<compile_context>
chip_gen: v7x
topology: tpu7x:2x2x1
jax: 0.10.0
libtpu: 0.0.40
codegen_flags: <defaults>
</compile_context>

<pallas_src>
import functools

import jax
import jax.numpy as jnp
from jax import lax
from jax.experimental import pallas as pl
from jax.experimental.pallas import tpu as pltpu

_NEG_BIG = -1e30  # "minus infinity" that stays NaN-free under subtraction


def _stable_softplus(x):
    return jnp.maximum(x, 0.0) + jnp.log1p(jnp.exp(-jnp.abs(x)))


def _circle_loss_kernel(pos_ref, neg_ref, dist_ref, out_ref, col_acc, rs_ref, *,
                        n_valid, m_valid, mask_rows, mask_lanes,
                        pos_margin, neg_margin, pos_optimal, neg_optimal,
                        log_scale):
    i = pl.program_id(0)
    tn, m_blk = dist_ref.shape

    # rows of the consolidated (8, m_blk) column accumulator
    cmax_p = col_acc.at[0:1, :]
    cmax_n = col_acc.at[1:2, :]
    csum_p = col_acc.at[2:3, :]
    csum_n = col_acc.at[3:4, :]
    cpos_cnt = col_acc.at[4:5, :]
    cneg_cnt = col_acc.at[5:6, :]

    @pl.when(i == 0)
    def _init():
        col_acc[...] = jnp.zeros((8, m_blk), jnp.float32)
        col_acc[0:2, :] = jnp.full((2, m_blk), _NEG_BIG, jnp.float32)
        rs_ref[0] = 0.0
        rs_ref[1] = 0.0
        out_ref[0] = 0.0

    d = dist_ref[...].astype(jnp.float32)
    pos_b = pos_ref[...]
    neg_b = neg_ref[...]

    # Validity of edge-padded rows / lanes.  These branches are *static* Python
    # (the wrapper knows whether any padding exists), so fully-tiled inputs pay
    # zero masking cost.  Padded entries must be excluded (arg -> -inf), because
    # arg == 0 entries legitimately contribute exp(0) to the logsumexp here.
    valid = None
    if mask_rows:
        row_ids = i * tn + lax.broadcasted_iota(jnp.int32, (tn, 1), 0)
        valid = row_ids < n_valid
    if mask_lanes:
        lane_ids = lax.broadcasted_iota(jnp.int32, (1, m_blk), 1)
        lane_ok = lane_ids < m_valid
        valid = lane_ok if valid is None else jnp.logical_and(valid, lane_ok)
    if valid is not None:
        pos_b = jnp.logical_and(pos_b, valid)
        neg_b = jnp.logical_and(neg_b, valid)
        fill = jnp.where(valid, jnp.float32(0.0), jnp.float32(_NEG_BIG))
    else:
        fill = jnp.float32(0.0)

    pos_f = pos_b.astype(jnp.float32)
    neg_f = neg_b.astype(jnp.float32)
    pos_row = jnp.sum(pos_f, axis=1, keepdims=True)          # (tn, 1)
    neg_row = jnp.sum(neg_f, axis=1, keepdims=True)
    row_ok = jnp.logical_and(pos_row > 0.0, neg_row > 0.0)   # padded rows -> False

    cpos_cnt[...] += jnp.sum(pos_f, axis=0, keepdims=True)   # (1, m_blk)
    cneg_cnt[...] += jnp.sum(neg_f, axis=0, keepdims=True)

    def one_side(arg, cmax_ref, csum_ref):
        # row logsumexp for this tile
        mr = jnp.max(arg, axis=1, keepdims=True)              # (tn, 1)
        e_r = jnp.exp(arg - mr)
        lse_row = mr + jnp.log(jnp.sum(e_r, axis=1, keepdims=True))
        # per-column ONLINE logsumexp (running per-column max + rescaled sum)
        cm_tile = jnp.max(arg, axis=0, keepdims=True)         # (1, m_blk)
        new_cmax = jnp.maximum(cmax_ref[...], cm_tile)
        e_c = jnp.exp(arg - new_cmax)                         # exponent <= 0, no overflow
        csum_ref[...] = (csum_ref[...] * jnp.exp(cmax_ref[...] - new_cmax)
                         + jnp.sum(e_c, axis=0, keepdims=True))
        cmax_ref[...] = new_cmax
        return lse_row

    # positive side first (fully consumed), then negative -> lower vreg pressure
    pos_arg = jnp.where(
        pos_b,
        log_scale * (d - pos_margin) * jnp.maximum(d - pos_optimal, 0.0),
        fill)
    lse_pos_row = one_side(pos_arg, cmax_p, csum_p)

    neg_arg = jnp.where(
        neg_b,
        log_scale * (neg_margin - d) * jnp.maximum(neg_optimal - d, 0.0),
        fill)
    lse_neg_row = one_side(neg_arg, cmax_n, csum_n)

    loss_row = _stable_softplus(lse_pos_row + lse_neg_row) / log_scale
    loss_row = jnp.where(row_ok, loss_row, 0.0)
    rs_ref[0] += jnp.sum(loss_row)
    rs_ref[1] += jnp.sum(row_ok.astype(jnp.float32))

    @pl.when(i == pl.num_programs(0) - 1)
    def _finalize():
        lse_pos_col = cmax_p[...] + jnp.log(csum_p[...])
        lse_neg_col = cmax_n[...] + jnp.log(csum_n[...])
        loss_col = _stable_softplus(lse_pos_col + lse_neg_col) / log_scale
        col_ok = jnp.logical_and(cpos_cnt[...] > 0.5, cneg_cnt[...] > 0.5)
        loss_col = jnp.where(col_ok, loss_col, 0.0)
        # NOTE: like the PyTorch reference, this yields NaN if no valid rows/cols.
        mean_col = jnp.sum(loss_col) / jnp.sum(col_ok.astype(jnp.float32))
        mean_row = rs_ref[0] / rs_ref[1]
        out_ref[0] = 0.5 * (mean_row + mean_col)


def _round_up(x, k):
    return (x + k - 1) // k * k


def _choose_row_tile(n, m_blk, row_tile):
    # ~28 B of VMEM per (row, lane) element: double-buffered inputs
    # (f32 dists + 2 bool masks = 6 B, x2 buffers) plus ~4 live f32 temporaries.
    budget = 12 * 1024 * 1024                      # fits default scoped VMEM on v5e/v6e/v7x
    cap = max(32, (budget // (28 * m_blk)) // 32 * 32)
    t = max(32, (min(int(row_tile), cap) // 32) * 32)
    if n <= t:
        return _round_up(n, 32)                    # single (possibly edge-padded) block
    for tn in range(t, max(31, t // 2 - 1), -32):  # prefer a divisor of n (no ragged tile)
        if n % tn == 0:
            return tn
    return t                                       # ragged last tile -> in-kernel row mask


def weighted_circle_loss_pallas(pos_masks, neg_masks, feat_dists,
                                pos_margin, neg_margin,
                                pos_optimal, neg_optimal, log_scale,
                                *, row_tile=512):
    # TODO(synk): optional pos_scales / neg_scales are not supported (None path only).
    # TODO(synk): on v7x the row loop could be split "parallel" across the two
    # TensorCores with per-core column/row accumulators + a tiny combine step.
    n, m = feat_dists.shape
    if pos_masks.dtype != jnp.bool_:
        pos_masks = pos_masks != 0
    if neg_masks.dtype != jnp.bool_:
        neg_masks = neg_masks != 0

    m_blk = _round_up(m, 128)                      # lane-dense blocks; pad lanes masked in-kernel
    tn = _choose_row_tile(n, m_blk, row_tile)
    grid = (pl.cdiv(n, tn),)
    mask_rows = (n % tn) != 0
    mask_lanes = m_blk != m

    kernel = functools.partial(
        _circle_loss_kernel,
        n_valid=n, m_valid=m, mask_rows=mask_rows, mask_lanes=mask_lanes,
        pos_margin=float(pos_margin), neg_margin=float(neg_margin),
        pos_optimal=float(pos_optimal), neg_optimal=float(neg_optimal),
        log_scale=float(log_scale))

    out = pl.pallas_call(
        kernel,
        out_shape=jax.ShapeDtypeStruct((1,), jnp.float32),
        grid=grid,
        in_specs=[
            pl.BlockSpec((tn, m_blk), lambda i: (i, 0)),   # pos mask (bool)
            pl.BlockSpec((tn, m_blk), lambda i: (i, 0)),   # neg mask (bool)
            pl.BlockSpec((tn, m_blk), lambda i: (i, 0)),   # feat dists
        ],
        out_specs=pl.BlockSpec(memory_space=pltpu.MemorySpace.SMEM),
        scratch_shapes=[
            # rows 0..5: cmax_p, cmax_n, csum_p, csum_n, cpos_cnt, cneg_cnt
            pltpu.VMEM((8, m_blk), jnp.float32),
            pltpu.SMEM((2,), jnp.float32),                 # [row loss sum, valid-row count]
        ],
        compiler_params=pltpu.CompilerParams(
            dimension_semantics=("arbitrary",),
            vmem_limit_bytes=32 * 1024 * 1024),
    )(pos_masks, neg_masks, feat_dists)
    return out[0]


class WeightedCircleLoss:
    """JAX/Pallas port of the PyTorch WeightedCircleLoss module (forward only)."""

    def __init__(self, pos_margin, neg_margin, pos_optimal, neg_optimal,
                 log_scale):
        self.pos_margin = pos_margin
        self.neg_margin = neg_margin
        self.pos_optimal = pos_optimal
        self.neg_optimal = neg_optimal
        self.log_scale = log_scale

    def __call__(self, pos_masks, neg_masks, feat_dists):
        return weighted_circle_loss_pallas(
            pos_masks, neg_masks, feat_dists,
            self.pos_margin, self.neg_margin,
            self.pos_optimal, self.neg_optimal, self.log_scale)


def _reference(pos_masks, neg_masks, feat_dists,
               pos_margin, neg_margin, pos_optimal, neg_optimal, log_scale):
    # pure-JAX reference used only for a correctness sanity check
    pos = pos_masks.astype(jnp.float32)
    neg = neg_masks.astype(jnp.float32)
    d = feat_dists.astype(jnp.float32)
    row_masks = (pos.sum(-1) > 0) & (neg.sum(-1) > 0)
    col_masks = (pos.sum(-2) > 0) & (neg.sum(-2) > 0)
    pos_w = jnp.maximum(d - 100000.0 * (1.0 - pos) - pos_optimal, 0.0)
    neg_w = jnp.maximum(neg_optimal - (d + 100000.0 * (1.0 - neg)), 0.0)
    lpr = jax.nn.logsumexp(log_scale * (d - pos_margin) * pos_w, axis=-1)
    lpc = jax.nn.logsumexp(log_scale * (d - pos_margin) * pos_w, axis=-2)
    lnr = jax.nn.logsumexp(log_scale * (neg_margin - d) * neg_w, axis=-1)
    lnc = jax.nn.logsumexp(log_scale * (neg_margin - d) * neg_w, axis=-2)
    loss_row = jax.nn.softplus(lpr + lnr) / log_scale
    loss_col = jax.nn.softplus(lpc + lnc) / log_scale
    rf = row_masks.astype(jnp.float32)
    cf = col_masks.astype(jnp.float32)
    mr = jnp.sum(loss_row * rf) / jnp.sum(rf)
    mc = jnp.sum(loss_col * cf) / jnp.sum(cf)
    return 0.5 * (mr + mc)


if __name__ == "__main__":
    # GeoTransformer default hyperparameters
    pos_margin, neg_margin = 0.1, 1.4
    pos_optimal, neg_optimal = 0.1, 1.4
    log_scale = 24.0

    loss_fn = WeightedCircleLoss(pos_margin, neg_margin, pos_optimal,
                                 neg_optimal, log_scale)

    key = jax.random.PRNGKey(0)
    # (200,160): single padded block, lane pad; (256,128): exact tiling, no masking;
    # (48,96): tiny padded block; (530,192): multi-tile + ragged rows + lane pad,
    #           wider distance range to exercise the per-column online logsumexp.
    cases = [(200, 160, 2.0), (256, 128, 2.0), (48, 96, 2.0), (530, 192, 3.0)]
    for (n, m, dmax) in cases:
        key, k1, k2 = jax.random.split(key, 3)
        feat_dists = jax.random.uniform(k1, (n, m), jnp.float32, 0.0, dmax)
        corr = jax.random.uniform(k2, (n, m), jnp.float32)
        pos_masks = corr < 0.15                       # "positive" correspondences
        neg_masks = jnp.logical_and(corr > 0.4, feat_dists > 0.3)

        loss = loss_fn(pos_masks, neg_masks, feat_dists)
        jax.block_until_ready(loss)

        ref = _reference(pos_masks, neg_masks, feat_dists, pos_margin,
                         neg_margin, pos_optimal, neg_optimal, log_scale)
        assert jnp.allclose(loss, ref, rtol=2e-4, atol=2e-4), (n, m, loss, ref)

    print("KERNEL_OK")
</pallas_src>

<mosaic_0001>
module attributes {stable_mosaic.version = 11 : i64} {
  func.func @_circle_loss_kernel(%arg0: i32, %arg1: memref<224x256xi32, #tpu.memory_space<vmem>>, %arg2: memref<224x256xi32, #tpu.memory_space<vmem>>, %arg3: memref<224x256xf32, #tpu.memory_space<vmem>>, %arg4: memref<1xf32, #tpu.memory_space<smem>>, %arg5: memref<8x256xf32, #tpu.memory_space<vmem>>, %arg6: memref<2xf32, #tpu.memory_space<smem>>) attributes {dimension_semantics = [#tpu.dimension_semantics<arbitrary>], iteration_bounds = array<i64: 1>, scalar_prefetch = 0 : i64, scratch_operands = 2 : i64, tpu.core_type = #tpu.core_type<tc>, window_params = [{transform_indices = @transform_0, window_bounds = array<i64: 224, 256>}, {transform_indices = @transform_1, window_bounds = array<i64: 224, 256>}, {transform_indices = @transform_2, window_bounds = array<i64: 224, 256>}, {transform_indices = @transform_3, window_bounds = array<i64: 1>}]} {
    %c0_i32 = arith.constant 0 : i32
    %0 = arith.cmpi eq, %arg0, %c0_i32 : i32
    %1 = arith.extui %0 : i1 to i32
    %c0_i32_0 = arith.constant 0 : i32
    %2 = arith.cmpi ne, %1, %c0_i32_0 : i32
    scf.if %2 {
      %cst_66 = arith.constant 0.000000e+00 : f32
      %152 = vector.broadcast %cst_66 : f32 to vector<8x256xf32>
      %c0_67 = arith.constant 0 : index
      %c0_68 = arith.constant 0 : index
      %153 = vector.load %arg5[%c0_67, %c0_68] : memref<8x256xf32, #tpu.memory_space<vmem>>, vector<8x256xf32>
      tpu.vector_store %arg5[%c0_67, %c0_68], %152 {strides = array<i32>} : memref<8x256xf32, #tpu.memory_space<vmem>>, vector<8x256xf32>,
      %cst_69 = arith.constant -1.000000e+30 : f32
      %154 = vector.broadcast %cst_69 : f32 to vector<2x256xf32>
      %c0_70 = arith.constant 0 : index
      %c0_71 = arith.constant 0 : index
      %155 = vector.load %arg5[%c0_70, %c0_71] : memref<8x256xf32, #tpu.memory_space<vmem>>, vector<2x256xf32>
      tpu.vector_store %arg5[%c0_70, %c0_71], %154 {strides = array<i32>} : memref<8x256xf32, #tpu.memory_space<vmem>>, vector<2x256xf32>,
      %cst_72 = arith.constant 0.000000e+00 : f32
      %c0_73 = arith.constant 0 : index
      %156 = memref.load %arg6[%c0_73] : memref<2xf32, #tpu.memory_space<smem>>
      memref.store %cst_72, %arg6[%c0_73] : memref<2xf32, #tpu.memory_space<smem>>
      %cst_74 = arith.constant 0.000000e+00 : f32
      %c1_75 = arith.constant 1 : index
      %157 = memref.load %arg6[%c1_75] : memref<2xf32, #tpu.memory_space<smem>>
      memref.store %cst_74, %arg6[%c1_75] : memref<2xf32, #tpu.memory_space<smem>>
      %cst_76 = arith.constant 0.000000e+00 : f32
      %c0_77 = arith.constant 0 : index
      %158 = memref.load %arg4[%c0_77] : memref<1xf32, #tpu.memory_space<smem>>
      memref.store %cst_76, %arg4[%c0_77] : memref<1xf32, #tpu.memory_space<smem>>
    } else {
    }
    %c0 = arith.constant 0 : index
    %c0_1 = arith.constant 0 : index
    %3 = vector.load %arg3[%c0, %c0_1] : memref<224x256xf32, #tpu.memory_space<vmem>>, vector<224x256xf32>
    %c0_2 = arith.constant 0 : index
    %c0_3 = arith.constant 0 : index
    %4 = vector.load %arg1[%c0_2, %c0_3] : memref<224x256xi32, #tpu.memory_space<vmem>>, vector<224x256xi32>
    %cst = arith.constant dense<0> : vector<224x256xi32>
    %5 = arith.cmpi ne, %4, %cst : vector<224x256xi32>
    %c0_4 = arith.constant 0 : index
    %c0_5 = arith.constant 0 : index
    %6 = vector.load %arg2[%c0_4, %c0_5] : memref<224x256xi32, #tpu.memory_space<vmem>>, vector<224x256xi32>
    %cst_6 = arith.constant dense<0> : vector<224x256xi32>
    %7 = arith.cmpi ne, %6, %cst_6 : vector<224x256xi32>
    %c224_i32 = arith.constant 224 : i32
    %8 = arith.muli %arg0, %c224_i32 : i32
    %9 = tpu.iota {dimensions = array<i32: 0>} : vector<224x1xi32>
    %10 = vector.broadcast %8 : i32 to vector<224x1xi32>
    %11 = arith.addi %10, %9 : vector<224x1xi32>
    %c200_i32 = arith.constant 200 : i32
    %12 = vector.broadcast %c200_i32 : i32 to vector<224x1xi32>
    %13 = arith.cmpi slt, %11, %12 : vector<224x1xi32>
    %14 = tpu.iota {dimensions = array<i32: 1>} : vector<1x256xi32>
    %c160_i32 = arith.constant 160 : i32
    %15 = vector.broadcast %c160_i32 : i32 to vector<1x256xi32>
    %16 = arith.cmpi slt, %14, %15 : vector<1x256xi32>
    %17 = vector.broadcast %13 : vector<224x1xi1> to vector<224x256xi1>
    %18 = vector.broadcast %16 : vector<1x256xi1> to vector<224x256xi1>
    %19 = arith.andi %17, %18 : vector<224x256xi1>
    %20 = arith.andi %5, %19 : vector<224x256xi1>
    %21 = arith.andi %7, %19 : vector<224x256xi1>
    %cst_7 = arith.constant 0.000000e+00 : f32
    %cst_8 = arith.constant -1.000000e+30 : f32
    %22 = vector.broadcast %cst_7 : f32 to vector<224x256xf32>
    %23 = vector.broadcast %cst_8 : f32 to vector<224x256xf32>
    %24 = arith.select %19, %22, %23 : vector<224x256xi1>, vector<224x256xf32>
    %25 = arith.extui %20 : vector<224x256xi1> to vector<224x256xi32>
    %26 = arith.sitofp %25 : vector<224x256xi32> to vector<224x256xf32>
    %27 = arith.extui %21 : vector<224x256xi1> to vector<224x256xi32>
    %28 = arith.sitofp %27 : vector<224x256xi32> to vector<224x256xf32>
    %cst_9 = arith.constant dense<0.000000e+00> : vector<224xf32>
    %29 = vector.multi_reduction <add>, %26, %cst_9 [1] : vector<224x256xf32> to vector<224xf32>
    %30 = vector.shape_cast %29 : vector<224xf32> to vector<224x1xf32>
    %cst_10 = arith.constant dense<0.000000e+00> : vector<224xf32>
    %31 = vector.multi_reduction <add>, %28, %cst_10 [1] : vector<224x256xf32> to vector<224xf32>
    %32 = vector.shape_cast %31 : vector<224xf32> to vector<224x1xf32>
    %cst_11 = arith.constant 0.000000e+00 : f32
    %33 = vector.broadcast %cst_11 : f32 to vector<224x1xf32>
    %34 = arith.cmpf ogt, %30, %33 : vector<224x1xf32>
    %cst_12 = arith.constant 0.000000e+00 : f32
    %35 = vector.broadcast %cst_12 : f32 to vector<224x1xf32>
    %36 = arith.cmpf ogt, %32, %35 : vector<224x1xf32>
    %37 = arith.andi %34, %36 : vector<224x1xi1>
    %c4 = arith.constant 4 : index
    %c0_13 = arith.constant 0 : index
    %38 = vector.load %arg5[%c4, %c0_13] : memref<8x256xf32, #tpu.memory_space<vmem>>, vector<1x256xf32>
    %cst_14 = arith.constant dense<0.000000e+00> : vector<256xf32>
    %39 = vector.multi_reduction <add>, %26, %cst_14 [0] : vector<224x256xf32> to vector<256xf32>
    %40 = vector.shape_cast %39 : vector<256xf32> to vector<1x256xf32>
    %41 = arith.addf %38, %40 : vector<1x256xf32>
    %c4_15 = arith.constant 4 : index
    %c0_16 = arith.constant 0 : index
    %42 = vector.load %arg5[%c4_15, %c0_16] : memref<8x256xf32, #tpu.memory_space<vmem>>, vector<1x256xf32>
    tpu.vector_store %arg5[%c4_15, %c0_16], %41 {strides = array<i32>} : memref<8x256xf32, #tpu.memory_space<vmem>>, vector<1x256xf32>,
    %c5 = arith.constant 5 : index
    %c0_17 = arith.constant 0 : index
    %43 = vector.load %arg5[%c5, %c0_17] : memref<8x256xf32, #tpu.memory_space<vmem>>, vector<1x256xf32>
    %cst_18 = arith.constant dense<0.000000e+00> : vector<256xf32>
    %44 = vector.multi_reduction <add>, %28, %cst_18 [0] : vector<224x256xf32> to vector<256xf32>
    %45 = vector.shape_cast %44 : vector<256xf32> to vector<1x256xf32>
    %46 = arith.addf %43, %45 : vector<1x256xf32>
    %c5_19 = arith.constant 5 : index
    %c0_20 = arith.constant 0 : index
    %47 = vector.load %arg5[%c5_19, %c0_20] : memref<8x256xf32, #tpu.memory_space<vmem>>, vector<1x256xf32>
    tpu.vector_store %arg5[%c5_19, %c0_20], %46 {strides = array<i32>} : memref<8x256xf32, #tpu.memory_space<vmem>>, vector<1x256xf32>,
    %cst_21 = arith.constant 1.000000e-01 : f32
    %48 = vector.broadcast %cst_21 : f32 to vector<224x256xf32>
    %49 = arith.subf %3, %48 : vector<224x256xf32>
    %cst_22 = arith.constant 2.400000e+01 : f32
    %50 = vector.broadcast %cst_22 : f32 to vector<224x256xf32>
    %51 = arith.mulf %50, %49 : vector<224x256xf32>
    %cst_23 = arith.constant 1.000000e-01 : f32
    %52 = vector.broadcast %cst_23 : f32 to vector<224x256xf32>
    %53 = arith.subf %3, %52 : vector<224x256xf32>
    %cst_24 = arith.constant 0.000000e+00 : f32
    %54 = vector.broadcast %cst_24 : f32 to vector<224x256xf32>
    %55 = arith.maximumf %53, %54 : vector<224x256xf32>
    %56 = arith.mulf %51, %55 : vector<224x256xf32>
    %57 = arith.select %20, %56, %24 : vector<224x256xi1>, vector<224x256xf32>
    %cst_25 = arith.constant dense<0xFF800000> : vector<224xf32>
    %58 = vector.multi_reduction <maximumf>, %57, %cst_25 [1] : vector<224x256xf32> to vector<224xf32>
    %59 = vector.shape_cast %58 : vector<224xf32> to vector<224x1xf32>
    %60 = vector.broadcast %59 : vector<224x1xf32> to vector<224x256xf32>
    %61 = arith.subf %57, %60 : vector<224x256xf32>
    %62 = math.exp %61 : vector<224x256xf32>
    %cst_26 = arith.constant dense<0.000000e+00> : vector<224xf32>
    %63 = vector.multi_reduction <add>, %62, %cst_26 [1] : vector<224x256xf32> to vector<224xf32>
    %64 = vector.shape_cast %63 : vector<224xf32> to vector<224x1xf32>
    %65 = math.log %64 : vector<224x1xf32>
    %66 = arith.addf %59, %65 : vector<224x1xf32>
    %cst_27 = arith.constant dense<0xFF800000> : vector<256xf32>
    %67 = vector.multi_reduction <maximumf>, %57, %cst_27 [0] : vector<224x256xf32> to vector<256xf32>
    %68 = vector.shape_cast %67 : vector<256xf32> to vector<1x256xf32>
    %c0_28 = arith.constant 0 : index
    %c0_29 = arith.constant 0 : index
    %69 = vector.load %arg5[%c0_28, %c0_29] : memref<8x256xf32, #tpu.memory_space<vmem>>, vector<1x256xf32>
    %70 = arith.maximumf %69, %68 : vector<1x256xf32>
    %71 = vector.broadcast %70 : vector<1x256xf32> to vector<224x256xf32>
    %72 = arith.subf %57, %71 : vector<224x256xf32>
    %73 = math.exp %72 : vector<224x256xf32>
    %c2 = arith.constant 2 : index
    %c0_30 = arith.constant 0 : index
    %74 = vector.load %arg5[%c2, %c0_30] : memref<8x256xf32, #tpu.memory_space<vmem>>, vector<1x256xf32>
    %c0_31 = arith.constant 0 : index
    %c0_32 = arith.constant 0 : index
    %75 = vector.load %arg5[%c0_31, %c0_32] : memref<8x256xf32, #tpu.memory_space<vmem>>, vector<1x256xf32>
    %76 = arith.subf %75, %70 : vector<1x256xf32>
    %77 = math.exp %76 : vector<1x256xf32>
    %78 = arith.mulf %74, %77 : vector<1x256xf32>
    %cst_33 = arith.constant dense<0.000000e+00> : vector<256xf32>
    %79 = vector.multi_reduction <add>, %73, %cst_33 [0] : vector<224x256xf32> to vector<256xf32>
    %80 = vector.shape_cast %79 : vector<256xf32> to vector<1x256xf32>
    %81 = arith.addf %78, %80 : vector<1x256xf32>
    %c2_34 = arith.constant 2 : index
    %c0_35 = arith.constant 0 : index
    %82 = vector.load %arg5[%c2_34, %c0_35] : memref<8x256xf32, #tpu.memory_space<vmem>>, vector<1x256xf32>
    tpu.vector_store %arg5[%c2_34, %c0_35], %81 {strides = array<i32>} : memref<8x256xf32, #tpu.memory_space<vmem>>, vector<1x256xf32>,
    %c0_36 = arith.constant 0 : index
    %c0_37 = arith.constant 0 : index
    %83 = vector.load %arg5[%c0_36, %c0_37] : memref<8x256xf32, #tpu.memory_space<vmem>>, vector<1x256xf32>
    tpu.vector_store %arg5[%c0_36, %c0_37], %70 {strides = array<i32>} : memref<8x256xf32, #tpu.memory_space<vmem>>, vector<1x256xf32>,
    %cst_38 = arith.constant 1.400000e+00 : f32
    %84 = vector.broadcast %cst_38 : f32 to vector<224x256xf32>
    %85 = arith.subf %84, %3 : vector<224x256xf32>
    %cst_39 = arith.constant 2.400000e+01 : f32
    %86 = vector.broadcast %cst_39 : f32 to vector<224x256xf32>
    %87 = arith.mulf %86, %85 : vector<224x256xf32>
    %cst_40 = arith.constant 1.400000e+00 : f32
    %88 = vector.broadcast %cst_40 : f32 to vector<224x256xf32>
    %89 = arith.subf %88, %3 : vector<224x256xf32>
    %cst_41 = arith.constant 0.000000e+00 : f32
    %90 = vector.broadcast %cst_41 : f32 to vector<224x256xf32>
    %91 = arith.maximumf %89, %90 : vector<224x256xf32>
    %92 = arith.mulf %87, %91 : vector<224x256xf32>
    %93 = arith.select %21, %92, %24 : vector<224x256xi1>, vector<224x256xf32>
    %cst_42 = arith.constant dense<0xFF800000> : vector<224xf32>
    %94 = vector.multi_reduction <maximumf>, %93, %cst_42 [1] : vector<224x256xf32> to vector<224xf32>
    %95 = vector.shape_cast %94 : vector<224xf32> to vector<224x1xf32>
    %96 = vector.broadcast %95 : vector<224x1xf32> to vector<224x256xf32>
    %97 = arith.subf %93, %96 : vector<224x256xf32>
    %98 = math.exp %97 : vector<224x256xf32>
    %cst_43 = arith.constant dense<0.000000e+00> : vector<224xf32>
    %99 = vector.multi_reduction <add>, %98, %cst_43 [1] : vector<224x256xf32> to vector<224xf32>
    %100 = vector.shape_cast %99 : vector<224xf32> to vector<224x1xf32>
    %101 = math.log %100 : vector<224x1xf32>
    %102 = arith.addf %95, %101 : vector<224x1xf32>
    %cst_44 = arith.constant dense<0xFF800000> : vector<256xf32>
    %103 = vector.multi_reduction <maximumf>, %93, %cst_44 [0] : vector<224x256xf32> to vector<256xf32>
    %104 = vector.shape_cast %103 : vector<256xf32> to vector<1x256xf32>
    %c1 = arith.constant 1 : index
    %c0_45 = arith.constant 0 : index
    %105 = vector.load %arg5[%c1, %c0_45] : memref<8x256xf32, #tpu.memory_space<vmem>>, vector<1x256xf32>
    %106 = arith.maximumf %105, %104 : vector<1x256xf32>
    %107 = vector.broadcast %106 : vector<1x256xf32> to vector<224x256xf32>
    %108 = arith.subf %93, %107 : vector<224x256xf32>
    %109 = math.exp %108 : vector<224x256xf32>
    %c3 = arith.constant 3 : index
    %c0_46 = arith.constant 0 : index
    %110 = vector.load %arg5[%c3, %c0_46] : memref<8x256xf32, #tpu.memory_space<vmem>>, vector<1x256xf32>
    %c1_47 = arith.constant 1 : index
    %c0_48 = arith.constant 0 : index
    %111 = vector.load %arg5[%c1_47, %c0_48] : memref<8x256xf32, #tpu.memory_space<vmem>>, vector<1x256xf32>
    %112 = arith.subf %111, %106 : vector<1x256xf32>
    %113 = math.exp %112 : vector<1x256xf32>
    %114 = arith.mulf %110, %113 : vector<1x256xf32>
    %cst_49 = arith.constant dense<0.000000e+00> : vector<256xf32>
    %115 = vector.multi_reduction <add>, %109, %cst_49 [0] : vector<224x256xf32> to vector<256xf32>
    %116 = vector.shape_cast %115 : vector<256xf32> to vector<1x256xf32>
    %117 = arith.addf %114, %116 : vector<1x256xf32>
    %c3_50 = arith.constant 3 : index
    %c0_51 = arith.constant 0 : index
    %118 = vector.load %arg5[%c3_50, %c0_51] : memref<8x256xf32, #tpu.memory_space<vmem>>, vector<1x256xf32>
    tpu.vector_store %arg5[%c3_50, %c0_51], %117 {strides = array<i32>} : memref<8x256xf32, #tpu.memory_space<vmem>>, vector<1x256xf32>,
    %c1_52 = arith.constant 1 : index
    %c0_53 = arith.constant 0 : index
    %119 = vector.load %arg5[%c1_52, %c0_53] : memref<8x256xf32, #tpu.memory_space<vmem>>, vector<1x256xf32>
    tpu.vector_store %arg5[%c1_52, %c0_53], %106 {strides = array<i32>} : memref<8x256xf32, #tpu.memory_space<vmem>>, vector<1x256xf32>,
    %120 = arith.addf %66, %102 : vector<224x1xf32>
    %cst_54 = arith.constant 0.000000e+00 : f32
    %121 = vector.broadcast %cst_54 : f32 to vector<224x1xf32>
    %122 = arith.maximumf %120, %121 : vector<224x1xf32>
    %123 = math.absf %120 : vector<224x1xf32>
    %cst_55 = arith.constant 0.000000e+00 : f32
    %124 = vector.broadcast %cst_55 : f32 to vector<224x1xf32>
    %125 = arith.subf %124, %123 : vector<224x1xf32>
    %126 = math.exp %125 : vector<224x1xf32>
    %127 = math.log1p %126 : vector<224x1xf32>
    %128 = arith.addf %122, %127 : vector<224x1xf32>
    %cst_56 = arith.constant 2.400000e+01 : f32
    %129 = vector.broadcast %cst_56 : f32 to vector<224x1xf32>
    %130 = arith.divf %128, %129 : vector<224x1xf32>
    %cst_57 = arith.constant 0.000000e+00 : f32
    %131 = vector.broadcast %cst_57 : f32 to vector<224x1xf32>
    %132 = arith.select %37, %130, %131 : vector<224x1xi1>, vector<224x1xf32>
    %c0_58 = arith.constant 0 : index
    %133 = memref.load %arg6[%c0_58] : memref<2xf32, #tpu.memory_space<smem>>
    %134 = vector.shape_cast %132 : vector<224x1xf32> to vector<1x224x1xf32>
    %cst_59 = arith.constant dense<0.000000e+00> : vector<1xf32>
    %135 = vector.multi_reduction <add>, %134, %cst_59 [1, 2] : vector<1x224x1xf32> to vector<1xf32>
    %136 = vector.shape_cast %135 : vector<1xf32> to vector<1x1x1xf32>
    %137 = vector.extract %136[0, 0, 0] : f32 from vector<1x1x1xf32>
    %138 = arith.addf %133, %137 : f32
    %c0_60 = arith.constant 0 : index
    %139 = memref.load %arg6[%c0_60] : memref<2xf32, #tpu.memory_space<smem>>
    memref.store %138, %arg6[%c0_60] : memref<2xf32, #tpu.memory_space<smem>>
    %c1_61 = arith.constant 1 : index
    %140 = memref.load %arg6[%c1_61] : memref<2xf32, #tpu.memory_space<smem>>
    %141 = arith.extui %37 : vector<224x1xi1> to vector<224x1xi32>
    %142 = arith.sitofp %141 : vector<224x1xi32> to vector<224x1xf32>
    %143 = vector.shape_cast %142 : vector<224x1xf32> to vector<1x224x1xf32>
    %cst_62 = arith.constant dense<0.000000e+00> : vector<1xf32>
    %144 = vector.multi_reduction <add>, %143, %cst_62 [1, 2] : vector<1x224x1xf32> to vector<1xf32>
    %145 = vector.shape_cast %144 : vector<1xf32> to vector<1x1x1xf32>
    %146 = vector.extract %145[0, 0, 0] : f32 from vector<1x1x1xf32>
    %147 = arith.addf %140, %146 : f32
    %c1_63 = arith.constant 1 : index
    %148 = memref.load %arg6[%c1_63] : memref<2xf32, #tpu.memory_space<smem>>
    memref.store %147, %arg6[%c1_63] : memref<2xf32, #tpu.memory_space<smem>>
    %c0_i32_64 = arith.constant 0 : i32
    %149 = arith.cmpi eq, %arg0, %c0_i32_64 : i32
    %150 = arith.extui %149 : i1 to i32
    %c0_i32_65 = arith.constant 0 : i32
    %151 = arith.cmpi ne, %150, %c0_i32_65 : i32
    scf.if %151 {
      %c0_66 = arith.constant 0 : index
      %c0_67 = arith.constant 0 : index
      %152 = vector.load %arg5[%c0_66, %c0_67] : memref<8x256xf32, #tpu.memory_space<vmem>>, vector<1x256xf32>
      %c2_68 = arith.constant 2 : index
      %c0_69 = arith.constant 0 : index
      %153 = vector.load %arg5[%c2_68, %c0_69] : memref<8x256xf32, #tpu.memory_space<vmem>>, vector<1x256xf32>
      %154 = math.log %153 : vector<1x256xf32>
      %155 = arith.addf %152, %154 : vector<1x256xf32>
      %c1_70 = arith.constant 1 : index
      %c0_71 = arith.constant 0 : index
      %156 = vector.load %arg5[%c1_70, %c0_71] : memref<8x256xf32, #tpu.memory_space<vmem>>, vector<1x256xf32>
      %c3_72 = arith.constant 3 : index
      %c0_73 = arith.constant 0 : index
      %157 = vector.load %arg5[%c3_72, %c0_73] : memref<8x256xf32, #tpu.memory_space<vmem>>, vector<1x256xf32>
      %158 = math.log %157 : vector<1x256xf32>
      %159 = arith.addf %156, %158 : vector<1x256xf32>
      %160 = arith.addf %155, %159 : vector<1x256xf32>
      %cst_74 = arith.constant 0.000000e+00 : f32
      %161 = vector.broadcast %cst_74 : f32 to vector<1x256xf32>
      %162 = arith.maximumf %160, %161 : vector<1x256xf32>
      %163 = math.absf %160 : vector<1x256xf32>
      %cst_75 = arith.constant 0.000000e+00 : f32
      %164 = vector.broadcast %cst_75 : f32 to vector<1x256xf32>
      %165 = arith.subf %164, %163 : vector<1x256xf32>
      %166 = math.exp %165 : vector<1x256xf32>
      %167 = math.log1p %166 : vector<1x256xf32>
      %168 = arith.addf %162, %167 : vector<1x256xf32>
      %cst_76 = arith.constant 2.400000e+01 : f32
      %169 = vector.broadcast %cst_76 : f32 to vector<1x256xf32>
      %170 = arith.divf %168, %169 : vector<1x256xf32>
      %c4_77 = arith.constant 4 : index
      %c0_78 = arith.constant 0 : index
      %171 = vector.load %arg5[%c4_77, %c0_78] : memref<8x256xf32, #tpu.memory_space<vmem>>, vector<1x256xf32>
      %cst_79 = arith.constant 5.000000e-01 : f32
      %172 = vector.broadcast %cst_79 : f32 to vector<1x256xf32>
      %173 = arith.cmpf ogt, %171, %172 : vector<1x256xf32>
      %c5_80 = arith.constant 5 : index
      %c0_81 = arith.constant 0 : index
      %174 = vector.load %arg5[%c5_80, %c0_81] : memref<8x256xf32, #tpu.memory_space<vmem>>, vector<1x256xf32>
      %cst_82 = arith.constant 5.000000e-01 : f32
      %175 = vector.broadcast %cst_82 : f32 to vector<1x256xf32>
      %176 = arith.cmpf ogt, %174, %175 : vector<1x256xf32>
      %177 = arith.andi %173, %176 : vector<1x256xi1>
      %cst_83 = arith.constant 0.000000e+00 : f32
      %178 = vector.broadcast %cst_83 : f32 to vector<1x256xf32>
      %179 = arith.select %177, %170, %178 : vector<1x256xi1>, vector<1x256xf32>
      %180 = vector.shape_cast %179 : vector<1x256xf32> to vector<1x1x256xf32>
      %cst_84 = arith.constant dense<0.000000e+00> : vector<1xf32>
      %181 = vector.multi_reduction <add>, %180, %cst_84 [1, 2] : vector<1x1x256xf32> to vector<1xf32>
      %182 = vector.shape_cast %181 : vector<1xf32> to vector<1x1x1xf32>
      %183 = vector.extract %182[0, 0, 0] : f32 from vector<1x1x1xf32>
      %184 = arith.extui %177 : vector<1x256xi1> to vector<1x256xi32>
      %185 = arith.sitofp %184 : vector<1x256xi32> to vector<1x256xf32>
      %186 = vector.shape_cast %185 : vector<1x256xf32> to vector<1x1x256xf32>
      %cst_85 = arith.constant dense<0.000000e+00> : vector<1xf32>
      %187 = vector.multi_reduction <add>, %186, %cst_85 [1, 2] : vector<1x1x256xf32> to vector<1xf32>
      %188 = vector.shape_cast %187 : vector<1xf32> to vector<1x1x1xf32>
      %189 = vector.extract %188[0, 0, 0] : f32 from vector<1x1x1xf32>
      %190 = arith.divf %183, %189 : f32
      %c0_86 = arith.constant 0 : index
      %191 = memref.load %arg6[%c0_86] : memref<2xf32, #tpu.memory_space<smem>>
      %c1_87 = arith.constant 1 : index
      %192 = memref.load %arg6[%c1_87] : memref<2xf32, #tpu.memory_space<smem>>
      %193 = arith.divf %191, %192 : f32
      %194 = arith.addf %193, %190 : f32
      %cst_88 = arith.constant 5.000000e-01 : f32
      %195 = arith.mulf %cst_88, %194 : f32
      %c0_89 = arith.constant 0 : index
      %196 = memref.load %arg4[%c0_89] : memref<1xf32, #tpu.memory_space<smem>>
      memref.store %195, %arg4[%c0_89] : memref<1xf32, #tpu.memory_space<smem>>
    } else {
    }
    return
  }
  func.func @transform_0(%arg0: i32) -> (i32, i32) {
    %c0_i32 = arith.constant 0 : i32
    %c0_i32_0 = arith.constant 0 : i32
    return %arg0, %c0_i32 : i32, i32
  }
  func.func @transform_1(%arg0: i32) -> (i32, i32) {
    %c0_i32 = arith.constant 0 : i32
    %c0_i32_0 = arith.constant 0 : i32
    return %arg0, %c0_i32 : i32, i32
  }
  func.func @transform_2(%arg0: i32) -> (i32, i32) {
    %c0_i32 = arith.constant 0 : i32
    %c0_i32_0 = arith.constant 0 : i32
    return %arg0, %c0_i32 : i32, i32
  }
  func.func @transform_3(%arg0: i32) -> i32 {
    %c0_i32 = arith.constant 0 : i32
    %c0_i32_0 = arith.constant 0 : i32
    return %c0_i32 : i32
  }
}

</mosaic_0001>

<bundles_post_ra>
// kernel: tpu_custom_call.1
= control target key start
LH: loop header
LB: loop body
LE: loop exit
PB: predicated region body
PF: predicated region fallthrough
CT: control target
= control target key end

     0   :  { %v9548_v3 = vlaneseq  ;;  %v9983_v28 = vmov 0  ;;  %v9546_v29 = vmov -1e+30   ;;  %v9988_v34 = vmov 0  ;;  %s9535_s0 = inlined_call_operand.vmem [shape: s32[200,160], index: 0, kind: input, shape index: {}]   ;;  %s9536_s1 = inlined_call_operand.vmem [shape: s32[200,160], index: 1, kind: input, shape index: {}]   ;;  %s9537_s2 = inlined_call_operand.vmem [shape: f32[200,160], index: 2, kind: input, shape index: {}]   ;;  %s9538_s3 = inlined_call_operand.hbm [shape: f32[1], index: 3, kind: output, shape index: {}]  }
   0x1   :  { %v29_v0 = vld [vmem:[%s9537_s2] sm:$0xff]  ;;  %v30_v1 = vld [vmem:[%s9537_s2 + $0x8] sm:$0xff]  ;;  %v5203_v17 = vld [vmem:[%s9535_s0 + $0x10] sm:$0xff]  ;;  %v9993_v52 = vmov 0 }
   0x2   :  { %v5183_v2 = vld [vmem:[%s9535_s0] sm:$0xff]  ;;  %v86_v4 = vld [vmem:[%s9535_s0 + $0x8] sm:$0xff]  ;;  %v4374_v5 = vadd.f32 -0.1, %v29_v0  ;;  %v4375_v6 = vadd.f32 -0.1, %v30_v1 }
   0x3   :  { %9979 = vst [vmem:[#allocation7_spill] sm:$0xff] %v5183_v2  ;;  %vm9558_vm0 = vcmp.ne.s32.totalorder %v5183_v2, 0  ;;  %v397_v7 = vand.u32 127, %v9548_v3  ;;  %v198_v8 = vld [vmem:[%s9536_s1 + $0x8] sm:$0xff]  ;;  %v2403_v9 = vsub.f32 1.4, %v29_v0 }
   0x4   :  { %v1399_v10 = vmul.f32 24.0, %v4374_v5  ;;  %v1400_v11 = vmul.f32 24.0, %v4375_v6  ;;  %v1455_v12 = vmax.f32 %v4374_v5, 0.0  ;;  %v1456_v13 = vmax.f32 %v4375_v6, 0.0  ;;  %v5196_v14 = vld [vmem:[%s9536_s1] sm:$0xff]  ;;  %9981 = vst [vmem:[#allocation9_spill] sm:$0xff] %v5203_v17 }
   0x5   :  { %9980 = vst [vmem:[#allocation8_spill] sm:$0xff] %v5196_v14  ;;  %vm142_vm1 = vcmp.ne.s32.totalorder %v86_v4, 0  ;;  %v5198_v15 = vadd.s32 128, %v397_v7  ;;  %vm254_vm2 = vcmp.ne.s32.totalorder %v198_v8, 0  ;;  %v2404_v16 = vsub.f32 1.4, %v30_v1 }
   0x6   :  { %v1511_v18 = vmul.f32 %v1455_v12, %v1399_v10  ;;  %v1512_v19 = vmul.f32 %v1456_v13, %v1400_v11  ;;  %v2459_v20 = vmul.f32 24.0, %v2403_v9  ;;  %v2515_v21 = vmax.f32 %v2403_v9, 0.0  ;;  %v31_v22 = vld [vmem:[%s9537_s2 + $0x10] sm:$0xff]  ;;  %v32_v23 = vld [vmem:[%s9537_s2 + $0x18] sm:$0xff]  ;;  %v33_v41 = vld [vmem:[%s9537_s2 + $0x20] sm:$0xff] }
   0x7   :  { %vm9595_vm3 = vcmp.lt.s32.totalorder %v5198_v15, 160  ;;  %vm9544_vm4 = vcmp.ne.s32.totalorder %v5196_v14, 0  ;;  %v2460_v24 = vmul.f32 24.0, %v2404_v16  ;;  %v2516_v25 = vmax.f32 %v2404_v16, 0.0  ;;  %v88_v26 = vld [vmem:[%s9535_s0 + $0x18] sm:$0xff]  ;;  %v5219_v27 = vld [vmem:[%s9536_s1 + $0x10] sm:$0xff] }
   0x8   :  { %9982 = vst [vmem:[#allocation10_spill] sm:$0xff] %v5219_v27  ;;  %vm5224_vm5 = vmand %vm142_vm1, %vm9595_vm3  ;;  %v5231_v30 = vsel %vm9595_vm3, 0.0, %v9546_v29  ;;  %v5235_v31 = vsel %vm9558_vm0, %v1511_v18, 0.0  ;;  %v2571_v32 = vmul.f32 %v2515_v21, %v2459_v20  ;;  %vm9545_vm6 = vcmp.ne.s32.totalorder %v5203_v17, 0  ;;  %v200_v40 = vld [vmem:[%s9536_s1 + $0x18] sm:$0xff]  ;;  %v90_v42 = vld [vmem:[%s9535_s0 + $0x28] sm:$0xff] }
   0x9   :  { %v9984_v28 = vsel %vm5224_vm5, 4294967295, %v9983_v28  ;;  %9986 = vst [vmem:[#allocation12_spill] sm:$0xff] %v5235_v31  ;;  %v5241_v33 = vsel %vm5224_vm5, %v1512_v19, %v5231_v30  ;;  %vm5246_vm7 = vmand %vm254_vm2, %vm9595_vm3  ;;  %v2572_v35 = vmul.f32 %v2516_v25, %v2460_v24  ;;  %v4376_v36 = vadd.f32 -0.1, %v31_v22  ;;  %v34_v51 = vld [vmem:[%s9537_s2 + $0x28] sm:$0xff]  ;;  %v5286_v54 = vld [vmem:[%s9535_s0 + $0x20] sm:$0xff] }
   0xa   :  { %9985 = vst [vmem:[#allocation11_spill] sm:$0xff] %v9984_v28  ;;  %9987 = vst [vmem:[#allocation13_spill] sm:$0xff] %v5241_v33  ;;  %v9989_v34 = vsel %vm5246_vm7, 4294967295, %v9988_v34  ;;  %v4377_v37 = vadd.f32 -0.1, %v32_v23  ;;  %v1623_v38 = vmax.f32 %v5235_v31, %v5241_v33  ;;  %v5254_v39 = vsel %vm9544_vm4, %v2571_v32, 0.0 }
   0xb   :  { %9990 = vst [vmem:[#allocation14_spill] sm:$0xff] %v9989_v34  ;;  %9991 = vst [vmem:[#allocation15_spill] sm:$0xff] %v5254_v39  ;;  %vm144_vm8 = vcmp.ne.s32.totalorder %v88_v26, 0  ;;  %vm9543_vm9 = vcmp.ne.s32.totalorder %v5219_v27, 0  ;;  %v5269_v43 = vsel %vm5246_vm7, %v2572_v35, %v5231_v30  ;;  %v1401_v44 = vmul.f32 24.0, %v4376_v36  ;;  %v202_v6 = vld [vmem:[%s9536_s1 + $0x28] sm:$0xff] }
   0xc   :  { %9992 = vst [vmem:[#allocation16_spill] sm:$0xff] %v5269_v43  ;;  %v1402_v45 = vmul.f32 24.0, %v4377_v37  ;;  %v1457_v46 = vmax.f32 %v4376_v36, 0.0  ;;  %1624 = vmax.xlane.f32.xlu0 %v1623_v38  ;;  %v2683_v47 = vmax.f32 %v5254_v39, %v5269_v43  ;;  %v1458_v48 = vmax.f32 %v4377_v37, 0.0  ;;  %vm5279_vm10 = vmand %vm144_vm8, %vm9595_vm3  ;;  %v5323_v16 = vld [vmem:[%s9536_s1 + $0x20] sm:$0xff]  ;;  %v35_v26 = vld [vmem:[%s9537_s2 + $0x30] sm:$0xff] }
   0xd   :  { %v2405_v49 = vsub.f32 1.4, %v31_v22  ;;  %v2406_v50 = vsub.f32 1.4, %v32_v23  ;;  %v9994_v52 = vsel %vm5279_vm10, 4294967295, %v9993_v52  ;;  %vm256_vm11 = vcmp.ne.s32.totalorder %v200_v40, 0 }
   0xe   :  { %9995 = vst [vmem:[#allocation17_spill] sm:$0xff] %v9994_v52  ;;  %v1513_v53 = vmul.f32 %v1457_v46, %v1401_v44  ;;  %9996 = vst [vmem:[#allocation18_spill] sm:$0xff] %v5286_v54  ;;  %vm146_vm12 = vcmp.ne.s32.totalorder %v90_v42, 0  ;;  %v4378_v55 = vadd.f32 -0.1, %v33_v41  ;;  %2684 = vmax.xlane.f32.xlu1 %v2683_v47  ;;  %v1514_v56 = vmul.f32 %v1458_v48, %v1402_v45  ;;  %v36_v32 = vld [vmem:[%s9537_s2 + $0x38] sm:$0xff] }
   0xf   :  { %v2461_v57 = vmul.f32 24.0, %v2405_v49  ;;  %v2462_v58 = vmul.f32 24.0, %v2406_v50  ;;  %v2517_v59 = vmax.f32 %v2405_v49, 0.0  ;;  %v2518_v61 = vmax.f32 %v2406_v50, 0.0  ;;  %vm5299_vm13 = vmand %vm256_vm11, %vm9595_vm3  ;;  %10006 = vst [vmem:[#allocation24_spill] sm:$0xff] %v5323_v16  ;;  %v92_v38 = vld [vmem:[%s9535_s0 + $0x38] sm:$0xff] }
  0x10   :  { %v5290_v60 = vsel %vm9545_vm6, %v1513_v53, 0.0  ;;  %v4379_v62 = vadd.f32 -0.1, %v34_v51  ;;  %v1403_v63 = vmul.f32 24.0, %v4378_v55  ;;  %v5295_v0 = vsel %vm5279_vm10, %v1514_v56, %v5231_v30  ;;  %vm5316_vm15 = vmand %vm146_vm12, %vm9595_vm3  ;;  %v5363_v44 = vld [vmem:[%s9535_s0 + $0x30] sm:$0xff]  ;;  %v204_v48 = vld [vmem:[%s9536_s1 + $0x38] sm:$0xff] }
  0x11   :  { %9997 = vst [vmem:[#allocation19_spill] sm:$0xff] %v5290_v60  ;;  %9998 = vst [vmem:[#allocation20_spill] sm:$0xff] %v5295_v0  ;;  %v9999_v1 = vmov 0  ;;  %v2573_v4 = vmul.f32 %v2517_v59, %v2461_v57  ;;  %vm9539_vm14 = vcmp.ne.s32.totalorder %v5286_v54, 0  ;;  %v1459_v5 = vmax.f32 %v4378_v55, 0.0  ;;  %v5381_v57 = vld [vmem:[%s9536_s1 + $0x30] sm:$0xff] }
  0x12   :  { %v10000_v1 = vsel %vm5299_vm13, 4294967295, %v9999_v1  ;;  %v1626_v7 = vmax.f32 %v5290_v60, %v5295_v0  ;;  %v2574_v8 = vmul.f32 %v2518_v61, %v2462_v58  ;;  %v1404_v9 = vmul.f32 24.0, %v4379_v62  ;;  %10013 = vst [vmem:[#allocation29_spill] sm:$0xff] %v5363_v44  ;;  %10016 = vst [vmem:[#allocation32_spill] sm:$0xff] %v5381_v57 }
  0x13   :  { %10001 = vst [vmem:[#allocation21_spill] sm:$0xff] %v10000_v1  ;;  %v1460_v10 = vmax.f32 %v4379_v62, 0.0  ;;  %v5311_v11 = vsel %vm9543_vm9, %v2573_v4, 0.0  ;;  %v10003_v12 = vmov 0  ;;  %v1515_v13 = vmul.f32 %v1459_v5, %v1403_v63  ;;  %v37_v62 = vld [vmem:[%s9537_s2 + $0x40] sm:$0xff]  ;;  %v38_v63 = vld [vmem:[%s9537_s2 + $0x48] sm:$0xff] }
  0x14   :  { %10002 = vst [vmem:[#allocation22_spill] sm:$0xff] %v5311_v11  ;;  %v10004_v12 = vsel %vm5316_vm15, 4294967295, %v10003_v12  ;;  %v2407_v18 = vsub.f32 1.4, %v33_v41  ;;  %1627 = vmax.xlane.f32.xlu0 %v1626_v7  ;;  %v5328_v19 = vsel %vm5299_vm13, %v2574_v8, %v5231_v30  ;;  %vm258_vm1 = vcmp.ne.s32.totalorder %v202_v6, 0 }
  0x15   :  { %10005 = vst [vmem:[#allocation23_spill] sm:$0xff] %v10004_v12  ;;  %10007 = vst [vmem:[#allocation25_spill] sm:$0xff] %v5328_v19  ;;  %v1516_v20 = vmul.f32 %v1460_v10, %v1404_v9  ;;  %v2408_v21 = vsub.f32 1.4, %v34_v51  ;;  %v2686_v22 = vmax.f32 %v5311_v11, %v5328_v19  ;;  %v5334_v23 = vsel %vm9539_vm14, %v1515_v13, 0.0 }
  0x16   :  { %10008 = vst [vmem:[#allocation26_spill] sm:$0xff] %v5334_v23  ;;  %v2463_v24 = vmul.f32 24.0, %v2407_v18  ;;  %v2519_v25 = vmax.f32 %v2407_v18, 0.0  ;;  %vm9540_vm2 = vcmp.ne.s32.totalorder %v5323_v16, 0  ;;  %vm5356_vm8 = vmand %vm258_vm1, %vm9595_vm3  ;;  %v10010_v41 = vmov 0  ;;  %v94_v18 = vld [vmem:[%s9535_s0 + $0x48] sm:$0xff] }
  0x17   :  { %v5345_v35 = vsel %vm5316_vm15, %v1516_v20, %v5231_v30  ;;  %v2464_v36 = vmul.f32 24.0, %v2408_v21  ;;  %v2520_v37 = vmax.f32 %v2408_v21, 0.0  ;;  %2687 = vmax.xlane.f32.xlu1 %v2686_v22  ;;  %v10011_v41 = vsel %vm5356_vm8, 4294967295, %v10010_v41  ;;  %v5719_v16 = vld [vmem:[%s9535_s0 + $0x80] sm:$0xff] }
  0x18   :  { %10009 = vst [vmem:[#allocation27_spill] sm:$0xff] %v5345_v35  ;;  %v1629_v40 = vmax.f32 %v5334_v23, %v5345_v35  ;;  %10012 = vst [vmem:[#allocation28_spill] sm:$0xff] %v10011_v41  ;;  %v2575_v42 = vmul.f32 %v2519_v25, %v2463_v24  ;;  %v4380_v46 = vadd.f32 -0.1, %v35_v26  ;;  %v4381_v47 = vadd.f32 -0.1, %v36_v32 }
  0x19   :  { %v2576_v45 = vmul.f32 %v2520_v37, %v2464_v36  ;;  %vm148_vm11 = vcmp.ne.s32.totalorder %v92_v38, 0  ;;  %v2409_v50 = vsub.f32 1.4, %v35_v26  ;;  %v2410_v51 = vsub.f32 1.4, %v36_v32  ;;  %v5412_v24 = vld [vmem:[%s9535_s0 + $0x40] sm:$0xff] }
  0x1a   :  { %1630 = vmax.xlane.f32.xlu0 %v1629_v40  ;;  %v5370_v49 = vsel %vm9540_vm2, %v2575_v42, 0.0  ;;  %vm9541_vm12 = vcmp.ne.s32.totalorder %v5363_v44, 0  ;;  %v1405_v55 = vmul.f32 24.0, %v4380_v46  ;;  %v1406_v56 = vmul.f32 24.0, %v4381_v47  ;;  %vm5393_vm14 = vmand %vm148_vm11, %vm9595_vm3  ;;  %10023 = vst [vmem:[#allocation35_spill] sm:$0xff] %v5412_v24  ;;  %v5430_v40 = vld [vmem:[%s9536_s1 + $0x40] sm:$0xff] }
  0x1b   :  { %10014 = vst [vmem:[#allocation30_spill] sm:$0xff] %v5370_v49  ;;  %v5375_v53 = vsel %vm5356_vm8, %v2576_v45, %v5231_v30  ;;  %v1461_v59 = vmax.f32 %v4380_v46, 0.0  ;;  %v1462_v61 = vmax.f32 %v4381_v47, 0.0  ;;  %vm260_vm1 = vcmp.ne.s32.totalorder %v204_v48, 0  ;;  %10026 = vst [vmem:[#allocation38_spill] sm:$0xff] %v5430_v40  ;;  %v206_v47 = vld [vmem:[%s9536_s1 + $0x48] sm:$0xff] }
  0x1c   :  { %10015 = vst [vmem:[#allocation31_spill] sm:$0xff] %v5375_v53  ;;  %v2689_v58 = vmax.f32 %v5370_v49, %v5375_v53  ;;  %v10017_v4 = vmov 0  ;;  %v2465_v5 = vmul.f32 24.0, %v2409_v50  ;;  %v2466_v6 = vmul.f32 24.0, %v2410_v51  ;;  %vm5405_vm11 = vmand %vm260_vm1, %vm9595_vm3  ;;  %v96_v48 = vld [vmem:[%s9535_s0 + $0x58] sm:$0xff] }
  0x1d   :  { %v10018_v4 = vsel %vm5393_vm14, 4294967295, %v10017_v4  ;;  %v2521_v7 = vmax.f32 %v2409_v50, 0.0  ;;  %v2522_v8 = vmax.f32 %v2410_v51, 0.0  ;;  %v2043_v9 = vmax.f32 %v5235_v31, %v5334_v23  ;;  %10078 = vst [vmem:[#allocation68_spill] sm:$0xff] %v5719_v16 }
  0x1e   :  { %10019 = vst [vmem:[#allocation33_spill] sm:$0xff] %v10018_v4  ;;  %2690 = vmax.xlane.f32.xlu1 %v2689_v58  ;;  %v1517_v10 = vmul.f32 %v1461_v59, %v1405_v55  ;;  %v1518_v13 = vmul.f32 %v1462_v61, %v1406_v56  ;;  %vm9542_vm2 = vcmp.ne.s32.totalorder %v5381_v57, 0  ;;  %v10020_v20 = vmov 0  ;;  %v39_v56 = vld [vmem:[%s9537_s2 + $0x50] sm:$0xff]  ;;  %v40_v58 = vld [vmem:[%s9537_s2 + $0x58] sm:$0xff] }
  0x1f   :  { %v10021_v20 = vsel %vm5405_vm11, 4294967295, %v10020_v20  ;;  %v2577_v21 = vmul.f32 %v2521_v7, %v2465_v5  ;;  %v2578_v22 = vmul.f32 %v2522_v8, %v2466_v6  ;;  %v4382_v25 = vadd.f32 -0.1, %v37_v62 }
  0x20   :  { %10022 = vst [vmem:[#allocation34_spill] sm:$0xff] %v10021_v20  ;;  %v4383_v26 = vadd.f32 -0.1, %v38_v63  ;;  %v2076_v32 = vmax.f32 %v5241_v33, %v5345_v35  ;;  %v3103_v36 = vmax.f32 %v5254_v39, %v5370_v49  ;;  %v5420_v37 = vsel %vm9541_vm12, %v1517_v10, 0.0 }
  0x21   :  { %10024 = vst [vmem:[#allocation36_spill] sm:$0xff] %v5420_v37  ;;  %v5425_v38 = vsel %vm5393_vm14, %v1518_v13, %v5231_v30  ;;  %v5438_v46 = vsel %vm9542_vm2, %v2577_v21, 0.0  ;;  %vm150_vm1 = vcmp.ne.s32.totalorder %v94_v18, 0  ;;  %v5449_v50 = vsel %vm5405_vm11, %v2578_v22, %v5231_v30 }
  0x22   :  { %10025 = vst [vmem:[#allocation37_spill] sm:$0xff] %v5425_v38  ;;  %v1632_v45 = vmax.f32 %v5420_v37, %v5425_v38  ;;  %10027 = vst [vmem:[#allocation39_spill] sm:$0xff] %v5438_v46  ;;  %vm9550_vm12 = vcmp.ne.s32.totalorder %v5412_v24, 0  ;;  %v1407_v51 = vmul.f32 24.0, %v4382_v25  ;;  %v1408_v55 = vmul.f32 24.0, %v4383_v26 }
  0x23   :  { %10028 = vst [vmem:[#allocation40_spill] sm:$0xff] %v5449_v50  ;;  %v2692_v59 = vmax.f32 %v5438_v46, %v5449_v50  ;;  %v1463_v61 = vmax.f32 %v4382_v25, 0.0  ;;  %v1464_v5 = vmax.f32 %v4383_v26, 0.0  ;;  %vm9551_vm2 = vcmp.ne.s32.totalorder %v5430_v40, 0  ;;  %vm5463_vm9 = vmand %vm150_vm1, %vm9595_vm3 }
  0x24   :  { %1633 = vmax.xlane.f32.xlu0 %v1632_v45  ;;  %v10029_v6 = vmov 0  ;;  %vm262_vm4 = vcmp.ne.s32.totalorder %v206_v47, 0  ;;  %v2411_v7 = vsub.f32 1.4, %v37_v62  ;;  %v2412_v8 = vsub.f32 1.4, %v38_v63 }
  0x25   :  { %v10030_v6 = vsel %vm5463_vm9, 4294967295, %v10029_v6  ;;  %vm152_vm6 = vcmp.ne.s32.totalorder %v96_v48, 0  ;;  %2693 = vmax.xlane.f32.xlu1 %v2692_v59  ;;  %v1519_v10 = vmul.f32 %v1463_v61, %v1407_v51  ;;  %v1520_v13 = vmul.f32 %v1464_v5, %v1408_v55  ;;  %v5479_v62 = vld [vmem:[%s9535_s0 + $0x50] sm:$0xff]  ;;  %vm5490_vm1 = vmand %vm262_vm4, %vm9595_vm3  ;;  %v98_v48 = vld [vmem:[%s9535_s0 + $0x68] sm:$0xff] }
  0x26   :  { %10031 = vst [vmem:[#allocation41_spill] sm:$0xff] %v10030_v6  ;;  %v4384_v18 = vadd.f32 -0.1, %v39_v56  ;;  %v4385_v21 = vadd.f32 -0.1, %v40_v58  ;;  %v2467_v22 = vmul.f32 24.0, %v2411_v7  ;;  %v10054_v4 = vmax.f32 %v5290_v60, %v5420_v37 }
  0x27   :  { %v2468_v25 = vmul.f32 24.0, %v2412_v8  ;;  %v2523_v26 = vmax.f32 %v2411_v7, 0.0  ;;  %v2524_v45 = vmax.f32 %v2412_v8, 0.0  ;;  %v5469_v29 = vsel %vm9550_vm12, %v1519_v10, 0.0  ;;  %10034 = vst [vmem:[#allocation44_spill] sm:$0xff] %v5479_v62  ;;  %v208_v8 = vld [vmem:[%s9536_s1 + $0x58] sm:$0xff]  ;;  %vm5507_vm12 = vmand %vm152_vm6, %vm9595_vm3 }
  0x28   :  { %10032 = vst [vmem:[#allocation42_spill] sm:$0xff] %v5469_v29  ;;  %v5474_v3 = vsel %vm5463_vm9, %v1520_v13, %v5231_v30  ;;  %v1409_v63 = vmul.f32 24.0, %v4384_v18  ;;  %v1410_v51 = vmul.f32 24.0, %v4385_v21  ;;  %v10035_v5 = vmov 0  ;;  %v5574_v10 = vld [vmem:[%s9535_s0 + $0x60] sm:$0xff] }
  0x29   :  { %10033 = vst [vmem:[#allocation43_spill] sm:$0xff] %v5474_v3  ;;  %v1635_v61 = vmax.f32 %v5469_v29, %v5474_v3  ;;  %v10036_v5 = vsel %vm5490_vm1, 4294967295, %v10035_v5  ;;  %v2579_v7 = vmul.f32 %v2523_v26, %v2467_v22  ;;  %v2580_v13 = vmul.f32 %v2524_v45, %v2468_v25  ;;  %v5519_v45 = vld [vmem:[%s9536_s1 + $0x50] sm:$0xff]  ;;  %10049 = vst [vmem:[#allocation53_spill] sm:$0xff] %v5574_v10 }
  0x2a   :  { %10037 = vst [vmem:[#allocation45_spill] sm:$0xff] %v10036_v5  ;;  %v1465_v59 = vmax.f32 %v4384_v18, 0.0  ;;  %v1466_v55 = vmax.f32 %v4385_v21, 0.0  ;;  %vm9552_vm4 = vcmp.ne.s32.totalorder %v5479_v62, 0  ;;  %v10039_v47 = vmov 0  ;;  %10043 = vst [vmem:[#allocation49_spill] sm:$0xff] %v5519_v45 }
  0x2b   :  { %1636 = vmax.xlane.f32.xlu0 %v1635_v61  ;;  %v5501_v42 = vsel %vm9551_vm2, %v2579_v7, 0.0  ;;  %v10040_v47 = vsel %vm5507_vm12, 4294967295, %v10039_v47  ;;  %v2413_v22 = vsub.f32 1.4, %v39_v56  ;;  %v2414_v26 = vsub.f32 1.4, %v40_v58 }
  0x2c   :  { %10038 = vst [vmem:[#allocation46_spill] sm:$0xff] %v5501_v42  ;;  %10041 = vst [vmem:[#allocation47_spill] sm:$0xff] %v10040_v47  ;;  %v5514_v18 = vsel %vm5490_vm1, %v2580_v13, %v5231_v30  ;;  %v1521_v21 = vmul.f32 %v1465_v59, %v1409_v63  ;;  %v1522_v25 = vmul.f32 %v1466_v55, %v1410_v51  ;;  %vm264_vm2 = vcmp.ne.s32.totalorder %v208_v8, 0  ;;  %v41_v7 = vld [vmem:[%s9537_s2 + $0x60] sm:$0xff]  ;;  %v42_v13 = vld [vmem:[%s9537_s2 + $0x68] sm:$0xff] }
  0x2d   :  { %10042 = vst [vmem:[#allocation48_spill] sm:$0xff] %v5514_v18  ;;  %v2695_v56 = vmax.f32 %v5501_v42, %v5514_v18  ;;  %v2469_v58 = vmul.f32 24.0, %v2413_v22  ;;  %v2470_v61 = vmul.f32 24.0, %v2414_v26  ;;  %v2525_v55 = vmax.f32 %v2413_v22, 0.0  ;;  %v210_v8 = vld [vmem:[%s9536_s1 + $0x68] sm:$0xff]  ;;  %v44_v5 = vld [vmem:[%s9537_s2 + $0x78] sm:$0xff] }
  0x2e   :  { %v5530_v63 = vsel %vm9552_vm4, %v1521_v21, 0.0  ;;  %v5535_v51 = vsel %vm5507_vm12, %v1522_v25, %v5231_v30  ;;  %v2526_v59 = vmax.f32 %v2414_v26, 0.0  ;;  %v5547_v21 = vmax.f32 %v2043_v9, %v5469_v29  ;;  %vm5561_vm4 = vmand %vm264_vm2, %vm9595_vm3 }
  0x2f   :  { %10044 = vst [vmem:[#allocation50_spill] sm:$0xff] %v5530_v63  ;;  %10045 = vst [vmem:[#allocation51_spill] sm:$0xff] %v5535_v51  ;;  %v5553_v22 = vmax.f32 %v2076_v32, %v5474_v3  ;;  %2696 = vmax.xlane.f32.xlu1 %v2695_v56  ;;  %v1638_v26 = vmax.f32 %v5530_v63, %v5535_v51  ;;  %vm9557_vm6 = vcmp.ne.s32.totalorder %v5519_v45, 0  ;;  %v10046_v25 = vmov 0 }
  0x30   :  { %v10047_v25 = vsel %vm5561_vm4, 4294967295, %v10046_v25  ;;  %v5569_v9 = vmax.f32 %v3103_v36, %v5501_v42  ;;  %v2581_v32 = vmul.f32 %v2525_v55, %v2469_v58  ;;  %v2582_v56 = vmul.f32 %v2526_v59, %v2470_v61 }
  0x31   :  { %10048 = vst [vmem:[#allocation52_spill] sm:$0xff] %v10047_v25  ;;  %v4386_v47 = vadd.f32 -0.1, %v41_v7  ;;  %v10050_v62 = vmax.f32 %v5269_v43, %v5375_v53  ;;  %1639 = vmax.xlane.f32.xlu0 %v1638_v26  ;;  %vm154_vm2 = vcmp.ne.s32.totalorder %v98_v48, 0  ;;  %v4387_v36 = vadd.f32 -0.1, %v42_v13 }
  0x32   :  { %v2415_v58 = vsub.f32 1.4, %v41_v7  ;;  %v5587_v61 = vsel %vm9557_vm6, %v2581_v32, 0.0  ;;  %v5592_v55 = vsel %vm5561_vm4, %v2582_v56, %v5231_v30  ;;  %v43_v7 = vld [vmem:[%s9537_s2 + $0x70] sm:$0xff]  ;;  %v2416_v45 = vsub.f32 1.4, %v42_v13  ;;  %vm5617_vm6 = vmand %vm154_vm2, %vm9595_vm3 }
  0x33   :  { %v5583_v6 = vmax.f32 %v10050_v62, %v5514_v18  ;;  %10051 = vst [vmem:[#allocation54_spill] sm:$0xff] %v5587_v61  ;;  %10052 = vst [vmem:[#allocation55_spill] sm:$0xff] %v5592_v55  ;;  %v1411_v59 = vmul.f32 24.0, %v4386_v47  ;;  %v1467_v24 = vmax.f32 %v4386_v47, 0.0  ;;  %v5597_v62 = vld [vmem:[%s9536_s1 + $0x60] sm:$0xff]  ;;  %v2698_v26 = vmax.f32 %v5587_v61, %v5592_v55  ;;  %v100_v13 = vld [vmem:[%s9535_s0 + $0x78] sm:$0xff] }
  0x34   :  { %10053 = vst [vmem:[#allocation56_spill] sm:$0xff] %v5597_v62  ;;  %v1412_v32 = vmul.f32 24.0, %v4387_v36  ;;  %v1468_v56 = vmax.f32 %v4387_v36, 0.0  ;;  %v2471_v47 = vmul.f32 24.0, %v2415_v58  ;;  %v5612_v40 = vmax.f32 %v10054_v4, %v5530_v63  ;;  %v5632_v48 = vld [vmem:[%s9535_s0 + $0x70] sm:$0xff] }
  0x35   :  { %v1523_v25 = vmul.f32 %v1467_v24, %v1411_v59  ;;  %2699 = vmax.xlane.f32.xlu1 %v2698_v26  ;;  %v10055_v44 = vmov 0  ;;  %v2527_v24 = vmax.f32 %v2415_v58, 0.0  ;;  %v4388_v36 = vadd.f32 -0.1, %v43_v7  ;;  %10060 = vst [vmem:[#allocation59_spill] sm:$0xff] %v5632_v48 }
  0x36   :  { %v10056_v44 = vsel %vm5617_vm6, 4294967295, %v10055_v44  ;;  %v1524_v59 = vmul.f32 %v1468_v56, %v1412_v32  ;;  %vm10058_vm12 = vcmp.ne.s32.totalorder %v5574_v10, 0  ;;  %v2472_v26 = vmul.f32 24.0, %v2416_v45 }
  0x37   :  { %10057 = vst [vmem:[#allocation57_spill] sm:$0xff] %v10056_v44  ;;  %v5627_v4 = vsel %vm10058_vm12, %v1523_v25, 0.0  ;;  %v2528_v20 = vmax.f32 %v2416_v45, 0.0  ;;  %v10061_v58 = vmax.f32 %v5295_v0, %v5425_v38  ;;  %vm10062_vm2 = vcmp.ne.s32.totalorder %v210_v8, 0  ;;  %v5676_v44 = vld [vmem:[%s9536_s1 + $0x70] sm:$0xff] }
  0x38   :  { %10059 = vst [vmem:[#allocation58_spill] sm:$0xff] %v5627_v4  ;;  %vm5643_vm0 = vmand %vm10062_vm2, %vm9595_vm3  ;;  %v10063_v32 = vmov 0  ;;  %v2583_v25 = vmul.f32 %v2527_v24, %v2471_v47  ;;  %v4389_v45 = vadd.f32 -0.1, %v44_v5  ;;  %v1413_v56 = vmul.f32 24.0, %v4388_v36  ;;  %v212_v24 = vld [vmem:[%s9536_s1 + $0x78] sm:$0xff] }
  0x39   :  { %v5638_v57 = vmax.f32 %v10061_v58, %v5535_v51  ;;  %v10064_v32 = vsel %vm5643_vm0, 4294967295, %v10063_v32  ;;  %v5650_v10 = vsel %vm5617_vm6, %v1524_v59, %v5231_v30  ;;  %v2584_v12 = vmul.f32 %v2528_v20, %v2472_v26  ;;  %10071 = vst [vmem:[#allocation64_spill] sm:$0xff] %v5676_v44 }
  0x3a   :  { %10065 = vst [vmem:[#allocation60_spill] sm:$0xff] %v10064_v32  ;;  %10066 = vst [vmem:[#allocation61_spill] sm:$0xff] %v5650_v10  ;;  %vm156_vm12 = vcmp.ne.s32.totalorder %v100_v13, 0  ;;  %v1469_v54 = vmax.f32 %v4388_v36, 0.0  ;;  %v1641_v58 = vmax.f32 %v5627_v4, %v5650_v10  ;;  %vm10067_vm4 = vcmp.ne.s32.totalorder %v5597_v62, 0  ;;  %v46_v13 = vld [vmem:[%s9537_s2 + $0x88] sm:$0xff] }
  0x3b   :  { %v5656_v8 = vsel %vm10067_vm4, %v2583_v25, 0.0  ;;  %vm9580_vm2 = vcmp.ne.s32.totalorder %v5632_v48, 0  ;;  %v1414_v47 = vmul.f32 24.0, %v4389_v45  ;;  %v10069_v20 = vmax.f32 %v5311_v11, %v5438_v46  ;;  %vm5691_vm4 = vmand %vm156_vm12, %vm9595_vm3  ;;  %v102_v32 = vld [vmem:[%s9535_s0 + $0x88] sm:$0xff] }
  0x3c   :  { %10068 = vst [vmem:[#allocation62_spill] sm:$0xff] %v5656_v8  ;;  %v5671_v36 = vsel %vm5643_vm0, %v2584_v12, %v5231_v30  ;;  %v1470_v26 = vmax.f32 %v4389_v45, 0.0  ;;  %v1525_v25 = vmul.f32 %v1469_v54, %v1413_v56  ;;  %v10072_v62 = vmax.f32 %v5328_v19, %v5449_v50  ;;  %1642 = vmax.xlane.f32.xlu0 %v1641_v58 }
  0x3d   :  { %v5666_v59 = vmax.f32 %v10069_v20, %v5587_v61  ;;  %10070 = vst [vmem:[#allocation63_spill] sm:$0xff] %v5671_v36  ;;  %v2701_v12 = vmax.f32 %v5656_v8, %v5671_v36  ;;  %v10073_v54 = vmov 0  ;;  %v2417_v45 = vsub.f32 1.4, %v43_v7 }
  0x3e   :  { %v5682_v41 = vmax.f32 %v10072_v62, %v5592_v55  ;;  %v10074_v54 = vsel %vm5691_vm4, 4294967295, %v10073_v54  ;;  %v45_v62 = vld [vmem:[%s9537_s2 + $0x80] sm:$0xff]  ;;  %v1526_v56 = vmul.f32 %v1470_v26, %v1414_v47  ;;  %v5700_v20 = vsel %vm9580_vm2, %v1525_v25, 0.0 }
  0x3f   :  { %10075 = vst [vmem:[#allocation65_spill] sm:$0xff] %v10074_v54  ;;  %10076 = vst [vmem:[#allocation66_spill] sm:$0xff] %v5700_v20  ;;  %vm268_vm6 = vcmp.ne.s32.totalorder %v212_v24, 0  ;;  %v2418_v58 = vsub.f32 1.4, %v44_v5  ;;  %2702 = vmax.xlane.f32.xlu1 %v2701_v12  ;;  %v2473_v47 = vmul.f32 24.0, %v2417_v45 }
  0x40   :  { %v2529_v26 = vmax.f32 %v2417_v45, 0.0  ;;  %v5714_v5 = vsel %vm5691_vm4, %v1526_v56, %v5231_v30  ;;  %v4390_v52 = vadd.f32 -0.1, %v45_v62  ;;  %vm5726_vm2 = vmand %vm268_vm6, %vm9595_vm3  ;;  %v10079_v45 = vmov 0 }
  0x41   :  { %10077 = vst [vmem:[#allocation67_spill] sm:$0xff] %v5714_v5  ;;  %v2474_v25 = vmul.f32 24.0, %v2418_v58  ;;  %v2530_v48 = vmax.f32 %v2418_v58, 0.0  ;;  %v1644_v12 = vmax.f32 %v5700_v20, %v5714_v5  ;;  %v10080_v45 = vsel %vm5726_vm2, 4294967295, %v10079_v45  ;;  %v214_v58 = vld [vmem:[%s9536_s1 + $0x88] sm:$0xff] }
  0x42   :  { %10081 = vst [vmem:[#allocation69_spill] sm:$0xff] %v10080_v45  ;;  %v2585_v56 = vmul.f32 %v2529_v26, %v2473_v47  ;;  %vm158_vm12 = vcmp.ne.s32.totalorder %v102_v32, 0  ;;  %v4391_v7 = vadd.f32 -0.1, %v46_v13  ;;  %v1415_v27 = vmul.f32 24.0, %v4390_v52 }
  0x43   :  { %v2586_v1 = vmul.f32 %v2530_v48, %v2474_v25  ;;  %v1471_v34 = vmax.f32 %v4390_v52, 0.0  ;;  %1645 = vmax.xlane.f32.xlu0 %v1644_v12  ;;  %vm10082_vm4 = vcmp.ne.s32.totalorder %v5676_v44, 0  ;;  %vm9589_vm6 = vcmp.ne.s32.totalorder %v5719_v16, 0  ;;  %vm5747_vm0 = vmand %vm158_vm12, %vm9595_vm3  ;;  %v5754_v25 = vld [vmem:[%s9536_s1 + $0x80] sm:$0xff] }
  0x44   :  { %v5737_v24 = vsel %vm10082_vm4, %v2585_v56, 0.0  ;;  %v1416_v47 = vmul.f32 24.0, %v4391_v7  ;;  %v1472_v32 = vmax.f32 %v4391_v7, 0.0  ;;  %v10085_v48 = vmov 0  ;;  %10088 = vst [vmem:[#allocation73_spill] sm:$0xff] %v5754_v25  ;;  %v48_v7 = vld [vmem:[%s9537_s2 + $0x98] sm:$0xff] }
  0x45   :  { %10083 = vst [vmem:[#allocation70_spill] sm:$0xff] %v5737_v24  ;;  %v5743_v26 = vsel %vm5726_vm2, %v2586_v1, %v5231_v30  ;;  %v10086_v48 = vsel %vm5747_vm0, 4294967295, %v10085_v48  ;;  %v1527_v52 = vmul.f32 %v1471_v34, %v1415_v27  ;;  %vm270_vm4 = vcmp.ne.s32.totalorder %v214_v58, 0 }
  0x46   :  { %10084 = vst [vmem:[#allocation71_spill] sm:$0xff] %v5743_v26  ;;  %10087 = vst [vmem:[#allocation72_spill] sm:$0xff] %v10086_v48  ;;  %v2419_v12 = vsub.f32 1.4, %v45_v62  ;;  %v2704_v1 = vmax.f32 %v5737_v24, %v5743_v26  ;;  %v1528_v56 = vmul.f32 %v1472_v32, %v1416_v47  ;;  %v2420_v54 = vsub.f32 1.4, %v46_v13 }
  0x47   :  { %v5764_v27 = vsel %vm9589_vm6, %v1527_v52, 0.0  ;;  %v47_v62 = vld [vmem:[%s9537_s2 + $0x90] sm:$0xff]  ;;  %vm9596_vm12 = vcmp.ne.s32.totalorder %v5754_v25, 0  ;;  %vm5781_vm6 = vmand %vm270_vm4, %vm9595_vm3  ;;  %v10091_v47 = vmov 0 }
  0x48   :  { %10089 = vst [vmem:[#allocation74_spill] sm:$0xff] %v5764_v27  ;;  %v2475_v34 = vmul.f32 24.0, %v2419_v12  ;;  %v2531_v44 = vmax.f32 %v2419_v12, 0.0  ;;  %2705 = vmax.xlane.f32.xlu1 %v2704_v1  ;;  %v5775_v13 = vsel %vm5747_vm0, %v1528_v56, %v5231_v30  ;;  %v10092_v47 = vsel %vm5781_vm6, 4294967295, %v10091_v47  ;;  %v104_v12 = vld [vmem:[%s9535_s0 + $0x98] sm:$0xff]  ;;  %v5797_v48 = vld [vmem:[%s9535_s0 + $0x90] sm:$0xff] }
  0x49   :  { %10090 = vst [vmem:[#allocation75_spill] sm:$0xff] %v5775_v13  ;;  %10093 = vst [vmem:[#allocation76_spill] sm:$0xff] %v10092_v47  ;;  %v2476_v32 = vmul.f32 24.0, %v2420_v54  ;;  %v2532_v52 = vmax.f32 %v2420_v54, 0.0  ;;  %v1647_v45 = vmax.f32 %v5764_v27, %v5775_v13 }
  0x4a   :  { %v2587_v58 = vmul.f32 %v2531_v44, %v2475_v34  ;;  %10094 = vst [vmem:[#allocation77_spill] sm:$0xff] %v5797_v48 }
  0x4b   :  { %8 = vsyncpa [#allocation5], 0  ;;  %v2588_v16 = vmul.f32 %v2532_v52, %v2476_v32  ;;  %v4392_v14 = vadd.f32 -0.1, %v47_v62  ;;  %v4393_v17 = vadd.f32 -0.1, %v48_v7  ;;  %1648 = vmax.xlane.f32.xlu0 %v1647_v45 }
  0x4c   :  { %v216_v56 = vld [vmem:[%s9536_s1 + $0x98] sm:$0xff]  ;;  %v5806_v44 = vsel %vm9596_vm12, %v2587_v58, 0.0  ;;  %vm160_vm4 = vcmp.ne.s32.totalorder %v104_v12, 0  ;;  %v2421_v34 = vsub.f32 1.4, %v47_v62  ;;  %v5817_v45 = vld [vmem:[%s9536_s1 + $0x90] sm:$0xff] }
  0x4d   :  { %10095 = vst [vmem:[#allocation78_spill] sm:$0xff] %v5806_v44  ;;  %v2422_v1 = vsub.f32 1.4, %v48_v7  ;;  %v5811_v28 = vsel %vm5781_vm6, %v2588_v16, %v5231_v30  ;;  %v1417_v32 = vmul.f32 24.0, %v4392_v14  ;;  %v1418_v52 = vmul.f32 24.0, %v4393_v17  ;;  %10097 = vst [vmem:[#allocation80_spill] sm:$0xff] %v5817_v45 }
  0x4e   :  { %10096 = vst [vmem:[#allocation79_spill] sm:$0xff] %v5811_v28  ;;  %v2707_v58 = vmax.f32 %v5806_v44, %v5811_v28  ;;  %v1473_v12 = vmax.f32 %v4392_v14, 0.0  ;;  %v1474_v62 = vmax.f32 %v4393_v17, 0.0  ;;  %vm272_vm12 = vcmp.ne.s32.totalorder %v216_v56, 0  ;;  %v49_v16 = vld [vmem:[%s9537_s2 + $0xa0] sm:$0xff]  ;;  %v50_v7 = vld [vmem:[%s9537_s2 + $0xa8] sm:$0xff] }
  0x4f   :  { %vm10098_vm3 = vcmp.lt.s32.totalorder %v5198_v15, 160  ;;  %v10099_v54 = vmov 0  ;;  %v2477_v47 = vmul.f32 24.0, %v2421_v34  ;;  %v2478_v25 = vmul.f32 24.0, %v2422_v1  ;;  %v106_v51 = vld [vmem:[%s9535_s0 + $0xa8] sm:$0xff]  ;;  %s5138_s24 = scalar_lea.hbm %s9538_s3, 16 }
  0x50   :  { %vm5829_vm0 = vmand %vm160_vm4, %vm10098_vm3  ;;  %v2533_v2 = vmax.f32 %v2421_v34, 0.0  ;;  %v2534_v14 = vmax.f32 %v2422_v1, 0.0  ;;  %v10102_v17 = vmax.f32 %v5547_v21, %v5627_v4  ;;  %2708 = vmax.xlane.f32.xlu1 %v2707_v58  ;;  %v1529_v55 = vmul.f32 %v1473_v12, %v1417_v32  ;;  %v5852_v21 = vld [vmem:[%s9535_s0 + $0xa0] sm:$0xff]  ;;  %p5139_p0 = scmp.ne.s32.totalorder %s9538_s3, %s5138_s24  ;;  %p5142_p1 = scmp.lt.u32.totalorder %s5138_s24, %s9538_s3 }
  0x51   :  { %v10100_v54 = vsel %vm5829_vm0, 4294967295, %v10099_v54  ;;  %v1530_v61 = vmul.f32 %v1474_v62, %v1418_v52  ;;  %vm9613_vm6 = vcmp.ne.s32.totalorder %v5817_v45, 0  ;;  %vm5845_vm4 = vmand %vm272_vm12, %vm10098_vm3  ;;  %v10103_v34 = vmov 0  ;;  %10106 = vst [vmem:[#allocation83_spill] sm:$0xff] %v5852_v21 }
  0x52   :  { %10101 = vst [vmem:[#allocation81_spill] sm:$0xff] %v10100_v54  ;;  %v5837_v56 = vmax.f32 %v10102_v17, %v5764_v27  ;;  %v10104_v34 = vsel %vm5845_vm4, 4294967295, %v10103_v34  ;;  %v2589_v1 = vmul.f32 %v2533_v2, %v2477_v47  ;;  %v2590_v63 = vmul.f32 %v2534_v14, %v2478_v25  ;;  %p5144_p2 = pnand %p5142_p1, %p5139_p0 }
  0x53   :  { %10105 = vst [vmem:[#allocation82_spill] sm:$0xff] %v10104_v34  ;;  %v4394_v32 = vadd.f32 -0.1, %v49_v16  ;;  %v4395_v52 = vadd.f32 -0.1, %v50_v7  ;;  %v10107_v58 = vmax.f32 %v5553_v22, %v5650_v10  ;;  %v10108_v62 = vmax.f32 %v5569_v9, %v5656_v8  ;;  %v5878_v22 = vld [vmem:[%s9536_s1 + $0xa0] sm:$0xff] }
  0x54   :  { %vm10109_vm12 = vcmp.ne.s32.totalorder %v5797_v48, 0  ;;  %v5873_v25 = vsel %vm5829_vm0, %v1530_v61, %v5231_v30  ;;  %10112 = vst [vmem:[#allocation86_spill] sm:$0xff] %v5878_v22  ;;  %v10113_v9 = vmax.f32 %v5583_v6, %v5671_v36  ;;  %v5890_v14 = vsel %vm9613_vm6, %v2589_v1, 0.0  ;;  %v218_v61 = vld [vmem:[%s9536_s1 + $0xa8] sm:$0xff]  ;;  %v52_v1 = vld [vmem:[%s9537_s2 + $0xb8] sm:$0xff] }
  0x55   :  { %v5858_v12 = vmax.f32 %v10107_v58, %v5775_v13  ;;  %v5864_v17 = vmax.f32 %v10108_v62, %v5806_v44  ;;  %v5868_v2 = vsel %vm10109_vm12, %v1529_v55, 0.0  ;;  %10111 = vst [vmem:[#allocation85_spill] sm:$0xff] %v5873_v25  ;;  %10114 = vst [vmem:[#allocation87_spill] sm:$0xff] %v5890_v14  ;;  %vm162_vm3 = vcmp.ne.s32.totalorder %v106_v51, 0  ;;  %v108_v58 = vld [vmem:[%s9535_s0 + $0xb8] sm:$0xff]  ;;  %v51_v51 = vld [vmem:[%s9537_s2 + $0xb0] sm:$0xff] }
  0x56   :  { %10110 = vst [vmem:[#allocation84_spill] sm:$0xff] %v5868_v2  ;;  %v5884_v47 = vmax.f32 %v10113_v9, %v5811_v28  ;;  %v1650_v55 = vmax.f32 %v5868_v2, %v5873_v25  ;;  %v5901_v6 = vsel %vm5845_vm4, %v2590_v63, %v5231_v30  ;;  %v1419_v62 = vmul.f32 24.0, %v4394_v32 }
  0x57   :  { %10115 = vst [vmem:[#allocation88_spill] sm:$0xff] %v5901_v6  ;;  %v1420_v9 = vmul.f32 24.0, %v4395_v52  ;;  %v2710_v54 = vmax.f32 %v5890_v14, %v5901_v6  ;;  %v1475_v48 = vmax.f32 %v4394_v32, 0.0  ;;  %v1476_v34 = vmax.f32 %v4395_v52, 0.0 }
  0x58   :  { %1651 = vmax.xlane.f32.xlu0 %v1650_v55  ;;  %vm10116_vm12 = vcmp.lt.s32.totalorder %v5198_v15, 160  ;;  %v10117_v63 = vmov 0  ;;  %vm274_vm4 = vcmp.ne.s32.totalorder %v218_v61, 0  ;;  %v2423_v45 = vsub.f32 1.4, %v49_v16 }
  0x59   :  { %vm5915_vm0 = vmand %vm162_vm3, %vm10116_vm12  ;;  %v2424_v28 = vsub.f32 1.4, %v50_v7  ;;  %vm164_vm2 = vcmp.ne.s32.totalorder %v108_v58, 0  ;;  %2711 = vmax.xlane.f32.xlu1 %v2710_v54  ;;  %v1531_v44 = vmul.f32 %v1475_v48, %v1419_v62  ;;  %v1532_v55 = vmul.f32 %v1476_v34, %v1420_v9  ;;  %v5931_v48 = vld [vmem:[%s9535_s0 + $0xb0] sm:$0xff] }
  0x5a   :  { %v10118_v63 = vsel %vm5915_vm0, 4294967295, %v10117_v63  ;;  %v4396_v13 = vadd.f32 -0.1, %v51_v51  ;;  %v4397_v27 = vadd.f32 -0.1, %v52_v1  ;;  %v2479_v36 = vmul.f32 24.0, %v2423_v45 }
  0x5b   :  { %10119 = vst [vmem:[#allocation89_spill] sm:$0xff] %v10118_v63  ;;  %v2480_v32 = vmul.f32 24.0, %v2424_v28  ;;  %v2535_v52 = vmax.f32 %v2423_v45, 0.0  ;;  %v2536_v8 = vmax.f32 %v2424_v28, 0.0  ;;  %vm10120_vm6 = vcmp.ne.s32.totalorder %v5852_v21, 0  ;;  %10123 = vst [vmem:[#allocation92_spill] sm:$0xff] %v5931_v48 }
  0x5c   :  { %v5921_v10 = vsel %vm10120_vm6, %v1531_v44, 0.0  ;;  %v5926_v4 = vsel %vm5915_vm0, %v1532_v55, %v5231_v30  ;;  %v1421_v54 = vmul.f32 24.0, %v4396_v13  ;;  %v1422_v16 = vmul.f32 24.0, %v4397_v27  ;;  %vm10126_vm6 = vmmov %vm10116_vm12 }
  0x5d   :  { %10121 = vst [vmem:[#allocation90_spill] sm:$0xff] %v5921_v10  ;;  %10122 = vst [vmem:[#allocation91_spill] sm:$0xff] %v5926_v4  ;;  %v10124_v28 = vmax.f32 %v5612_v40, %v5700_v20  ;;  %v10125_v44 = vmax.f32 %v5638_v57, %v5714_v5  ;;  %v1653_v34 = vmax.f32 %v5921_v10, %v5926_v4  ;;  %v10127_v62 = vmov 0  ;;  %v220_v40 = vld [vmem:[%s9536_s1 + $0xb8] sm:$0xff] }
  0x5e   :  { %vm5950_vm3 = vmand %vm274_vm4, %vm10126_vm6  ;;  %v2591_v9 = vmul.f32 %v2535_v52, %v2479_v36  ;;  %v10130_v57 = vmax.f32 %v5666_v59, %v5737_v24  ;;  %v1478_v63 = vmax.f32 %v4397_v27, 0.0  ;;  %vm10131_vm4 = vcmp.ne.s32.totalorder %v5878_v22, 0 }
  0x5f   :  { %v5937_v45 = vmax.f32 %v10124_v28, %v5868_v2  ;;  %v5943_v7 = vmax.f32 %v10125_v44, %v5873_v25  ;;  %v10128_v62 = vsel %vm5950_vm3, 4294967295, %v10127_v62  ;;  %v2592_v28 = vmul.f32 %v2536_v8, %v2480_v32  ;;  %1654 = vmax.xlane.f32.xlu0 %v1653_v34  ;;  %vm5971_vm0 = vmand %vm164_vm2, %vm10126_vm6  ;;  %v5983_v32 = vld [vmem:[%s9536_s1 + $0xb0] sm:$0xff] }
  0x60   :  { %10129 = vst [vmem:[#allocation93_spill] sm:$0xff] %v10128_v62  ;;  %v5961_v55 = vmax.f32 %v10130_v57, %v5890_v14  ;;  %v1477_v44 = vmax.f32 %v4396_v13, 0.0  ;;  %v5965_v61 = vsel %vm10131_vm4, %v2591_v9, 0.0  ;;  %vm9636_vm12 = vcmp.ne.s32.totalorder %v5931_v48, 0  ;;  %10137 = vst [vmem:[#allocation97_spill] sm:$0xff] %v5983_v32  ;;  %v222_v48 = vld [vmem:[%s9536_s1 + $0xc8] sm:$0xff] }
  0x61   :  { %10132 = vst [vmem:[#allocation94_spill] sm:$0xff] %v5965_v61  ;;  %v10133_v36 = vmov 0  ;;  %v2425_v59 = vsub.f32 1.4, %v51_v51  ;;  %v2426_v52 = vsub.f32 1.4, %v52_v1  ;;  %v5978_v8 = vsel %vm5950_vm3, %v2592_v28, %v5231_v30 }
  0x62   :  { %v10134_v36 = vsel %vm5971_vm0, 4294967295, %v10133_v36  ;;  %10136 = vst [vmem:[#allocation96_spill] sm:$0xff] %v5978_v8  ;;  %v1533_v27 = vmul.f32 %v1477_v44, %v1421_v54  ;;  %v1534_v13 = vmul.f32 %v1478_v63, %v1422_v16  ;;  %vm276_vm4 = vcmp.ne.s32.totalorder %v220_v40, 0  ;;  %v53_v63 = vld [vmem:[%s9537_s2 + $0xc0] sm:$0xff]  ;;  %v54_v28 = vld [vmem:[%s9537_s2 + $0xc8] sm:$0xff] }
  0x63   :  { %10135 = vst [vmem:[#allocation95_spill] sm:$0xff] %v10134_v36  ;;  %v10138_v58 = vmax.f32 %v5682_v41, %v5743_v26  ;;  %v2713_v51 = vmax.f32 %v5965_v61, %v5978_v8  ;;  %v2481_v1 = vmul.f32 24.0, %v2425_v59  ;;  %v2482_v9 = vmul.f32 24.0, %v2426_v52  ;;  %v110_v44 = vld [vmem:[%s9535_s0 + $0xc8] sm:$0xff] }
  0x64   :  { %v5998_v54 = vsel %vm9636_vm12, %v1533_v27, 0.0  ;;  %v6003_v16 = vsel %vm5971_vm0, %v1534_v13, %v5231_v30  ;;  %v2537_v41 = vmax.f32 %v2425_v59, 0.0  ;;  %v2538_v57 = vmax.f32 %v2426_v52, 0.0  ;;  %vm6021_vm12 = vmand %vm276_vm4, %vm10126_vm6  ;;  %v6049_v52 = vld [vmem:[%s9536_s1 + $0xc0] sm:$0xff] }
  0x65   :  { %v5989_v34 = vmax.f32 %v10138_v58, %v5901_v6  ;;  %10139 = vst [vmem:[#allocation98_spill] sm:$0xff] %v5998_v54  ;;  %10140 = vst [vmem:[#allocation99_spill] sm:$0xff] %v6003_v16  ;;  %2714 = vmax.xlane.f32.xlu1 %v2713_v51  ;;  %v1656_v13 = vmax.f32 %v5998_v54, %v6003_v16  ;;  %vm9641_vm2 = vcmp.ne.s32.totalorder %v5983_v32, 0  ;;  %v10141_v59 = vmov 0  ;;  %v6030_v51 = vld [vmem:[%s9535_s0 + $0xc0] sm:$0xff]  ;;  %v56_v32 = vld [vmem:[%s9537_s2 + $0xd8] sm:$0xff] }
  0x66   :  { %v10142_v59 = vsel %vm6021_vm12, 4294967295, %v10141_v59  ;;  %v2593_v58 = vmul.f32 %v2537_v41, %v2481_v1  ;;  %v2594_v36 = vmul.f32 %v2538_v57, %v2482_v9  ;;  %10144 = vst [vmem:[#allocation101_spill] sm:$0xff] %v6030_v51  ;;  %v4398_v27 = vadd.f32 -0.1, %v53_v63  ;;  %10147 = vst [vmem:[#allocation104_spill] sm:$0xff] %v6049_v52 }
  0x67   :  { %10143 = vst [vmem:[#allocation100_spill] sm:$0xff] %v10142_v59  ;;  %1657 = vmax.xlane.f32.xlu0 %v1656_v13  ;;  %v4399_v21 = vadd.f32 -0.1, %v54_v28  ;;  %v2427_v62 = vsub.f32 1.4, %v53_v63  ;;  %v55_v63 = vld [vmem:[%s9537_s2 + $0xd0] sm:$0xff] }
  0x68   :  { %v6039_v1 = vsel %vm9641_vm2, %v2593_v58, 0.0  ;;  %v6044_v9 = vsel %vm6021_vm12, %v2594_v36, %v5231_v30  ;;  %v1423_v41 = vmul.f32 24.0, %v4398_v27  ;;  %v1479_v57 = vmax.f32 %v4398_v27, 0.0 }
  0x69   :  { %10145 = vst [vmem:[#allocation102_spill] sm:$0xff] %v6039_v1  ;;  %10146 = vst [vmem:[#allocation103_spill] sm:$0xff] %v6044_v9  ;;  %v2716_v58 = vmax.f32 %v6039_v1, %v6044_v9  ;;  %vm9654_vm6 = vcmp.ne.s32.totalorder %v6030_v51, 0  ;;  %v1424_v13 = vmul.f32 24.0, %v4399_v21  ;;  %v1480_v36 = vmax.f32 %v4399_v21, 0.0 }
  0x6a   :  { %v1535_v40 = vmul.f32 %v1479_v57, %v1423_v41  ;;  %v2428_v59 = vsub.f32 1.4, %v54_v28  ;;  %v2483_v27 = vmul.f32 24.0, %v2427_v62  ;;  %vm10148_vm4 = vcmp.lt.s32.totalorder %v5198_v15, 160  ;;  %v112_v28 = vld [vmem:[%s9535_s0 + $0xd8] sm:$0xff] }
  0x6b   :  { %2717 = vmax.xlane.f32.xlu1 %v2716_v58  ;;  %vm10149_vm0 = vcmp.ne.s32.totalorder %v110_v44, 0  ;;  %v10150_v6 = vmov 0  ;;  %v2539_v21 = vmax.f32 %v2427_v62, 0.0  ;;  %v4400_v41 = vadd.f32 -0.1, %v55_v63  ;;  %v6080_v44 = vld [vmem:[%s9535_s0 + $0xd0] sm:$0xff] }
  0x6c   :  { %vm6065_vm12 = vmand %vm10149_vm0, %vm10148_vm4  ;;  %v1536_v57 = vmul.f32 %v1480_v36, %v1424_v13  ;;  %v6075_v22 = vsel %vm9654_vm6, %v1535_v40, 0.0  ;;  %v2484_v58 = vmul.f32 24.0, %v2428_v59  ;;  %v2540_v14 = vmax.f32 %v2428_v59, 0.0  ;;  %10154 = vst [vmem:[#allocation107_spill] sm:$0xff] %v6080_v44 }
  0x6d   :  { %v10151_v6 = vsel %vm6065_vm12, 4294967295, %v10150_v6  ;;  %10153 = vst [vmem:[#allocation106_spill] sm:$0xff] %v6075_v22  ;;  %vm10155_vm0 = vmmov %vm10148_vm4  ;;  %vm10156_vm4 = vcmp.ne.s32.totalorder %v222_v48, 0  ;;  %v10157_v25 = vmov 0  ;;  %v2595_v13 = vmul.f32 %v2539_v21, %v2483_v27  ;;  %v224_v21 = vld [vmem:[%s9536_s1 + $0xd8] sm:$0xff] }
  0x6e   :  { %10152 = vst [vmem:[#allocation105_spill] sm:$0xff] %v10151_v6  ;;  %vm6087_vm2 = vmand %vm10156_vm4, %vm10155_vm0  ;;  %v4401_v40 = vadd.f32 -0.1, %v56_v32  ;;  %v1425_v36 = vmul.f32 24.0, %v4400_v41  ;;  %v6094_v59 = vsel %vm6065_vm12, %v1536_v57, %v5231_v30  ;;  %v2596_v51 = vmul.f32 %v2540_v14, %v2484_v58 }
  0x6f   :  { %v10158_v25 = vsel %vm6087_vm2, 4294967295, %v10157_v25  ;;  %10160 = vst [vmem:[#allocation109_spill] sm:$0xff] %v6094_v59  ;;  %vm168_vm6 = vcmp.ne.s32.totalorder %v112_v28, 0  ;;  %v1481_v2 = vmax.f32 %v4400_v41, 0.0  ;;  %v1659_v62 = vmax.f32 %v6075_v22, %v6094_v59  ;;  %v58_v28 = vld [vmem:[%s9537_s2 + $0xe8] sm:$0xff] }
  0x70   :  { %10159 = vst [vmem:[#allocation108_spill] sm:$0xff] %v10158_v25  ;;  %vm10161_vm3 = vcmp.ne.s32.totalorder %v6049_v52, 0  ;;  %vm9665_vm0 = vcmp.ne.s32.totalorder %v6080_v44, 0  ;;  %v1426_v27 = vmul.f32 24.0, %v4401_v40  ;;  %v6111_v14 = vsel %vm6087_vm2, %v2596_v51, %v5231_v30 }
  0x71   :  { %v6100_v48 = vsel %vm10161_vm3, %v2595_v13, 0.0  ;;  %10163 = vst [vmem:[#allocation111_spill] sm:$0xff] %v6111_v14  ;;  %v1482_v41 = vmax.f32 %v4401_v40, 0.0  ;;  %v1537_v58 = vmul.f32 %v1481_v2, %v1425_v36  ;;  %v6116_v13 = vld [vmem:[%s9536_s1 + $0xd0] sm:$0xff]  ;;  %v10165_v52 = vmax.f32 %v5837_v56, %v5921_v10  ;;  %1660 = vmax.xlane.f32.xlu0 %v1659_v62  ;;  %v57_v36 = vld [vmem:[%s9537_s2 + $0xe0] sm:$0xff]  ;;  %v114_v62 = vld [vmem:[%s9535_s0 + $0xe8] sm:$0xff] }
  0x72   :  { %10162 = vst [vmem:[#allocation110_spill] sm:$0xff] %v6100_v48  ;;  %10164 = vst [vmem:[#allocation112_spill] sm:$0xff] %v6116_v13  ;;  %v2719_v51 = vmax.f32 %v6100_v48, %v6111_v14  ;;  %vm10166_vm3 = vcmp.lt.s32.totalorder %v5198_v15, 160  ;;  %v10167_v2 = vmov 0  ;;  %v2429_v40 = vsub.f32 1.4, %v55_v63 }
  0x73   :  { %v6124_v57 = vmax.f32 %v10165_v52, %v6075_v22  ;;  %vm6131_vm4 = vmand %vm168_vm6, %vm10166_vm3  ;;  %v1538_v6 = vmul.f32 %v1482_v41, %v1426_v27  ;;  %v6140_v56 = vsel %vm9665_vm0, %v1537_v58, 0.0  ;;  %vm280_vm12 = vcmp.ne.s32.totalorder %v224_v21, 0  ;;  %v6163_v22 = vld [vmem:[%s9535_s0 + $0xe0] sm:$0xff]  ;;  %v226_v21 = vld [vmem:[%s9536_s1 + $0xe8] sm:$0xff] }
  0x74   :  { %v10168_v2 = vsel %vm6131_vm4, 4294967295, %v10167_v2  ;;  %10170 = vst [vmem:[#allocation114_spill] sm:$0xff] %v6140_v56  ;;  %v2430_v52 = vsub.f32 1.4, %v56_v32  ;;  %v10171_v63 = vmax.f32 %v5858_v12, %v5926_v4  ;;  %2720 = vmax.xlane.f32.xlu1 %v2719_v51  ;;  %v2485_v27 = vmul.f32 24.0, %v2429_v40  ;;  %10173 = vst [vmem:[#allocation116_spill] sm:$0xff] %v6163_v22 }
  0x75   :  { %10169 = vst [vmem:[#allocation113_spill] sm:$0xff] %v10168_v2  ;;  %v2541_v41 = vmax.f32 %v2429_v40, 0.0  ;;  %v6158_v32 = vsel %vm6131_vm4, %v1538_v6, %v5231_v30  ;;  %v4402_v12 = vadd.f32 -0.1, %v57_v36  ;;  %vm6170_vm0 = vmand %vm280_vm12, %vm10166_vm3  ;;  %v10174_v40 = vmov 0 }
  0x76   :  { %v6152_v25 = vmax.f32 %v10171_v63, %v6094_v59  ;;  %10172 = vst [vmem:[#allocation115_spill] sm:$0xff] %v6158_v32  ;;  %v2486_v58 = vmul.f32 24.0, %v2430_v52  ;;  %v2542_v44 = vmax.f32 %v2430_v52, 0.0  ;;  %v1662_v51 = vmax.f32 %v6140_v56, %v6158_v32 }
  0x77   :  { %v10175_v40 = vsel %vm6170_vm0, 4294967295, %v10174_v40  ;;  %v2597_v6 = vmul.f32 %v2541_v41, %v2485_v27  ;;  %vm170_vm6 = vcmp.ne.s32.totalorder %v114_v62, 0  ;;  %v4403_v63 = vadd.f32 -0.1, %v58_v28 }
  0x78   :  { %10176 = vst [vmem:[#allocation117_spill] sm:$0xff] %v10175_v40  ;;  %v10177_v52 = vmax.f32 %v5864_v17, %v5965_v61  ;;  %v2598_v59 = vmul.f32 %v2542_v44, %v2486_v58  ;;  %v1427_v4 = vmul.f32 24.0, %v4402_v12  ;;  %v1483_v10 = vmax.f32 %v4402_v12, 0.0  ;;  %1663 = vmax.xlane.f32.xlu0 %v1662_v51  ;;  %v6208_v51 = vld [vmem:[%s9536_s1 + $0xe0] sm:$0xff] }
  0x79   :  { %vm10178_vm12 = vcmp.ne.s32.totalorder %v6116_v13, 0  ;;  %vm9679_vm3 = vcmp.ne.s32.totalorder %v6163_v22, 0  ;;  %v1428_v62 = vmul.f32 24.0, %v4403_v63  ;;  %v1484_v27 = vmax.f32 %v4403_v63, 0.0  ;;  %10186 = vst [vmem:[#allocation121_spill] sm:$0xff] %v6208_v51 }
  0x7a   :  { %v6178_v2 = vmax.f32 %v10177_v52, %v6100_v48  ;;  %v6185_v26 = vsel %vm10178_vm12, %v2597_v6, 0.0  ;;  %v10180_v17 = vmax.f32 %v5884_v47, %v5978_v8  ;;  %v6197_v41 = vsel %vm6170_vm0, %v2598_v59, %v5231_v30 }
  0x7b   :  { %10179 = vst [vmem:[#allocation118_spill] sm:$0xff] %v6185_v26  ;;  %10181 = vst [vmem:[#allocation119_spill] sm:$0xff] %v6197_v41  ;;  %vm10182_vm4 = vcmp.lt.s32.totalorder %v5198_v15, 160  ;;  %v10183_v58 = vmov 0  ;;  %v1539_v12 = vmul.f32 %v1483_v10, %v1427_v4  ;;  %v2431_v47 = vsub.f32 1.4, %v57_v36 }
  0x7c   :  { %v6192_v44 = vmax.f32 %v10180_v17, %v6111_v14  ;;  %vm6201_vm2 = vmand %vm170_vm6, %vm10182_vm4  ;;  %v2722_v6 = vmax.f32 %v6185_v26, %v6197_v41  ;;  %v1540_v63 = vmul.f32 %v1484_v27, %v1428_v62  ;;  %vm282_vm12 = vcmp.ne.s32.totalorder %v226_v21, 0  ;;  %v59_v36 = vld [vmem:[%s9537_s2 + $0xf0] sm:$0xff]  ;;  %v228_v21 = vld [vmem:[%s9536_s1 + $0xf8] sm:$0xff] }
  0x7d   :  { %v10184_v58 = vsel %vm6201_vm2, 4294967295, %v10183_v58  ;;  %v2432_v59 = vsub.f32 1.4, %v58_v28  ;;  %v10187_v52 = vmax.f32 %v5937_v45, %v5998_v54  ;;  %v6220_v10 = vsel %vm9679_vm3, %v1539_v12, 0.0  ;;  %v60_v28 = vld [vmem:[%s9537_s2 + $0xf8] sm:$0xff]  ;;  %v118_v14 = vld [vmem:[%s9535_s0 + $0x108] sm:$0xff] }
  0x7e   :  { %10185 = vst [vmem:[#allocation120_spill] sm:$0xff] %v10184_v58  ;;  %10188 = vst [vmem:[#allocation122_spill] sm:$0xff] %v6220_v10  ;;  %v2487_v4 = vmul.f32 24.0, %v2431_v47  ;;  %v2543_v40 = vmax.f32 %v2431_v47, 0.0  ;;  %2723 = vmax.xlane.f32.xlu1 %v2722_v6  ;;  %v6231_v45 = vsel %vm6201_vm2, %v1540_v63, %v5231_v30  ;;  %vm9686_vm4 = vcmp.ne.s32.totalorder %v6208_v51, 0  ;;  %v116_v12 = vld [vmem:[%s9535_s0 + $0xf8] sm:$0xff] }
  0x7f   :  { %v6216_v17 = vmax.f32 %v10187_v52, %v6140_v56  ;;  %10189 = vst [vmem:[#allocation123_spill] sm:$0xff] %v6231_v45  ;;  %v2488_v62 = vmul.f32 24.0, %v2432_v59  ;;  %v2544_v27 = vmax.f32 %v2432_v59, 0.0  ;;  %v10190_v47 = vmax.f32 %v5943_v7, %v6003_v16  ;;  %v6261_v7 = vld [vmem:[%s9535_s0 + $0xf0] sm:$0xff] }
  0x80   :  { %v10191_v6 = vmax.f32 %v5961_v55, %v6039_v1  ;;  %v1665_v58 = vmax.f32 %v6220_v10, %v6231_v45  ;;  %vm10192_vm6 = vcmp.lt.s32.totalorder %v5198_v15, 160  ;;  %v10193_v59 = vmov 0  ;;  %10196 = vst [vmem:[#allocation125_spill] sm:$0xff] %v6261_v7 }
  0x81   :  { %v6241_v52 = vmax.f32 %v10190_v47, %v6158_v32  ;;  %vm6254_vm3 = vmand %vm282_vm12, %vm10192_vm6  ;;  %v2599_v22 = vmul.f32 %v2543_v40, %v2487_v4  ;;  %v10197_v55 = vmax.f32 %v5989_v34, %v6044_v9  ;;  %v4404_v13 = vadd.f32 -0.1, %v59_v36 }
  0x82   :  { %v6247_v63 = vmax.f32 %v10191_v6, %v6185_v26  ;;  %v10194_v59 = vsel %vm6254_vm3, 4294967295, %v10193_v59  ;;  %v2600_v6 = vmul.f32 %v2544_v27, %v2488_v62  ;;  %v4405_v26 = vadd.f32 -0.1, %v60_v28  ;;  %1666 = vmax.xlane.f32.xlu0 %v1665_v58  ;;  %v6285_v58 = vld [vmem:[%s9536_s1 + $0xf0] sm:$0xff] }
  0x83   :  { %10195 = vst [vmem:[#allocation124_spill] sm:$0xff] %v10194_v59  ;;  %v6267_v47 = vmax.f32 %v10197_v55, %v6197_v41  ;;  %v6274_v40 = vsel %vm9686_vm4, %v2599_v22, 0.0  ;;  %vm172_vm12 = vcmp.ne.s32.totalorder %v116_v12, 0  ;;  %v2433_v4 = vsub.f32 1.4, %v59_v36  ;;  %10200 = vst [vmem:[#allocation128_spill] sm:$0xff] %v6285_v58 }
  0x84   :  { %10198 = vst [vmem:[#allocation126_spill] sm:$0xff] %v6274_v40  ;;  %v2434_v32 = vsub.f32 1.4, %v60_v28  ;;  %v6279_v34 = vsel %vm6254_vm3, %v2600_v6, %v5231_v30  ;;  %v1429_v62 = vmul.f32 24.0, %v4404_v13  ;;  %v1430_v27 = vmul.f32 24.0, %v4405_v26  ;;  %v61_v28 = vld [vmem:[%s9537_s2 + $0x100] sm:$0xff]  ;;  %vm6297_vm2 = vmand %vm172_vm12, %vm10192_vm6 }
  0x85   :  { %10199 = vst [vmem:[#allocation127_spill] sm:$0xff] %v6279_v34  ;;  %v2725_v22 = vmax.f32 %v6274_v40, %v6279_v34  ;;  %v1485_v12 = vmax.f32 %v4404_v13, 0.0  ;;  %v1486_v36 = vmax.f32 %v4405_v26, 0.0  ;;  %vm284_vm4 = vcmp.ne.s32.totalorder %v228_v21, 0  ;;  %v62_v55 = vld [vmem:[%s9537_s2 + $0x108] sm:$0xff]  ;;  %vm10204_vm12 = vmmov %vm10192_vm6 }
  0x86   :  { %v10201_v6 = vmov 0  ;;  %v2489_v59 = vmul.f32 24.0, %v2433_v4  ;;  %v2490_v51 = vmul.f32 24.0, %v2434_v32  ;;  %v2545_v41 = vmax.f32 %v2433_v4, 0.0  ;;  %vm6309_vm6 = vmand %vm284_vm4, %vm10204_vm12 }
  0x87   :  { %v10202_v6 = vsel %vm6297_vm2, 4294967295, %v10201_v6  ;;  %v2546_v13 = vmax.f32 %v2434_v32, 0.0  ;;  %2726 = vmax.xlane.f32.xlu1 %v2725_v22  ;;  %v1541_v21 = vmul.f32 %v1485_v12, %v1429_v62  ;;  %v1542_v56 = vmul.f32 %v1486_v36, %v1430_v27  ;;  %v6316_v22 = vld [vmem:[%s9535_s0 + $0x100] sm:$0xff]  ;;  %v120_v36 = vld [vmem:[%s9535_s0 + $0x118] sm:$0xff] }
  0x88   :  { %10203 = vst [vmem:[#allocation129_spill] sm:$0xff] %v10202_v6  ;;  %vm9703_vm3 = vcmp.ne.s32.totalorder %v6285_v58, 0  ;;  %v10205_v48 = vmov 0  ;;  %v2601_v4 = vmul.f32 %v2545_v41, %v2489_v59  ;;  %10208 = vst [vmem:[#allocation131_spill] sm:$0xff] %v6316_v22  ;;  %v4406_v62 = vadd.f32 -0.1, %v61_v28 }
  0x89   :  { %v10206_v48 = vsel %vm6309_vm6, 4294967295, %v10205_v48  ;;  %v2602_v32 = vmul.f32 %v2546_v13, %v2490_v51  ;;  %v4407_v27 = vadd.f32 -0.1, %v62_v55  ;;  %vm10209_vm4 = vcmp.ne.s32.totalorder %v6261_v7, 0  ;;  %v6334_v51 = vld [vmem:[%s9536_s1 + $0x100] sm:$0xff] }
  0x8a   :  { %10207 = vst [vmem:[#allocation130_spill] sm:$0xff] %v10206_v48  ;;  %v6324_v26 = vsel %vm10209_vm4, %v1541_v21, 0.0  ;;  %v6329_v41 = vsel %vm6297_vm2, %v1542_v56, %v5231_v30  ;;  %10212 = vst [vmem:[#allocation134_spill] sm:$0xff] %v6334_v51  ;;  %v6342_v21 = vsel %vm9703_vm3, %v2601_v4, 0.0  ;;  %vm174_vm12 = vcmp.ne.s32.totalorder %v118_v14, 0  ;;  %v230_v56 = vld [vmem:[%s9536_s1 + $0x108] sm:$0xff] }
  0x8b   :  { %10210 = vst [vmem:[#allocation132_spill] sm:$0xff] %v6324_v26  ;;  %10211 = vst [vmem:[#allocation133_spill] sm:$0xff] %v6329_v41  ;;  %v1668_v13 = vmax.f32 %v6324_v26, %v6329_v41  ;;  %v6353_v59 = vsel %vm6309_vm6, %v2602_v32, %v5231_v30  ;;  %v1431_v12 = vmul.f32 24.0, %v4406_v62  ;;  %v1432_v6 = vmul.f32 24.0, %v4407_v27  ;;  %v63_v14 = vld [vmem:[%s9537_s2 + $0x110] sm:$0xff]  ;;  %v64_v4 = vld [vmem:[%s9537_s2 + $0x118] sm:$0xff] }
  0x8c   :  { %10213 = vst [vmem:[#allocation135_spill] sm:$0xff] %v6342_v21  ;;  %10214 = vst [vmem:[#allocation136_spill] sm:$0xff] %v6353_v59  ;;  %v2728_v7 = vmax.f32 %v6342_v21, %v6353_v59  ;;  %v1487_v58 = vmax.f32 %v4406_v62, 0.0  ;;  %v1488_v48 = vmax.f32 %v4407_v27, 0.0  ;;  %vm10215_vm4 = vcmp.lt.s32.totalorder %v5198_v15, 160 }
  0x8d   :  { %1669 = vmax.xlane.f32.xlu0 %v1668_v13  ;;  %vm6367_vm2 = vmand %vm174_vm12, %vm10215_vm4  ;;  %v10216_v32 = vmov 0  ;;  %vm286_vm6 = vcmp.ne.s32.totalorder %v230_v56, 0  ;;  %v2435_v9 = vsub.f32 1.4, %v61_v28  ;;  %v2436_v1 = vsub.f32 1.4, %v62_v55 }
  0x8e   :  { %v10217_v32 = vsel %vm6367_vm2, 4294967295, %v10216_v32  ;;  %vm176_vm0 = vcmp.ne.s32.totalorder %v120_v36, 0  ;;  %2729 = vmax.xlane.f32.xlu1 %v2728_v7  ;;  %v1543_v16 = vmul.f32 %v1487_v58, %v1431_v12  ;;  %v1544_v13 = vmul.f32 %v1488_v48, %v1432_v6  ;;  %v6383_v7 = vld [vmem:[%s9535_s0 + $0x110] sm:$0xff]  ;;  %v232_v6 = vld [vmem:[%s9536_s1 + $0x118] sm:$0xff]  ;;  %v122_v36 = vld [vmem:[%s9535_s0 + $0x128] sm:$0xff] }
  0x8f   :  { %10218 = vst [vmem:[#allocation137_spill] sm:$0xff] %v10217_v32  ;;  %v4408_v54 = vadd.f32 -0.1, %v63_v14  ;;  %v4409_v8 = vadd.f32 -0.1, %v64_v4  ;;  %v2491_v61 = vmul.f32 24.0, %v2435_v9 }
  0x90   :  { %v2492_v62 = vmul.f32 24.0, %v2436_v1  ;;  %v2547_v27 = vmax.f32 %v2435_v9, 0.0  ;;  %v2548_v24 = vmax.f32 %v2436_v1, 0.0  ;;  %vm10219_vm3 = vcmp.ne.s32.totalorder %v6316_v22, 0  ;;  %10222 = vst [vmem:[#allocation140_spill] sm:$0xff] %v6383_v7 }
  0x91   :  { %v6373_v5 = vsel %vm10219_vm3, %v1543_v16, 0.0  ;;  %v6378_v20 = vsel %vm6367_vm2, %v1544_v13, %v5231_v30  ;;  %v1433_v48 = vmul.f32 24.0, %v4408_v54  ;;  %v1434_v58 = vmul.f32 24.0, %v4409_v8  ;;  %vm10223_vm3 = vmmov %vm10215_vm4 }
  0x92   :  { %10220 = vst [vmem:[#allocation138_spill] sm:$0xff] %v6373_v5  ;;  %10221 = vst [vmem:[#allocation139_spill] sm:$0xff] %v6378_v20  ;;  %v1671_v16 = vmax.f32 %v6373_v5, %v6378_v20  ;;  %v10224_v28 = vmov 0  ;;  %v2603_v55 = vmul.f32 %v2547_v27, %v2491_v61  ;;  %v2604_v13 = vmul.f32 %v2548_v24, %v2492_v62  ;;  %v6423_v62 = vld [vmem:[%s9536_s1 + $0x110] sm:$0xff] }
  0x93   :  { %vm6394_vm12 = vmand %vm286_vm6, %vm10223_vm3  ;;  %v1489_v1 = vmax.f32 %v4408_v54, 0.0  ;;  %v1490_v9 = vmax.f32 %v4409_v8, 0.0  ;;  %vm10227_vm4 = vcmp.ne.s32.totalorder %v6334_v51, 0  ;;  %vm9727_vm6 = vcmp.ne.s32.totalorder %v6383_v7, 0  ;;  %10233 = vst [vmem:[#allocation145_spill] sm:$0xff] %v6423_v62 }
  0x94   :  { %v10225_v28 = vsel %vm6394_vm12, 4294967295, %v10224_v28  ;;  %1672 = vmax.xlane.f32.xlu0 %v1671_v16  ;;  %v6405_v32 = vsel %vm10227_vm4, %v2603_v55, 0.0  ;;  %vm6411_vm2 = vmand %vm176_vm0, %vm10223_vm3  ;;  %v10229_v61 = vmov 0  ;;  %v2437_v56 = vsub.f32 1.4, %v63_v14  ;;  %v65_v55 = vld [vmem:[%s9537_s2 + $0x120] sm:$0xff] }
  0x95   :  { %10226 = vst [vmem:[#allocation141_spill] sm:$0xff] %v10225_v28  ;;  %10228 = vst [vmem:[#allocation142_spill] sm:$0xff] %v6405_v32  ;;  %v10230_v61 = vsel %vm6411_vm2, 4294967295, %v10229_v61  ;;  %v2438_v27 = vsub.f32 1.4, %v64_v4  ;;  %v6418_v24 = vsel %vm6394_vm12, %v2604_v13, %v5231_v30  ;;  %v1545_v8 = vmul.f32 %v1489_v1, %v1433_v48  ;;  %v66_v13 = vld [vmem:[%s9537_s2 + $0x128] sm:$0xff] }
  0x96   :  { %10231 = vst [vmem:[#allocation143_spill] sm:$0xff] %v10230_v61  ;;  %10232 = vst [vmem:[#allocation144_spill] sm:$0xff] %v6418_v24  ;;  %v1546_v54 = vmul.f32 %v1490_v9, %v1434_v58  ;;  %vm288_vm4 = vcmp.ne.s32.totalorder %v232_v6, 0  ;;  %v2731_v14 = vmax.f32 %v6405_v32, %v6418_v24  ;;  %v2493_v4 = vmul.f32 24.0, %v2437_v56  ;;  %v234_v6 = vld [vmem:[%s9536_s1 + $0x128] sm:$0xff] }
  0x97   :  { %v2494_v16 = vmul.f32 24.0, %v2438_v27  ;;  %v6434_v48 = vsel %vm9727_vm6, %v1545_v8, 0.0  ;;  %v2549_v9 = vmax.f32 %v2437_v56, 0.0  ;;  %v2550_v1 = vmax.f32 %v2438_v27, 0.0  ;;  %vm6465_vm6 = vmand %vm288_vm4, %vm10223_vm3 }
  0x98   :  { %10234 = vst [vmem:[#allocation146_spill] sm:$0xff] %v6434_v48  ;;  %v6439_v58 = vsel %vm6411_vm2, %v1546_v54, %v5231_v30  ;;  %v10236_v8 = vmax.f32 %v6124_v57, %v6220_v10  ;;  %v10237_v54 = vmax.f32 %v6152_v25, %v6231_v45  ;;  %2732 = vmax.xlane.f32.xlu1 %v2731_v14  ;;  %vm9732_vm0 = vcmp.ne.s32.totalorder %v6423_v62, 0  ;;  %v68_v62 = vld [vmem:[%s9537_s2 + $0x138] sm:$0xff]  ;;  %vm10248_vm4 = vmmov %vm10223_vm3  ;;  %v130_v45 = vld [vmem:[%s9535_s0 + $0x168] sm:$0xff] }
  0x99   :  { %10235 = vst [vmem:[#allocation147_spill] sm:$0xff] %v6439_v58  ;;  %v1674_v27 = vmax.f32 %v6434_v48, %v6439_v58  ;;  %v10238_v61 = vmov 0  ;;  %v10241_v57 = vmax.f32 %v6178_v2, %v6274_v40  ;;  %v2606_v14 = vmul.f32 %v2550_v1, %v2494_v16 }
  0x9a   :  { %v6451_v12 = vmax.f32 %v10236_v8, %v6373_v5  ;;  %v6457_v56 = vmax.f32 %v10237_v54, %v6378_v20  ;;  %v10239_v61 = vsel %vm6465_vm6, 4294967295, %v10238_v61  ;;  %v2605_v8 = vmul.f32 %v2549_v9, %v2493_v4  ;;  %v6478_v54 = vld [vmem:[%s9535_s0 + $0x120] sm:$0xff]  ;;  %v238_v5 = vld [vmem:[%s9536_s1 + $0x148] sm:$0xff] }
  0x9b   :  { %10240 = vst [vmem:[#allocation148_spill] sm:$0xff] %v10239_v61  ;;  %v6473_v25 = vmax.f32 %v10241_v57, %v6405_v32  ;;  %10242 = vst [vmem:[#allocation149_spill] sm:$0xff] %v6478_v54  ;;  %v4410_v7 = vadd.f32 -0.1, %v65_v55  ;;  %v10243_v22 = vmax.f32 %v6192_v44, %v6279_v34  ;;  %1675 = vmax.xlane.f32.xlu0 %v1674_v27  ;;  %v4411_v2 = vadd.f32 -0.1, %v66_v13 }
  0x9c   :  { %v2439_v4 = vsub.f32 1.4, %v65_v55  ;;  %v6491_v16 = vsel %vm9732_vm0, %v2605_v8, 0.0  ;;  %v6496_v9 = vsel %vm6465_vm6, %v2606_v14, %v5231_v30  ;;  %v6501_v44 = vld [vmem:[%s9536_s1 + $0x120] sm:$0xff]  ;;  %v2440_v61 = vsub.f32 1.4, %v66_v13 }
  0x9d   :  { %v6487_v28 = vmax.f32 %v10243_v22, %v6418_v24  ;;  %10244 = vst [vmem:[#allocation150_spill] sm:$0xff] %v6491_v16  ;;  %10245 = vst [vmem:[#allocation151_spill] sm:$0xff] %v6496_v9  ;;  %v1435_v1 = vmul.f32 24.0, %v4410_v7  ;;  %v1491_v57 = vmax.f32 %v4410_v7, 0.0  ;;  %v67_v22 = vld [vmem:[%s9537_s2 + $0x130] sm:$0xff]  ;;  %v2734_v55 = vmax.f32 %v6491_v16, %v6496_v9 }
  0x9e   :  { %10246 = vst [vmem:[#allocation152_spill] sm:$0xff] %v6501_v44  ;;  %v1436_v27 = vmul.f32 24.0, %v4411_v2  ;;  %v1492_v8 = vmax.f32 %v4411_v2, 0.0  ;;  %v2495_v7 = vmul.f32 24.0, %v2439_v4  ;;  %v10247_v51 = vmax.f32 %v6216_v17, %v6324_v26  ;;  %v124_v2 = vld [vmem:[%s9535_s0 + $0x138] sm:$0xff] }
  0x9f   :  { %v1547_v14 = vmul.f32 %v1491_v57, %v1435_v1  ;;  %2735 = vmax.xlane.f32.xlu1 %v2734_v55  ;;  %vm10249_vm3 = vcmp.ne.s32.totalorder %v122_v36, 0  ;;  %v10250_v32 = vmov 0  ;;  %v2551_v13 = vmax.f32 %v2439_v4, 0.0  ;;  %v6536_v36 = vld [vmem:[%s9535_s0 + $0x130] sm:$0xff] }
  0xa0   :  { %v6516_v24 = vmax.f32 %v10247_v51, %v6434_v48  ;;  %vm6521_vm2 = vmand %vm10249_vm3, %vm10248_vm4  ;;  %v4412_v1 = vadd.f32 -0.1, %v67_v22  ;;  %v1548_v57 = vmul.f32 %v1492_v8, %v1436_v27  ;;  %vm10253_vm6 = vcmp.ne.s32.totalorder %v6478_v54, 0  ;;  %10255 = vst [vmem:[#allocation155_spill] sm:$0xff] %v6536_v36 }
  0xa1   :  { %v10251_v32 = vsel %vm6521_vm2, 4294967295, %v10250_v32  ;;  %v6531_v17 = vsel %vm10253_vm6, %v1547_v14, 0.0  ;;  %v2496_v51 = vmul.f32 24.0, %v2440_v61  ;;  %v2552_v55 = vmax.f32 %v2440_v61, 0.0 }
  0xa2   :  { %10252 = vst [vmem:[#allocation153_spill] sm:$0xff] %v10251_v32  ;;  %10254 = vst [vmem:[#allocation154_spill] sm:$0xff] %v6531_v17  ;;  %v10256_v4 = vmax.f32 %v6241_v52, %v6329_v41  ;;  %vm10257_vm3 = vcmp.ne.s32.totalorder %v234_v6, 0  ;;  %v10258_v27 = vmov 0  ;;  %v2607_v8 = vmul.f32 %v2551_v13, %v2495_v7  ;;  %v236_v13 = vld [vmem:[%s9536_s1 + $0x138] sm:$0xff]  ;;  %v6580_v32 = vld [vmem:[%s9536_s1 + $0x130] sm:$0xff] }
  0xa3   :  { %vm6547_vm0 = vmand %vm10257_vm3, %vm10248_vm4  ;;  %v4413_v61 = vadd.f32 -0.1, %v68_v62  ;;  %v1437_v14 = vmul.f32 24.0, %v4412_v1  ;;  %v6554_v54 = vsel %vm6521_vm2, %v1548_v57, %v5231_v30  ;;  %v2608_v20 = vmul.f32 %v2552_v55, %v2496_v51  ;;  %10266 = vst [vmem:[#allocation160_spill] sm:$0xff] %v6580_v32 }
  0xa4   :  { %v6542_v48 = vmax.f32 %v10256_v4, %v6439_v58  ;;  %v10259_v27 = vsel %vm6547_vm0, 4294967295, %v10258_v27  ;;  %10261 = vst [vmem:[#allocation157_spill] sm:$0xff] %v6554_v54  ;;  %vm180_vm6 = vcmp.ne.s32.totalorder %v124_v2, 0  ;;  %v1493_v52 = vmax.f32 %v4412_v1, 0.0  ;;  %v70_v2 = vld [vmem:[%s9537_s2 + $0x148] sm:$0xff] }
  0xa5   :  { %10260 = vst [vmem:[#allocation156_spill] sm:$0xff] %v10259_v27  ;;  %v1677_v4 = vmax.f32 %v6531_v17, %v6554_v54  ;;  %vm10262_vm12 = vcmp.ne.s32.totalorder %v6501_v44, 0  ;;  %vm9755_vm4 = vcmp.ne.s32.totalorder %v6536_v36, 0  ;;  %v1438_v7 = vmul.f32 24.0, %v4413_v61  ;;  %v6623_v36 = vld [vmem:[%s9535_s0 + $0x140] sm:$0xff] }
  0xa6   :  { %v6560_v6 = vsel %vm10262_vm12, %v2607_v8, 0.0  ;;  %v10264_v57 = vmax.f32 %v6247_v63, %v6342_v21  ;;  %v6575_v1 = vsel %vm6547_vm0, %v2608_v20, %v5231_v30  ;;  %v1494_v55 = vmax.f32 %v4413_v61, 0.0  ;;  %10274 = vst [vmem:[#allocation164_spill] sm:$0xff] %v6623_v36 }
  0xa7   :  { %10263 = vst [vmem:[#allocation158_spill] sm:$0xff] %v6560_v6  ;;  %10265 = vst [vmem:[#allocation159_spill] sm:$0xff] %v6575_v1  ;;  %v1549_v8 = vmul.f32 %v1493_v52, %v1437_v14  ;;  %v10267_v44 = vmax.f32 %v6267_v47, %v6353_v59  ;;  %1678 = vmax.xlane.f32.xlu0 %v1677_v4  ;;  %v2737_v20 = vmax.f32 %v6560_v6, %v6575_v1  ;;  %v10269_v61 = vmov 0  ;;  %v69_v47 = vld [vmem:[%s9537_s2 + $0x140] sm:$0xff] }
  0xa8   :  { %v6570_v51 = vmax.f32 %v10264_v57, %v6491_v16  ;;  %vm10268_vm12 = vcmp.lt.s32.totalorder %v5198_v15, 160  ;;  %v2441_v14 = vsub.f32 1.4, %v67_v22  ;;  %vm292_vm2 = vcmp.ne.s32.totalorder %v236_v13, 0  ;;  %v126_v57 = vld [vmem:[%s9535_s0 + $0x148] sm:$0xff] }
  0xa9   :  { %v6586_v58 = vmax.f32 %v10267_v44, %v6496_v9  ;;  %vm6595_vm3 = vmand %vm180_vm6, %vm10268_vm12  ;;  %v1550_v44 = vmul.f32 %v1494_v55, %v1438_v7  ;;  %v6604_v52 = vsel %vm9755_vm4, %v1549_v8, 0.0  ;;  %v2442_v4 = vsub.f32 1.4, %v68_v62  ;;  %2738 = vmax.xlane.f32.xlu1 %v2737_v20 }
  0xaa   :  { %v10270_v61 = vsel %vm6595_vm3, 4294967295, %v10269_v61  ;;  %10272 = vst [vmem:[#allocation162_spill] sm:$0xff] %v6604_v52  ;;  %v2497_v7 = vmul.f32 24.0, %v2441_v14  ;;  %v2553_v55 = vmax.f32 %v2441_v14, 0.0  ;;  %v4414_v27 = vadd.f32 -0.1, %v69_v47  ;;  %vm6630_vm4 = vmand %vm292_vm2, %vm10268_vm12 }
  0xab   :  { %10271 = vst [vmem:[#allocation161_spill] sm:$0xff] %v10270_v61  ;;  %v6618_v62 = vsel %vm6595_vm3, %v1550_v44, %v5231_v30  ;;  %v2498_v8 = vmul.f32 24.0, %v2442_v4  ;;  %v2554_v63 = vmax.f32 %v2442_v4, 0.0  ;;  %v10275_v14 = vmov 0 }
  0xac   :  { %10273 = vst [vmem:[#allocation163_spill] sm:$0xff] %v6618_v62  ;;  %v1680_v20 = vmax.f32 %v6604_v52, %v6618_v62  ;;  %v10276_v14 = vsel %vm6630_vm4, 4294967295, %v10275_v14  ;;  %v2609_v44 = vmul.f32 %v2553_v55, %v2497_v7  ;;  %vm182_vm6 = vcmp.ne.s32.totalorder %v126_v57, 0 }
  0xad   :  { %10277 = vst [vmem:[#allocation165_spill] sm:$0xff] %v10276_v14  ;;  %v4415_v22 = vadd.f32 -0.1, %v70_v2  ;;  %v2610_v61 = vmul.f32 %v2554_v63, %v2498_v8  ;;  %v1439_v9 = vmul.f32 24.0, %v4414_v27  ;;  %v1495_v16 = vmax.f32 %v4414_v27, 0.0  ;;  %vm6653_vm0 = vmand %vm182_vm6, %vm10268_vm12 }
  0xae   :  { %1681 = vmax.xlane.f32.xlu0 %v1680_v20  ;;  %vm10278_vm3 = vcmp.ne.s32.totalorder %v6580_v32, 0  ;;  %vm9767_vm2 = vcmp.ne.s32.totalorder %v6623_v36, 0  ;;  %v10281_v63 = vmov 0  ;;  %v6660_v20 = vld [vmem:[%s9536_s1 + $0x140] sm:$0xff]  ;;  %v71_v32 = vld [vmem:[%s9537_s2 + $0x150] sm:$0xff] }
  0xaf   :  { %v6641_v13 = vsel %vm10278_vm3, %v2609_v44, 0.0  ;;  %v1440_v7 = vmul.f32 24.0, %v4415_v22  ;;  %v1496_v57 = vmax.f32 %v4415_v22, 0.0  ;;  %v6649_v27 = vsel %vm6630_vm4, %v2610_v61, %v5231_v30  ;;  %10284 = vst [vmem:[#allocation169_spill] sm:$0xff] %v6660_v20 }
  0xb0   :  { %10279 = vst [vmem:[#allocation166_spill] sm:$0xff] %v6641_v13  ;;  %10280 = vst [vmem:[#allocation167_spill] sm:$0xff] %v6649_v27  ;;  %v10282_v63 = vsel %vm6653_vm0, 4294967295, %v10281_v63  ;;  %v1551_v8 = vmul.f32 %v1495_v16, %v1439_v9  ;;  %v2443_v22 = vsub.f32 1.4, %v69_v47  ;;  %v2740_v44 = vmax.f32 %v6641_v13, %v6649_v27  ;;  %v72_v47 = vld [vmem:[%s9537_s2 + $0x158] sm:$0xff] }
  0xb1   :  { %10283 = vst [vmem:[#allocation168_spill] sm:$0xff] %v10282_v63  ;;  %v1552_v55 = vmul.f32 %v1496_v57, %v1440_v7  ;;  %vm294_vm3 = vcmp.ne.s32.totalorder %v238_v5, 0  ;;  %v2444_v61 = vsub.f32 1.4, %v70_v2  ;;  %vm9776_vm6 = vcmp.ne.s32.totalorder %v6660_v20, 0  ;;  %v6701_v63 = vld [vmem:[%s9535_s0 + $0x150] sm:$0xff] }
  0xb2   :  { %v6668_v14 = vsel %vm9767_vm2, %v1551_v8, 0.0  ;;  %v2499_v16 = vmul.f32 24.0, %v2443_v22  ;;  %v2555_v9 = vmax.f32 %v2443_v22, 0.0  ;;  %2741 = vmax.xlane.f32.xlu1 %v2740_v44  ;;  %v128_v8 = vld [vmem:[%s9535_s0 + $0x158] sm:$0xff]  ;;  %vm6694_vm2 = vmand %vm294_vm3, %vm10268_vm12  ;;  %10290 = vst [vmem:[#allocation173_spill] sm:$0xff] %v6701_v63  ;;  %v10294_v22 = vmov 0 }
  0xb3   :  { %10285 = vst [vmem:[#allocation170_spill] sm:$0xff] %v6668_v14  ;;  %v6679_v2 = vsel %vm6653_vm0, %v1552_v55, %v5231_v30  ;;  %v2500_v7 = vmul.f32 24.0, %v2444_v61  ;;  %v2556_v57 = vmax.f32 %v2444_v61, 0.0  ;;  %v10287_v55 = vmov 0  ;;  %v240_v5 = vld [vmem:[%s9536_s1 + $0x158] sm:$0xff] }
  0xb4   :  { %10286 = vst [vmem:[#allocation171_spill] sm:$0xff] %v6679_v2  ;;  %v1683_v44 = vmax.f32 %v6668_v14, %v6679_v2  ;;  %v10288_v55 = vsel %vm6694_vm2, 4294967295, %v10287_v55  ;;  %v2611_v61 = vmul.f32 %v2555_v9, %v2499_v16  ;;  %v4416_v36 = vadd.f32 -0.1, %v71_v32 }
  0xb5   :  { %10289 = vst [vmem:[#allocation172_spill] sm:$0xff] %v10288_v55  ;;  %v2612_v4 = vmul.f32 %v2556_v57, %v2500_v7  ;;  %v4417_v59 = vadd.f32 -0.1, %v72_v47  ;;  %vm184_vm3 = vcmp.ne.s32.totalorder %v128_v8, 0  ;;  %v2445_v16 = vsub.f32 1.4, %v71_v32 }
  0xb6   :  { %1684 = vmax.xlane.f32.xlu0 %v1683_v44  ;;  %v6710_v21 = vsel %vm9776_vm6, %v2611_v61, 0.0  ;;  %v2446_v9 = vsub.f32 1.4, %v72_v47  ;;  %v1441_v7 = vmul.f32 24.0, %v4416_v36  ;;  %v6721_v44 = vld [vmem:[%s9536_s1 + $0x150] sm:$0xff]  ;;  %v1497_v8 = vmax.f32 %v4416_v36, 0.0  ;;  %vm6733_vm0 = vmand %vm184_vm3, %vm10268_vm12 }
  0xb7   :  { %10291 = vst [vmem:[#allocation174_spill] sm:$0xff] %v6710_v21  ;;  %v6715_v41 = vsel %vm6694_vm2, %v2612_v4, %v5231_v30  ;;  %v1442_v57 = vmul.f32 24.0, %v4417_v59  ;;  %10293 = vst [vmem:[#allocation176_spill] sm:$0xff] %v6721_v44  ;;  %v1498_v32 = vmax.f32 %v4417_v59, 0.0  ;;  %vm296_vm6 = vcmp.ne.s32.totalorder %v240_v5, 0  ;;  %v73_v4 = vld [vmem:[%s9537_s2 + $0x160] sm:$0xff] }
  0xb8   :  { %10292 = vst [vmem:[#allocation175_spill] sm:$0xff] %v6715_v41  ;;  %v2743_v61 = vmax.f32 %v6710_v21, %v6715_v41  ;;  %v74_v47 = vld [vmem:[%s9537_s2 + $0x168] sm:$0xff]  ;;  %v10295_v22 = vsel %vm6733_vm0, 4294967295, %v10294_v22  ;;  %v2501_v55 = vmul.f32 24.0, %v2445_v16  ;;  %v2502_v20 = vmul.f32 24.0, %v2446_v9  ;;  %vm10298_vm3 = vmmov %vm10268_vm12 }
  0xb9   :  { %10296 = vst [vmem:[#allocation177_spill] sm:$0xff] %v10295_v22  ;;  %v2557_v26 = vmax.f32 %v2445_v16, 0.0  ;;  %v2558_v36 = vmax.f32 %v2446_v9, 0.0  ;;  %v10297_v59 = vmax.f32 %v6451_v12, %v6531_v17  ;;  %v1553_v34 = vmul.f32 %v1497_v8, %v1441_v7  ;;  %vm6749_vm12 = vmand %vm296_vm6, %vm10298_vm3  ;;  %v6756_v12 = vld [vmem:[%s9535_s0 + $0x160] sm:$0xff] }
  0xba   :  { %2744 = vmax.xlane.f32.xlu1 %v2743_v61  ;;  %v1554_v40 = vmul.f32 %v1498_v32, %v1442_v57  ;;  %vm9794_vm2 = vcmp.ne.s32.totalorder %v6721_v44, 0  ;;  %v10299_v16 = vmov 0  ;;  %10302 = vst [vmem:[#allocation179_spill] sm:$0xff] %v6756_v12  ;;  %v4418_v7 = vadd.f32 -0.1, %v73_v4 }
  0xbb   :  { %v6741_v5 = vmax.f32 %v10297_v59, %v6668_v14  ;;  %v10300_v16 = vsel %vm6749_vm12, 4294967295, %v10299_v16  ;;  %v2613_v9 = vmul.f32 %v2557_v26, %v2501_v55  ;;  %v2614_v10 = vmul.f32 %v2558_v36, %v2502_v20 }
  0xbc   :  { %10301 = vst [vmem:[#allocation178_spill] sm:$0xff] %v10300_v16  ;;  %v4419_v57 = vadd.f32 -0.1, %v74_v47  ;;  %v10303_v61 = vmax.f32 %v6457_v56, %v6554_v54  ;;  %v10304_v32 = vmax.f32 %v6473_v25, %v6560_v6  ;;  %vm10305_vm6 = vcmp.ne.s32.totalorder %v6701_v63, 0  ;;  %v6782_v56 = vld [vmem:[%s9536_s1 + $0x160] sm:$0xff] }
  0xbd   :  { %v6772_v26 = vsel %vm10305_vm6, %v1553_v34, 0.0  ;;  %v6777_v20 = vsel %vm6733_vm0, %v1554_v40, %v5231_v30  ;;  %10308 = vst [vmem:[#allocation182_spill] sm:$0xff] %v6782_v56  ;;  %v10309_v25 = vmax.f32 %v6487_v28, %v6575_v1  ;;  %v6794_v36 = vsel %vm9794_vm2, %v2613_v9, 0.0  ;;  %v242_v40 = vld [vmem:[%s9536_s1 + $0x168] sm:$0xff]  ;;  %v76_v9 = vld [vmem:[%s9537_s2 + $0x178] sm:$0xff]  ;;  %v6823_v1 = vpop.xlane.xlu0 %1624 }
  0xbe   :  { %v6762_v8 = vmax.f32 %v10303_v61, %v6679_v2  ;;  %v6768_v59 = vmax.f32 %v10304_v32, %v6710_v21  ;;  %10306 = vst [vmem:[#allocation180_spill] sm:$0xff] %v6772_v26  ;;  %10307 = vst [vmem:[#allocation181_spill] sm:$0xff] %v6777_v20  ;;  %v1686_v34 = vmax.f32 %v6772_v26, %v6777_v20  ;;  %vm186_vm3 = vcmp.ne.s32.totalorder %v130_v45, 0  ;;  %v132_v61 = vld [vmem:[%s9535_s0 + $0x178] sm:$0xff]  ;;  %v75_v45 = vld [vmem:[%s9537_s2 + $0x170] sm:$0xff] }
  0xbf   :  { %v6788_v55 = vmax.f32 %v10309_v25, %v6715_v41  ;;  %10310 = vst [vmem:[#allocation183_spill] sm:$0xff] %v6794_v36  ;;  %v6805_v28 = vsel %vm6749_vm12, %v2614_v10, %v5231_v30  ;;  %v1443_v32 = vmul.f32 24.0, %v4418_v7  ;;  %v1444_v25 = vmul.f32 24.0, %v4419_v57  ;;  %10316 = vst [vmem:[#allocation186_spill] sm:$0xff] %v6823_v1 }
  0xc0   :  { %10311 = vst [vmem:[#allocation184_spill] sm:$0xff] %v6805_v28  ;;  %1687 = vmax.xlane.f32.xlu0 %v1686_v34  ;;  %v2746_v22 = vmax.f32 %v6794_v36, %v6805_v28  ;;  %v1499_v63 = vmax.f32 %v4418_v7, 0.0  ;;  %v1500_v16 = vmax.f32 %v4419_v57, 0.0  ;;  %vm9820_vm2 = vcmp.ne.s32.totalorder %v6782_v56, 0 }
  0xc1   :  { %vm10312_vm6 = vcmp.lt.s32.totalorder %v5198_v15, 160  ;;  %v10313_v10 = vmov 0  ;;  %vm298_vm12 = vcmp.ne.s32.totalorder %v242_v40, 0  ;;  %v2447_v44 = vsub.f32 1.4, %v73_v4 }
  0xc2   :  { %vm6819_vm0 = vmand %vm186_vm3, %vm10312_vm6  ;;  %v2448_v41 = vsub.f32 1.4, %v74_v47  ;;  %vm188_vm4 = vcmp.ne.s32.totalorder %v132_v61, 0  ;;  %2747 = vmax.xlane.f32.xlu1 %v2746_v22  ;;  %v1555_v21 = vmul.f32 %v1499_v63, %v1443_v32  ;;  %v1556_v34 = vmul.f32 %v1500_v16, %v1444_v25  ;;  %v6837_v63 = vld [vmem:[%s9535_s0 + $0x170] sm:$0xff]  ;;  %v6889_v61 = vpop.xlane.xlu0 %1627 }
  0xc3   :  { %v10314_v10 = vsel %vm6819_vm0, 4294967295, %v10313_v10  ;;  %v4420_v2 = vadd.f32 -0.1, %v75_v45  ;;  %v4421_v14 = vadd.f32 -0.1, %v76_v9  ;;  %v2503_v7 = vmul.f32 24.0, %v2447_v44 }
  0xc4   :  { %10315 = vst [vmem:[#allocation185_spill] sm:$0xff] %v10314_v10  ;;  %v2504_v57 = vmul.f32 24.0, %v2448_v41  ;;  %v2559_v6 = vmax.f32 %v2447_v44, 0.0  ;;  %v2560_v54 = vmax.f32 %v2448_v41, 0.0  ;;  %vm10317_vm3 = vcmp.ne.s32.totalorder %v6756_v12, 0  ;;  %10320 = vst [vmem:[#allocation189_spill] sm:$0xff] %v6837_v63 }
  0xc5   :  { %v6827_v17 = vsel %vm10317_vm3, %v1555_v21, 0.0  ;;  %v6832_v4 = vsel %vm6819_vm0, %v1556_v34, %v5231_v30  ;;  %v1445_v22 = vmul.f32 24.0, %v4420_v2  ;;  %v1446_v47 = vmul.f32 24.0, %v4421_v14  ;;  %vm6852_vm3 = vmand %vm298_vm12, %vm10312_vm6 }
  0xc6   :  { %10318 = vst [vmem:[#allocation187_spill] sm:$0xff] %v6827_v17  ;;  %10319 = vst [vmem:[#allocation188_spill] sm:$0xff] %v6832_v4  ;;  %v10321_v41 = vmax.f32 %v6516_v24, %v6604_v52  ;;  %v10322_v21 = vmax.f32 %v6542_v48, %v6618_v62  ;;  %v1689_v32 = vmax.f32 %v6827_v17, %v6832_v4  ;;  %v10323_v25 = vmov 0  ;;  %v244_v24 = vld [vmem:[%s9536_s1 + $0x178] sm:$0xff] }
  0xc7   :  { %v10324_v25 = vsel %vm6852_vm3, 4294967295, %v10323_v25  ;;  %v2615_v34 = vmul.f32 %v2559_v6, %v2503_v7  ;;  %v10326_v48 = vmax.f32 %v6570_v51, %v6641_v13  ;;  %v1501_v10 = vmax.f32 %v4420_v2, 0.0  ;;  %vm6875_vm0 = vmand %vm188_vm4, %vm10312_vm6 }
  0xc8   :  { %v2062_v44 = vmax.f32 %v10321_v41, %v6772_v26  ;;  %v2095_v16 = vmax.f32 %v10322_v21, %v6777_v20  ;;  %10325 = vst [vmem:[#allocation190_spill] sm:$0xff] %v10324_v25  ;;  %v2616_v21 = vmul.f32 %v2560_v54, %v2504_v57  ;;  %v1502_v12 = vmax.f32 %v4421_v14, 0.0  ;;  %v6865_v20 = vpop.xlane.xlu1 %2684  ;;  %1690 = vmax.xlane.f32.xlu0 %v1689_v32  ;;  %v6887_v57 = vld [vmem:[%s9536_s1 + $0x170] sm:$0xff] }
  0xc9   :  { %v6863_v41 = vmax.f32 %v10326_v48, %v6794_v36  ;;  %v6869_v40 = vsel %vm9820_vm2, %v2615_v34, 0.0  ;;  %vm9821_vm12 = vcmp.ne.s32.totalorder %v6837_v63, 0  ;;  %v10328_v6 = vmov 0  ;;  %10332 = vst [vmem:[#allocation194_spill] sm:$0xff] %v6887_v57 }
  0xca   :  { %10327 = vst [vmem:[#allocation191_spill] sm:$0xff] %v6869_v40  ;;  %v10329_v6 = vsel %vm6875_vm0, 4294967295, %v10328_v6  ;;  %v2449_v51 = vsub.f32 1.4, %v75_v45  ;;  %v2450_v54 = vsub.f32 1.4, %v76_v9  ;;  %v6882_v14 = vsel %vm6852_vm3, %v2616_v21, %v5231_v30 }
  0xcb   :  { %10330 = vst [vmem:[#allocation192_spill] sm:$0xff] %v10329_v6  ;;  %10331 = vst [vmem:[#allocation193_spill] sm:$0xff] %v6882_v14  ;;  %v1557_v2 = vmul.f32 %v1501_v10, %v1445_v22  ;;  %v1558_v7 = vmul.f32 %v1502_v12, %v1446_v47  ;;  %vm300_vm2 = vcmp.ne.s32.totalorder %v244_v24, 0  ;;  %v10333_v45 = vmax.f32 %v6586_v58, %v6649_v27  ;;  %v78_v24 = vld [vmem:[%s9537_s2 + $0x188] sm:$0xff] }
  0xcc   :  { %v2749_v32 = vmax.f32 %v6869_v40, %v6882_v14  ;;  %v2505_v34 = vmul.f32 24.0, %v2449_v51  ;;  %v2506_v48 = vmul.f32 24.0, %v2450_v54  ;;  %v2561_v22 = vmax.f32 %v2449_v51, 0.0  ;;  %v77_v51 = vld [vmem:[%s9537_s2 + $0x180] sm:$0xff] }
  0xcd   :  { %v3155_v9 = vmax.f32 %v10333_v45, %v6805_v28  ;;  %v6899_v12 = vsel %vm9821_vm12, %v1557_v2, 0.0  ;;  %v6904_v10 = vsel %vm6875_vm0, %v1558_v7, %v5231_v30  ;;  %v2562_v47 = vmax.f32 %v2450_v54, 0.0  ;;  %vm6914_vm12 = vmand %vm300_vm2, %vm10312_vm6  ;;  %v6921_v7 = vpop.xlane.xlu1 %2687 }
  0xce   :  { %10334 = vst [vmem:[#allocation195_spill] sm:$0xff] %v6899_v12  ;;  %10335 = vst [vmem:[#allocation196_spill] sm:$0xff] %v6904_v10  ;;  %2750 = vmax.xlane.f32.xlu1 %v2749_v32  ;;  %v2064_v58 = vmax.f32 %v2062_v44, %v6899_v12  ;;  %v2097_v21 = vmax.f32 %v2095_v16, %v6904_v10  ;;  %v1692_v45 = vmax.f32 %v6899_v12, %v6904_v10  ;;  %v10336_v2 = vmov 0 }
  0xcf   :  { %vm9840_vm4 = vcmp.ne.s32.totalorder %v6887_v57, 0  ;;  %v10337_v2 = vsel %vm6914_vm12, 4294967295, %v10336_v2  ;;  %v2617_v54 = vmul.f32 %v2561_v22, %v2505_v34  ;;  %v2618_v44 = vmul.f32 %v2562_v47, %v2506_v48  ;;  %v134_v34 = vld [vmem:[%s9535_s0 + $0x188] sm:$0xff] }
  0xd0   :  { %10338 = vst [vmem:[#allocation197_spill] sm:$0xff] %v10337_v2  ;;  %v2063_v16 = vmax.f32 %v6741_v5, %v6827_v17  ;;  %v2096_v32 = vmax.f32 %v6762_v8, %v6832_v4  ;;  %v6927_v6 = vmax.f32 %v2064_v58, -1e+30  ;;  %1693 = vmax.xlane.f32.xlu0 %v1692_v45  ;;  %v6935_v48 = vmax.f32 %v2097_v21, -1e+30  ;;  %v6949_v8 = vld [vmem:[%s9535_s0 + $0x180] sm:$0xff]  ;;  %v6951_v58 = vpop.xlane.xlu0 %1630 }
  0xd1   :  { %v6939_v22 = vsel %vm9840_vm4, %v2617_v54, 0.0  ;;  %v6944_v5 = vsel %vm6914_vm12, %v2618_v44, %v5231_v30  ;;  %10341 = vst [vmem:[#allocation200_spill] sm:$0xff] %v6949_v8  ;;  %v4422_v47 = vadd.f32 -0.1, %v77_v51  ;;  %vm190_vm2 = vcmp.ne.s32.totalorder %v134_v34, 0  ;;  %v6978_v4 = vpop.xlane.xlu1 %2690  ;;  %vm10344_vm4 = vmmov %vm10312_vm6 }
  0xd2   :  { %10339 = vst [vmem:[#allocation198_spill] sm:$0xff] %v6939_v22  ;;  %10340 = vst [vmem:[#allocation199_spill] sm:$0xff] %v6944_v5  ;;  %v3124_v54 = vmax.f32 %v6863_v41, %v6939_v22  ;;  %v3157_v44 = vmax.f32 %v3155_v9, %v6944_v5  ;;  %v2752_v63 = vmax.f32 %v6939_v22, %v6944_v5  ;;  %v4423_v2 = vadd.f32 -0.1, %v78_v24  ;;  %v6971_v41 = vld [vmem:[%s9536_s1 + $0x180] sm:$0xff]  ;;  %v246_v9 = vld [vmem:[%s9536_s1 + $0x188] sm:$0xff] }
  0xd3   :  { %v1447_v57 = vmul.f32 24.0, %v4422_v47  ;;  %v5151_v25 = vmov 1966171168   ;;  %v10342_v21 = vlaneseq  ;;  %v1503_v45 = vmax.f32 %v4422_v47, 0.0  ;;  %10343 = vst [vmem:[#allocation201_spill] sm:$0xff] %v6978_v4  ;;  %vm6987_vm6 = vmand %vm190_vm2, %vm10344_vm4 }
  0xd4   :  { %v6963_v56 = vunpack.c.l.s4 %v5151_v25  ;;  %v2068_v5 = vmax.f32 %v6927_v6, -1e+30  ;;  %v2101_v22 = vmax.f32 %v6935_v48, -1e+30  ;;  %2753 = vmax.xlane.f32.xlu1 %v2752_v63  ;;  %v1448_v25 = vmul.f32 24.0, %v4423_v2 }
  0xd5   :  { %v6966_v10 = vshrl.u32 %v10342_v21, 7  ;;  %v1504_v12 = vmax.f32 %v4423_v2, 0.0  ;;  %v6980_v17 = vmax.f32 %v3124_v54, -1e+30  ;;  %v6982_v47 = vmax.f32 %v3157_v44, -1e+30  ;;  %v6994_v2 = vpop.xlane.xlu0 %1633 }
  0xd6   :  { %v10345_v28 = vmov 0  ;;  %v1559_v36 = vmul.f32 %v1503_v45, %v1447_v57  ;;  %v9850_v26 = vmov 0.0   ;;  %vm301_vm0 = vcmp.ne.s32.totalorder %v6971_v41, 0  ;;  %10348 = vst [vmem:[#allocation203_spill] sm:$0xff] %v6994_v2 }
  0xd7   :  { %v10346_v28 = vsel %vm6987_vm6, 4294967295, %v10345_v28  ;;  %v1560_v6 = vmul.f32 %v1504_v12, %v1448_v25  ;;  %19 = vst [vmem:[#allocation2] sm:$0xff] %v9850_v26  ;;  %20 = vst [vmem:[#allocation2 + $0x8] sm:$0xff] %v9850_v26  ;;  %vm302_vm12 = vcmp.ne.s32.totalorder %v246_v9, 0  ;;  %v2451_v63 = vsub.f32 1.4, %v77_v51 }
  0xd8   :  { %10347 = vst [vmem:[#allocation202_spill] sm:$0xff] %v10346_v28  ;;  %vm10349_vm3 = vcmp.ne.s32.totalorder %v6949_v8, 0  ;;  %v10350_v48 = vmov -1e+30   ;;  %v2452_v57 = vsub.f32 1.4, %v78_v24  ;;  %v1707_v12 = vsub.f32 %v5235_v31, %v6823_v1 }
  0xd9   :  { %v6998_v34 = vsel %vm10349_vm3, %v1559_v36, 0.0  ;;  %21 = vst [vmem:[#allocation2] sm:$0x3] %v10350_v48  ;;  %22 = vst [vmem:[#allocation2 + $0x8] sm:$0x3] %v10350_v48  ;;  %v1708_v45 = vsub.f32 %v5241_v33, %v6823_v1  ;;  %v7010_v51 = vsel %vm6987_vm6, %v1560_v6, %v5231_v30  ;;  %v2507_v36 = vmul.f32 24.0, %v2451_v63 }
  0xda   :  { %v2065_v54 = vmax.f32 %v2063_v16, %v6998_v34  ;;  %10351 = vst [vmem:[#allocation204_spill] sm:$0xff] %v7010_v51  ;;  %v2563_v44 = vmax.f32 %v2451_v63, 0.0  ;;  %v2098_v25 = vmax.f32 %v2096_v32, %v7010_v51  ;;  %v1695_v24 = vmax.f32 %v6998_v34, %v7010_v51  ;;  %vm10352_vm3 = vmmov %vm10344_vm4  ;;  %v7024_v63 = vpop.xlane.xlu1 %2693 }
  0xdb   :  { %v2508_v26 = vmul.f32 24.0, %v2452_v57  ;;  %v2564_v8 = vmax.f32 %v2452_v57, 0.0  ;;  %v3128_v31 = vmax.f32 %v6980_v17, -1e+30  ;;  %v3161_v33 = vmax.f32 %v6982_v47, -1e+30  ;;  %vm7020_vm4 = vmand %vm302_vm12, %vm10352_vm3 }
  0xdc   :  { %v2067_v1 = vmax.f32 %v2065_v54, -1e+30  ;;  %v2619_v6 = vmul.f32 %v2563_v44, %v2507_v36  ;;  %10355 = vst [vmem:[#allocation205_spill] sm:$0xff] %v7024_v63  ;;  %v2100_v32 = vmax.f32 %v2098_v25, -1e+30  ;;  %1696 = vmax.xlane.f32.xlu0 %v1695_v24  ;;  %v2767_v17 = vsub.f32 %v5254_v39, %v6865_v20  ;;  %v7034_v54 = vpop.xlane.xlu0 %1636 }
  0xdd   :  { %v2620_v28 = vmul.f32 %v2564_v8, %v2508_v26  ;;  %v1763_v51 = vmul.f32 1.442695, %v1707_v12  ;;  %v1765_v15 = vmul.f32 1.442695, %v1708_v45  ;;  %v2768_v9 = vsub.f32 %v5269_v43, %v6865_v20  ;;  %10357 = vst [vmem:[#allocation207_spill] sm:$0xff] %v7034_v54 }
  0xde   :  { %v2069_v57 = vmax.f32 %v2067_v1, %v2068_v5  ;;  %v7030_v47 = vsel %vm301_vm0, %v2619_v6, 0.0  ;;  %v2102_v36 = vmax.f32 %v2100_v32, %v2101_v22  ;;  %v10358_v26 = vmax.f32 %v6768_v59, %v6869_v40 }
  0xdf   :  { %10356 = vst [vmem:[#allocation206_spill] sm:$0xff] %v7030_v47  ;;  %v7043_v1 = vsel %vm7020_vm4, %v2620_v28, %v5231_v30  ;;  %v1709_v5 = vsub.f32 %v5290_v60, %v6889_v61  ;;  %v10360_v45 = vmax.f32 %v6788_v55, %v6882_v14  ;;  %v2823_v25 = vmul.f32 1.442695, %v2767_v17 }
  0xe0   :  { %v3125_v8 = vmax.f32 %v10358_v26, %v7030_v47  ;;  %10359 = vst [vmem:[#allocation208_spill] sm:$0xff] %v7043_v1  ;;  %v2070_v12 = vrot.slane %v2069_v57, 4  ;;  %v2755_v22 = vmax.f32 %v7030_v47, %v7043_v1  ;;  %v2103_v59 = vrot.slane %v2102_v36, 4  ;;  %1699 = vmax.xlane.f32.xlu0 %v10350_v48  ;;  %v7056_v26 = vpop.xlane.xlu1 %2696 }
  0xe1   :  { %v3158_v44 = vmax.f32 %v10360_v45, %v7043_v1  ;;  %4478 = vpow2.f32 %v1763_v51  ;;  %v1710_v30 = vsub.f32 %v5295_v0, %v6889_v61  ;;  %v2825_v32 = vmul.f32 1.442695, %v2768_v9  ;;  %10361 = vst [vmem:[#allocation209_spill] sm:$0xff] %v7056_v26  ;;  %v7062_v0 = vpop.xlane.xlu0 %1639 }
  0xe2   :  { %v3127_v24 = vmax.f32 %v3125_v8, -1e+30  ;;  %v2071_v28 = vmax.f32 %v2069_v57, %v2070_v12  ;;  %2756 = vmax.xlane.f32.xlu1 %v2755_v22  ;;  %4480 = vpow2.f32 %v1765_v15  ;;  %v2104_v55 = vmax.f32 %v2102_v36, %v2103_v59  ;;  %10362 = vst [vmem:[#allocation210_spill] sm:$0xff] %v7062_v0 }
  0xe3   :  { %v3160_v6 = vmax.f32 %v3158_v44, -1e+30  ;;  %v1767_v43 = vmul.f32 1.442695, %v1709_v5  ;;  %v2769_v17 = vsub.f32 %v5311_v11, %v6921_v7  ;;  %4482 = vpow2.f32 %v2823_v25 }
  0xe4   :  { %v3129_v45 = vmax.f32 %v3127_v24, %v3128_v31  ;;  %v2072_v8 = vrot.slane %v2071_v28, 2  ;;  %v2770_v51 = vsub.f32 %v5328_v19, %v6921_v7  ;;  %v2105_v57 = vrot.slane %v2104_v55, 2  ;;  %1702 = vmax.xlane.f32.xlu0 %v10350_v48 }
  0xe5   :  { %v3162_v39 = vmax.f32 %v3160_v6, %v3161_v33  ;;  %4484 = vpow2.f32 %v2825_v32  ;;  %v1769_v15 = vmul.f32 1.442695, %v1710_v30  ;;  %v1234_v31 = vunpack.c.0.s8 %v6963_v56  ;;  %v7071_v30 = vpop.xlane.xlu1 %2699 }
  0xe6   :  { %v3130_v12 = vrot.slane %v3129_v45, 4  ;;  %v2073_v9 = vmax.f32 %v2071_v28, %v2072_v8  ;;  %2759 = vmax.xlane.f32.xlu1 %v10350_v48  ;;  %4486 = vpow2.f32 %v1767_v43  ;;  %v2106_v33 = vmax.f32 %v2104_v55, %v2105_v57  ;;  %10363 = vst [vmem:[#allocation211_spill] sm:$0xff] %v7071_v30 }
  0xe7   :  { %v3163_v36 = vrot.slane %v3162_v39, 4  ;;  %v2827_v44 = vmul.f32 1.442695, %v2769_v17  ;;  %v1711_v22 = vsub.f32 %v5334_v23, %v6951_v58  ;;  %v2829_v24 = vmul.f32 1.442695, %v2770_v51  ;;  %v7079_v17 = vpop.xlane.xlu0 %1642 }
  0xe8   :  { %v3131_v5 = vmax.f32 %v3129_v45, %v3130_v12  ;;  %v2074_v25 = vrot.slane %v2073_v9, 1  ;;  %v1712_v6 = vsub.f32 %v5345_v35, %v6951_v58  ;;  %v2107_v56 = vrot.slane %v2106_v33, 1  ;;  %1705 = vmax.xlane.f32.xlu0 %v10350_v48  ;;  %10364 = vst [vmem:[#allocation212_spill] sm:$0xff] %v7079_v17 }
  0xe9   :  { %v3164_v59 = vmax.f32 %v3162_v39, %v3163_v36  ;;  %4488 = vpow2.f32 %v1769_v15  ;;  %v2771_v43 = vsub.f32 %v5370_v49, %v6978_v4  ;;  %v1771_v45 = vmul.f32 1.442695, %v1711_v22 }
  0xea   :  { %v3132_v28 = vrot.slane %v3131_v5, 2  ;;  %v2075_v32 = vmax.f32 %v2073_v9, %v2074_v25  ;;  %2762 = vmax.xlane.f32.xlu1 %v10350_v48  ;;  %v2772_v39 = vsub.f32 %v5375_v53, %v6978_v4  ;;  %v7082_v51 = vsub.s32 %v1234_v31, %v6966_v10 }
  0xeb   :  { %v3165_v55 = vrot.slane %v3164_v59, 2  ;;  %v4479_v8 = vpop.eup %4478  ;;  %v2108_v57 = vmax.f32 %v2106_v33, %v2107_v56  ;;  %4490 = vpow2.f32 %v2827_v44  ;;  %v1773_v9 = vmul.f32 1.442695, %v1712_v6 }
  0xec   :  { %10365 = vst [vmem:[#allocation213_spill] sm:$0xff] %v7082_v51  ;;  %v3133_v12 = vmax.f32 %v3131_v5, %v3132_v28  ;;  %v4481_v15 = vpop.eup %4480  ;;  %4492 = vpow2.f32 %v2829_v24  ;;  %v1713_v25 = vsub.f32 %v5420_v37, %v6994_v2  ;;  %v2831_v19 = vmul.f32 1.442695, %v2771_v43  ;;  %v7091_v5 = vpop.xlane.xlu1 %2702  ;;  %v7096_v43 = vld [vmem:[#allocation2] ss:$8 sm:$0x3] }
  0xed   :  { %v3166_v36 = vmax.f32 %v3164_v59, %v3165_v55  ;;  %v2112_v22 = vcombine.low %v2075_v32, %v2108_v57  ;;  %v1714_v53 = vsub.f32 %v5425_v38, %v6994_v2  ;;  %v4483_v11 = vpop.eup %4482  ;;  %4494 = vpow2.f32 %v1771_v45  ;;  %10366 = vst [vmem:[#allocation214_spill] sm:$0xff] %v7091_v5  ;;  %v7100_v45 = vpop.xlane.xlu0 %1645 }
  0xee   :  { %v3134_v49 = vrot.slane %v3133_v12, 1  ;;  %2765 = vmax.xlane.f32.xlu1 %v10350_v48  ;;  %v2833_v31 = vmul.f32 1.442695, %v2772_v39  ;;  %v2773_v33 = vsub.f32 %v5438_v46, %v7024_v63  ;;  %v1775_v6 = vmul.f32 1.442695, %v1713_v25  ;;  %10367 = vst [vmem:[#allocation215_spill] sm:$0xff] %v7100_v45 }
  0xef   :  { %v3167_v35 = vrot.slane %v3166_v36, 1  ;;  %v4485_v44 = vpop.eup %4484  ;;  %v2119_v59 = vrot.slane %v2112_v22, %v7082_v51  ;;  %v2774_v56 = vsub.f32 %v5449_v50, %v7024_v63  ;;  %4496 = vpow2.f32 %v1773_v9 }
  0xf0   :  { %v3135_v24 = vmax.f32 %v3133_v12, %v3134_v49  ;;  %v4487_v28 = vpop.eup %4486  ;;  %v1777_v48 = vmul.f32 1.442695, %v1714_v53  ;;  %v1715_v55 = vsub.f32 %v5469_v29, %v7034_v54  ;;  %vm7103_vm12 = vcmp.lt.s32.totalorder %v10342_v21, 256 }
  0xf1   :  { %v3168_v32 = vmax.f32 %v3166_v36, %v3167_v35  ;;  %v10368_v39 = vmov 0  ;;  %v2126_v49 = vrot.slane %v2119_v59, %v7082_v51  ;;  %4498 = vpow2.f32 %v2831_v19 }
  0xf2   :  { %v10369_v39 = vsel %vm7103_vm12, 4294967295, %v10368_v39  ;;  %v1716_v57 = vsub.f32 %v5474_v3, %v7034_v54  ;;  %4500 = vpow2.f32 %v2833_v31  ;;  %v2835_v35 = vmul.f32 1.442695, %v2773_v33  ;;  %v7118_v31 = vpop.xlane.xlu1 %2705  ;;  %v7125_v33 = vld [vmem:[#allocation2 + $0x1] ss:$8 sm:$0x3] }
  0xf3   :  { %10370 = vst [vmem:[#allocation216_spill] sm:$0xff] %v10369_v39  ;;  %v3173_v12 = vcombine.low %v3135_v24, %v3168_v32  ;;  %v1875_v53 = vadd.f32 %v4481_v15, %v4479_v8  ;;  %v4489_v36 = vpop.eup %4488  ;;  %v7111_v9 = vmax.f32 %v7096_v43, %v2126_v49  ;;  %4502 = vpow2.f32 %v1775_v6  ;;  %10371 = vst [vmem:[#allocation217_spill] sm:$0xff] %v7118_v31  ;;  %v10373_v6 = vld [vmem:[#allocation50_spill] sm:$0xff] }
  0xf4   :  { %v2837_v25 = vmul.f32 1.442695, %v2774_v56  ;;  %v2775_v21 = vsub.f32 %v5501_v42, %v7056_v26  ;;  %4504 = vpow2.f32 %v1777_v48  ;;  %v1779_v19 = vmul.f32 1.442695, %v1715_v55  ;;  %10372 = vst [vmem:[#allocation218_spill] sm:$0xff] %v7125_v33  ;;  %v7130_v55 = vpop.xlane.xlu0 %1648  ;;  %v10385_v3 = vld [vmem:[#allocation66_spill] sm:$0xff] }
  0xf5   :  { %v3180_v22 = vrot.slane %v3173_v12, %v7082_v51  ;;  %1876 = vadd.xlane.f32.xlu0 %v1875_v53  ;;  %v2776_v59 = vsub.f32 %v5514_v18, %v7056_v26  ;;  %v4491_v8 = vpop.eup %4490  ;;  %2401 = vst.msk [vmem:[#allocation2] ss:$8 sm:$0x3] %vm7103_vm12, %v7111_v9  ;;  %v1781_v24 = vmul.f32 1.442695, %v1716_v57  ;;  %v1717_v56 = vsub.f32 %v10373_v6, %v7062_v0  ;;  %v10375_v12 = vld [vmem:[#allocation51_spill] sm:$0xff] }
  0xf6   :  { %v4493_v32 = vpop.eup %4492  ;;  %4506 = vpow2.f32 %v2835_v35  ;;  %10374 = vst [vmem:[#allocation219_spill] sm:$0xff] %v7130_v55  ;;  %v2839_v49 = vmul.f32 1.442695, %v2775_v21  ;;  %v1718_v53 = vsub.f32 %v10375_v12, %v7062_v0  ;;  %v2935_v42 = vadd.f32 %v4485_v44, %v4483_v11  ;;  %v10378_v11 = vld [vmem:[#allocation54_spill] sm:$0xff] }
  0xf7   :  { %v3187_v48 = vrot.slane %v3180_v22, %v7082_v51  ;;  %4508 = vpow2.f32 %v2837_v25  ;;  %v4495_v15 = vpop.eup %4494  ;;  %v2841_v57 = vmul.f32 1.442695, %v2776_v59  ;;  %v1783_v50 = vmul.f32 1.442695, %v1717_v56  ;;  %v7142_v25 = vpop.xlane.xlu1 %2708  ;;  %v10380_v59 = vld [vmem:[#allocation58_spill] sm:$0xff] }
  0xf8   :  { %4510 = vpow2.f32 %v1779_v19  ;;  %v1878_v46 = vadd.f32 %v4489_v36, %v4487_v28  ;;  %10377 = vst [vmem:[#allocation221_spill] sm:$0xff] %v7142_v25  ;;  %v1785_v22 = vmul.f32 1.442695, %v1718_v53  ;;  %v2777_v44 = vsub.f32 %v10378_v11, %v7071_v30  ;;  %v10379_v28 = vld [vmem:[#allocation55_spill] sm:$0xff]  ;;  %v7150_v56 = vpop.xlane.xlu0 %1651 }
  0xf9   :  { %v7135_v18 = vmax.f32 %v7125_v33, %v3187_v48  ;;  %4512 = vpow2.f32 %v1781_v24  ;;  %v4497_v6 = vpop.eup %4496  ;;  %2936 = vadd.xlane.f32.xlu0 %v2935_v42  ;;  %v2778_v36 = vsub.f32 %v10379_v28, %v7071_v30  ;;  %v1719_v24 = vsub.f32 %v10380_v59, %v7079_v17  ;;  %10381 = vst [vmem:[#allocation222_spill] sm:$0xff] %v7150_v56  ;;  %v10382_v48 = vld [vmem:[#allocation61_spill] sm:$0xff]  ;;  %v10384_v59 = vld [vmem:[#allocation63_spill] sm:$0xff] }
  0xfa   :  { %4514 = vpow2.f32 %v2839_v49  ;;  %1879 = vadd.xlane.f32.xlu1 %v1878_v46  ;;  %v1720_v49 = vsub.f32 %v10382_v48, %v7079_v17  ;;  %v2843_v46 = vmul.f32 1.442695, %v2777_v44  ;;  %v2938_v33 = vadd.f32 %v4493_v32, %v4491_v8  ;;  %v10387_v8 = vld [vmem:[#allocation67_spill] sm:$0xff] }
  0xfb   :  { %10376 = vst [vmem:[#allocation220_spill] sm:$0xff] %v7135_v18  ;;  %3462 = vst.msk [vmem:[#allocation2 + $0x1] ss:$8 sm:$0x3] %vm7103_vm12, %v7135_v18  ;;  %v4499_v21 = vpop.eup %4498  ;;  %4516 = vpow2.f32 %v2841_v57  ;;  %v2845_v35 = vmul.f32 1.442695, %v2778_v36  ;;  %v1881_v11 = vadd.f32 %v4497_v6, %v4495_v15  ;;  %v2780_v12 = vsub.f32 %v10384_v59, %v7091_v5  ;;  %v7160_v29 = vpop.xlane.xlu1 %2711 }
  0xfc   :  { %v4501_v19 = vpop.eup %4500  ;;  %4518 = vpow2.f32 %v1783_v50  ;;  %v1787_v28 = vmul.f32 1.442695, %v1719_v24  ;;  %v10383_v57 = vld [vmem:[#allocation62_spill] sm:$0xff]  ;;  %v1721_v50 = vsub.f32 %v10385_v3, %v7100_v45  ;;  %10386 = vst [vmem:[#allocation223_spill] sm:$0xff] %v7160_v29  ;;  %v1789_v48 = vmul.f32 1.442695, %v1720_v49  ;;  %v7164_v36 = vpop.xlane.xlu0 %1654 }
  0xfd   :  { %v4503_v42 = vpop.eup %4502  ;;  %4520 = vpow2.f32 %v1785_v22  ;;  %v2779_v30 = vsub.f32 %v10383_v57, %v7091_v5  ;;  %1882 = vadd.xlane.f32.xlu0 %v1881_v11  ;;  %v1722_v15 = vsub.f32 %v10387_v8, %v7100_v45  ;;  %v2941_v6 = vadd.f32 %v4501_v19, %v4499_v21  ;;  %10388 = vst [vmem:[#allocation224_spill] sm:$0xff] %v7164_v36  ;;  %v10389_v57 = vld [vmem:[#allocation70_spill] sm:$0xff]  ;;  %v10390_v49 = vld [vmem:[#allocation71_spill] sm:$0xff] }
  0xfe   :  { %v4505_v53 = vpop.eup %4504  ;;  %2939 = vadd.xlane.f32.xlu1 %v2938_v33  ;;  %4522 = vpow2.f32 %v2843_v46  ;;  %v2849_v59 = vmul.f32 1.442695, %v2780_v12  ;;  %v2781_v5 = vsub.f32 %v10389_v57, %v7118_v31  ;;  %v2782_v33 = vsub.f32 %v10390_v49, %v7118_v31  ;;  %v10391_v45 = vld [vmem:[#allocation74_spill] sm:$0xff] }
  0xff   :  { %v1884_v32 = vadd.f32 %v4505_v53, %v4503_v42  ;;  %v2847_v44 = vmul.f32 1.442695, %v2779_v30  ;;  %4524 = vpow2.f32 %v2845_v35  ;;  %v1791_v11 = vmul.f32 1.442695, %v1721_v50  ;;  %v10392_v30 = vld [vmem:[#allocation75_spill] sm:$0xff]  ;;  %v7174_v8 = vpop.xlane.xlu1 %2714  ;;  %v10394_v49 = vld [vmem:[#allocation78_spill] sm:$0xff] }
 0x100   :  { %v4507_v0 = vpop.eup %4506  ;;  %4526 = vpow2.f32 %v1787_v28  ;;  %v1723_v21 = vsub.f32 %v10391_v45, %v7130_v55  ;;  %v1793_v42 = vmul.f32 1.442695, %v1722_v15  ;;  %v1724_v35 = vsub.f32 %v10392_v30, %v7130_v55  ;;  %10393 = vst [vmem:[#allocation225_spill] sm:$0xff] %v7174_v8  ;;  %v10400_v55 = vld [vmem:[#allocation88_spill] sm:$0xff] }
 0x101   :  { %v4509_v17 = vpop.eup %4508  ;;  %4528 = vpow2.f32 %v1789_v48  ;;  %1885 = vadd.xlane.f32.xlu0 %v1884_v32  ;;  %v2851_v46 = vmul.f32 1.442695, %v2781_v5  ;;  %v2853_v50 = vmul.f32 1.442695, %v2782_v33  ;;  %v2783_v31 = vsub.f32 %v10394_v49, %v7142_v25  ;;  %v10395_v48 = vld [vmem:[#allocation79_spill] sm:$0xff]  ;;  %v10396_v32 = vld [vmem:[#allocation84_spill] sm:$0xff] }
 0x102   :  { %v4511_v22 = vpop.eup %4510  ;;  %2942 = vadd.xlane.f32.xlu1 %v2941_v6  ;;  %v2944_v12 = vadd.f32 %v4509_v17, %v4507_v0  ;;  %4530 = vpow2.f32 %v2847_v44  ;;  %v2784_v15 = vsub.f32 %v10395_v48, %v7142_v25  ;;  %v1795_v6 = vmul.f32 1.442695, %v1723_v21  ;;  %v7182_v17 = vpop.xlane.xlu0 %1657 }
 0x103   :  { %v4513_v24 = vpop.eup %4512  ;;  %4532 = vpow2.f32 %v2849_v59  ;;  %v1725_v0 = vsub.f32 %v10396_v32, %v7150_v56  ;;  %10397 = vst [vmem:[#allocation226_spill] sm:$0xff] %v7182_v17  ;;  %v10398_v59 = vld [vmem:[#allocation85_spill] sm:$0xff]  ;;  %v2855_v33 = vmul.f32 1.442695, %v2783_v31  ;;  %v2786_v25 = vsub.f32 %v10400_v55, %v7160_v29 }
 0x104   :  { %v4515_v19 = vpop.eup %4514  ;;  %v1887_v57 = vadd.f32 %v4513_v24, %v4511_v22  ;;  %4534 = vpow2.f32 %v1791_v11  ;;  %v1797_v22 = vmul.f32 1.442695, %v1724_v35  ;;  %v1726_v44 = vsub.f32 %v10398_v59, %v7150_v56  ;;  %v10399_v11 = vld [vmem:[#allocation87_spill] sm:$0xff] }
 0x105   :  { %v4517_v53 = vpop.eup %4516  ;;  %4536 = vpow2.f32 %v1793_v42  ;;  %v2785_v21 = vsub.f32 %v10399_v11, %v7160_v29  ;;  %v2857_v48 = vmul.f32 1.442695, %v2784_v15  ;;  %v1799_v42 = vmul.f32 1.442695, %v1725_v0 }
 0x106   :  { %v4519_v28 = vpop.eup %4518  ;;  %2945 = vadd.xlane.f32.xlu1 %v2944_v12  ;;  %1888 = vadd.xlane.f32.xlu0 %v1887_v57  ;;  %v2947_v24 = vadd.f32 %v4517_v53, %v4515_v19  ;;  %4538 = vpow2.f32 %v2851_v46  ;;  %v10401_v57 = vld [vmem:[#allocation90_spill] sm:$0xff]  ;;  %v7192_v12 = vpop.xlane.xlu1 %2717  ;;  %v1801_v31 = vmul.f32 1.442695, %v1726_v44  ;;  %v10403_v53 = vld [vmem:[#allocation91_spill] sm:$0xff]  ;;  %v2861_v11 = vmul.f32 1.442695, %v2786_v25 }
 0x107   :  { %v4521_v5 = vpop.eup %4520  ;;  %4540 = vpow2.f32 %v2853_v50  ;;  %v1727_v35 = vsub.f32 %v10401_v57, %v7164_v36  ;;  %10402 = vst [vmem:[#allocation227_spill] sm:$0xff] %v7192_v12  ;;  %v1728_v46 = vsub.f32 %v10403_v53, %v7164_v36  ;;  %v2859_v50 = vmul.f32 1.442695, %v2785_v21  ;;  %v10407_v36 = vld [vmem:[#allocation98_spill] sm:$0xff] }
 0x108   :  { %v1890_v49 = vadd.f32 %v4521_v5, %v4519_v28  ;;  %v4523_v32 = vpop.eup %4522  ;;  %4542 = vpow2.f32 %v1795_v6  ;;  %v10404_v6 = vld [vmem:[#allocation94_spill] sm:$0xff]  ;;  %v7198_v5 = vpop.xlane.xlu0 %1660 }
 0x109   :  { %v4525_v19 = vpop.eup %4524  ;;  %4544 = vpow2.f32 %v1797_v22  ;;  %v2787_v0 = vsub.f32 %v10404_v6, %v7174_v8  ;;  %10405 = vst [vmem:[#allocation228_spill] sm:$0xff] %v7198_v5  ;;  %v10406_v22 = vld [vmem:[#allocation96_spill] sm:$0xff] }
 0x10a   :  { %2948 = vadd.xlane.f32.xlu1 %v2947_v24  ;;  %1891 = vadd.xlane.f32.xlu0 %v1890_v49  ;;  %v4527_v28 = vpop.eup %4526  ;;  %4546 = vpow2.f32 %v2855_v33  ;;  %v2950_v15 = vadd.f32 %v4525_v19, %v4523_v32  ;;  %v2788_v44 = vsub.f32 %v10406_v22, %v7174_v8  ;;  %v1803_v49 = vmul.f32 1.442695, %v1727_v35  ;;  %v10408_v19 = vld [vmem:[#allocation99_spill] sm:$0xff] }
 0x10b   :  { %v4529_v55 = vpop.eup %4528  ;;  %4548 = vpow2.f32 %v2857_v48  ;;  %v1729_v33 = vsub.f32 %v10407_v36, %v7182_v17  ;;  %v1805_v32 = vmul.f32 1.442695, %v1728_v46  ;;  %v1730_v6 = vsub.f32 %v10408_v19, %v7182_v17  ;;  %v10409_v48 = vld [vmem:[#allocation102_spill] sm:$0xff] }
 0x10c   :  { %v4531_v24 = vpop.eup %4530  ;;  %4550 = vpow2.f32 %v1799_v42  ;;  %v1893_v29 = vadd.f32 %v4529_v55, %v4527_v28  ;;  %v2789_v25 = vsub.f32 %v10409_v48, %v7192_v12  ;;  %v2863_v22 = vmul.f32 1.442695, %v2787_v0  ;;  %v10410_v55 = vld [vmem:[#allocation103_spill] sm:$0xff]  ;;  %v7210_v28 = vpop.xlane.xlu1 %2720  ;;  %v10412_v46 = vld [vmem:[#allocation106_spill] sm:$0xff] }
 0x10d   :  { %v4533_v21 = vpop.eup %4532  ;;  %4552 = vpow2.f32 %v1801_v31  ;;  %v2790_v35 = vsub.f32 %v10410_v55, %v7192_v12  ;;  %10411 = vst [vmem:[#allocation229_spill] sm:$0xff] %v7210_v28  ;;  %v2865_v31 = vmul.f32 1.442695, %v2788_v44  ;;  %v1807_v19 = vmul.f32 1.442695, %v1729_v33  ;;  %v7216_v0 = vpop.xlane.xlu0 %1663 }
 0x10e   :  { %2951 = vadd.xlane.f32.xlu1 %v2950_v15  ;;  %v4535_v56 = vpop.eup %4534  ;;  %4554 = vpow2.f32 %v2859_v50  ;;  %1894 = vadd.xlane.f32.xlu0 %v1893_v29  ;;  %v2953_v42 = vadd.f32 %v4533_v21, %v4531_v24  ;;  %v1731_v15 = vsub.f32 %v10412_v46, %v7198_v5  ;;  %v10413_v50 = vld [vmem:[#allocation109_spill] sm:$0xff]  ;;  %10414 = vst [vmem:[#allocation230_spill] sm:$0xff] %v7216_v0  ;;  %v1809_v21 = vmul.f32 1.442695, %v1730_v6  ;;  %v10418_v6 = vld [vmem:[#allocation115_spill] sm:$0xff] }
 0x10f   :  { %v4537_v8 = vpop.eup %4536  ;;  %4556 = vpow2.f32 %v2861_v11  ;;  %v1732_v29 = vsub.f32 %v10413_v50, %v7198_v5  ;;  %v2867_v55 = vmul.f32 1.442695, %v2789_v25  ;;  %v10415_v11 = vld [vmem:[#allocation110_spill] sm:$0xff]  ;;  %v2869_v46 = vmul.f32 1.442695, %v2790_v35 }
 0x110   :  { %v4539_v17 = vpop.eup %4538  ;;  %4558 = vpow2.f32 %v1803_v49  ;;  %v1896_v48 = vadd.f32 %v4537_v8, %v4535_v56  ;;  %v2791_v44 = vsub.f32 %v10415_v11, %v7210_v28  ;;  %v10416_v56 = vld [vmem:[#allocation111_spill] sm:$0xff]  ;;  %v1811_v50 = vmul.f32 1.442695, %v1731_v15  ;;  %v10417_v5 = vld [vmem:[#allocation114_spill] sm:$0xff] }
 0x111   :  { %v4541_v24 = vpop.eup %4540  ;;  %4560 = vpow2.f32 %v1805_v32  ;;  %v2792_v8 = vsub.f32 %v10416_v56, %v7210_v28  ;;  %v1733_v32 = vsub.f32 %v10417_v5, %v7216_v0  ;;  %v1734_v25 = vsub.f32 %v10418_v6, %v7216_v0  ;;  %v10423_v15 = vld [vmem:[#allocation118_spill] sm:$0xff]  ;;  %v10424_v6 = vld [vmem:[#allocation119_spill] sm:$0xff] }
 0x112   :  { %2954 = vadd.xlane.f32.xlu1 %v2953_v42  ;;  %v4543_v12 = vpop.eup %4542  ;;  %4562 = vpow2.f32 %v2863_v22  ;;  %1897 = vadd.xlane.f32.xlu0 %v1896_v48  ;;  %v2956_v49 = vadd.f32 %v4541_v24, %v4539_v17  ;;  %v1813_v11 = vmul.f32 1.442695, %v1732_v29  ;;  %v7226_v22 = vpop.xlane.xlu1 %2723  ;;  %v10420_v48 = vmov 0.0   ;;  %v10421_v17 = vld [vmem:[#allocation7_spill] sm:$0xff] }
 0x113   :  { %v4545_v33 = vpop.eup %4544  ;;  %4564 = vpow2.f32 %v2865_v31  ;;  %10419 = vst [vmem:[#allocation231_spill] sm:$0xff] %v7226_v22  ;;  %vm10422_vm2 = vcmp.ne.s32.totalorder %v10421_v17, 0  ;;  %v2871_v31 = vmul.f32 1.442695, %v2791_v44  ;;  %v2793_v56 = vsub.f32 %v10423_v15, %v7226_v22  ;;  %v10427_v15 = vld [vmem:[#allocation9_spill] sm:$0xff] }
 0x114   :  { %v4547_v42 = vpop.eup %4546  ;;  %4566 = vpow2.f32 %v1807_v19  ;;  %v1899_v36 = vadd.f32 %v4545_v33, %v4543_v12  ;;  %v7231_v35 = vsel %vm10422_vm2, 1.0, %v10420_v48  ;;  %v2794_v5 = vsub.f32 %v10424_v6, %v7226_v22  ;;  %v10431_v22 = vld [vmem:[#allocation8_spill] sm:$0xff] }
 0x115   :  { %v4549_v24 = vpop.eup %4548  ;;  %4568 = vpow2.f32 %v1809_v21  ;;  %v2873_v12 = vmul.f32 1.442695, %v2792_v8  ;;  %v7240_v17 = vsel %vm5224_vm5, 1.0, %v10420_v48  ;;  %v1815_v21 = vmul.f32 1.442695, %v1733_v32  ;;  %v10430_v32 = vld [vmem:[#allocation123_spill] sm:$0xff] }
 0x116   :  { %2957 = vadd.xlane.f32.xlu1 %v2956_v49  ;;  %v4551_v19 = vpop.eup %4550  ;;  %4570 = vpow2.f32 %v2867_v55  ;;  %1900 = vadd.xlane.f32.xlu0 %v1899_v36  ;;  %v2959_v29 = vadd.f32 %v4549_v24, %v4547_v42  ;;  %v1817_v44 = vmul.f32 1.442695, %v1734_v25  ;;  %v7242_v49 = vpop.xlane.xlu0 %1666  ;;  %vm10428_vm3 = vcmp.ne.s32.totalorder %v10427_v15, 0  ;;  %v10429_v42 = vld [vmem:[#allocation122_spill] sm:$0xff] }
 0x117   :  { %v4553_v0 = vpop.eup %4552  ;;  %4572 = vpow2.f32 %v2869_v46  ;;  %10426 = vst [vmem:[#allocation7_spill] sm:$0xff] %v7242_v49  ;;  %v7247_v6 = vsel %vm10428_vm3, 1.0, %v10420_v48  ;;  %v2875_v8 = vmul.f32 1.442695, %v2793_v56  ;;  %v1735_v24 = vsub.f32 %v10429_v42, %v7242_v49  ;;  %v10439_v42 = vld [vmem:[#allocation127_spill] sm:$0xff] }
 0x118   :  { %v4555_v55 = vpop.eup %4554  ;;  %4574 = vpow2.f32 %v1811_v50  ;;  %v1902_v36 = vadd.f32 %v4553_v0, %v4551_v19  ;;  %v2877_v46 = vmul.f32 1.442695, %v2794_v5  ;;  %v1736_v25 = vsub.f32 %v10430_v32, %v7242_v49  ;;  %v10438_v0 = vld [vmem:[#allocation126_spill] sm:$0xff] }
 0x119   :  { %v4557_v33 = vpop.eup %4556  ;;  %4576 = vpow2.f32 %v1813_v11  ;;  %vm10432_vm5 = vcmp.ne.s32.totalorder %v10431_v22, 0  ;;  %v7261_v56 = vsel %vm5246_vm7, 1.0, %v10420_v48  ;;  %v10434_v11 = vld [vmem:[#allocation10_spill] sm:$0xff]  ;;  %v7268_v22 = vpop.xlane.xlu1 %2726  ;;  %v7284_v53 = vsel %vm5279_vm10, 1.0, %v10420_v48 }
 0x11a   :  { %2960 = vadd.xlane.f32.xlu1 %v2959_v29  ;;  %v7256_v15 = vsel %vm10432_vm5, 1.0, %v10420_v48  ;;  %v4559_v28 = vpop.eup %4558  ;;  %4578 = vpow2.f32 %v2871_v31  ;;  %1903 = vadd.xlane.f32.xlu0 %v1902_v36  ;;  %v2962_v50 = vadd.f32 %v4557_v33, %v4555_v55  ;;  %vm10435_vm2 = vcmp.ne.s32.totalorder %v10434_v11, 0  ;;  %10436 = vst [vmem:[#allocation11_spill] sm:$0xff] %v7268_v22 }
 0x11b   :  { %v7266_v5 = vsel %vm10435_vm2, 1.0, %v10420_v48  ;;  %v4561_v19 = vpop.eup %4560  ;;  %4580 = vpow2.f32 %v2873_v12  ;;  %v1819_v29 = vmul.f32 1.442695, %v1735_v24  ;;  %v7273_v31 = vsel %vm5299_vm13, 1.0, %v10420_v48 }
 0x11c   :  { %v1256_v55 = vadd.f32 %v7266_v5, %v7256_v15  ;;  %v4563_v36 = vpop.eup %4562  ;;  %4582 = vpow2.f32 %v1815_v21  ;;  %v1905_v33 = vadd.f32 %v4561_v19, %v4559_v28  ;;  %v2795_v11 = vsub.f32 %v10438_v0, %v7268_v22 }
 0x11d   :  { %v2796_v12 = vsub.f32 %v10439_v42, %v7268_v22  ;;  %v4565_v24 = vpop.eup %4564  ;;  %4584 = vpow2.f32 %v1817_v44  ;;  %v1821_v49 = vmul.f32 1.442695, %v1736_v25  ;;  %v1289_v57 = vadd.f32 %v7273_v31, %v7261_v56 }
 0x11e   :  { %2963 = vadd.xlane.f32.xlu1 %v2962_v50  ;;  %v4567_v21 = vpop.eup %4566  ;;  %4586 = vpow2.f32 %v2875_v8  ;;  %1906 = vadd.xlane.f32.xlu0 %v1905_v33  ;;  %v2879_v28 = vmul.f32 1.442695, %v2795_v11  ;;  %v2965_v19 = vadd.f32 %v4565_v24, %v4563_v36  ;;  %v1163_v42 = vadd.f32 %v7247_v6, %v7231_v35  ;;  %v10441_v50 = vld [vmem:[#allocation24_spill] sm:$0xff]  ;;  %v7297_v8 = vpop.xlane.xlu0 %1669  ;;  %v10448_v36 = vld [vmem:[#allocation18_spill] sm:$0xff] }
 0x11f   :  { %v4569_v0 = vpop.eup %4568  ;;  %4588 = vpow2.f32 %v2877_v46  ;;  %v2881_v44 = vmul.f32 1.442695, %v2796_v12  ;;  %v1196_v25 = vadd.f32 %v7284_v53, %v7240_v17  ;;  %vm10442_vm7 = vcmp.ne.s32.totalorder %v10441_v50, 0  ;;  %10443 = vst [vmem:[#allocation9_spill] sm:$0xff] %v7297_v8  ;;  %v10445_v24 = vld [vmem:[#allocation132_spill] sm:$0xff]  ;;  %v10446_v50 = vld [vmem:[#allocation133_spill] sm:$0xff] }
 0x120   :  { %v7295_v32 = vsel %vm10442_vm7, 1.0, %v10420_v48  ;;  %v4571_v22 = vpop.eup %4570  ;;  %4590 = vpow2.f32 %v1819_v29  ;;  %v1908_v33 = vadd.f32 %v4569_v0, %v4567_v21  ;;  %v7302_v11 = vsel %vm5356_vm8, 1.0, %v10420_v48  ;;  %v7310_v0 = vpop.xlane.xlu1 %2729 }
 0x121   :  { %v1257_v46 = vadd.f32 %v7295_v32, %v1256_v55  ;;  %v4573_v12 = vpop.eup %4572  ;;  %4592 = vpow2.f32 %v1821_v49  ;;  %v1737_v59 = vsub.f32 %v10445_v24, %v7297_v8  ;;  %v1738_v30 = vsub.f32 %v10446_v50, %v7297_v8  ;;  %10447 = vst [vmem:[#allocation8_spill] sm:$0xff] %v7310_v0 }
 0x122   :  { %2966 = vadd.xlane.f32.xlu1 %v2965_v19  ;;  %v1290_v29 = vadd.f32 %v7302_v11, %v1289_v57  ;;  %v4575_v45 = vpop.eup %4574  ;;  %4594 = vpow2.f32 %v2879_v28  ;;  %1909 = vadd.xlane.f32.xlu0 %v1908_v33  ;;  %v2968_v21 = vadd.f32 %v4573_v12, %v4571_v22  ;;  %vm10449_vm10 = vcmp.ne.s32.totalorder %v10448_v36, 0  ;;  %v10451_v28 = vld [vmem:[#allocation135_spill] sm:$0xff]  ;;  %v10452_v22 = vld [vmem:[#allocation136_spill] sm:$0xff] }
 0x123   :  { %v7315_v55 = vsel %vm10449_vm10, 1.0, %v10420_v48  ;;  %v7320_v24 = vsel %vm5316_vm15, 1.0, %v10420_v48  ;;  %v4577_v50 = vpop.eup %4576  ;;  %4596 = vpow2.f32 %v2881_v44  ;;  %v1823_v19 = vmul.f32 1.442695, %v1737_v59  ;;  %v10453_v36 = vld [vmem:[#allocation32_spill] sm:$0xff] }
 0x124   :  { %v1825_v57 = vmul.f32 1.442695, %v1738_v30  ;;  %v2797_v33 = vsub.f32 %v10451_v28, %v7310_v0  ;;  %v4579_v8 = vpop.eup %4578  ;;  %v2798_v12 = vsub.f32 %v10452_v22, %v7310_v0  ;;  %v1911_v3 = vadd.f32 %v4577_v50, %v4575_v45  ;;  %v7336_v0 = vpop.xlane.xlu0 %1672 }
 0x125   :  { %vm10454_vm13 = vcmp.ne.s32.totalorder %v10453_v36, 0  ;;  %v4331_v54 = vsel %vm5405_vm11, 1.0, %v10420_v48  ;;  %v4581_v37 = vpop.eup %4580  ;;  %4598 = vpow2.f32 %v1823_v19  ;;  %v1164_v30 = vadd.f32 %v7315_v55, %v1163_v42  ;;  %10456 = vst [vmem:[#allocation14_spill] sm:$0xff] %v7336_v0  ;;  %v10457_v19 = vld [vmem:[#allocation29_spill] sm:$0xff]  ;;  %v10459_v42 = vld [vmem:[#allocation38_spill] sm:$0xff] }
 0x126   :  { %v4330_v38 = vsel %vm10454_vm13, 1.0, %v10420_v48  ;;  %v2883_v59 = vmul.f32 1.442695, %v2797_v33  ;;  %2969 = vadd.xlane.f32.xlu1 %v2968_v21  ;;  %v4583_v28 = vpop.eup %4582  ;;  %4600 = vpow2.f32 %v1825_v57  ;;  %v2885_v22 = vmul.f32 1.442695, %v2798_v12  ;;  %1912 = vadd.xlane.f32.xlu0 %v1911_v3  ;;  %v10461_v3 = vld [vmem:[#allocation138_spill] sm:$0xff] }
 0x127   :  { %v7333_v44 = vadd.f32 %v4331_v54, %v4330_v38  ;;  %v2971_v45 = vadd.f32 %v4581_v37, %v4579_v8  ;;  %v1197_v50 = vadd.f32 %v7320_v24, %v1196_v25  ;;  %v4585_v36 = vpop.eup %4584  ;;  %v1258_v49 = vadd.f32 %v4330_v38, %v1257_v46  ;;  %v10462_v25 = vld [vmem:[#allocation139_spill] sm:$0xff] }
 0x128   :  { %4602 = vpow2.f32 %v2883_v59  ;;  %vm10458_vm15 = vcmp.ne.s32.totalorder %v10457_v19, 0  ;;  %vm10460_vm8 = vcmp.ne.s32.totalorder %v10459_v42, 0  ;;  %v4587_v57 = vpop.eup %4586  ;;  %v1739_v37 = vsub.f32 %v10461_v3, %v7336_v0  ;;  %v10467_v46 = vld [vmem:[#allocation35_spill] sm:$0xff]  ;;  %v7373_v18 = vpop.xlane.xlu0 %1675 }
 0x129   :  { %v7341_v21 = vsel %vm10458_vm15, 1.0, %v10420_v48  ;;  %v4332_v33 = vsel %vm10460_vm8, 1.0, %v10420_v48  ;;  %4604 = vpow2.f32 %v2885_v22  ;;  %v1740_v8 = vsub.f32 %v10462_v25, %v7336_v0  ;;  %v4589_v59 = vpop.eup %4588  ;;  %10471 = vst [vmem:[#allocation17_spill] sm:$0xff] %v7373_v18 }
 0x12a   :  { %v1914_v12 = vadd.f32 %v4585_v36, %v4583_v28  ;;  %2972 = vadd.xlane.f32.xlu1 %v2971_v45  ;;  %v1291_v38 = vadd.f32 %v4331_v54, %v1290_v29  ;;  %v7353_v19 = vsel %vm5393_vm14, 1.0, %v10420_v48  ;;  %v1165_v42 = vadd.f32 %v7341_v21, %v1164_v30  ;;  %v4591_v26 = vpop.eup %4590  ;;  %v7361_v54 = vpop.xlane.xlu1 %2732 }
 0x12b   :  { %v4333_v22 = vsel %vm5490_vm1, 1.0, %v10420_v48  ;;  %v1827_v3 = vmul.f32 1.442695, %v1739_v37  ;;  %v1829_v60 = vmul.f32 1.442695, %v1740_v8  ;;  %v2974_v25 = vadd.f32 %v4589_v59, %v4587_v57  ;;  %v4593_v45 = vpop.eup %4592  ;;  %10466 = vst [vmem:[#allocation21_spill] sm:$0xff] %v7361_v54 }
 0x12c   :  { %1915 = vadd.xlane.f32.xlu0 %v1914_v12  ;;  %v7359_v28 = vadd.f32 %v4333_v22, %v4332_v33  ;;  %v1198_v29 = vadd.f32 %v7353_v19, %v1197_v50  ;;  %v1259_v36 = vadd.f32 %v4332_v33, %v1258_v49  ;;  %vm10468_vm14 = vcmp.ne.s32.totalorder %v10467_v46, 0  ;;  %v4595_v23 = vpop.eup %4594  ;;  %v10469_v37 = vld [vmem:[#allocation142_spill] sm:$0xff]  ;;  %v10470_v57 = vld [vmem:[#allocation144_spill] sm:$0xff] }
 0x12d   :  { %v7367_v30 = vsel %vm10468_vm14, 1.0, %v10420_v48  ;;  %4606 = vpow2.f32 %v1827_v3  ;;  %v2799_v8 = vsub.f32 %v10469_v37, %v7361_v54  ;;  %v2800_v12 = vsub.f32 %v10470_v57, %v7361_v54  ;;  %v4597_v0 = vpop.eup %4596  ;;  %v10473_v37 = vld [vmem:[#allocation146_spill] sm:$0xff]  ;;  %v10477_v49 = vld [vmem:[#allocation52_spill] sm:$0xff] }
 0x12e   :  { %10465 = vst [vmem:[#allocation10_spill] sm:$0xff] %v7359_v28  ;;  %v1917_v59 = vadd.f32 %v4593_v45, %v4591_v26  ;;  %4608 = vpow2.f32 %v1829_v60  ;;  %2975 = vadd.xlane.f32.xlu1 %v2974_v25  ;;  %v1292_v50 = vadd.f32 %v4333_v22, %v1291_v38  ;;  %v7378_v33 = vsel %vm5463_vm9, 1.0, %v10420_v48  ;;  %v10474_v26 = vld [vmem:[#allocation147_spill] sm:$0xff]  ;;  %v10475_v38 = vld [vmem:[#allocation49_spill] sm:$0xff] }
 0x12f   :  { %v1166_v3 = vadd.f32 %v7367_v30, %v1165_v42  ;;  %v2887_v46 = vmul.f32 1.442695, %v2799_v8  ;;  %v2889_v2 = vmul.f32 1.442695, %v2800_v12  ;;  %v1741_v63 = vsub.f32 %v10473_v37, %v7373_v18  ;;  %v4599_v60 = vpop.eup %4598 }
 0x130   :  { %v1742_v45 = vsub.f32 %v10474_v26, %v7373_v18  ;;  %1918 = vadd.xlane.f32.xlu0 %v1917_v59  ;;  %v2977_v57 = vadd.f32 %v4597_v0, %v4595_v23  ;;  %v1199_v25 = vadd.f32 %v7378_v33, %v1198_v29  ;;  %vm10476_vm11 = vcmp.ne.s32.totalorder %v10475_v38, 0  ;;  %v4601_v8 = vpop.eup %4600  ;;  %v7394_v59 = vpop.xlane.xlu1 %2735  ;;  %v10481_v23 = vld [vmem:[#allocation44_spill] sm:$0xff] }
 0x131   :  { %v4334_v22 = vsel %vm10476_vm11, 1.0, %v10420_v48  ;;  %vm10478_vm9 = vnez %v10477_v49  ;;  %4610 = vpow2.f32 %v2887_v46  ;;  %v1831_v12 = vmul.f32 1.442695, %v1741_v63  ;;  %10480 = vst [vmem:[#allocation28_spill] sm:$0xff] %v7394_v59  ;;  %v10483_v46 = vld [vmem:[#allocation150_spill] sm:$0xff] }
 0x132   :  { %v4335_v42 = vsel %vm10478_vm9, 1.0, %v10420_v48  ;;  %v1833_v37 = vmul.f32 1.442695, %v1742_v45  ;;  %v4603_v26 = vpop.eup %4602  ;;  %4612 = vpow2.f32 %v2889_v2  ;;  %2978 = vadd.xlane.f32.xlu1 %v2977_v57  ;;  %v1920_v0 = vadd.f32 %v4601_v8, %v4599_v60  ;;  %v10484_v45 = vld [vmem:[#allocation151_spill] sm:$0xff] }
 0x133   :  { %v7392_v54 = vadd.f32 %v4335_v42, %v4334_v22  ;;  %v1260_v29 = vadd.f32 %v4334_v22, %v1259_v36  ;;  %vm10482_vm1 = vcmp.ne.s32.totalorder %v10481_v23, 0  ;;  %v4605_v49 = vpop.eup %4604  ;;  %4614 = vpow2.f32 %v1831_v12  ;;  %v10485_v57 = vld [vmem:[#allocation47_spill] sm:$0xff]  ;;  %v10487_v23 = vld [vmem:[#allocation56_spill] sm:$0xff] }
 0x134   :  { %v7399_v38 = vsel %vm10482_vm1, 1.0, %v10420_v48  ;;  %v2801_v63 = vsub.f32 %v10483_v46, %v7394_v59  ;;  %v2802_v18 = vsub.f32 %v10484_v45, %v7394_v59  ;;  %4616 = vpow2.f32 %v1833_v37  ;;  %1921 = vadd.xlane.f32.xlu0 %v1920_v0 }
 0x135   :  { %10479 = vst [vmem:[#allocation24_spill] sm:$0xff] %v7392_v54  ;;  %v1293_v54 = vadd.f32 %v4335_v42, %v1292_v50  ;;  %v2980_v2 = vadd.f32 %v4605_v49, %v4603_v26  ;;  %vm10486_vm3 = vnez %v10485_v57  ;;  %v1167_v60 = vadd.f32 %v7399_v38, %v1166_v3  ;;  %v10489_v50 = vld [vmem:[#allocation60_spill] sm:$0xff]  ;;  %v10491_v3 = vld [vmem:[#allocation53_spill] sm:$0xff] }
 0x136   :  { %v7408_v36 = vsel %vm10486_vm3, 1.0, %v10420_v48  ;;  %v2891_v22 = vmul.f32 1.442695, %v2801_v63  ;;  %v2893_v8 = vmul.f32 1.442695, %v2802_v18  ;;  %vm10488_vm5 = vcmp.ne.s32.totalorder %v10487_v23, 0  ;;  %v7448_v45 = vpop.xlane.xlu1 %2738 }
 0x137   :  { %v1200_v12 = vadd.f32 %v7408_v36, %v1199_v25  ;;  %v4336_v46 = vsel %vm10488_vm5, 1.0, %v10420_v48  ;;  %2981 = vadd.xlane.f32.xlu1 %v2980_v2  ;;  %v7417_v37 = vadd.f32 %v7240_v17, %v7231_v35  ;;  %vm10490_vm2 = vnez %v10489_v50  ;;  %v4607_v25 = vpop.eup %4606  ;;  %v10495_v63 = vld [vmem:[#allocation57_spill] sm:$0xff]  ;;  %v7434_v2 = vpop.xlane.xlu0 %1678  ;;  %v10499_v23 = vld [vmem:[#allocation64_spill] sm:$0xff]  ;;  %10505 = vst [vmem:[#allocation29_spill] sm:$0xff] %v7448_v45 }
 0x138   :  { %v4337_v26 = vsel %vm10490_vm2, 1.0, %v10420_v48  ;;  %v1261_v42 = vadd.f32 %v4336_v46, %v1260_v29  ;;  %vm10492_vm7 = vcmp.ne.s32.totalorder %v10491_v3, 0  ;;  %4618 = vpow2.f32 %v2891_v22  ;;  %v4609_v17 = vpop.eup %4608  ;;  %10498 = vst [vmem:[#allocation34_spill] sm:$0xff] %v7434_v2  ;;  %v10502_v50 = vld [vmem:[#allocation157_spill] sm:$0xff] }
 0x139   :  { %v7425_v18 = vsel %vm10492_vm7, 1.0, %v10420_v48  ;;  %v7427_v0 = vadd.f32 %v4337_v26, %v4336_v46  ;;  %v1294_v49 = vadd.f32 %v4337_v26, %v1293_v54  ;;  %vm10496_vm10 = vnez %v10495_v63  ;;  %v10501_v46 = vld [vmem:[#allocation154_spill] sm:$0xff]  ;;  %v10503_v63 = vld [vmem:[#allocation69_spill] sm:$0xff] }
 0x13a   :  { %10493 = vst [vmem:[#allocation18_spill] sm:$0xff] %v7425_v18  ;;  %v7432_v35 = vsel %vm10496_vm10, 1.0, %v10420_v48  ;;  %4620 = vpow2.f32 %v2893_v8  ;;  %v1168_v29 = vadd.f32 %v7425_v18, %v1167_v60  ;;  %vm10500_vm13 = vcmp.ne.s32.totalorder %v10499_v23, 0  ;;  %v10507_v23 = vld [vmem:[#allocation59_spill] sm:$0xff]  ;;  %v10511_v18 = vld [vmem:[#allocation65_spill] sm:$0xff] }
 0x13b   :  { %10494 = vst [vmem:[#allocation23_spill] sm:$0xff] %v7427_v0  ;;  %10497 = vst [vmem:[#allocation32_spill] sm:$0xff] %v7432_v35  ;;  %v1201_v57 = vadd.f32 %v7432_v35, %v1200_v12  ;;  %v4338_v22 = vsel %vm10500_vm13, 1.0, %v10420_v48  ;;  %v1743_v54 = vsub.f32 %v10501_v46, %v7434_v2  ;;  %v1744_v26 = vsub.f32 %v10502_v50, %v7434_v2  ;;  %v4611_v28 = vpop.eup %4610  ;;  %v10509_v50 = vld [vmem:[#allocation158_spill] sm:$0xff] }
 0x13c   :  { %v1923_v3 = vadd.f32 %v4609_v17, %v4607_v25  ;;  %vm10504_vm15 = vnez %v10503_v63  ;;  %v1262_v12 = vadd.f32 %v4338_v22, %v1261_v42  ;;  %vm10508_vm8 = vcmp.ne.s32.totalorder %v10507_v23, 0  ;;  %v10510_v17 = vld [vmem:[#allocation159_spill] sm:$0xff]  ;;  %v4613_v2 = vpop.eup %4612 }
 0x13d   :  { %v4339_v8 = vsel %vm10504_vm15, 1.0, %v10420_v48  ;;  %v4288_v0 = vsel %vm10508_vm8, 1.0, %v10420_v48  ;;  %v1835_v46 = vmul.f32 1.442695, %v1743_v54  ;;  %v1837_v35 = vmul.f32 1.442695, %v1744_v26  ;;  %v4615_v23 = vpop.eup %4614 }
 0x13e   :  { %v7450_v60 = vadd.f32 %v4339_v8, %v4338_v22  ;;  %v1295_v59 = vadd.f32 %v4339_v8, %v1294_v49  ;;  %v2803_v25 = vsub.f32 %v10509_v50, %v7448_v45  ;;  %v2804_v63 = vsub.f32 %v10510_v17, %v7448_v45  ;;  %1924 = vadd.xlane.f32.xlu0 %v1923_v3  ;;  %v10513_v22 = vld [vmem:[#allocation73_spill] sm:$0xff]  ;;  %v10515_v54 = vld [vmem:[#allocation76_spill] sm:$0xff]  ;;  %v4617_v3 = vpop.eup %4616  ;;  %v7468_v45 = vpop.xlane.xlu0 %1681 }
 0x13f   :  { %vm10512_vm14 = vnez %v10511_v18  ;;  %v1169_v49 = vadd.f32 %v4288_v0, %v1168_v29  ;;  %vm10514_vm11 = vcmp.ne.s32.totalorder %v10513_v22, 0  ;;  %vm10516_vm9 = vnez %v10515_v54  ;;  %10517 = vst [vmem:[#allocation33_spill] sm:$0xff] %v7468_v45 }
 0x140   :  { %10506 = vst [vmem:[#allocation38_spill] sm:$0xff] %v7450_v60  ;;  %v4289_v42 = vsel %vm10512_vm14, 1.0, %v10420_v48  ;;  %v4340_v8 = vsel %vm10514_vm11, 1.0, %v10420_v48  ;;  %v4341_v26 = vsel %vm10516_vm9, 1.0, %v10420_v48  ;;  %4622 = vpow2.f32 %v1835_v46 }
 0x141   :  { %v2895_v50 = vmul.f32 1.442695, %v2803_v25  ;;  %v2897_v60 = vmul.f32 1.442695, %v2804_v63  ;;  %v2983_v17 = vadd.f32 %v4613_v2, %v4611_v28  ;;  %4624 = vpow2.f32 %v1837_v35  ;;  %v10519_v35 = vld [vmem:[#allocation68_spill] sm:$0xff] }
 0x142   :  { %v7470_v18 = vadd.f32 %v4289_v42, %v4288_v0  ;;  %v1202_v29 = vadd.f32 %v4289_v42, %v1201_v57  ;;  %v7472_v4 = vadd.f32 %v4341_v26, %v4340_v8  ;;  %v1745_v22 = vsub.f32 %v6604_v52, %v7468_v45  ;;  %v4619_v25 = vpop.eup %4618 }
 0x143   :  { %4626 = vpow2.f32 %v2895_v50  ;;  %v1746_v54 = vsub.f32 %v6618_v62, %v7468_v45  ;;  %2984 = vadd.xlane.f32.xlu1 %v2983_v17  ;;  %v1926_v46 = vadd.f32 %v4617_v3, %v4615_v23  ;;  %v1263_v28 = vadd.f32 %v4340_v8, %v1262_v12  ;;  %v10521_v50 = vld [vmem:[#allocation72_spill] sm:$0xff]  ;;  %v7484_v62 = vpop.xlane.xlu1 %2741  ;;  %v10526_v8 = vld [vmem:[#allocation82_spill] sm:$0xff] }
 0x144   :  { %10518 = vst [vmem:[#allocation45_spill] sm:$0xff] %v7472_v4  ;;  %4628 = vpow2.f32 %v2897_v60  ;;  %v1296_v2 = vadd.f32 %v4341_v26, %v1295_v59  ;;  %vm10520_vm1 = vcmp.ne.s32.totalorder %v10519_v35, 0  ;;  %v1839_v57 = vmul.f32 1.442695, %v1745_v22  ;;  %v4621_v4 = vpop.eup %4620  ;;  %10523 = vst [vmem:[#allocation35_spill] sm:$0xff] %v7484_v62  ;;  %v10524_v59 = vld [vmem:[#allocation80_spill] sm:$0xff] }
 0x145   :  { %v4290_v0 = vsel %vm10520_vm1, 1.0, %v10420_v48  ;;  %v1841_v63 = vmul.f32 1.442695, %v1746_v54  ;;  %1927 = vadd.xlane.f32.xlu0 %v1926_v46  ;;  %vm10522_vm3 = vnez %v10521_v50  ;;  %vm10525_vm5 = vcmp.ne.s32.totalorder %v10524_v59, 0  ;;  %v10530_v50 = vld [vmem:[#allocation77_spill] sm:$0xff] }
 0x146   :  { %v4291_v42 = vsel %vm10522_vm3, 1.0, %v10420_v48  ;;  %v1170_v52 = vadd.f32 %v4290_v0, %v1169_v49  ;;  %v4342_v12 = vsel %vm10525_vm5, 1.0, %v10420_v48  ;;  %vm10527_vm2 = vnez %v10526_v8 }
 0x147   :  { %v7486_v17 = vadd.f32 %v4291_v42, %v4290_v0  ;;  %v1203_v60 = vadd.f32 %v4291_v42, %v1202_v29  ;;  %v4343_v26 = vsel %vm10527_vm2, 1.0, %v10420_v48  ;;  %4630 = vpow2.f32 %v1839_v57  ;;  %v7500_v0 = vpop.xlane.xlu0 %1684  ;;  %v10532_v42 = vld [vmem:[#allocation81_spill] sm:$0xff] }
 0x148   :  { %v2805_v23 = vsub.f32 %v6641_v13, %v7484_v62  ;;  %v2806_v49 = vsub.f32 %v6649_v27, %v7484_v62  ;;  %v2986_v3 = vadd.f32 %v4621_v4, %v4619_v25  ;;  %4632 = vpow2.f32 %v1841_v63  ;;  %10529 = vst [vmem:[#allocation49_spill] sm:$0xff] %v7500_v0  ;;  %v10534_v4 = vld [vmem:[#allocation170_spill] sm:$0xff]  ;;  %v10535_v63 = vld [vmem:[#allocation171_spill] sm:$0xff] }
 0x149   :  { %v7498_v22 = vadd.f32 %v4343_v26, %v4342_v12  ;;  %v1264_v29 = vadd.f32 %v4342_v12, %v1263_v28  ;;  %v1297_v54 = vadd.f32 %v4343_v26, %v1296_v2  ;;  %vm10531_vm7 = vcmp.ne.s32.totalorder %v10530_v50, 0 }
 0x14a   :  { %v2899_v46 = vmul.f32 1.442695, %v2805_v23  ;;  %v2901_v35 = vmul.f32 1.442695, %v2806_v49  ;;  %2987 = vadd.xlane.f32.xlu1 %v2986_v3  ;;  %v4292_v57 = vsel %vm10531_vm7, 1.0, %v10420_v48  ;;  %vm10533_vm10 = vnez %v10532_v42  ;;  %v4623_v8 = vpop.eup %4622  ;;  %v10536_v23 = vld [vmem:[#allocation86_spill] sm:$0xff] }
 0x14b   :  { %10528 = vst [vmem:[#allocation41_spill] sm:$0xff] %v7498_v22  ;;  %v4293_v59 = vsel %vm10533_vm10, 1.0, %v10420_v48  ;;  %v1747_v25 = vsub.f32 %v10534_v4, %v7500_v0  ;;  %v1748_v28 = vsub.f32 %v10535_v63, %v7500_v0  ;;  %v1171_v12 = vadd.f32 %v4292_v57, %v1170_v52  ;;  %v10538_v3 = vld [vmem:[#allocation93_spill] sm:$0xff]  ;;  %v4625_v42 = vpop.eup %4624  ;;  %v7522_v0 = vpop.xlane.xlu1 %2744 }
 0x14c   :  { %v7512_v2 = vadd.f32 %v4293_v59, %v4292_v57  ;;  %4634 = vpow2.f32 %v2899_v46  ;;  %v1204_v26 = vadd.f32 %v4293_v59, %v1203_v60  ;;  %vm10537_vm13 = vcmp.ne.s32.totalorder %v10536_v23, 0  ;;  %10541 = vst [vmem:[#allocation44_spill] sm:$0xff] %v7522_v0  ;;  %v10542_v57 = vld [vmem:[#allocation83_spill] sm:$0xff] }
 0x14d   :  { %v4344_v49 = vsel %vm10537_vm13, 1.0, %v10420_v48  ;;  %vm10539_vm15 = vnez %v10538_v3  ;;  %4636 = vpow2.f32 %v2901_v35  ;;  %v1843_v27 = vmul.f32 1.442695, %v1747_v25  ;;  %v4627_v63 = vpop.eup %4626  ;;  %v10544_v3 = vld [vmem:[#allocation174_spill] sm:$0xff]  ;;  %v10545_v35 = vld [vmem:[#allocation175_spill] sm:$0xff] }
 0x14e   :  { %v4345_v50 = vsel %vm10539_vm15, 1.0, %v10420_v48  ;;  %v1845_v13 = vmul.f32 1.442695, %v1748_v28  ;;  %v1929_v52 = vadd.f32 %v4625_v42, %v4623_v8  ;;  %v1265_v46 = vadd.f32 %v4344_v49, %v1264_v29  ;;  %v4629_v23 = vpop.eup %4628  ;;  %v10546_v28 = vld [vmem:[#allocation89_spill] sm:$0xff] }
 0x14f   :  { %v7520_v4 = vadd.f32 %v4345_v50, %v4344_v49  ;;  %v1298_v60 = vadd.f32 %v4345_v50, %v1297_v54  ;;  %vm10543_vm8 = vcmp.ne.s32.totalorder %v10542_v57, 0  ;;  %4638 = vpow2.f32 %v1843_v27  ;;  %v10548_v27 = vld [vmem:[#allocation97_spill] sm:$0xff] }
 0x150   :  { %v4294_v59 = vsel %vm10543_vm8, 1.0, %v10420_v48  ;;  %v2807_v62 = vsub.f32 %v10544_v3, %v7522_v0  ;;  %v2808_v25 = vsub.f32 %v10545_v35, %v7522_v0  ;;  %vm10547_vm14 = vnez %v10546_v28  ;;  %1930 = vadd.xlane.f32.xlu0 %v1929_v52  ;;  %v10550_v35 = vld [vmem:[#allocation100_spill] sm:$0xff] }
 0x151   :  { %10540 = vst [vmem:[#allocation52_spill] sm:$0xff] %v7520_v4  ;;  %v4295_v45 = vsel %vm10547_vm14, 1.0, %v10420_v48  ;;  %4640 = vpow2.f32 %v1845_v13  ;;  %v2989_v29 = vadd.f32 %v4629_v23, %v4627_v63  ;;  %v1172_v8 = vadd.f32 %v4294_v59, %v1171_v12  ;;  %v4631_v3 = vpop.eup %4630  ;;  %v10552_v13 = vld [vmem:[#allocation92_spill] sm:$0xff]  ;;  %v10554_v12 = vld [vmem:[#allocation95_spill] sm:$0xff] }
 0x152   :  { %v7534_v54 = vadd.f32 %v4295_v45, %v4294_v59  ;;  %v2903_v49 = vmul.f32 1.442695, %v2807_v62  ;;  %v2905_v50 = vmul.f32 1.442695, %v2808_v25  ;;  %v1205_v42 = vadd.f32 %v4295_v45, %v1204_v26  ;;  %v4633_v45 = vpop.eup %4632  ;;  %v7548_v26 = vpop.xlane.xlu0 %1687  ;;  %v10560_v25 = vld [vmem:[#allocation181_spill] sm:$0xff] }
 0x153   :  { %vm10549_vm11 = vcmp.ne.s32.totalorder %v10548_v27, 0  ;;  %2990 = vadd.xlane.f32.xlu1 %v2989_v29  ;;  %vm10551_vm9 = vnez %v10550_v35  ;;  %vm10553_vm1 = vcmp.ne.s32.totalorder %v10552_v13, 0  ;;  %vm10555_vm3 = vnez %v10554_v12  ;;  %10556 = vst [vmem:[#allocation47_spill] sm:$0xff] %v7548_v26  ;;  %v7558_v13 = vpop.xlane.xlu1 %2747 }
 0x154   :  { %v4346_v57 = vsel %vm10549_vm11, 1.0, %v10420_v48  ;;  %v4347_v28 = vsel %vm10551_vm9, 1.0, %v10420_v48  ;;  %v4296_v63 = vsel %vm10553_vm1, 1.0, %v10420_v48  ;;  %v4297_v62 = vsel %vm10555_vm3, 1.0, %v10420_v48  ;;  %10561 = vst [vmem:[#allocation53_spill] sm:$0xff] %v7558_v13 }
 0x155   :  { %v1266_v0 = vadd.f32 %v4346_v57, %v1265_v46  ;;  %4642 = vpow2.f32 %v2903_v49  ;;  %v7550_v52 = vadd.f32 %v4347_v28, %v4346_v57  ;;  %v1299_v59 = vadd.f32 %v4347_v28, %v1298_v60  ;;  %v10559_v46 = vld [vmem:[#allocation180_spill] sm:$0xff] }
 0x156   :  { %v7552_v23 = vadd.f32 %v4297_v62, %v4296_v63  ;;  %4644 = vpow2.f32 %v2905_v50  ;;  %v1749_v35 = vsub.f32 %v10559_v46, %v7548_v26  ;;  %v1750_v29 = vsub.f32 %v10560_v25, %v7548_v26  ;;  %v10562_v49 = vld [vmem:[#allocation104_spill] sm:$0xff]  ;;  %v4635_v50 = vpop.eup %4634  ;;  %v10566_v46 = vld [vmem:[#allocation183_spill] sm:$0xff] }
 0x157   :  { %10557 = vst [vmem:[#allocation56_spill] sm:$0xff] %v7550_v52  ;;  %v1932_v27 = vadd.f32 %v4633_v45, %v4631_v3  ;;  %v1173_v12 = vadd.f32 %v4296_v63, %v1172_v8  ;;  %v1206_v4 = vadd.f32 %v4297_v62, %v1205_v42  ;;  %vm10563_vm5 = vcmp.ne.s32.totalorder %v10562_v49, 0  ;;  %v10564_v60 = vld [vmem:[#allocation108_spill] sm:$0xff]  ;;  %v4637_v8 = vpop.eup %4636  ;;  %v10569_v49 = vld [vmem:[#allocation101_spill] sm:$0xff] }
 0x158   :  { %10558 = vst [vmem:[#allocation60_spill] sm:$0xff] %v7552_v23  ;;  %v4348_v57 = vsel %vm10563_vm5, 1.0, %v10420_v48  ;;  %vm10565_vm2 = vnez %v10564_v60  ;;  %v1847_v52 = vmul.f32 1.442695, %v1749_v35  ;;  %v1849_v23 = vmul.f32 1.442695, %v1750_v29 }
 0x159   :  { %v4349_v28 = vsel %vm10565_vm2, 1.0, %v10420_v48  ;;  %v2809_v22 = vsub.f32 %v10566_v46, %v7558_v13  ;;  %v10567_v3 = vld [vmem:[#allocation184_spill] sm:$0xff]  ;;  %1933 = vadd.xlane.f32.xlu0 %v1932_v27  ;;  %v1267_v63 = vadd.f32 %v4348_v57, %v1266_v0  ;;  %vm10570_vm7 = vcmp.ne.s32.totalorder %v10569_v49, 0  ;;  %v4639_v26 = vpop.eup %4638  ;;  %v10571_v46 = vld [vmem:[#allocation105_spill] sm:$0xff] }
 0x15a   :  { %v2810_v45 = vsub.f32 %v10567_v3, %v7558_v13  ;;  %v7570_v42 = vadd.f32 %v4349_v28, %v4348_v57  ;;  %v1300_v62 = vadd.f32 %v4349_v28, %v1299_v59  ;;  %v4298_v60 = vsel %vm10570_vm7, 1.0, %v10420_v48  ;;  %v10573_v13 = vld [vmem:[#allocation112_spill] sm:$0xff]  ;;  %v7581_v57 = vpop.xlane.xlu0 %1690  ;;  %v10577_v28 = vld [vmem:[#allocation117_spill] sm:$0xff] }
 0x15b   :  { %4646 = vpow2.f32 %v1847_v52  ;;  %v2907_v25 = vmul.f32 1.442695, %v2809_v22  ;;  %v2992_v29 = vadd.f32 %v4637_v8, %v4635_v50  ;;  %vm10572_vm10 = vnez %v10571_v46  ;;  %v4641_v59 = vpop.eup %4640  ;;  %10575 = vst [vmem:[#allocation64_spill] sm:$0xff] %v7581_v57  ;;  %v10579_v46 = vld [vmem:[#allocation187_spill] sm:$0xff]  ;;  %v10580_v50 = vld [vmem:[#allocation188_spill] sm:$0xff] }
 0x15c   :  { %10568 = vst [vmem:[#allocation57_spill] sm:$0xff] %v7570_v42  ;;  %v2909_v35 = vmul.f32 1.442695, %v2810_v45  ;;  %4648 = vpow2.f32 %v1849_v23  ;;  %v4299_v3 = vsel %vm10572_vm10, 1.0, %v10420_v48  ;;  %v1174_v27 = vadd.f32 %v4298_v60, %v1173_v12 }
 0x15d   :  { %vm10574_vm13 = vcmp.ne.s32.totalorder %v10573_v13, 0  ;;  %4650 = vpow2.f32 %v2907_v25  ;;  %2993 = vadd.xlane.f32.xlu1 %v2992_v29  ;;  %v7583_v52 = vadd.f32 %v4299_v3, %v4298_v60  ;;  %v1207_v22 = vadd.f32 %v4299_v3, %v1206_v4  ;;  %v10582_v60 = vld [vmem:[#allocation107_spill] sm:$0xff] }
 0x15e   :  { %v4350_v0 = vsel %vm10574_vm13, 1.0, %v10420_v48  ;;  %vm10578_vm15 = vnez %v10577_v28  ;;  %4652 = vpow2.f32 %v2909_v35  ;;  %v1751_v12 = vsub.f32 %v10579_v46, %v7581_v57  ;;  %v10584_v35 = vld [vmem:[#allocation113_spill] sm:$0xff] }
 0x15f   :  { %10576 = vst [vmem:[#allocation69_spill] sm:$0xff] %v7583_v52  ;;  %v4351_v23 = vsel %vm10578_vm15, 1.0, %v10420_v48  ;;  %v1752_v13 = vsub.f32 %v10580_v50, %v7581_v57  ;;  %v1935_v45 = vadd.f32 %v4641_v59, %v4639_v26  ;;  %v1268_v25 = vadd.f32 %v4350_v0, %v1267_v63  ;;  %v4643_v3 = vpop.eup %4642  ;;  %v7600_v50 = vpop.xlane.xlu1 %2750  ;;  %v10590_v59 = vld [vmem:[#allocation124_spill] sm:$0xff] }
 0x160   :  { %v7592_v8 = vadd.f32 %v4351_v23, %v4350_v0  ;;  %v1301_v49 = vadd.f32 %v4351_v23, %v1300_v62  ;;  %vm10583_vm8 = vcmp.ne.s32.totalorder %v10582_v60, 0  ;;  %v1851_v29 = vmul.f32 1.442695, %v1751_v12  ;;  %v4645_v52 = vpop.eup %4644  ;;  %10586 = vst [vmem:[#allocation65_spill] sm:$0xff] %v7600_v50  ;;  %v10588_v62 = vld [vmem:[#allocation121_spill] sm:$0xff] }
 0x161   :  { %v4300_v4 = vsel %vm10583_vm8, 1.0, %v10420_v48  ;;  %v1853_v28 = vmul.f32 1.442695, %v1752_v13  ;;  %1936 = vadd.xlane.f32.xlu0 %v1935_v45  ;;  %vm10585_vm14 = vnez %v10584_v35  ;;  %vm10589_vm11 = vcmp.ne.s32.totalorder %v10588_v62, 0  ;;  %v7614_v45 = vpop.xlane.xlu0 %1693  ;;  %v10594_v62 = vld [vmem:[#allocation195_spill] sm:$0xff] }
 0x162   :  { %10581 = vst [vmem:[#allocation59_spill] sm:$0xff] %v7592_v8  ;;  %v4301_v46 = vsel %vm10585_vm14, 1.0, %v10420_v48  ;;  %v1175_v42 = vadd.f32 %v4300_v4, %v1174_v27  ;;  %v4352_v0 = vsel %vm10589_vm11, 1.0, %v10420_v48  ;;  %vm10591_vm9 = vnez %v10590_v59  ;;  %10592 = vst [vmem:[#allocation76_spill] sm:$0xff] %v7614_v45 }
 0x163   :  { %v7602_v26 = vadd.f32 %v4301_v46, %v4300_v4  ;;  %v1208_v63 = vadd.f32 %v4301_v46, %v1207_v22  ;;  %v4353_v23 = vsel %vm10591_vm9, 1.0, %v10420_v48  ;;  %4654 = vpow2.f32 %v1851_v29  ;;  %v10595_v29 = vld [vmem:[#allocation196_spill] sm:$0xff] }
 0x164   :  { %v2811_v12 = vsub.f32 %v6869_v40, %v7600_v50  ;;  %v2812_v27 = vsub.f32 %v6882_v14, %v7600_v50  ;;  %v2995_v13 = vadd.f32 %v4645_v52, %v4643_v3  ;;  %4656 = vpow2.f32 %v1853_v28  ;;  %v10596_v14 = vld [vmem:[#allocation116_spill] sm:$0xff] }
 0x165   :  { %10587 = vst [vmem:[#allocation73_spill] sm:$0xff] %v7602_v26  ;;  %v7616_v22 = vadd.f32 %v4353_v23, %v4352_v0  ;;  %v1269_v46 = vadd.f32 %v4352_v0, %v1268_v25  ;;  %v1302_v60 = vadd.f32 %v4353_v23, %v1301_v49  ;;  %v1753_v59 = vsub.f32 %v10594_v62, %v7614_v45  ;;  %v4647_v40 = vpop.eup %4646  ;;  %v10598_v3 = vld [vmem:[#allocation120_spill] sm:$0xff]  ;;  %v10602_v0 = vld [vmem:[#allocation130_spill] sm:$0xff] }
 0x166   :  { %v2911_v4 = vmul.f32 1.442695, %v2811_v12  ;;  %v2913_v35 = vmul.f32 1.442695, %v2812_v27  ;;  %v1754_v57 = vsub.f32 %v10595_v29, %v7614_v45  ;;  %2996 = vadd.xlane.f32.xlu1 %v2995_v13  ;;  %vm10597_vm1 = vcmp.ne.s32.totalorder %v10596_v14, 0  ;;  %v10600_v25 = vld [vmem:[#allocation128_spill] sm:$0xff]  ;;  %v4649_v12 = vpop.eup %4648 }
 0x167   :  { %10593 = vst [vmem:[#allocation68_spill] sm:$0xff] %v7616_v22  ;;  %v4302_v52 = vsel %vm10597_vm1, 1.0, %v10420_v48  ;;  %vm10599_vm3 = vnez %v10598_v3  ;;  %vm10601_vm5 = vcmp.ne.s32.totalorder %v10600_v25, 0  ;;  %vm10603_vm2 = vnez %v10602_v0  ;;  %v4651_v14 = vpop.eup %4650  ;;  %v7636_v22 = vpop.xlane.xlu1 %2753 }
 0x168   :  { %v4303_v28 = vsel %vm10599_vm3, 1.0, %v10420_v48  ;;  %v4354_v49 = vsel %vm10601_vm5, 1.0, %v10420_v48  ;;  %v4355_v23 = vsel %vm10603_vm2, 1.0, %v10420_v48  ;;  %4658 = vpow2.f32 %v2911_v4  ;;  %v4653_v50 = vpop.eup %4652  ;;  %10605 = vst [vmem:[#allocation80_spill] sm:$0xff] %v7636_v22  ;;  %v10607_v4 = vld [vmem:[#allocation198_spill] sm:$0xff] }
 0x169   :  { %v1855_v27 = vmul.f32 1.442695, %v1753_v59  ;;  %v1857_v13 = vmul.f32 1.442695, %v1754_v57  ;;  %v7634_v29 = vadd.f32 %v4303_v28, %v4302_v52  ;;  %4660 = vpow2.f32 %v2913_v35  ;;  %v10608_v57 = vld [vmem:[#allocation199_spill] sm:$0xff] }
 0x16a   :  { %v1938_v62 = vadd.f32 %v4649_v12, %v4647_v40  ;;  %v1176_v45 = vadd.f32 %v4302_v52, %v1175_v42  ;;  %v1209_v3 = vadd.f32 %v4303_v28, %v1208_v63  ;;  %v7638_v25 = vadd.f32 %v4355_v23, %v4354_v49  ;;  %v10609_v40 = vld [vmem:[#allocation125_spill] sm:$0xff] }
 0x16b   :  { %10604 = vst [vmem:[#allocation72_spill] sm:$0xff] %v7634_v29  ;;  %4662 = vpow2.f32 %v1855_v27  ;;  %v1270_v8 = vadd.f32 %v4354_v49, %v1269_v46  ;;  %v1303_v0 = vadd.f32 %v4355_v23, %v1302_v60  ;;  %v2813_v59 = vsub.f32 %v10607_v4, %v7636_v22  ;;  %v10611_v63 = vld [vmem:[#allocation129_spill] sm:$0xff]  ;;  %v10613_v46 = vld [vmem:[#allocation134_spill] sm:$0xff] }
 0x16c   :  { %10606 = vst [vmem:[#allocation82_spill] sm:$0xff] %v7638_v25  ;;  %4664 = vpow2.f32 %v1857_v13  ;;  %v2814_v29 = vsub.f32 %v10608_v57, %v7636_v22  ;;  %1939 = vadd.xlane.f32.xlu0 %v1938_v62  ;;  %v2998_v35 = vadd.f32 %v4653_v50, %v4651_v14  ;;  %vm10610_vm7 = vcmp.ne.s32.totalorder %v10609_v40, 0  ;;  %v10615_v28 = vld [vmem:[#allocation141_spill] sm:$0xff]  ;;  %v10637_v22 = vld [vmem:[#allocation156_spill] sm:$0xff] }
 0x16d   :  { %v4304_v42 = vsel %vm10610_vm7, 1.0, %v10420_v48  ;;  %vm10612_vm10 = vnez %v10611_v63  ;;  %vm10614_vm13 = vcmp.ne.s32.totalorder %v10613_v46, 0  ;;  %vm10616_vm15 = vnez %v10615_v28  ;;  %v4655_v27 = vpop.eup %4654  ;;  %v10619_v46 = vld [vmem:[#allocation131_spill] sm:$0xff]  ;;  %v10621_v28 = vld [vmem:[#allocation137_spill] sm:$0xff] }
 0x16e   :  { %v4305_v52 = vsel %vm10612_vm10, 1.0, %v10420_v48  ;;  %v4356_v60 = vsel %vm10614_vm13, 1.0, %v10420_v48  ;;  %v4357_v49 = vsel %vm10616_vm15, 1.0, %v10420_v48  ;;  %v2915_v23 = vmul.f32 1.442695, %v2813_v59  ;;  %2999 = vadd.xlane.f32.xlu1 %v2998_v35  ;;  %v4657_v57 = vpop.eup %4656  ;;  %v10623_v59 = vld [vmem:[#allocation145_spill] sm:$0xff] }
 0x16f   :  { %v2917_v12 = vmul.f32 1.442695, %v2814_v29  ;;  %v7656_v50 = vadd.f32 %v4305_v52, %v4304_v42  ;;  %v1177_v62 = vadd.f32 %v4304_v42, %v1176_v45  ;;  %v1210_v13 = vadd.f32 %v4305_v52, %v1209_v3  ;;  %v10627_v52 = vld [vmem:[#allocation148_spill] sm:$0xff] }
 0x170   :  { %v7658_v14 = vadd.f32 %v4357_v49, %v4356_v60  ;;  %v1271_v40 = vadd.f32 %v4356_v60, %v1270_v8  ;;  %v1304_v63 = vadd.f32 %v4357_v49, %v1303_v0  ;;  %4666 = vpow2.f32 %v2915_v23  ;;  %v7671_v0 = vpop.xlane.xlu0 %1696  ;;  %v10629_v23 = vld [vmem:[#allocation140_spill] sm:$0xff] }
 0x171   :  { %10617 = vst [vmem:[#allocation77_spill] sm:$0xff] %v7656_v50  ;;  %vm10620_vm8 = vcmp.ne.s32.totalorder %v10619_v46, 0  ;;  %vm10622_vm14 = vnez %v10621_v28  ;;  %vm10624_vm11 = vcmp.ne.s32.totalorder %v10623_v59, 0  ;;  %4668 = vpow2.f32 %v2917_v12  ;;  %10626 = vst [vmem:[#allocation93_spill] sm:$0xff] %v7671_v0 }
 0x172   :  { %10618 = vst [vmem:[#allocation81_spill] sm:$0xff] %v7658_v14  ;;  %v4306_v4 = vsel %vm10620_vm8, 1.0, %v10420_v48  ;;  %v4307_v29 = vsel %vm10622_vm14, 1.0, %v10420_v48  ;;  %v4358_v45 = vsel %vm10624_vm11, 1.0, %v10420_v48  ;;  %v1941_v3 = vadd.f32 %v4657_v57, %v4655_v27  ;;  %v4659_v28 = vpop.eup %4658  ;;  %v10631_v57 = vld [vmem:[#allocation204_spill] sm:$0xff] }
 0x173   :  { %v7669_v35 = vadd.f32 %v4307_v29, %v4306_v4  ;;  %v1178_v8 = vadd.f32 %v4306_v4, %v1177_v62  ;;  %v1211_v42 = vadd.f32 %v4307_v29, %v1210_v13  ;;  %vm10628_vm9 = vnez %v10627_v52  ;;  %v4661_v13 = vpop.eup %4660  ;;  %v10633_v29 = vld [vmem:[#allocation143_spill] sm:$0xff]  ;;  %v10635_v52 = vld [vmem:[#allocation152_spill] sm:$0xff] }
 0x174   :  { %v4359_v60 = vsel %vm10628_vm9, 1.0, %v10420_v48  ;;  %v1272_v49 = vadd.f32 %v4358_v45, %v1271_v40  ;;  %vm10630_vm1 = vcmp.ne.s32.totalorder %v10629_v23, 0  ;;  %v1755_v12 = vsub.f32 %v6998_v34, %v7671_v0  ;;  %1942 = vadd.xlane.f32.xlu0 %v1941_v3 }
 0x175   :  { %10625 = vst [vmem:[#allocation86_spill] sm:$0xff] %v7669_v35  ;;  %v4308_v46 = vsel %vm10630_vm1, 1.0, %v10420_v48  ;;  %v1756_v27 = vsub.f32 %v10631_v57, %v7671_v0  ;;  %v7683_v4 = vadd.f32 %v4359_v60, %v4358_v45  ;;  %v1305_v62 = vadd.f32 %v4359_v60, %v1304_v63  ;;  %v4663_v25 = vpop.eup %4662  ;;  %v7696_v60 = vpop.xlane.xlu0 %1699 }
 0x176   :  { %vm10634_vm3 = vnez %v10633_v29  ;;  %v1179_v59 = vadd.f32 %v4308_v46, %v1178_v8  ;;  %vm10636_vm5 = vcmp.ne.s32.totalorder %v10635_v52, 0  ;;  %vm10638_vm2 = vnez %v10637_v22  ;;  %v4665_v63 = vpop.eup %4664  ;;  %10639 = vst [vmem:[#allocation89_spill] sm:$0xff] %v7696_v60  ;;  %v7700_v52 = vpop.xlane.xlu1 %2756 }
 0x177   :  { %10632 = vst [vmem:[#allocation83_spill] sm:$0xff] %v7683_v4  ;;  %v4309_v40 = vsel %vm10634_vm3, 1.0, %v10420_v48  ;;  %v4360_v23 = vsel %vm10636_vm5, 1.0, %v10420_v48  ;;  %v4361_v14 = vsel %vm10638_vm2, 1.0, %v10420_v48  ;;  %v1859_v0 = vmul.f32 1.442695, %v1755_v12 }
 0x178   :  { %v1861_v3 = vmul.f32 1.442695, %v1756_v27  ;;  %v3001_v45 = vadd.f32 %v4661_v13, %v4659_v28  ;;  %v7694_v4 = vadd.f32 %v4309_v40, %v4308_v46  ;;  %v1212_v29 = vadd.f32 %v4309_v40, %v1211_v42  ;;  %10641 = vst [vmem:[#allocation100_spill] sm:$0xff] %v7700_v52  ;;  %v10642_v12 = vld [vmem:[#allocation149_spill] sm:$0xff] }
 0x179   :  { %v7698_v35 = vadd.f32 %v4361_v14, %v4360_v23  ;;  %v1273_v8 = vadd.f32 %v4360_v23, %v1272_v49  ;;  %v1306_v50 = vadd.f32 %v4361_v14, %v1305_v62  ;;  %4670 = vpow2.f32 %v1859_v0  ;;  %v10644_v14 = vld [vmem:[#allocation153_spill] sm:$0xff] }
 0x17a   :  { %v1757_v22 = vsub.f32 -1e+30, %v7696_v60  ;;  %3002 = vadd.xlane.f32.xlu1 %v3001_v45  ;;  %v1944_v26 = vadd.f32 %v4665_v63, %v4663_v25  ;;  %vm10643_vm7 = vcmp.ne.s32.totalorder %v10642_v12, 0  ;;  %4672 = vpow2.f32 %v1861_v3  ;;  %v4667_v13 = vpop.eup %4666  ;;  %v7715_v3 = vpop.xlane.xlu0 %1702  ;;  %v10647_v45 = vld [vmem:[#allocation160_spill] sm:$0xff]  ;;  %v10649_v12 = vld [vmem:[#allocation165_spill] sm:$0xff] }
 0x17b   :  { %10640 = vst [vmem:[#allocation97_spill] sm:$0xff] %v7698_v35  ;;  %v4310_v46 = vsel %vm10643_vm7, 1.0, %v10420_v48  ;;  %v2815_v28 = vsub.f32 %v7030_v47, %v7700_v52  ;;  %v2816_v42 = vsub.f32 %v7043_v1, %v7700_v52  ;;  %vm10645_vm10 = vnez %v10644_v14  ;;  %10646 = vst [vmem:[#allocation92_spill] sm:$0xff] %v7715_v3  ;;  %v4669_v60 = vpop.eup %4668 }
 0x17c   :  { %v4311_v0 = vsel %vm10645_vm10, 1.0, %v10420_v48  ;;  %v1863_v49 = vmul.f32 1.442695, %v1757_v22  ;;  %1945 = vadd.xlane.f32.xlu0 %v1944_v26  ;;  %v1180_v25 = vadd.f32 %v4310_v46, %v1179_v59  ;;  %vm10648_vm13 = vcmp.ne.s32.totalorder %v10647_v45, 0  ;;  %v7723_v26 = vpop.xlane.xlu1 %2759  ;;  %v10653_v45 = vld [vmem:[#allocation155_spill] sm:$0xff] }
 0x17d   :  { %v7713_v27 = vadd.f32 %v4311_v0, %v4310_v46  ;;  %v1213_v62 = vadd.f32 %v4311_v0, %v1212_v29  ;;  %v2919_v40 = vmul.f32 1.442695, %v2815_v28  ;;  %v2921_v23 = vmul.f32 1.442695, %v2816_v42  ;;  %10651 = vst [vmem:[#allocation95_spill] sm:$0xff] %v7723_v26 }
 0x17e   :  { %v4362_v63 = vsel %vm10648_vm13, 1.0, %v10420_v48  ;;  %vm10650_vm15 = vnez %v10649_v12  ;;  %4674 = vpow2.f32 %v1863_v49  ;;  %v1759_v59 = vsub.f32 -1e+30, %v7715_v3  ;;  %v10655_v49 = vld [vmem:[#allocation161_spill] sm:$0xff]  ;;  %v7735_v3 = vpop.xlane.xlu0 %1705 }
 0x17f   :  { %v4363_v14 = vsel %vm10650_vm15, 1.0, %v10420_v48  ;;  %v1274_v22 = vadd.f32 %v4362_v63, %v1273_v8  ;;  %4676 = vpow2.f32 %v2919_v40  ;;  %v2817_v46 = vsub.f32 -1e+30, %v7723_v26  ;;  %10657 = vst [vmem:[#allocation108_spill] sm:$0xff] %v7735_v3 }
 0x180   :  { %v7726_v29 = vadd.f32 %v4363_v14, %v4362_v63  ;;  %v3004_v28 = vadd.f32 %v4669_v60, %v4667_v13  ;;  %v1307_v42 = vadd.f32 %v4363_v14, %v1306_v50  ;;  %4678 = vpow2.f32 %v2921_v23  ;;  %v7739_v50 = vpop.xlane.xlu1 %2762  ;;  %v10659_v13 = vld [vmem:[#allocation169_spill] sm:$0xff]  ;;  %v10661_v14 = vld [vmem:[#allocation172_spill] sm:$0xff] }
 0x181   :  { %v1867_v0 = vmul.f32 1.442695, %v1759_v59  ;;  %vm10654_vm8 = vcmp.ne.s32.totalorder %v10653_v45, 0  ;;  %vm10656_vm14 = vnez %v10655_v49  ;;  %v2923_v35 = vmul.f32 1.442695, %v2817_v46  ;;  %10658 = vst [vmem:[#allocation101_spill] sm:$0xff] %v7739_v50 }
 0x182   :  { %10652 = vst [vmem:[#allocation104_spill] sm:$0xff] %v7726_v29  ;;  %v4312_v12 = vsel %vm10654_vm8, 1.0, %v10420_v48  ;;  %v4313_v52 = vsel %vm10656_vm14, 1.0, %v10420_v48  ;;  %3005 = vadd.xlane.f32.xlu1 %v3004_v28  ;;  %v1761_v60 = vsub.f32 -1e+30, %v7735_v3  ;;  %vm10660_vm11 = vcmp.ne.s32.totalorder %v10659_v13, 0 }
 0x183   :  { %v7737_v8 = vadd.f32 %v4313_v52, %v4312_v12  ;;  %v1181_v40 = vadd.f32 %v4312_v12, %v1180_v25  ;;  %v1214_v63 = vadd.f32 %v4313_v52, %v1213_v62  ;;  %4680 = vpow2.f32 %v1867_v0  ;;  %v4671_v52 = vpop.eup %4670  ;;  %v10664_v45 = vld [vmem:[#allocation164_spill] sm:$0xff] }
 0x184   :  { %v4364_v23 = vsel %vm10660_vm11, 1.0, %v10420_v48  ;;  %vm10662_vm9 = vnez %v10661_v14  ;;  %4682 = vpow2.f32 %v2923_v35  ;;  %v2819_v46 = vsub.f32 -1e+30, %v7739_v50  ;;  %v10666_v49 = vld [vmem:[#allocation168_spill] sm:$0xff]  ;;  %v4673_v3 = vpop.eup %4672 }
 0x185   :  { %v4365_v59 = vsel %vm10662_vm9, 1.0, %v10420_v48  ;;  %v1275_v25 = vadd.f32 %v4364_v23, %v1274_v22  ;;  %v1871_v62 = vmul.f32 1.442695, %v1761_v60  ;;  %vm10665_vm1 = vcmp.ne.s32.totalorder %v10664_v45, 0  ;;  %v7759_v22 = vpop.xlane.xlu1 %2765 }
 0x186   :  { %v7749_v28 = vadd.f32 %v4365_v59, %v4364_v23  ;;  %v1308_v0 = vadd.f32 %v4365_v59, %v1307_v42  ;;  %v4314_v12 = vsel %vm10665_vm1, 1.0, %v10420_v48  ;;  %vm10667_vm3 = vnez %v10666_v49  ;;  %10669 = vst [vmem:[#allocation117_spill] sm:$0xff] %v7759_v22  ;;  %v10670_v42 = vld [vmem:[#allocation176_spill] sm:$0xff]  ;;  %v10672_v23 = vld [vmem:[#allocation178_spill] sm:$0xff] }
 0x187   :  { %v4315_v13 = vsel %vm10667_vm3, 1.0, %v10420_v48  ;;  %v2927_v14 = vmul.f32 1.442695, %v2819_v46  ;;  %v1182_v35 = vadd.f32 %v4314_v12, %v1181_v40  ;;  %v1947_v29 = vadd.f32 %v4673_v3, %v4671_v52 }
 0x188   :  { %10663 = vst [vmem:[#allocation105_spill] sm:$0xff] %v7749_v28  ;;  %v7757_v26 = vadd.f32 %v4315_v13, %v4314_v12  ;;  %v1215_v50 = vadd.f32 %v4315_v13, %v1214_v63  ;;  %4684 = vpow2.f32 %v1871_v62  ;;  %vm10671_vm5 = vcmp.ne.s32.totalorder %v10670_v42, 0  ;;  %v4675_v40 = vpop.eup %4674  ;;  %v10675_v63 = vld [vmem:[#allocation173_spill] sm:$0xff]  ;;  %v10679_v13 = vld [vmem:[#allocation182_spill] sm:$0xff] }
 0x189   :  { %v4366_v60 = vsel %vm10671_vm5, 1.0, %v10420_v48  ;;  %vm10673_vm2 = vnez %v10672_v23  ;;  %4686 = vpow2.f32 %v2927_v14  ;;  %v2821_v45 = vsub.f32 -1e+30, %v7759_v22  ;;  %1948 = vadd.xlane.f32.xlu0 %v1947_v29  ;;  %v10677_v62 = vld [vmem:[#allocation177_spill] sm:$0xff]  ;;  %v4677_v42 = vpop.eup %4676 }
 0x18a   :  { %10668 = vst [vmem:[#allocation112_spill] sm:$0xff] %v7757_v26  ;;  %v4367_v59 = vsel %vm10673_vm2, 1.0, %v10420_v48  ;;  %v1276_v49 = vadd.f32 %v4366_v60, %v1275_v25  ;;  %vm10676_vm7 = vcmp.ne.s32.totalorder %v10675_v63, 0  ;;  %vm10678_vm10 = vnez %v10677_v62  ;;  %v4679_v29 = vpop.eup %4678  ;;  %v10684_v62 = vld [vmem:[#allocation179_spill] sm:$0xff] }
 0x18b   :  { %v7768_v46 = vadd.f32 %v4367_v59, %v4366_v60  ;;  %v1309_v3 = vadd.f32 %v4367_v59, %v1308_v0  ;;  %v4316_v52 = vsel %vm10676_vm7, 1.0, %v10420_v48  ;;  %v4317_v12 = vsel %vm10678_vm10, 1.0, %v10420_v48  ;;  %v10682_v60 = vld [vmem:[#allocation190_spill] sm:$0xff] }
 0x18c   :  { %vm10680_vm13 = vcmp.ne.s32.totalorder %v10679_v13, 0  ;;  %v1950_v23 = vadd.f32 %v4675_v40, %v4675_v40  ;;  %v2931_v22 = vmul.f32 1.442695, %v2821_v45  ;;  %v1183_v25 = vadd.f32 %v4316_v52, %v1182_v35  ;;  %v10687_v35 = vld [vmem:[#allocation185_spill] sm:$0xff] }
 0x18d   :  { %10674 = vst [vmem:[#allocation107_spill] sm:$0xff] %v7768_v46  ;;  %v4368_v14 = vsel %vm10680_vm13, 1.0, %v10420_v48  ;;  %v7779_v46 = vadd.f32 %v4317_v12, %v4316_v52  ;;  %v1216_v0 = vadd.f32 %v4317_v12, %v1215_v50  ;;  %vm10683_vm15 = vnez %v10682_v60  ;;  %v4681_v45 = vpop.eup %4680  ;;  %v10689_v12 = vld [vmem:[#allocation194_spill] sm:$0xff]  ;;  %v10691_v60 = vld [vmem:[#allocation197_spill] sm:$0xff] }
 0x18e   :  { %v4369_v59 = vsel %vm10683_vm15, 1.0, %v10420_v48  ;;  %v1277_v63 = vadd.f32 %v4368_v14, %v1276_v49  ;;  %vm10685_vm8 = vcmp.ne.s32.totalorder %v10684_v62, 0  ;;  %v3007_v26 = vadd.f32 %v4679_v29, %v4677_v42  ;;  %1951 = vadd.xlane.f32.xlu0 %v1950_v23 }
 0x18f   :  { %10681 = vst [vmem:[#allocation113_spill] sm:$0xff] %v7779_v46  ;;  %v4318_v28 = vsel %vm10685_vm8, 1.0, %v10420_v48  ;;  %4688 = vpow2.f32 %v2931_v22  ;;  %v7787_v13 = vadd.f32 %v4369_v59, %v4368_v14  ;;  %v1310_v40 = vadd.f32 %v4369_v59, %v1309_v3  ;;  %v1877_v46 = vpop.xlane.xlu0 %1876  ;;  %v4683_v22 = vpop.eup %4682 }
 0x190   :  { %vm10688_vm14 = vnez %v10687_v35  ;;  %v1184_v52 = vadd.f32 %v4318_v28, %v1183_v25  ;;  %vm10690_vm11 = vcmp.ne.s32.totalorder %v10689_v12, 0  ;;  %vm10692_vm9 = vnez %v10691_v60  ;;  %3008 = vadd.xlane.f32.xlu1 %v3007_v26  ;;  %v10694_v35 = vld [vmem:[#allocation189_spill] sm:$0xff] }
 0x191   :  { %10686 = vst [vmem:[#allocation121_spill] sm:$0xff] %v7787_v13  ;;  %v4319_v50 = vsel %vm10688_vm14, 1.0, %v10420_v48  ;;  %v4370_v49 = vsel %vm10690_vm11, 1.0, %v10420_v48  ;;  %v4371_v42 = vsel %vm10692_vm9, 1.0, %v10420_v48  ;;  %v1953_v14 = vadd.f32 %v4681_v45, %v4681_v45  ;;  %v10696_v13 = vld [vmem:[#allocation192_spill] sm:$0xff] }
 0x192   :  { %4690 = vlog2.f32 %v1877_v46  ;;  %v7798_v3 = vadd.f32 %v4319_v50, %v4318_v28  ;;  %v1217_v23 = vadd.f32 %v4319_v50, %v1216_v0  ;;  %v3010_v29 = vadd.f32 %v4683_v22, %v4683_v22  ;;  %v4685_v46 = vpop.eup %4684 }
 0x193   :  { %v7800_v59 = vadd.f32 %v4371_v42, %v4370_v49  ;;  %v1278_v62 = vadd.f32 %v4370_v49, %v1277_v63  ;;  %v1311_v25 = vadd.f32 %v4371_v42, %v1310_v40  ;;  %vm10695_vm1 = vcmp.ne.s32.totalorder %v10694_v35, 0  ;;  %1954 = vadd.xlane.f32.xlu0 %v1953_v14  ;;  %v4687_v50 = vpop.eup %4686  ;;  %v10700_v42 = vld [vmem:[#allocation200_spill] sm:$0xff]  ;;  %v2937_v35 = vpop.xlane.xlu0 %2936 }
 0x194   :  { %v4320_v12 = vsel %vm10695_vm1, 1.0, %v10420_v48  ;;  %vm10697_vm3 = vnez %v10696_v13  ;;  %v4372_v26 = vsel %vm301_vm0, 1.0, %v10420_v48  ;;  %v4373_v28 = vsel %vm7020_vm4, 1.0, %v10420_v48  ;;  %3011 = vadd.xlane.f32.xlu1 %v3010_v29 }
 0x195   :  { %10693 = vst [vmem:[#allocation124_spill] sm:$0xff] %v7800_v59  ;;  %v4321_v60 = vsel %vm10697_vm3, 1.0, %v10420_v48  ;;  %v1185_v63 = vadd.f32 %v4320_v12, %v1184_v52  ;;  %v7816_v45 = vadd.f32 %v4373_v28, %v4372_v26  ;;  %v1279_v13 = vadd.f32 %v4372_v26, %v1278_v62 }
 0x196   :  { %v7814_v0 = vadd.f32 %v4321_v60, %v4320_v12  ;;  %v1218_v40 = vadd.f32 %v4321_v60, %v1217_v23  ;;  %v1312_v49 = vadd.f32 %v4373_v28, %v1311_v25  ;;  %vm10701_vm5 = vcmp.ne.s32.totalorder %v10700_v42, 0 }
 0x197   :  { %10699 = vst [vmem:[#allocation120_spill] sm:$0xff] %v7816_v45  ;;  %v4322_v41 = vsel %vm10701_vm5, 1.0, %v10420_v48  ;;  %v3013_v22 = vadd.f32 %v4687_v50, %v4687_v50  ;;  %v4323_v14 = vsel %vm6987_vm6, 1.0, %v10420_v48  ;;  %4692 = vlog2.f32 %v2937_v35  ;;  %910 = vadd.xlane.f32.xlu0 %v7417_v37 }
 0x198   :  { %10698 = vst [vmem:[#allocation116_spill] sm:$0xff] %v7814_v0  ;;  %v1186_v59 = vadd.f32 %v4322_v41, %v1185_v63  ;;  %v1880_v0 = vpop.xlane.xlu1 %1879  ;;  %v1283_v52 = vrot.slane %v1279_v13, 4  ;;  %v1316_v23 = vrot.slane %v1312_v49, 4  ;;  %v7824_v12 = vadd.f32 %v4323_v14, %v4322_v41 }
 0x199   :  { %v993_v29 = vadd.f32 %v7261_v56, %v7256_v15  ;;  %v1219_v25 = vadd.f32 %v4323_v14, %v1218_v40  ;;  %v4689_v60 = vpop.eup %4688  ;;  %3014 = vadd.xlane.f32.xlu1 %v3013_v22  ;;  %v912_v26 = vadd.f32 %v7284_v53, %v7247_v6  ;;  %4694 = vlog2.f32 %v1880_v0  ;;  %v1883_v40 = vpop.xlane.xlu0 %1882 }
 0x19a   :  { %v1190_v62 = vrot.slane %v1186_v59, 4  ;;  %v1284_v28 = vadd.f32 %v1283_v52, %v1279_v13  ;;  %v1317_v63 = vadd.f32 %v1316_v23, %v1312_v49  ;;  %v1956_v37 = vadd.f32 %v4685_v46, %v4685_v46 }
 0x19b   :  { %v1223_v42 = vrot.slane %v1219_v25, 4  ;;  %994 = vadd.xlane.f32.xlu0 %v993_v29  ;;  %v996_v15 = vadd.f32 %v7273_v31, %v7266_v5  ;;  %v915_v46 = vadd.f32 %v7320_v24, %v7315_v55  ;;  %v3016_v5 = vadd.f32 %v4689_v60, %v4689_v60  ;;  %v10704_v55 = vld [vmem:[#allocation186_spill] sm:$0xff] }
 0x19c   :  { %v1191_v50 = vadd.f32 %v1190_v62, %v1186_v59  ;;  %v4691_v35 = vpop.eup %4690  ;;  %v1285_v41 = vrot.slane %v1284_v28, 2  ;;  %v1318_v16 = vrot.slane %v1317_v63, 2  ;;  %v2940_v56 = vpop.xlane.xlu1 %2939 }
 0x19d   :  { %v1224_v48 = vadd.f32 %v1223_v42, %v1219_v25  ;;  %913 = vadd.xlane.f32.xlu1 %v912_v26  ;;  %4696 = vlog2.f32 %v2940_v56  ;;  %v1960_v49 = vmul.f32 0.6931472, %v4691_v35  ;;  %v1886_v29 = vpop.xlane.xlu0 %1885  ;;  %v7846_v56 = vsub.s32 1, %v6966_v10 }
 0x19e   :  { %v1192_v45 = vrot.slane %v1191_v50, 2  ;;  %v1286_v22 = vadd.f32 %v1285_v41, %v1284_v28  ;;  %v1319_v53 = vadd.f32 %v1318_v16, %v1317_v63  ;;  %4698 = vlog2.f32 %v1883_v40 }
 0x19f   :  { %v1225_v0 = vrot.slane %v1224_v48, 2  ;;  %1957 = vadd.xlane.f32.xlu0 %v1956_v37  ;;  %v7836_v63 = vsub.s32 0, %v6966_v10  ;;  %v2015_v60 = vadd.f32 %v1960_v49, %v10704_v55  ;;  %v999_v41 = vadd.f32 %v7302_v11, %v7295_v32  ;;  %10705 = vst [vmem:[#allocation130_spill] sm:$0xff] %v7846_v56 }
 0x1a0   :  { %v1193_v6 = vadd.f32 %v1192_v45, %v1191_v50  ;;  %v1287_v59 = vrot.slane %v1286_v22, 1  ;;  %v1320_v13 = vrot.slane %v1319_v53, 1  ;;  %v2943_v31 = vpop.xlane.xlu1 %2942  ;;  %v10707_v32 = vsub.f32 %v7096_v43, %v7111_v9 }
 0x1a1   :  { %v1226_v52 = vadd.f32 %v1225_v0, %v1224_v48  ;;  %v4693_v23 = vpop.eup %4692  ;;  %997 = vadd.xlane.f32.xlu1 %v996_v15  ;;  %4700 = vlog2.f32 %v2943_v31  ;;  %10703 = vst [vmem:[#allocation128_spill] sm:$0xff] %v7836_v63  ;;  %v918_v48 = vadd.f32 %v7353_v19, %v7341_v21  ;;  %v1889_v37 = vpop.xlane.xlu0 %1888  ;;  %v1255_v21 = vld [vmem:[#allocation2 + $0x5] ss:$8 sm:$0x3]  ;;  %v921_v10 = vadd.f32 %v7378_v33, %v7367_v30 }
 0x1a2   :  { %v1194_v14 = vrot.slane %v1193_v6, 1  ;;  %v1288_v62 = vadd.f32 %v1287_v59, %v1286_v22  ;;  %v1321_v25 = vadd.f32 %v1320_v13, %v1319_v53  ;;  %v3020_v26 = vmul.f32 0.6931472, %v4693_v23 }
 0x1a3   :  { %v1227_v28 = vrot.slane %v1226_v52, 1  ;;  %4702 = vlog2.f32 %v1886_v29  ;;  %v4695_v24 = vpop.eup %4694  ;;  %916 = vadd.xlane.f32.xlu0 %v915_v46  ;;  %v2311_v11 = vmul.f32 1.442695, %v10707_v32  ;;  %v7863_v23 = vrot.slane %v7111_v9, %v7846_v56  ;;  %v10713_v32 = vld [vmem:[#allocation203_spill] sm:$0xff] }
 0x1a4   :  { %v1195_v45 = vadd.f32 %v1194_v14, %v1193_v6  ;;  %v1324_v50 = vcombine.low %v1288_v62, %v1321_v25  ;;  %v3075_v42 = vadd.f32 %v3020_v26, %v6865_v20  ;;  %v2946_v16 = vpop.xlane.xlu1 %2945  ;;  %v1962_v22 = vmul.f32 0.6931472, %v4695_v24 }
 0x1a5   :  { %v1228_v35 = vadd.f32 %v1227_v28, %v1226_v52  ;;  %3017 = vadd.xlane.f32.xlu1 %v3016_v5  ;;  %4704 = vlog2.f32 %v2946_v16  ;;  %v7853_v6 = vrot.slane %v7111_v9, %v7836_v63  ;;  %v1892_v49 = vpop.xlane.xlu0 %1891  ;;  %v1162_v52 = vld [vmem:[#allocation2 + $0x4] ss:$8 sm:$0x3]  ;;  %v2189_v9 = vsub.f32 %v10631_v57, %v7863_v23 }
 0x1a6   :  { %v1331_v15 = vrot.slane %v1324_v50, %v7082_v51  ;;  %v7848_v40 = vadd.f32 %v3075_v42, %v2015_v60  ;;  %v2016_v33 = vadd.f32 %v1962_v22, %v6889_v61  ;;  %v10710_v42 = vld [vmem:[#allocation32_spill] sm:$0xff]  ;;  %v10711_v16 = vld [vmem:[#allocation10_spill] sm:$0xff] }
 0x1a7   :  { %v1231_v19 = vcombine.low %v1195_v45, %v1228_v35  ;;  %v4697_v53 = vpop.eup %4696  ;;  %10706 = vst [vmem:[#allocation125_spill] sm:$0xff] %v7853_v6  ;;  %919 = vadd.xlane.f32.xlu0 %v918_v48  ;;  %v2188_v43 = vsub.f32 %v6998_v34, %v7853_v6  ;;  %v924_v34 = vadd.f32 %v7408_v36, %v7399_v38  ;;  %v10708_v38 = vld [vmem:[#allocation201_spill] sm:$0xff]  ;;  %v2294_v60 = vmul.f32 1.442695, %v2189_v9 }
 0x1a8   :  { %v1338_v20 = vrot.slane %v1331_v15, %v7082_v51  ;;  %v4699_v59 = vpop.eup %4698  ;;  %v3022_v13 = vmul.f32 0.6931472, %v4697_v53  ;;  %v2949_v46 = vpop.xlane.xlu1 %2948  ;;  %v3520_v5 = vand.u32 2147483647, %v7848_v40 }
 0x1a9   :  { %v1238_v0 = vrot.slane %v1231_v19, %v7082_v51  ;;  %1000 = vadd.xlane.f32.xlu1 %v999_v41  ;;  %v1964_v29 = vmul.f32 0.6931472, %v4699_v59  ;;  %4706 = vlog2.f32 %v2949_v46  ;;  %v2292_v28 = vmul.f32 1.442695, %v2188_v43  ;;  %v1895_v24 = vpop.xlane.xlu0 %1894 }
 0x1aa   :  { %v1340_v14 = vadd.f32 %v1338_v20, %v1255_v21  ;;  %v3076_v31 = vadd.f32 %v3022_v13, %v6921_v7  ;;  %4708 = vpow2.f32 %v2311_v11  ;;  %v3548_v50 = vsub.f32 0.0, %v3520_v5 }
 0x1ab   :  { %v1245_v30 = vrot.slane %v1238_v0, %v7082_v51  ;;  %v4701_v62 = vpop.eup %4700  ;;  %922 = vadd.xlane.f32.xlu0 %v921_v10  ;;  %4710 = vlog2.f32 %v1889_v37  ;;  %v2017_v48 = vadd.f32 %v1964_v29, %v6951_v58  ;;  %v10712_v58 = vld [vmem:[#allocation205_spill] sm:$0xff]  ;;  %v10714_v0 = vld [vmem:[#allocation24_spill] sm:$0xff]  ;;  %v10755_v51 = vld [vmem:[#allocation214_spill] sm:$0xff] }
 0x1ac   :  { %1341 = vst.msk [vmem:[#allocation2 + $0x5] ss:$8 sm:$0x3] %vm7103_vm12, %v1340_v14  ;;  %v7878_v61 = vadd.f32 %v3076_v31, %v2016_v33  ;;  %v3024_v7 = vmul.f32 0.6931472, %v4701_v62  ;;  %v2952_v45 = vpop.xlane.xlu1 %2951  ;;  %4712 = vpow2.f32 %v2292_v28 }
 0x1ad   :  { %v1247_v25 = vadd.f32 %v1245_v30, %v1162_v52  ;;  %v4703_v26 = vpop.eup %4702  ;;  %1003 = vadd.xlane.f32.xlu1 %v7333_v44  ;;  %v10709_v44 = vld [vmem:[#allocation18_spill] sm:$0xff]  ;;  %v3576_v19 = vmul.f32 1.442695, %v3548_v50  ;;  %v1898_v20 = vpop.xlane.xlu0 %1897  ;;  %4714 = vlog2.f32 %v2952_v45  ;;  %v10715_v52 = vld [vmem:[#allocation220_spill] sm:$0xff] }
 0x1ae   :  { %v3521_v57 = vand.u32 2147483647, %v7878_v61  ;;  %v3077_v36 = vadd.f32 %v3024_v7, %v10708_v38  ;;  %v927_v35 = vadd.f32 %v10710_v42, %v10709_v44  ;;  %v1966_v41 = vmul.f32 0.6931472, %v4703_v26  ;;  %v10725_v42 = vld [vmem:[#allocation209_spill] sm:$0xff]  ;;  %v10864_v38 = vld [vmem:[#allocation100_spill] sm:$0xff] }
 0x1af   :  { %1252 = vst.msk [vmem:[#allocation2 + $0x4] ss:$8 sm:$0x3] %vm7103_vm12, %v1247_v25  ;;  %v4705_v55 = vpop.eup %4704  ;;  %925 = vadd.xlane.f32.xlu0 %v924_v34  ;;  %4716 = vpow2.f32 %v2294_v60  ;;  %v2309_v14 = vld [vmem:[#allocation2 + $0x2] ss:$8 sm:$0x3]  ;;  %v7896_v43 = vrot.slane %v10715_v52, %v7836_v63  ;;  %v7902_v29 = vrot.slane %v10715_v52, %v7846_v56 }
 0x1b0   :  { %v7888_v37 = vadd.f32 %v3077_v36, %v2017_v48  ;;  %v3026_v15 = vmul.f32 0.6931472, %v4705_v55  ;;  %v2955_v21 = vpop.xlane.xlu1 %2954  ;;  %v3549_v22 = vsub.f32 0.0, %v3521_v57  ;;  %v2018_v11 = vadd.f32 %v1966_v41, %v10713_v32  ;;  %v10719_v25 = vld [vmem:[#allocation23_spill] sm:$0xff]  ;;  %v10746_v48 = vld [vmem:[#allocation41_spill] sm:$0xff] }
 0x1b1   :  { %1006 = vadd.xlane.f32.xlu1 %v10711_v16  ;;  %4718 = vlog2.f32 %v1892_v49  ;;  %10716 = vst [vmem:[#allocation129_spill] sm:$0xff] %v7896_v43  ;;  %v1901_v33 = vpop.xlane.xlu0 %1900  ;;  %10717 = vst [vmem:[#allocation134_spill] sm:$0xff] %v7902_v29  ;;  %v10753_v29 = vld [vmem:[#allocation60_spill] sm:$0xff]  ;;  %v10758_v52 = vld [vmem:[#allocation69_spill] sm:$0xff] }
 0x1b2   :  { %v3078_v53 = vadd.f32 %v3026_v15, %v10712_v58  ;;  %v3522_v59 = vand.u32 2147483647, %v7888_v37  ;;  %4720 = vpow2.f32 %v3576_v19  ;;  %v3578_v5 = vmul.f32 1.442695, %v3549_v22  ;;  %v10728_v22 = vld [vmem:[#allocation38_spill] sm:$0xff]  ;;  %v10761_v60 = vld [vmem:[#allocation217_spill] sm:$0xff] }
 0x1b3   :  { %928 = vadd.xlane.f32.xlu0 %v927_v35  ;;  %v4707_v10 = vpop.eup %4706  ;;  %4722 = vlog2.f32 %v1895_v24 }
 0x1b4   :  { %v2958_v13 = vpop.xlane.xlu1 %2957  ;;  %v4709_v46 = vpop.eup %4708  ;;  %v7898_v30 = vadd.f32 %v3078_v53, %v2018_v11  ;;  %v3028_v62 = vmul.f32 0.6931472, %v4707_v10  ;;  %4724 = vlog2.f32 %v2955_v21  ;;  %v3550_v26 = vsub.f32 0.0, %v3522_v59  ;;  %v10764_v21 = vld [vmem:[#allocation225_spill] sm:$0xff] }
 0x1b5   :  { %1009 = vadd.xlane.f32.xlu1 %v10714_v0  ;;  %v4711_v31 = vpop.eup %4710  ;;  %v7907_v9 = vmul.f32 %v4709_v46, %v2309_v14  ;;  %4726 = vlog2.f32 %v1898_v20  ;;  %v1904_v50 = vpop.xlane.xlu0 %1903  ;;  %v10731_v0 = vld [vmem:[#allocation207_spill] sm:$0xff]  ;;  %v10750_v14 = vld [vmem:[#allocation210_spill] sm:$0xff] }
 0x1b6   :  { %4728 = vpow2.f32 %v3578_v5  ;;  %v3523_v45 = vand.u32 2147483647, %v7898_v30  ;;  %v1968_v28 = vmul.f32 0.6931472, %v4711_v31  ;;  %v7921_v44 = vpop.eup %4712  ;;  %v3079_v35 = vadd.f32 %v3028_v62, %v10725_v42 }
 0x1b7   :  { %931 = vadd.xlane.f32.xlu0 %v7470_v18  ;;  %10718 = vst [vmem:[#allocation141_spill] sm:$0xff] %v7907_v9  ;;  %4730 = vlog2.f32 %v1904_v50  ;;  %10724 = vst [vmem:[#allocation131_spill] sm:$0xff] %v7921_v44  ;;  %v4715_v19 = vpop.eup %4714  ;;  %v3580_v20 = vmul.f32 1.442695, %v3550_v26 }
 0x1b8   :  { %v2961_v7 = vpop.xlane.xlu1 %2960  ;;  %4732 = vlog2.f32 %v2958_v13  ;;  %v3551_v10 = vsub.f32 0.0, %v3523_v45  ;;  %v2019_v59 = vadd.f32 %v1968_v28, %v10731_v0  ;;  %v3030_v28 = vmul.f32 0.6931472, %v4715_v19 }
 0x1b9   :  { %1012 = vadd.xlane.f32.xlu1 %v10719_v25  ;;  %4734 = vlog2.f32 %v1901_v33  ;;  %v7933_v11 = vpop.eup %4716  ;;  %v1907_v13 = vpop.xlane.xlu0 %1906 }
 0x1ba   :  { %10730 = vst [vmem:[#allocation137_spill] sm:$0xff] %v7933_v11  ;;  %v7947_v45 = vadd.f32 %v3079_v35, %v2019_v59  ;;  %v3582_v59 = vmul.f32 1.442695, %v3551_v10  ;;  %v10744_v10 = vld [vmem:[#allocation211_spill] sm:$0xff] }
 0x1bb   :  { %934 = vadd.xlane.f32.xlu0 %v7486_v17  ;;  %v4719_v5 = vpop.eup %4718 }
 0x1bc   :  { %v2964_v58 = vpop.xlane.xlu1 %2963  ;;  %v7944_v42 = vpop.eup %4720  ;;  %v1970_v19 = vmul.f32 0.6931472, %v4719_v5  ;;  %v3080_v5 = vadd.f32 %v3030_v28, %v10744_v10 }
 0x1bd   :  { %1015 = vadd.xlane.f32.xlu1 %v10728_v22  ;;  %4736 = vlog2.f32 %v2964_v58  ;;  %v4723_v0 = vpop.eup %4722  ;;  %v3632_v18 = vadd.f32 1.0, %v7944_v42  ;;  %v3635_v49 = vmul.f32 -0.5, %v7944_v42  ;;  %v10775_v22 = vld [vmem:[#allocation77_spill] sm:$0xff] }
 0x1be   :  { %4738 = vlog2.f32 %v1907_v13  ;;  %v10737_v13 = vld [vmem:[#allocation45_spill] sm:$0xff]  ;;  %v4725_v35 = vpop.eup %4724  ;;  %v2020_v39 = vadd.f32 %v1970_v19, %v10750_v14  ;;  %v1972_v14 = vmul.f32 0.6931472, %v4723_v0  ;;  %v10754_v19 = vld [vmem:[#allocation52_spill] sm:$0xff] }
 0x1bf   :  { %937 = vadd.xlane.f32.xlu0 %v7512_v2  ;;  %4740 = vlog2.f32 %v2961_v7  ;;  %v1910_v7 = vpop.xlane.xlu0 %1909  ;;  %v4727_v17 = vpop.eup %4726  ;;  %v3032_v36 = vmul.f32 0.6931472, %v4725_v35 }
 0x1c0   :  { %4742 = vpow2.f32 %v3580_v20  ;;  %v2967_v34 = vpop.xlane.xlu1 %2966  ;;  %v7965_v2 = vpop.eup %4728  ;;  %v1974_v11 = vmul.f32 0.6931472, %v4727_v17 }
 0x1c1   :  { %1018 = vadd.xlane.f32.xlu1 %v10737_v13  ;;  %4744 = vlog2.f32 %v2967_v34  ;;  %v3524_v34 = vand.u32 2147483647, %v7947_v45  ;;  %v4731_v13 = vpop.eup %4730  ;;  %v3081_v53 = vadd.f32 %v3032_v36, %v10755_v51  ;;  %v10759_v51 = vld [vmem:[#allocation212_spill] sm:$0xff]  ;;  %v3641_v17 = vadd.f32 1.0, %v7965_v2 }
 0x1c2   :  { %4746 = vlog2.f32 %v1910_v7  ;;  %v4733_v10 = vpop.eup %4732  ;;  %v1978_v9 = vmul.f32 0.6931472, %v4731_v13  ;;  %v2021_v36 = vadd.f32 %v1972_v14, %v10759_v51  ;;  %v10763_v14 = vld [vmem:[#allocation224_spill] sm:$0xff] }
 0x1c3   :  { %940 = vadd.xlane.f32.xlu0 %v7534_v54  ;;  %4748 = vpow2.f32 %v3582_v59  ;;  %v1913_v1 = vpop.xlane.xlu0 %1912  ;;  %v4735_v47 = vpop.eup %4734  ;;  %v3552_v28 = vsub.f32 0.0, %v3524_v34  ;;  %v7988_v59 = vadd.f32 %v3080_v5, %v2020_v39  ;;  %v10757_v5 = vld [vmem:[#allocation223_spill] sm:$0xff]  ;;  %v10760_v39 = vld [vmem:[#allocation56_spill] sm:$0xff] }
 0x1c4   :  { %v2970_v16 = vpop.xlane.xlu1 %2969 }
 0x1c5   :  { %1021 = vadd.xlane.f32.xlu1 %v10746_v48  ;;  %4750 = vlog2.f32 %v2970_v16  ;;  %v3034_v48 = vmul.f32 0.6931472, %v4733_v10  ;;  %v3525_v54 = vand.u32 2147483647, %v7988_v59 }
 0x1c6   :  { %4752 = vlog2.f32 %v1913_v1  ;;  %v10756_v1 = vld [vmem:[#allocation222_spill] sm:$0xff] }
 0x1c7   :  { %v4737_v44 = vpop.eup %4736  ;;  %943 = vadd.xlane.f32.xlu0 %v10753_v29  ;;  %4754 = vlog2.f32 %v3632_v18  ;;  %v1916_v29 = vpop.xlane.xlu0 %1915  ;;  %v2024_v0 = vadd.f32 %v1978_v9, %v10756_v1  ;;  %v3584_v18 = vmul.f32 1.442695, %v3552_v28  ;;  %v3082_v7 = vadd.f32 %v3034_v48, %v10761_v60  ;;  %v10762_v28 = vld [vmem:[#allocation215_spill] sm:$0xff] }
 0x1c8   :  { %v4739_v35 = vpop.eup %4738  ;;  %v3038_v13 = vmul.f32 0.6931472, %v4737_v44  ;;  %v2973_v16 = vpop.xlane.xlu1 %2972 }
 0x1c9   :  { %1024 = vadd.xlane.f32.xlu1 %v10754_v19  ;;  %v4741_v43 = vpop.eup %4740  ;;  %4756 = vlog2.f32 %v2973_v16  ;;  %v1980_v10 = vmul.f32 0.6931472, %v4739_v35 }
 0x1ca   :  { %v7994_v34 = vpop.eup %4742  ;;  %v3084_v19 = vadd.f32 %v3038_v13, %v10757_v5  ;;  %4758 = vlog2.f32 %v1916_v29  ;;  %v3036_v9 = vmul.f32 0.6931472, %v4741_v43  ;;  %v8006_v29 = vadd.f32 %v3081_v53, %v2021_v36  ;;  %v10765_v43 = vld [vmem:[#allocation73_spill] sm:$0xff] }
 0x1cb   :  { %v4745_v44 = vpop.eup %4744  ;;  %946 = vadd.xlane.f32.xlu0 %v10758_v52  ;;  %v2022_v52 = vadd.f32 %v1974_v11, %v10762_v28  ;;  %v1976_v5 = vmul.f32 0.6931472, %v4735_v47  ;;  %v1919_v25 = vpop.xlane.xlu0 %1918  ;;  %v2025_v51 = vadd.f32 %v1980_v10, %v10763_v14  ;;  %v3636_v53 = vadd.f32 1.0, %v3635_v49  ;;  %v10766_v47 = vld [vmem:[#allocation57_spill] sm:$0xff]  ;;  %v10768_v28 = vld [vmem:[#allocation219_spill] sm:$0xff] }
 0x1cc   :  { %v4747_v16 = vpop.eup %4746  ;;  %v8004_v1 = vadd.f32 %v3084_v19, %v2024_v0  ;;  %v3040_v35 = vmul.f32 0.6931472, %v4745_v44  ;;  %v2976_v13 = vpop.xlane.xlu1 %2975  ;;  %v3644_v0 = vmul.f32 -0.5, %v7965_v2  ;;  %v10767_v10 = vld [vmem:[#allocation221_spill] sm:$0xff]  ;;  %v3647_v49 = vand.u32 2147483647, %v7965_v2 }
 0x1cd   :  { %1027 = vadd.xlane.f32.xlu1 %v10760_v39  ;;  %4760 = vlog2.f32 %v2976_v13  ;;  %v3650_v39 = vadd.f32 1.0, %v7994_v34  ;;  %v8012_v60 = vpop.eup %4748  ;;  %v1982_v48 = vmul.f32 0.6931472, %v4747_v16  ;;  %v8017_v19 = vadd.f32 %v3082_v7, %v2022_v52 }
 0x1ce   :  { %v3085_v20 = vadd.f32 %v3040_v35, %v10764_v21  ;;  %4762 = vlog2.f32 %v1919_v25  ;;  %v3083_v44 = vadd.f32 %v3036_v9, %v10767_v10  ;;  %v3553_v13 = vsub.f32 0.0, %v3525_v54  ;;  %v10769_v9 = vld [vmem:[#allocation72_spill] sm:$0xff] }
 0x1cf   :  { %4764 = vpow2.f32 %v3584_v18  ;;  %949 = vadd.xlane.f32.xlu0 %v10765_v43  ;;  %v4751_v11 = vpop.eup %4750  ;;  %v3526_v18 = vand.u32 2147483647, %v8006_v29  ;;  %v2023_v14 = vadd.f32 %v1976_v5, %v10768_v28  ;;  %v1922_v7 = vpop.xlane.xlu0 %1921  ;;  %v3527_v54 = vand.u32 2147483647, %v8017_v19 }
 0x1d0   :  { %v8020_v21 = vadd.f32 %v3085_v20, %v2025_v51  ;;  %v2979_v25 = vpop.xlane.xlu1 %2978  ;;  %4766 = vlog2.f32 %v3641_v17  ;;  %v4753_v36 = vpop.eup %4752  ;;  %v3042_v35 = vmul.f32 0.6931472, %v4751_v11  ;;  %v10770_v20 = vld [vmem:[#allocation226_spill] sm:$0xff]  ;;  %v10771_v17 = vld [vmem:[#allocation227_spill] sm:$0xff]  ;;  %v3659_v11 = vadd.f32 1.0, %v8012_v60 }
 0x1d1   :  { %1030 = vadd.xlane.f32.xlu1 %v10766_v47  ;;  %4768 = vlog2.f32 %v2979_v25  ;;  %v4755_v16 = vpop.eup %4754  ;;  %v1984_v43 = vmul.f32 0.6931472, %v4753_v36  ;;  %v2026_v51 = vadd.f32 %v1982_v48, %v10770_v20  ;;  %v10772_v25 = vld [vmem:[#allocation59_spill] sm:$0xff]  ;;  %v8031_v58 = vadd.f32 %v3083_v44, %v2023_v14  ;;  %v10774_v20 = vld [vmem:[#allocation229_spill] sm:$0xff] }
 0x1d2   :  { %4770 = vlog2.f32 %v3650_v39  ;;  %v3086_v47 = vadd.f32 %v3042_v35, %v10771_v17  ;;  %v3645_v39 = vadd.f32 1.0, %v3644_v0  ;;  %v3554_v28 = vsub.f32 0.0, %v3526_v18  ;;  %v10786_v18 = vld [vmem:[#allocation7_spill] sm:$0xff] }
 0x1d3   :  { %v4757_v52 = vpop.eup %4756  ;;  %952 = vadd.xlane.f32.xlu0 %v10769_v9  ;;  %4772 = vlog2.f32 %v1922_v7  ;;  %v3653_v48 = vmul.f32 -0.5, %v7994_v34  ;;  %v3586_v35 = vmul.f32 1.442695, %v3553_v13  ;;  %v10773_v7 = vld [vmem:[#allocation228_spill] sm:$0xff]  ;;  %v3634_v44 = vmul.f32 0.6931472, %v4755_v16 }
 0x1d4   :  { %v4759_v10 = vpop.eup %4758  ;;  %v3044_v5 = vmul.f32 0.6931472, %v4757_v52  ;;  %v2982_v36 = vpop.xlane.xlu1 %2981  ;;  %v8033_v31 = vadd.f32 %v3086_v47, %v2026_v51  ;;  %v2027_v9 = vadd.f32 %v1984_v43, %v10773_v7  ;;  %v3637_v14 = vmul.f32 %v7944_v42, %v3636_v53  ;;  %v10779_v13 = vld [vmem:[#allocation68_spill] sm:$0xff]  ;;  %v10782_v7 = vld [vmem:[#allocation230_spill] sm:$0xff] }
 0x1d5   :  { %1033 = vadd.xlane.f32.xlu1 %v10772_v25  ;;  %4774 = vlog2.f32 %v2982_v36  ;;  %v1986_v50 = vmul.f32 0.6931472, %v4759_v10  ;;  %v10776_v0 = vand.u32 2147483647, %v7944_v42  ;;  %v3555_v43 = vsub.f32 0.0, %v3527_v54  ;;  %v1925_v53 = vpop.xlane.xlu0 %1924 }
 0x1d6   :  { %v3087_v17 = vadd.f32 %v3044_v5, %v10774_v20  ;;  %4776 = vlog2.f32 %v3659_v11  ;;  %v3528_v51 = vand.u32 2147483647, %v8031_v58  ;;  %v3588_v16 = vmul.f32 1.442695, %v3554_v28  ;;  %v10783_v20 = vld [vmem:[#allocation231_spill] sm:$0xff] }
 0x1d7   :  { %v4761_v25 = vpop.eup %4760  ;;  %955 = vadd.xlane.f32.xlu0 %v10775_v22  ;;  %vm8042_vm0 = vcmp.lt.f32.partialorder %v10776_v0, 0.0004427343  ;;  %v3646_v42 = vmul.f32 %v7965_v2, %v3645_v39  ;;  %vm8053_vm6 = vcmp.lt.f32.partialorder %v3647_v49, 0.0004427343  ;;  %v3654_v11 = vadd.f32 1.0, %v3653_v48 }
 0x1d8   :  { %v4763_v52 = vpop.eup %4762  ;;  %v8048_v47 = vadd.f32 %v3087_v17, %v2027_v9  ;;  %v3046_v10 = vmul.f32 0.6931472, %v4761_v25  ;;  %4778 = vpow2.f32 %v3586_v35  ;;  %v2028_v54 = vadd.f32 %v1986_v50, %v10782_v7  ;;  %v10784_v25 = vld [vmem:[#allocation86_spill] sm:$0xff] }
 0x1d9   :  { %1036 = vadd.xlane.f32.xlu1 %v10779_v13  ;;  %v8050_v22 = vpop.eup %4764  ;;  %v1988_v9 = vmul.f32 0.6931472, %v4763_v52  ;;  %v3529_v28 = vand.u32 2147483647, %v8004_v1  ;;  %4780 = vlog2.f32 %v1925_v53  ;;  %v3640_v2 = vsel %vm8042_vm0, %v3637_v14, %v3634_v44  ;;  %v10785_v13 = vld [vmem:[#allocation82_spill] sm:$0xff]  ;;  %v10787_v14 = vld [vmem:[#allocation11_spill] sm:$0xff] }
 0x1da   :  { %v4767_v36 = vpop.eup %4766  ;;  %v3088_v0 = vadd.f32 %v3046_v10, %v10783_v20  ;;  %v3656_v49 = vand.u32 2147483647, %v7994_v34  ;;  %v3590_v48 = vmul.f32 1.442695, %v3555_v43  ;;  %v3556_v35 = vsub.f32 0.0, %v3528_v51  ;;  %v2985_v20 = vpop.xlane.xlu1 %2984 }
 0x1db   :  { %v4769_v17 = vpop.eup %4768  ;;  %958 = vadd.xlane.f32.xlu0 %v10784_v25  ;;  %4782 = vpow2.f32 %v3588_v16  ;;  %v3530_v7 = vand.u32 2147483647, %v8020_v21  ;;  %v3643_v25 = vmul.f32 0.6931472, %v4767_v36  ;;  %v3655_v53 = vmul.f32 %v7994_v34, %v3654_v11  ;;  %v1928_v16 = vpop.xlane.xlu0 %1927  ;;  %v10789_v11 = vld [vmem:[#allocation81_spill] sm:$0xff] }
 0x1dc   :  { %v4771_v39 = vpop.eup %4770  ;;  %v8065_v50 = vadd.f32 %v3088_v0, %v2028_v54  ;;  %v3048_v10 = vmul.f32 0.6931472, %v4769_v17  ;;  %v2029_v44 = vadd.f32 %v1988_v9, %v10786_v18  ;;  %v3662_v43 = vmul.f32 -0.5, %v8012_v60 }
 0x1dd   :  { %1039 = vadd.xlane.f32.xlu1 %v10785_v13  ;;  %v4773_v52 = vpop.eup %4772  ;;  %v3668_v13 = vadd.f32 1.0, %v8050_v22  ;;  %v3557_v54 = vsub.f32 0.0, %v3529_v28  ;;  %4784 = vlog2.f32 %v2985_v20  ;;  %v10788_v17 = vmax.f32 %v7848_v40, 0.0 }
 0x1de   :  { %v3089_v26 = vadd.f32 %v3048_v10, %v10787_v14  ;;  %v1990_v0 = vmul.f32 0.6931472, %v4773_v52  ;;  %4786 = vpow2.f32 %v3590_v48  ;;  %v3592_v34 = vmul.f32 1.442695, %v3556_v35  ;;  %v10790_v48 = vld [vmem:[#allocation9_spill] sm:$0xff]  ;;  %v10791_v35 = vld [vmem:[#allocation8_spill] sm:$0xff]  ;;  %v2988_v20 = vpop.xlane.xlu1 %2987 }
 0x1df   :  { %v4775_v51 = vpop.eup %4774  ;;  %961 = vadd.xlane.f32.xlu0 %v7694_v4  ;;  %v3884_v36 = vadd.f32 %v3640_v2, %v10788_v17  ;;  %v3652_v10 = vmul.f32 0.6931472, %v4771_v39  ;;  %v3558_v14 = vsub.f32 0.0, %v3530_v7  ;;  %4788 = vlog2.f32 %v1928_v16  ;;  %v10800_v7 = vld [vmem:[#allocation112_spill] sm:$0xff] }
 0x1e0   :  { %v8077_v9 = vadd.f32 %v3089_v26, %v2029_v44  ;;  %v4777_v18 = vpop.eup %4776  ;;  %v3050_v62 = vmul.f32 0.6931472, %v4775_v51  ;;  %v3649_v4 = vsel %vm8053_vm6, %v3646_v42, %v3643_v25  ;;  %v3531_v28 = vand.u32 2147483647, %v8033_v31  ;;  %v10794_v42 = vld [vmem:[#allocation83_spill] sm:$0xff] }
 0x1e1   :  { %1042 = vadd.xlane.f32.xlu1 %v10789_v11  ;;  %v3663_v52 = vadd.f32 1.0, %v3662_v43  ;;  %v3665_v40 = vand.u32 2147483647, %v8012_v60  ;;  %4790 = vlog2.f32 %v3668_v13  ;;  %v3594_v2 = vmul.f32 1.442695, %v3557_v54 }
 0x1e2   :  { %v2030_v26 = vadd.f32 %v1990_v0, %v10790_v48  ;;  %v3090_v39 = vadd.f32 %v3050_v62, %v10791_v35  ;;  %vm8086_vm4 = vcmp.lt.f32.partialorder %v3656_v49, 0.0004427343  ;;  %v8090_v5 = vpop.eup %4778  ;;  %v10795_v25 = vmax.f32 %v7878_v61, 0.0 }
 0x1e3   :  { %964 = vadd.xlane.f32.xlu0 %v7713_v27  ;;  %v3658_v43 = vsel %vm8086_vm4, %v3655_v53, %v3652_v10  ;;  %v3661_v27 = vmul.f32 0.6931472, %v4777_v18  ;;  %v3496_v13 = vmax.f32 %v7947_v45, 0.0  ;;  %v4781_v51 = vpop.eup %4780  ;;  %v3596_v62 = vmul.f32 1.442695, %v3558_v14 }
 0x1e4   :  { %v3885_v44 = vadd.f32 %v3649_v4, %v10795_v25  ;;  %v8098_v54 = vadd.f32 %v3090_v39, %v2030_v26  ;;  %4792 = vlog2.f32 %v2988_v20  ;;  %v8100_v49 = vmul.f32 0.041666668, %v3884_v36 }
 0x1e5   :  { %1045 = vadd.xlane.f32.xlu1 %v10794_v42  ;;  %4794 = vpow2.f32 %v3592_v34  ;;  %v3559_v0 = vsub.f32 0.0, %v3531_v28  ;;  %v3664_v16 = vmul.f32 %v8012_v60, %v3663_v52  ;;  %vm8103_vm2 = vcmp.lt.f32.partialorder %v3665_v40, 0.0004427343  ;;  %v8107_v17 = vpop.eup %4782  ;;  %v10799_v34 = vld [vmem:[#allocation97_spill] sm:$0xff]  ;;  %v2991_v42 = vpop.xlane.xlu1 %2990 }
 0x1e6   :  { %4796 = vpow2.f32 %v3594_v2  ;;  %v3532_v53 = vand.u32 2147483647, %v8048_v47  ;;  %v10798_v11 = vmax.f32 %v7888_v37, 0.0  ;;  %v3677_v36 = vadd.f32 1.0, %v8090_v5  ;;  %v1931_v37 = vpop.xlane.xlu0 %1930 }
 0x1e7   :  { %967 = vadd.xlane.f32.xlu0 %v7737_v8  ;;  %v1992_v18 = vmul.f32 0.6931472, %v4781_v51  ;;  %v8115_v60 = vmul.f32 0.041666668, %v3885_v44  ;;  %v3667_v14 = vsel %vm8103_vm2, %v3664_v16, %v3661_v27  ;;  %v3671_v4 = vmul.f32 -0.5, %v8050_v22  ;;  %v4785_v28 = vpop.eup %4784  ;;  %v10802_v51 = vld [vmem:[#allocation104_spill] sm:$0xff] }
 0x1e8   :  { %v3886_v10 = vadd.f32 %v3658_v43, %v10798_v11  ;;  %4798 = vpow2.f32 %v3596_v62  ;;  %v3533_v8 = vand.u32 2147483647, %v8065_v50  ;;  %v3534_v52 = vand.u32 2147483647, %v8077_v9  ;;  %v8123_v2 = vpop.eup %4786  ;;  %v10803_v62 = vld [vmem:[#allocation14_spill] sm:$0xff]  ;;  %v10804_v16 = vld [vmem:[#allocation21_spill] sm:$0xff] }
 0x1e9   :  { %1048 = vadd.xlane.f32.xlu1 %v10799_v34  ;;  %v3674_v40 = vand.u32 2147483647, %v8050_v22  ;;  %v3598_v48 = vmul.f32 1.442695, %v3559_v0  ;;  %v3052_v26 = vmul.f32 0.6931472, %v4785_v28  ;;  %4800 = vlog2.f32 %v1931_v37  ;;  %v4789_v39 = vpop.eup %4788 }
 0x1ea   :  { %v3686_v35 = vadd.f32 1.0, %v8107_v17  ;;  %v3560_v20 = vsub.f32 0.0, %v3532_v53  ;;  %v8127_v25 = vmul.f32 0.041666668, %v3886_v10  ;;  %v10801_v44 = vmax.f32 %v7898_v30, 0.0 }
 0x1eb   :  { %970 = vadd.xlane.f32.xlu0 %v10800_v7  ;;  %4802 = vlog2.f32 %v3677_v36  ;;  %v4791_v27 = vpop.eup %4790  ;;  %v2031_v0 = vadd.f32 %v1992_v18, %v10803_v62  ;;  %v3091_v61 = vadd.f32 %v3052_v26, %v10804_v16  ;;  %v3672_v11 = vadd.f32 1.0, %v3671_v4  ;;  %v10807_v26 = vld [vmem:[#allocation113_spill] sm:$0xff]  ;;  %v1934_v4 = vpop.xlane.xlu0 %1933  ;;  %v10810_v16 = vld [vmem:[#allocation28_spill] sm:$0xff] }
 0x1ec   :  { %v3887_v43 = vadd.f32 %v3667_v14, %v10801_v44  ;;  %4804 = vlog2.f32 %v2991_v42  ;;  %v3561_v34 = vsub.f32 0.0, %v3533_v8  ;;  %v3562_v53 = vsub.f32 0.0, %v3534_v52  ;;  %v10808_v7 = vld [vmem:[#allocation105_spill] sm:$0xff] }
 0x1ed   :  { %1051 = vadd.xlane.f32.xlu1 %v10802_v51  ;;  %vm8134_vm7 = vcmp.lt.f32.partialorder %v3674_v40, 0.0004427343  ;;  %v3680_v10 = vmul.f32 -0.5, %v8090_v5  ;;  %v8139_v30 = vadd.f32 %v3091_v61, %v2031_v0  ;;  %v1994_v36 = vmul.f32 0.6931472, %v4789_v39 }
 0x1ee   :  { %4806 = vlog2.f32 %v3686_v35  ;;  %v3695_v14 = vadd.f32 1.0, %v8123_v2  ;;  %v4793_v37 = vpop.eup %4792  ;;  %v3600_v18 = vmul.f32 1.442695, %v3560_v20  ;;  %v8143_v8 = vmul.f32 0.041666668, %v3887_v43 }
 0x1ef   :  { %4808 = vpow2.f32 %v3598_v48  ;;  %973 = vadd.xlane.f32.xlu0 %v10807_v26  ;;  %v3670_v52 = vmul.f32 0.6931472, %v4791_v27  ;;  %v8145_v40 = vpop.eup %4794  ;;  %v3054_v42 = vmul.f32 0.6931472, %v4793_v37  ;;  %v3683_v39 = vand.u32 2147483647, %v8090_v5  ;;  %v2994_v26 = vpop.xlane.xlu1 %2993 }
 0x1f0   :  { %4810 = vlog2.f32 %v1934_v4  ;;  %v3689_v35 = vmul.f32 -0.5, %v8107_v17  ;;  %v8150_v44 = vpop.eup %4796  ;;  %v3602_v48 = vmul.f32 1.442695, %v3561_v34  ;;  %v3604_v20 = vmul.f32 1.442695, %v3562_v53  ;;  %v10809_v27 = vld [vmem:[#allocation17_spill] sm:$0xff] }
 0x1f1   :  { %1054 = vadd.xlane.f32.xlu1 %v10808_v7  ;;  %v3673_v51 = vmul.f32 %v8050_v22, %v3672_v11  ;;  %v3681_v62 = vadd.f32 1.0, %v3680_v10  ;;  %v3535_v43 = vand.u32 2147483647, %v8098_v54  ;;  %v2032_v0 = vadd.f32 %v1994_v36, %v10809_v27  ;;  %v10811_v10 = vld [vmem:[#allocation107_spill] sm:$0xff] }
 0x1f2   :  { %v3092_v61 = vadd.f32 %v3054_v42, %v10810_v16  ;;  %4812 = vlog2.f32 %v3695_v14  ;;  %v8156_v37 = vpop.eup %4798  ;;  %v3497_v53 = vmax.f32 %v7988_v59, 0.0  ;;  %v3690_v14 = vadd.f32 1.0, %v3689_v35  ;;  %v10814_v35 = vld [vmem:[#allocation116_spill] sm:$0xff] }
 0x1f3   :  { %4814 = vpow2.f32 %v3600_v18  ;;  %976 = vadd.xlane.f32.xlu0 %v7798_v3  ;;  %v3676_v34 = vsel %vm8134_vm7, %v3673_v51, %v3670_v52  ;;  %v4801_v11 = vpop.eup %4800  ;;  %v3704_v4 = vadd.f32 1.0, %v8145_v40  ;;  %v3682_v7 = vmul.f32 %v8090_v5, %v3681_v62  ;;  %v1937_v51 = vpop.xlane.xlu0 %1936  ;;  %v10815_v62 = vld [vmem:[#allocation121_spill] sm:$0xff] }
 0x1f4   :  { %v8164_v36 = vadd.f32 %v3092_v61, %v2032_v0  ;;  %4816 = vlog2.f32 %v2994_v26  ;;  %v1996_v3 = vmul.f32 0.6931472, %v4801_v11  ;;  %vm8168_vm10 = vcmp.lt.f32.partialorder %v3683_v39, 0.0004427343  ;;  %v2997_v22 = vpop.xlane.xlu1 %2996 }
 0x1f5   :  { %1057 = vadd.xlane.f32.xlu1 %v10811_v10  ;;  %v4803_v18 = vpop.eup %4802  ;;  %4818 = vpow2.f32 %v3602_v48  ;;  %v3563_v42 = vsub.f32 0.0, %v3535_v43  ;;  %v3698_v27 = vmul.f32 -0.5, %v8123_v2  ;;  %v3713_v0 = vadd.f32 1.0, %v8150_v44  ;;  %v10816_v10 = vld [vmem:[#allocation34_spill] sm:$0xff] }
 0x1f6   :  { %v4805_v52 = vpop.eup %4804  ;;  %4820 = vpow2.f32 %v3604_v20  ;;  %v3888_v48 = vadd.f32 %v3676_v34, %v3496_v13  ;;  %v3692_v5 = vand.u32 2147483647, %v8107_v17  ;;  %v3679_v61 = vmul.f32 0.6931472, %v4803_v18 }
 0x1f7   :  { %979 = vadd.xlane.f32.xlu0 %v10814_v35  ;;  %v3056_v16 = vmul.f32 0.6931472, %v4805_v52  ;;  %4822 = vlog2.f32 %v1937_v51  ;;  %v3691_v20 = vmul.f32 %v8107_v17, %v3690_v14  ;;  %v3701_v43 = vand.u32 2147483647, %v8123_v2  ;;  %v10817_v51 = vld [vmem:[#allocation29_spill] sm:$0xff] }
 0x1f8   :  { %v4807_v39 = vpop.eup %4806  ;;  %4824 = vlog2.f32 %v3704_v4  ;;  %v3536_v11 = vand.u32 2147483647, %v8139_v30  ;;  %v2033_v52 = vadd.f32 %v1996_v3, %v10816_v10  ;;  %v3722_v13 = vadd.f32 1.0, %v8156_v37  ;;  %v10818_v10 = vld [vmem:[#allocation124_spill] sm:$0xff] }
 0x1f9   :  { %1060 = vadd.xlane.f32.xlu1 %v10815_v62  ;;  %v8181_v26 = vpop.eup %4808  ;;  %v3093_v45 = vadd.f32 %v3056_v16, %v10817_v51  ;;  %v3606_v35 = vmul.f32 1.442695, %v3563_v42  ;;  %v3699_v62 = vadd.f32 1.0, %v3698_v27  ;;  %v3707_v18 = vmul.f32 -0.5, %v8145_v40 }
 0x1fa   :  { %v4811_v34 = vpop.eup %4810  ;;  %4826 = vlog2.f32 %v3713_v0  ;;  %v8191_v14 = vmul.f32 0.041666668, %v3888_v48  ;;  %v3688_v4 = vmul.f32 0.6931472, %v4807_v39  ;;  %vm8194_vm13 = vcmp.lt.f32.partialorder %v3692_v5, 0.0004427343 }
 0x1fb   :  { %982 = vadd.xlane.f32.xlu0 %v7824_v12  ;;  %v8189_v17 = vadd.f32 %v3093_v45, %v2033_v52  ;;  %4828 = vlog2.f32 %v2997_v22  ;;  %v3499_v42 = vmax.f32 %v8017_v19, 0.0  ;;  %vm8199_vm15 = vcmp.lt.f32.partialorder %v3701_v43, 0.0004427343  ;;  %v1940_v12 = vpop.xlane.xlu0 %1939 }
 0x1fc   :  { %v4813_v3 = vpop.eup %4812  ;;  %v3564_v22 = vsub.f32 0.0, %v3536_v11  ;;  %v1998_v48 = vmul.f32 0.6931472, %v4811_v34  ;;  %v3685_v39 = vsel %vm8168_vm10, %v3682_v7, %v3679_v61  ;;  %4830 = vlog2.f32 %v3722_v13  ;;  %v10824_v61 = vld [vmem:[#allocation120_spill] sm:$0xff]  ;;  %v3000_v7 = vpop.xlane.xlu1 %2999 }
 0x1fd   :  { %1063 = vadd.xlane.f32.xlu1 %v10818_v10  ;;  %v8204_v0 = vpop.eup %4814  ;;  %4832 = vpow2.f32 %v3606_v35  ;;  %v3700_v52 = vmul.f32 %v8123_v2, %v3699_v62  ;;  %v3708_v51 = vadd.f32 1.0, %v3707_v18  ;;  %v3710_v19 = vand.u32 2147483647, %v8145_v40 }
 0x1fe   :  { %v4817_v5 = vpop.eup %4816  ;;  %v10823_v45 = vmov 0.0   ;;  %v3694_v11 = vsel %vm8194_vm13, %v3691_v20, %v3688_v4  ;;  %v3697_v34 = vmul.f32 0.6931472, %v4813_v3  ;;  %4834 = vlog2.f32 %v1940_v12  ;;  %v10825_v20 = vld [vmem:[#allocation33_spill] sm:$0xff]  ;;  %v10826_v3 = vld [vmem:[#allocation35_spill] sm:$0xff] }
 0x1ff   :  { %v8210_v43 = vpop.eup %4818  ;;  %985 = vadd.xlane.f32.xlu0 %v10823_v45  ;;  %v3058_v10 = vmul.f32 0.6931472, %v4817_v5  ;;  %v3889_v2 = vadd.f32 %v3685_v39, %v3497_v53  ;;  %v3716_v13 = vmul.f32 -0.5, %v8150_v44  ;;  %v3719_v35 = vand.u32 2147483647, %v8150_v44 }
 0x200   :  { %v8216_v28 = vpop.eup %4820  ;;  %v3608_v18 = vmul.f32 1.442695, %v3564_v22  ;;  %v3537_v16 = vand.u32 2147483647, %v8164_v36  ;;  %v2034_v4 = vadd.f32 %v1998_v48, %v10825_v20  ;;  %4836 = vlog2.f32 %v3000_v7 }
 0x201   :  { %1066 = vadd.xlane.f32.xlu1 %v10824_v61  ;;  %v4823_v62 = vpop.eup %4822  ;;  %v3094_v5 = vadd.f32 %v3058_v10, %v10826_v3  ;;  %v10827_v12 = vmax.f32 %v8006_v29, 0.0  ;;  %v3709_v59 = vmul.f32 %v8145_v40, %v3708_v51  ;;  %vm8229_vm8 = vcmp.lt.f32.partialorder %v3710_v19, 0.0004427343 }
 0x202   :  { %v4825_v33 = vpop.eup %4824  ;;  %v3703_v48 = vsel %vm8199_vm15, %v3700_v52, %v3697_v34  ;;  %v3725_v39 = vmul.f32 -0.5, %v8156_v37  ;;  %v3731_v10 = vadd.f32 1.0, %v8181_v26  ;;  %v2000_v29 = vmul.f32 0.6931472, %v4823_v62  ;;  %v1943_v34 = vpop.xlane.xlu0 %1942 }
 0x203   :  { %v3890_v61 = vadd.f32 %v3694_v11, %v10827_v12  ;;  %988 = vadd.xlane.f32.xlu0 %v10823_v45  ;;  %v8234_v22 = vadd.f32 %v3094_v5, %v2034_v4  ;;  %v8241_v40 = vmul.f32 0.041666668, %v3889_v2  ;;  %v3717_v51 = vadd.f32 1.0, %v3716_v13 }
 0x204   :  { %v4827_v7 = vpop.eup %4826  ;;  %4838 = vpow2.f32 %v3608_v18  ;;  %v3565_v20 = vsub.f32 0.0, %v3537_v16  ;;  %vm8244_vm14 = vcmp.lt.f32.partialorder %v3719_v35, 0.0004427343  ;;  %v3728_v27 = vand.u32 2147483647, %v8156_v37 }
 0x205   :  { %1069 = vadd.xlane.f32.xlu1 %v10823_v45  ;;  %v4829_v11 = vpop.eup %4828  ;;  %v8249_v3 = vmul.f32 0.041666668, %v3890_v61  ;;  %v3891_v5 = vadd.f32 %v3703_v48, %v3499_v42  ;;  %v3706_v62 = vmul.f32 0.6931472, %v4825_v33  ;;  %v3715_v13 = vmul.f32 0.6931472, %v4827_v7 }
 0x206   :  { %v3060_v52 = vmul.f32 0.6931472, %v4829_v11  ;;  %v4831_v2 = vpop.eup %4830  ;;  %v3726_v12 = vadd.f32 1.0, %v3725_v39  ;;  %4840 = vlog2.f32 %v3731_v10  ;;  %v3740_v18 = vadd.f32 1.0, %v8204_v0  ;;  %v10832_v11 = vld [vmem:[#allocation49_spill] sm:$0xff]  ;;  %v10833_v61 = vld [vmem:[#allocation44_spill] sm:$0xff] }
 0x207   :  { %991 = vadd.xlane.f32.xlu0 %v10823_v45  ;;  %v8253_v35 = vpop.eup %4832  ;;  %v3538_v16 = vand.u32 2147483647, %v8189_v17  ;;  %v2035_v19 = vadd.f32 %v2000_v29, %v10832_v11  ;;  %4842 = vlog2.f32 %v1943_v34  ;;  %v3610_v33 = vmul.f32 1.442695, %v3565_v20  ;;  %v3003_v32 = vpop.xlane.xlu1 %3002 }
 0x208   :  { %v3095_v46 = vadd.f32 %v3060_v52, %v10833_v61  ;;  %v3718_v42 = vmul.f32 %v8150_v44, %v3717_v51  ;;  %vm8260_vm11 = vcmp.lt.f32.partialorder %v3728_v27, 0.0004427343  ;;  %v3503_v39 = vmax.f32 %v8033_v31, 0.0  ;;  %v4835_v10 = vpop.eup %4834  ;;  %v10839_v61 = vld [vmem:[#allocation53_spill] sm:$0xff] }
 0x209   :  { %1072 = vadd.xlane.f32.xlu1 %v10823_v45  ;;  %v8267_v15 = vmul.f32 0.041666668, %v3891_v5  ;;  %v3712_v29 = vsel %vm8229_vm8, %v3709_v59, %v3706_v62  ;;  %v3724_v52 = vmul.f32 0.6931472, %v4831_v2  ;;  %v2002_v34 = vmul.f32 0.6931472, %v4835_v10 }
 0x20a   :  { %v8265_v7 = vadd.f32 %v3095_v46, %v2035_v19  ;;  %v3721_v44 = vsel %vm8244_vm14, %v3718_v42, %v3715_v13  ;;  %v3727_v51 = vmul.f32 %v8156_v37, %v3726_v12  ;;  %4844 = vlog2.f32 %v3740_v18  ;;  %v4837_v20 = vpop.eup %4836  ;;  %v1946_v46 = vpop.xlane.xlu0 %1945 }
 0x20b   :  { %v3566_v27 = vsub.f32 0.0, %v3538_v16  ;;  %v3539_v11 = vand.u32 2147483647, %v8234_v22  ;;  %4846 = vlog2.f32 %v3003_v32  ;;  %v3749_v19 = vadd.f32 1.0, %v8210_v43  ;;  %v10838_v16 = vld [vmem:[#allocation47_spill] sm:$0xff] }
 0x20c   :  { %v3062_v53 = vmul.f32 0.6931472, %v4837_v20  ;;  %v10836_v59 = vmax.f32 %v8031_v58, 0.0  ;;  %v3734_v4 = vmul.f32 -0.5, %v8181_v26  ;;  %v3737_v62 = vand.u32 2147483647, %v8181_v26 }
 0x20d   :  { %1075 = vadd.xlane.f32.xlu1 %v10823_v45  ;;  %4848 = vpow2.f32 %v3610_v33  ;;  %v10837_v37 = vmax.f32 %v8004_v1, 0.0  ;;  %v3730_v13 = vsel %vm8260_vm11, %v3727_v51, %v3724_v52  ;;  %v3743_v32 = vmul.f32 -0.5, %v8204_v0 }
 0x20e   :  { %v3892_v5 = vadd.f32 %v3712_v29, %v10836_v59  ;;  %v8286_v12 = vpop.eup %4838  ;;  %v3540_v18 = vand.u32 2147483647, %v8265_v7  ;;  %v2036_v58 = vadd.f32 %v2002_v34, %v10838_v16  ;;  %v3096_v42 = vadd.f32 %v3062_v53, %v10839_v61 }
 0x20f   :  { %v3893_v2 = vadd.f32 %v3721_v44, %v10837_v37  ;;  %4850 = vlog2.f32 %v1946_v46  ;;  %v3612_v10 = vmul.f32 1.442695, %v3566_v27  ;;  %v3567_v29 = vsub.f32 0.0, %v3539_v11  ;;  %v3006_v48 = vpop.xlane.xlu1 %3005 }
 0x210   :  { %4852 = vlog2.f32 %v3749_v19  ;;  %v4841_v1 = vpop.eup %4840  ;;  %v8292_v44 = vadd.f32 %v3096_v42, %v2036_v58  ;;  %v8294_v52 = vmul.f32 0.041666668, %v3892_v5  ;;  %v3735_v51 = vadd.f32 1.0, %v3734_v4 }
 0x211   :  { %vm8296_vm9 = vcmp.lt.f32.partialorder %v3737_v62, 0.0004427343  ;;  %v4843_v34 = vpop.eup %4842  ;;  %v10842_v53 = vmax.f32 %v8020_v21, 0.0  ;;  %v3746_v27 = vand.u32 2147483647, %v8204_v0  ;;  %v3752_v11 = vmul.f32 -0.5, %v8210_v43 }
 0x212   :  { %v3758_v19 = vadd.f32 1.0, %v8216_v28  ;;  %v3568_v59 = vsub.f32 0.0, %v3540_v18  ;;  %4854 = vlog2.f32 %v3006_v48  ;;  %v8305_v37 = vmul.f32 0.041666668, %v3893_v2 }
 0x213   :  { %v3894_v46 = vadd.f32 %v3730_v13, %v10842_v53  ;;  %v3744_v5 = vadd.f32 1.0, %v3743_v32  ;;  %4856 = vpow2.f32 %v3612_v10  ;;  %v3614_v4 = vmul.f32 1.442695, %v3567_v29 }
 0x214   :  { %v3733_v62 = vmul.f32 0.6931472, %v4841_v1  ;;  %v3755_v16 = vand.u32 2147483647, %v8210_v43  ;;  %v4845_v58 = vpop.eup %4844  ;;  %v2004_v61 = vmul.f32 0.6931472, %v4843_v34  ;;  %v3736_v21 = vmul.f32 %v8181_v26, %v3735_v51 }
 0x215   :  { %v3767_v42 = vadd.f32 1.0, %v8253_v35  ;;  %v4847_v53 = vpop.eup %4846  ;;  %v8311_v33 = vmul.f32 0.041666668, %v3894_v46  ;;  %vm8313_vm1 = vcmp.lt.f32.partialorder %v3746_v27, 0.0004427343  ;;  %v3753_v32 = vadd.f32 1.0, %v3752_v11 }
 0x216   :  { %4858 = vlog2.f32 %v3758_v19  ;;  %v3616_v18 = vmul.f32 1.442695, %v3568_v59  ;;  %v3064_v10 = vmul.f32 0.6931472, %v4847_v53  ;;  %v3745_v29 = vmul.f32 %v8204_v0, %v3744_v5  ;;  %v1949_v48 = vpop.xlane.xlu0 %1948  ;;  %v10847_v11 = vld [vmem:[#allocation64_spill] sm:$0xff]  ;;  %v10848_v59 = vld [vmem:[#allocation65_spill] sm:$0xff] }
 0x217   :  { %v8319_v26 = vpop.eup %4848  ;;  %4860 = vpow2.f32 %v3614_v4  ;;  %v3739_v51 = vsel %vm8296_vm9, %v3736_v21, %v3733_v62  ;;  %vm8323_vm3 = vcmp.lt.f32.partialorder %v3755_v16, 0.0004427343  ;;  %v3776_v46 = vadd.f32 1.0, %v8286_v12 }
 0x218   :  { %v2037_v19 = vadd.f32 %v2004_v61, %v10847_v11  ;;  %v3097_v0 = vadd.f32 %v3064_v10, %v10848_v59  ;;  %v3742_v5 = vmul.f32 0.6931472, %v4845_v58  ;;  %4862 = vlog2.f32 %v3767_v42 }
 0x219   :  { %v4851_v27 = vpop.eup %4850  ;;  %v3541_v4 = vand.u32 2147483647, %v8292_v44  ;;  %4864 = vlog2.f32 %v1949_v48  ;;  %v3754_v20 = vmul.f32 %v8210_v43, %v3753_v32  ;;  %v3761_v62 = vmul.f32 -0.5, %v8216_v28 }
 0x21a   :  { %v4853_v53 = vpop.eup %4852  ;;  %4866 = vpow2.f32 %v3616_v18  ;;  %v8333_v16 = vadd.f32 %v3097_v0, %v2037_v19  ;;  %v3764_v21 = vand.u32 2147483647, %v8216_v28  ;;  %v3785_v1 = vadd.f32 1.0, %v8319_v26 }
 0x21b   :  { %v2006_v61 = vmul.f32 0.6931472, %v4851_v27  ;;  %v1952_v11 = vpop.xlane.xlu0 %1951  ;;  %v3895_v58 = vadd.f32 %v3739_v51, %v3503_v39  ;;  %v3770_v42 = vmul.f32 -0.5, %v8253_v35  ;;  %4868 = vlog2.f32 %v3776_v46 }
 0x21c   :  { %v4855_v10 = vpop.eup %4854  ;;  %4870 = vlog2.f32 %v1952_v11  ;;  %v3748_v43 = vsel %vm8313_vm1, %v3745_v29, %v3742_v5  ;;  %v3751_v32 = vmul.f32 0.6931472, %v4853_v53  ;;  %v3779_v18 = vmul.f32 -0.5, %v8286_v12  ;;  %v10851_v29 = vld [vmem:[#allocation76_spill] sm:$0xff] }
 0x21d   :  { %v3009_v48 = vpop.xlane.xlu1 %3008  ;;  %v8343_v19 = vpop.eup %4856  ;;  %v3569_v59 = vsub.f32 0.0, %v3541_v4  ;;  %v3066_v27 = vmul.f32 0.6931472, %v4855_v10  ;;  %v3762_v0 = vadd.f32 1.0, %v3761_v62  ;;  %vm8345_vm5 = vcmp.lt.f32.partialorder %v3764_v21, 0.0004427343 }
 0x21e   :  { %4872 = vlog2.f32 %v3009_v48  ;;  %v3773_v51 = vand.u32 2147483647, %v8253_v35  ;;  %v2038_v46 = vadd.f32 %v2006_v61, %v10851_v29  ;;  %v10852_v5 = vld [vmem:[#allocation80_spill] sm:$0xff]  ;;  %v10853_v4 = vmax.f32 %v8048_v47, 0.0 }
 0x21f   :  { %4874 = vlog2.f32 %v3785_v1  ;;  %v3098_v53 = vadd.f32 %v3066_v27, %v10852_v5  ;;  %v3771_v48 = vadd.f32 1.0, %v3770_v42  ;;  %v3757_v21 = vsel %vm8323_vm3, %v3754_v20, %v3751_v32 }
 0x220   :  { %v4859_v2 = vpop.eup %4858  ;;  %v1955_v11 = vpop.xlane.xlu0 %1954  ;;  %v3896_v10 = vadd.f32 %v3748_v43, %v10853_v4  ;;  %v3780_v13 = vadd.f32 1.0, %v3779_v18  ;;  %v3788_v39 = vmul.f32 -0.5, %v8319_v26  ;;  %v3794_v41 = vadd.f32 1.0, %v8343_v19 }
 0x221   :  { %v3012_v62 = vpop.xlane.xlu1 %3011  ;;  %v8359_v1 = vpop.eup %4860  ;;  %v3618_v55 = vmul.f32 1.442695, %v3569_v59  ;;  %v8361_v61 = vadd.f32 %v3098_v53, %v2038_v46  ;;  %v3782_v27 = vand.u32 2147483647, %v8286_v12  ;;  %v8364_v43 = vmul.f32 0.041666668, %v3895_v58 }
 0x222   :  { %4876 = vlog2.f32 %v3012_v62  ;;  %v4863_v47 = vpop.eup %4862  ;;  %v3760_v42 = vmul.f32 0.6931472, %v4859_v2  ;;  %v3763_v34 = vmul.f32 %v8216_v28, %v3762_v0  ;;  %v10854_v29 = vmax.f32 %v8065_v50, 0.0 }
 0x223   :  { %v4865_v32 = vpop.eup %4864  ;;  %v3772_v59 = vmul.f32 %v8253_v35, %v3771_v48  ;;  %vm8373_vm0 = vcmp.lt.f32.partialorder %v3773_v51, 0.0004427343  ;;  %v3791_v58 = vand.u32 2147483647, %v8319_v26  ;;  %v8380_v28 = vmul.f32 0.041666668, %v3896_v10 }
 0x224   :  { %v8368_v18 = vpop.xlane.xlu0 %910  ;;  %v3897_v5 = vadd.f32 %v3757_v21, %v10854_v29  ;;  %v8378_v53 = vpop.eup %4866  ;;  %v3789_v4 = vadd.f32 1.0, %v3788_v39  ;;  %4878 = vlog2.f32 %v3794_v41  ;;  %v3769_v50 = vmul.f32 0.6931472, %v4863_v47 }
 0x225   :  { %v4869_v62 = vpop.eup %4868  ;;  %4880 = vpow2.f32 %v3618_v55  ;;  %v3781_v35 = vmul.f32 %v8286_v12, %v3780_v13  ;;  %vm8384_vm6 = vcmp.lt.f32.partialorder %v3782_v27, 0.0004427343  ;;  %v3542_v21 = vand.u32 2147483647, %v8333_v16  ;;  %v10863_v12 = vld [vmem:[#allocation93_spill] sm:$0xff] }
 0x226   :  { %v3015_v2 = vpop.xlane.xlu1 %3014  ;;  %v4871_v48 = vpop.eup %4870  ;;  %v2008_v29 = vmul.f32 0.6931472, %v4865_v32  ;;  %4882 = vlog2.f32 %v1955_v11  ;;  %v3766_v10 = vsel %vm8345_vm5, %v3763_v34, %v3760_v42  ;;  %v8391_v39 = vmul.f32 0.041666668, %v3897_v5 }
 0x227   :  { %4884 = vlog2.f32 %v3015_v2  ;;  %vm8393_vm4 = vcmp.lt.f32.partialorder %v3791_v58, 0.0004427343  ;;  %v3778_v11 = vmul.f32 0.6931472, %v4869_v62  ;;  %v3790_v31 = vmul.f32 %v8319_v26, %v3789_v4 }
 0x228   :  { %v4873_v0 = vpop.eup %4872  ;;  %v995_v41 = vpop.xlane.xlu0 %994  ;;  %v3803_v42 = vadd.f32 1.0, %v8359_v1  ;;  %v10862_v34 = vmax.f32 %v8077_v9, 0.0  ;;  %v3775_v5 = vsel %vm8373_vm0, %v3772_v59, %v3769_v50  ;;  %v3797_v58 = vmul.f32 -0.5, %v8343_v19  ;;  %v10866_v9 = vld [vmem:[#allocation89_spill] sm:$0xff] }
 0x229   :  { %v4875_v27 = vpop.eup %4874  ;;  %v3068_v47 = vmul.f32 0.6931472, %v4873_v0  ;;  %v3800_v2 = vand.u32 2147483647, %v8343_v19  ;;  %v3570_v13 = vsub.f32 0.0, %v3542_v21  ;;  %v2039_v0 = vadd.f32 %v2008_v29, %v10863_v12 }
 0x22a   :  { %v8399_v20 = vpop.xlane.xlu1 %913  ;;  %v3898_v32 = vadd.f32 %v3766_v10, %v10862_v34  ;;  %v2010_v62 = vmul.f32 0.6931472, %v4871_v48  ;;  %v3543_v26 = vand.u32 2147483647, %v8361_v61  ;;  %v3787_v6 = vmul.f32 0.6931472, %v4875_v27 }
 0x22b   :  { %v3099_v57 = vadd.f32 %v3068_v47, %v10864_v38  ;;  %v3812_v46 = vadd.f32 1.0, %v8378_v53  ;;  %v3784_v21 = vsel %vm8384_vm6, %v3781_v35, %v3778_v11  ;;  %4886 = vlog2.f32 %v3803_v42 }
 0x22c   :  { %v4877_v24 = vpop.eup %4876  ;;  %v1958_v4 = vpop.xlane.xlu0 %1957  ;;  %v8418_v29 = vmul.f32 0.041666668, %v3898_v32  ;;  %v10865_v38 = vmax.f32 %v8098_v54, 0.0  ;;  %v3511_v12 = vmax.f32 %v8234_v22, 0.0  ;;  %v3806_v27 = vmul.f32 -0.5, %v8359_v1 }
 0x22d   :  { %v8414_v59 = vadd.f32 %v3099_v57, %v2039_v0  ;;  %v3070_v50 = vmul.f32 0.6931472, %v4877_v24  ;;  %v3620_v34 = vmul.f32 1.442695, %v3570_v13  ;;  %v2040_v57 = vadd.f32 %v2010_v62, %v10866_v9  ;;  %v10867_v0 = vld [vmem:[#allocation95_spill] sm:$0xff] }
 0x22e   :  { %v998_v10 = vpop.xlane.xlu1 %997  ;;  %v3899_v48 = vadd.f32 %v3775_v5, %v10865_v38  ;;  %v4879_v47 = vpop.eup %4878  ;;  %v3798_v56 = vadd.f32 1.0, %v3797_v58  ;;  %v3571_v35 = vsub.f32 0.0, %v3543_v26  ;;  %v10868_v11 = vmax.f32 %v8139_v30, 0.0 }
 0x22f   :  { %v3100_v24 = vadd.f32 %v3070_v50, %v10867_v0  ;;  %v8426_v63 = vpop.eup %4880  ;;  %v3793_v42 = vsel %vm8393_vm4, %v3790_v31, %v3787_v6  ;;  %4888 = vlog2.f32 %v3812_v46  ;;  %vm1077_vm2 = vcmp.gt.f32.partialorder %v8368_v18, 0.0  ;;  %v10878_v0 = vld [vmem:[#allocation109_spill] sm:$0xff] }
 0x230   :  { %v8428_v51 = vpop.xlane.xlu0 %916  ;;  %v3900_v54 = vadd.f32 %v3784_v21, %v10868_v11  ;;  %v4883_v32 = vpop.eup %4882  ;;  %vm3970_vm7 = vcmask 7168   ;;  %vm1105_vm10 = vcmp.gt.f32.partialorder %v995_v41, 0.0  ;;  %v3809_v58 = vand.u32 2147483647, %v8359_v1 }
 0x231   :  { %v8434_v5 = vadd.f32 %v3100_v24, %v2040_v57  ;;  %v4885_v62 = vpop.eup %4884  ;;  %vm1106_vm13 = vcmp.gt.f32.partialorder %v998_v10, 0.0  ;;  %v3796_v26 = vmul.f32 0.6931472, %v4879_v47  ;;  %v3807_v30 = vadd.f32 1.0, %v3806_v27  ;;  %vm8449_vm14 = vmand %vm1077_vm2, %vm1105_vm10 }
 0x232   :  { %v3018_v13 = vpop.xlane.xlu1 %3017  ;;  %v8438_v9 = vmul.f32 0.041666668, %v3899_v48  ;;  %v10869_v6 = vmax.f32 %v8164_v36, 0.0  ;;  %vm8442_vm15 = vcmp.lt.f32.partialorder %v3800_v2, 0.0004427343  ;;  %vm1078_vm8 = vcmp.gt.f32.partialorder %v8399_v20, 0.0 }
 0x233   :  { %4890 = vlog2.f32 %v3018_v13  ;;  %v3622_v46 = vmul.f32 1.442695, %v3571_v35  ;;  %v3815_v36 = vmul.f32 -0.5, %v8378_v53  ;;  %v2012_v2 = vmul.f32 0.6931472, %v4883_v32  ;;  %vm8458_vm11 = vmand %vm1078_vm8, %vm1106_vm13  ;;  %v10880_v13 = vld [vmem:[#allocation101_spill] sm:$0xff] }
 0x234   :  { %4892 = vlog2.f32 %v1958_v4  ;;  %v3901_v55 = vadd.f32 %v3793_v42, %v10869_v6  ;;  %v8453_v50 = vpop.xlane.xlu0 %919  ;;  %v3799_v4 = vmul.f32 %v8343_v19, %v3798_v56  ;;  %v3072_v21 = vmul.f32 0.6931472, %v4885_v62  ;;  %v10879_v42 = vld [vmem:[#allocation92_spill] sm:$0xff] }
 0x235   :  { %4894 = vpow2.f32 %v3620_v34  ;;  %v3512_v18 = vmax.f32 %v8265_v7, 0.0  ;;  %v8463_v48 = vmul.f32 0.041666668, %v3900_v54  ;;  %v8468_v56 = vmul.f32 %v8359_v1, %v3807_v30  ;;  %v4887_v10 = vpop.eup %4886 }
 0x236   :  { %v1001_v20 = vpop.xlane.xlu1 %1000  ;;  %v3802_v27 = vsel %vm8442_vm15, %v3799_v4, %v3796_v26  ;;  %vm8470_vm9 = vcmp.lt.f32.partialorder %v3809_v58, 0.0004427343  ;;  %v3544_v47 = vand.u32 2147483647, %v8414_v59  ;;  %v8475_v34 = vmul.f32 0.041666668, %v3901_v55 }
 0x237   :  { %v3818_v57 = vand.u32 2147483647, %v8378_v53  ;;  %4896 = vpow2.f32 %v3622_v46  ;;  %v3941_v1 = vsel %vm8449_vm14, %v8100_v49, 0.0  ;;  %v3942_v35 = vsel %vm8458_vm11, %v8115_v60, 0.0 }
 0x238   :  { %v8486_v11 = vpop.xlane.xlu0 %922  ;;  %v3816_v54 = vadd.f32 1.0, %v3815_v36  ;;  %v2041_v32 = vadd.f32 %v2012_v2, %v10879_v42  ;;  %v3101_v58 = vadd.f32 %v3072_v21, %v10880_v13  ;;  %v4431_v62 = vsel %vm8449_vm14, 1.0, %v10823_v45 }
 0x239   :  { %v10881_v30 = vmax.f32 %v8189_v17, 0.0  ;;  %v4889_v49 = vpop.eup %4888  ;;  %v4432_v60 = vsel %vm8458_vm11, 1.0, %v10823_v45  ;;  %vm1107_vm1 = vcmp.gt.f32.partialorder %v1001_v20, 0.0  ;;  %vm1079_vm3 = vcmp.gt.f32.partialorder %v8428_v51, 0.0 }
 0x23a   :  { %v1004_v26 = vpop.xlane.xlu1 %1003  ;;  %v3805_v55 = vmul.f32 0.6931472, %v4887_v10  ;;  %v3572_v31 = vsub.f32 0.0, %v3544_v47  ;;  %v3545_v46 = vand.u32 2147483647, %v8434_v5  ;;  %v3972_v4 = vsel %vm3970_vm7, %v3942_v35, 0.0  ;;  %vm8512_vm0 = vmand %vm1079_vm3, %vm1107_vm1 }
 0x23b   :  { %v3902_v6 = vadd.f32 %v3802_v27, %v10881_v30  ;;  %v3821_v41 = vadd.f32 1.0, %v8426_v63  ;;  %v3971_v17 = vsel %vm3970_vm7, %v3941_v1, 0.0  ;;  %v4095_v2 = vsel %vm3970_vm7, %v4431_v62, 0.0  ;;  %v10889_v27 = vld [vmem:[#allocation108_spill] sm:$0xff] }
 0x23c   :  { %v926_v21 = vpop.xlane.xlu0 %925  ;;  %v3817_v38 = vmul.f32 %v8378_v53, %v3816_v54  ;;  %vm8505_vm5 = vcmp.lt.f32.partialorder %v3818_v57, 0.0004427343  ;;  %v8509_v10 = vadd.f32 %v3101_v58, %v2041_v32  ;;  %v3814_v42 = vmul.f32 0.6931472, %v4889_v49 }
 0x23d   :  { %v4891_v36 = vpop.eup %4890  ;;  %v3513_v1 = vmax.f32 %v8292_v44, 0.0  ;;  %v3824_v13 = vmul.f32 -0.5, %v8426_v63  ;;  %v3973_v62 = vadd.f32 %v3972_v4, %v3971_v17  ;;  %v4096_v53 = vsel %vm3970_vm7, %v4432_v60, 0.0 }
 0x23e   :  { %v4893_v51 = vpop.eup %4892  ;;  %v1007_v35 = vpop.xlane.xlu1 %1006  ;;  %v3074_v57 = vmul.f32 0.6931472, %v4891_v36  ;;  %v8519_v54 = vmul.f32 0.041666668, %v3902_v6  ;;  %v3624_v32 = vmul.f32 1.442695, %v3572_v31  ;;  %v3811_v58 = vsel %vm8470_vm9, %v8468_v56, %v3805_v55 }
 0x23f   :  { %v8521_v30 = vpop.eup %4894  ;;  %v3573_v20 = vsub.f32 0.0, %v3545_v46  ;;  %4898 = vlog2.f32 %v3821_v41  ;;  %v2014_v49 = vmul.f32 0.6931472, %v4893_v51  ;;  %v3943_v24 = vsel %vm8512_vm0, %v8127_v25, 0.0  ;;  %v10886_v56 = vld [vmem:[#allocation117_spill] sm:$0xff] }
 0x240   :  { %vm1108_vm6 = vcmp.gt.f32.partialorder %v1004_v26, 0.0  ;;  %vm1080_vm4 = vcmp.gt.f32.partialorder %v8453_v50, 0.0  ;;  %v929_v60 = vpop.xlane.xlu0 %928  ;;  %v3546_v6 = vand.u32 2147483647, %v8509_v10  ;;  %v4097_v4 = vadd.f32 %v4096_v53, %v4095_v2 }
 0x241   :  { %v3820_v31 = vsel %vm8505_vm5, %v3817_v38, %v3814_v42  ;;  %v3825_v46 = vadd.f32 1.0, %v3824_v13  ;;  %v8533_v19 = vpop.eup %4896  ;;  %v3102_v55 = vadd.f32 %v3074_v57, %v10886_v56  ;;  %v4433_v25 = vsel %vm8512_vm0, 1.0, %v10823_v45  ;;  %vm8544_vm13 = vmand %vm1080_vm4, %vm1108_vm6 }
 0x242   :  { %v1010_v36 = vpop.xlane.xlu1 %1009  ;;  %vm1109_vm2 = vcmp.gt.f32.partialorder %v1007_v35, 0.0  ;;  %vm1081_vm10 = vcmp.gt.f32.partialorder %v8486_v11, 0.0  ;;  %4900 = vpow2.f32 %v3624_v32  ;;  %v3626_v41 = vmul.f32 1.442695, %v3573_v20 }
 0x243   :  { %v3974_v17 = vsel %vm3970_vm7, %v3943_v24, 0.0  ;;  %v3903_v38 = vadd.f32 %v3811_v58, %v3511_v12  ;;  %v2042_v51 = vadd.f32 %v2014_v49, %v10889_v27  ;;  %vm1110_vm15 = vcmp.gt.f32.partialorder %v1010_v36, 0.0  ;;  %vm8553_vm14 = vmand %vm1081_vm10, %vm1109_vm2 }
 0x244   :  { %vm1082_vm8 = vcmp.gt.f32.partialorder %v926_v21, 0.0  ;;  %v932_v47 = vpop.xlane.xlu0 %931  ;;  %v3830_v11 = vadd.f32 1.0, %v8521_v30  ;;  %v3574_v35 = vsub.f32 0.0, %v3546_v6  ;;  %v4098_v24 = vsel %vm3970_vm7, %v4433_v25, 0.0 }
 0x245   :  { %v3904_v42 = vadd.f32 %v3820_v31, %v3512_v18  ;;  %v8560_v22 = vmul.f32 %v8426_v63, %v3825_v46  ;;  %v8562_v12 = vadd.f32 %v3102_v55, %v2042_v51  ;;  %v3944_v13 = vsel %vm8544_vm13, %v8143_v8, 0.0  ;;  %vm8569_vm1 = vmand %vm1082_vm8, %vm1110_vm15 }
 0x246   :  { %v1013_v50 = vpop.xlane.xlu1 %1012  ;;  %vm1083_vm9 = vcmp.gt.f32.partialorder %v929_v60, 0.0  ;;  %4902 = vpow2.f32 %v3626_v41  ;;  %v3975_v53 = vadd.f32 %v3974_v17, %v3973_v62  ;;  %v8573_v7 = vmul.f32 0.041666668, %v3903_v38 }
 0x247   :  { %vm1111_vm11 = vcmp.gt.f32.partialorder %v1013_v50, 0.0  ;;  %v3827_v18 = vand.u32 2147483647, %v8426_v63  ;;  %v4099_v32 = vadd.f32 %v4098_v24, %v4097_v4  ;;  %v3945_v20 = vsel %vm8553_vm14, %v8191_v14, 0.0 }
 0x248   :  { %vm1084_vm3 = vcmp.gt.f32.partialorder %v932_v47, 0.0  ;;  %v935_v8 = vpop.xlane.xlu0 %934  ;;  %4904 = vlog2.f32 %v3830_v11  ;;  %v3628_v62 = vmul.f32 1.442695, %v3574_v35  ;;  %v3976_v21 = vsel %vm3970_vm7, %v3944_v13, 0.0  ;;  %vm8585_vm5 = vmand %vm1083_vm9, %vm1111_vm11 }
 0x249   :  { %v4899_v58 = vpop.eup %4898  ;;  %v4434_v49 = vsel %vm8544_vm13, 1.0, %v10823_v45  ;;  %v8589_v4 = vmul.f32 0.041666668, %v3904_v42  ;;  %v3547_v14 = vand.u32 2147483647, %v8562_v12  ;;  %v4435_v36 = vsel %vm8553_vm14, 1.0, %v10823_v45 }
 0x24a   :  { %v1016_v6 = vpop.xlane.xlu1 %1015  ;;  %v3946_v31 = vsel %vm8569_vm1, %v8241_v40, 0.0  ;;  %v3978_v60 = vsel %vm3970_vm7, %v3945_v20, 0.0  ;;  %vm8604_vm4 = vcmp.lt.f32.partialorder %v3827_v18, 0.0004427343  ;;  %v3514_v55 = vmax.f32 %v8333_v16, 0.0 }
 0x24b   :  { %vm1112_vm0 = vcmp.gt.f32.partialorder %v1016_v6, 0.0  ;;  %v3839_v25 = vadd.f32 1.0, %v8533_v19  ;;  %v3977_v41 = vadd.f32 %v3976_v21, %v3975_v53  ;;  %v4100_v17 = vsel %vm3970_vm7, %v4434_v49, 0.0 }
 0x24c   :  { %vm8600_vm6 = vmand %vm1084_vm3, %vm1112_vm0  ;;  %v3947_v40 = vsel %vm8585_vm5, %v8249_v3, 0.0  ;;  %vm1085_vm2 = vcmp.gt.f32.partialorder %v935_v8, 0.0  ;;  %v938_v2 = vpop.xlane.xlu0 %937  ;;  %v8614_v38 = vpop.eup %4900  ;;  %4906 = vpow2.f32 %v3628_v62  ;;  %v4102_v27 = vsel %vm3970_vm7, %v4435_v36, 0.0 }
 0x24d   :  { %v3980_v51 = vsel %vm3970_vm7, %v3946_v31, 0.0  ;;  %v3823_v11 = vmul.f32 0.6931472, %v4899_v58  ;;  %v3575_v35 = vsub.f32 0.0, %v3547_v14  ;;  %v3979_v24 = vadd.f32 %v3978_v60, %v3977_v41 }
 0x24e   :  { %v1019_v47 = vpop.xlane.xlu1 %1018  ;;  %v3948_v26 = vsel %vm8600_vm6, %v8267_v15, 0.0  ;;  %v4101_v50 = vadd.f32 %v4100_v17, %v4099_v32  ;;  %v3982_v3 = vsel %vm3970_vm7, %v3947_v40, 0.0  ;;  %v3833_v13 = vmul.f32 -0.5, %v8521_v30 }
 0x24f   :  { %vm1113_vm10 = vcmp.gt.f32.partialorder %v1019_v47, 0.0  ;;  %4908 = vlog2.f32 %v3839_v25  ;;  %v3981_v53 = vadd.f32 %v3980_v51, %v3979_v24  ;;  %v4436_v18 = vsel %vm8569_vm1, 1.0, %v10823_v45 }
 0x250   :  { %vm8622_vm13 = vmand %vm1085_vm2, %vm1113_vm10  ;;  %vm1086_vm15 = vcmp.gt.f32.partialorder %v938_v2, 0.0  ;;  %v941_v32 = vpop.xlane.xlu0 %940  ;;  %v8633_v20 = vpop.eup %4902  ;;  %v4103_v8 = vadd.f32 %v4102_v27, %v4101_v50  ;;  %v3984_v58 = vsel %vm3970_vm7, %v3948_v26, 0.0  ;;  %v3836_v21 = vand.u32 2147483647, %v8521_v30 }
 0x251   :  { %v3949_v15 = vsel %vm8622_vm13, %v8294_v52, 0.0  ;;  %v3515_v49 = vmax.f32 %v8361_v61, 0.0  ;;  %v3630_v14 = vmul.f32 1.442695, %v3575_v35  ;;  %v3983_v57 = vadd.f32 %v3982_v3, %v3981_v53 }
 0x252   :  { %v1022_v62 = vpop.xlane.xlu1 %1021  ;;  %v4905_v6 = vpop.eup %4904  ;;  %v3829_v52 = vsel %vm8604_vm4, %v8560_v22, %v3823_v11  ;;  %v4104_v36 = vsel %vm3970_vm7, %v4436_v18, 0.0  ;;  %v3986_v31 = vsel %vm3970_vm7, %v3949_v15, 0.0  ;;  %v3834_v25 = vadd.f32 1.0, %v3833_v13 }
 0x253   :  { %vm1114_vm8 = vcmp.gt.f32.partialorder %v1022_v62, 0.0  ;;  %v3848_v41 = vadd.f32 1.0, %v8614_v38  ;;  %v4437_v17 = vsel %vm8585_vm5, 1.0, %v10823_v45  ;;  %v3985_v40 = vadd.f32 %v3984_v58, %v3983_v57 }
 0x254   :  { %vm8644_vm14 = vmand %vm1086_vm15, %vm1114_vm8  ;;  %vm1087_vm11 = vcmp.gt.f32.partialorder %v941_v32, 0.0  ;;  %v944_v56 = vpop.xlane.xlu0 %943  ;;  %v3905_v51 = vadd.f32 %v3829_v52, %v3513_v1  ;;  %v3832_v47 = vmul.f32 0.6931472, %v4905_v6  ;;  %v3842_v11 = vmul.f32 -0.5, %v8533_v19 }
 0x255   :  { %v3950_v22 = vsel %vm8644_vm14, %v8305_v37, 0.0  ;;  %4910 = vpow2.f32 %v3630_v14  ;;  %v3987_v35 = vadd.f32 %v3986_v31, %v3985_v40  ;;  %vm8659_vm1 = vcmp.lt.f32.partialorder %v3836_v21, 0.0004427343 }
 0x256   :  { %v3988_v2 = vsel %vm3970_vm7, %v3950_v22, 0.0  ;;  %v1025_v27 = vpop.xlane.xlu1 %1024  ;;  %v8663_v24 = vpop.eup %4906  ;;  %v4105_v37 = vadd.f32 %v4104_v36, %v4103_v8  ;;  %v4106_v26 = vsel %vm3970_vm7, %v4437_v17, 0.0  ;;  %v3835_v44 = vmul.f32 %v8521_v30, %v3834_v25 }
 0x257   :  { %vm1115_vm9 = vcmp.gt.f32.partialorder %v1025_v27, 0.0  ;;  %4912 = vlog2.f32 %v3848_v41  ;;  %v4438_v1 = vsel %vm8600_vm6, 1.0, %v10823_v45  ;;  %v3989_v3 = vadd.f32 %v3988_v2, %v3987_v35 }
 0x258   :  { %vm8666_vm3 = vmand %vm1087_vm11, %vm1115_vm9  ;;  %vm1088_vm5 = vcmp.gt.f32.partialorder %v944_v56, 0.0  ;;  %v947_v53 = vpop.xlane.xlu0 %946  ;;  %v8678_v8 = vmul.f32 0.041666668, %v3905_v51  ;;  %v3838_v30 = vsel %vm8659_vm1, %v3835_v44, %v3832_v47  ;;  %v3843_v58 = vadd.f32 1.0, %v3842_v11 }
 0x259   :  { %v3951_v13 = vsel %vm8666_vm3, %v8311_v33, 0.0  ;;  %v4909_v18 = vpop.eup %4908  ;;  %v3845_v46 = vand.u32 2147483647, %v8533_v19  ;;  %v3857_v21 = vadd.f32 1.0, %v8633_v20  ;;  %v4107_v6 = vadd.f32 %v4106_v26, %v4105_v37 }
 0x25a   :  { %v3990_v15 = vsel %vm3970_vm7, %v3951_v13, 0.0  ;;  %v1028_v32 = vpop.xlane.xlu1 %1027  ;;  %v4108_v33 = vsel %vm3970_vm7, %v4438_v1, 0.0  ;;  %v3516_v57 = vmax.f32 %v8414_v59, 0.0  ;;  %v3851_v52 = vmul.f32 -0.5, %v8614_v38 }
 0x25b   :  { %v3991_v62 = vadd.f32 %v3990_v15, %v3989_v3  ;;  %vm1116_vm0 = vcmp.gt.f32.partialorder %v1028_v32, 0.0  ;;  %vm1089_vm4 = vcmp.gt.f32.partialorder %v947_v53, 0.0  ;;  %v3906_v25 = vadd.f32 %v3838_v30, %v3514_v55 }
 0x25c   :  { %vm8685_vm6 = vmand %vm1088_vm5, %vm1116_vm0  ;;  %v950_v31 = vpop.xlane.xlu0 %949  ;;  %v3841_v41 = vmul.f32 0.6931472, %v4909_v18  ;;  %v3844_v22 = vmul.f32 %v8533_v19, %v3843_v58  ;;  %v3854_v56 = vand.u32 2147483647, %v8614_v38  ;;  %v3866_v2 = vadd.f32 1.0, %v8663_v24 }
 0x25d   :  { %v3952_v36 = vsel %vm8685_vm6, %v8364_v43, 0.0  ;;  %vm8700_vm10 = vcmp.lt.f32.partialorder %v3845_v46, 0.0004427343  ;;  %4914 = vlog2.f32 %v3857_v21  ;;  %v4109_v43 = vadd.f32 %v4108_v33, %v4107_v6 }
 0x25e   :  { %v3992_v17 = vsel %vm3970_vm7, %v3952_v36, 0.0  ;;  %v1031_v40 = vpop.xlane.xlu1 %1030  ;;  %v4439_v16 = vsel %vm8622_vm13, 1.0, %v10823_v45  ;;  %v3852_v19 = vadd.f32 1.0, %v3851_v52  ;;  %v3860_v47 = vmul.f32 -0.5, %v8633_v20 }
 0x25f   :  { %v3993_v27 = vadd.f32 %v3992_v17, %v3991_v62  ;;  %vm1117_vm2 = vcmp.gt.f32.partialorder %v1031_v40, 0.0  ;;  %v8713_v11 = vpop.eup %4910  ;;  %vm1090_vm8 = vcmp.gt.f32.partialorder %v950_v31, 0.0  ;;  %v8718_v37 = vmul.f32 0.041666668, %v3906_v25 }
 0x260   :  { %vm8708_vm15 = vmand %vm1089_vm4, %vm1117_vm2  ;;  %v953_v63 = vpop.xlane.xlu0 %952  ;;  %v3847_v42 = vsel %vm8700_vm10, %v3844_v22, %v3841_v41  ;;  %v4440_v44 = vsel %vm8644_vm14, 1.0, %v10823_v45  ;;  %vm8726_vm13 = vcmp.lt.f32.partialorder %v3854_v56, 0.0004427343  ;;  %4916 = vlog2.f32 %v3866_v2  ;;  %v4194_v56 = vld [vmem:[#allocation2 + $0x5] ss:$8 sm:$0x3] }
 0x261   :  { %v3953_v35 = vsel %vm8708_vm15, %v8380_v28, 0.0  ;;  %v4913_v26 = vpop.eup %4912  ;;  %v4110_v28 = vsel %vm3970_vm7, %v4439_v16, 0.0  ;;  %v3517_v18 = vmax.f32 %v8434_v5, 0.0  ;;  %v3907_v60 = vadd.f32 %v3847_v42, %v3515_v49 }
 0x262   :  { %v3994_v1 = vsel %vm3970_vm7, %v3953_v35, 0.0  ;;  %v1034_v3 = vpop.xlane.xlu1 %1033  ;;  %v3853_v32 = vmul.f32 %v8614_v38, %v3852_v19  ;;  %v3861_v30 = vadd.f32 1.0, %v3860_v47  ;;  %v3875_v58 = vadd.f32 1.0, %v8713_v11 }
 0x263   :  { %v3995_v53 = vadd.f32 %v3994_v1, %v3993_v27  ;;  %vm1118_vm11 = vcmp.gt.f32.partialorder %v1034_v3, 0.0  ;;  %v4112_v62 = vsel %vm3970_vm7, %v4440_v44, 0.0  ;;  %vm1091_vm14 = vcmp.gt.f32.partialorder %v953_v63, 0.0 }
 0x264   :  { %vm8732_vm9 = vmand %vm1090_vm8, %vm1118_vm11  ;;  %v956_v21 = vpop.xlane.xlu0 %955  ;;  %v3850_v6 = vmul.f32 0.6931472, %v4913_v26  ;;  %v4111_v33 = vadd.f32 %v4110_v28, %v4109_v43  ;;  %v3863_v61 = vand.u32 2147483647, %v8633_v20  ;;  %v3869_v38 = vmul.f32 -0.5, %v8663_v24 }
 0x265   :  { %v3954_v46 = vsel %vm8732_vm9, %v8391_v39, 0.0  ;;  %v4441_v49 = vsel %vm8666_vm3, 1.0, %v10823_v45  ;;  %v3518_v25 = vmax.f32 %v8509_v10, 0.0  ;;  %v4192_v39 = vld [vmem:[#allocation2 + $0x4] ss:$8 sm:$0x3]  ;;  %v3862_v22 = vmul.f32 %v8633_v20, %v3861_v30 }
 0x266   :  { %v3996_v52 = vsel %vm3970_vm7, %v3954_v46, 0.0  ;;  %v1037_v36 = vpop.xlane.xlu1 %1036  ;;  %v4113_v41 = vadd.f32 %v4112_v62, %v4111_v33  ;;  %v8755_v40 = vmul.f32 0.041666668, %v3907_v60  ;;  %4918 = vlog2.f32 %v3875_v58 }
 0x267   :  { %v3997_v31 = vadd.f32 %v3996_v52, %v3995_v53  ;;  %vm1119_vm1 = vcmp.gt.f32.partialorder %v1037_v36, 0.0  ;;  %v4915_v2 = vpop.eup %4914  ;;  %vm1092_vm3 = vcmp.gt.f32.partialorder %v956_v21, 0.0  ;;  %v3856_v51 = vsel %vm8726_vm13, %v3853_v32, %v3850_v6 }
 0x268   :  { %vm8751_vm5 = vmand %vm1091_vm14, %vm1119_vm1  ;;  %v959_v27 = vpop.xlane.xlu0 %958  ;;  %v3872_v43 = vand.u32 2147483647, %v8663_v24  ;;  %v4114_v16 = vsel %vm3970_vm7, %v4441_v49, 0.0  ;;  %v4442_v20 = vsel %vm8685_vm6, 1.0, %v10823_v45  ;;  %v3870_v35 = vadd.f32 1.0, %v3869_v38 }
 0x269   :  { %v3955_v50 = vsel %vm8751_vm5, %v8418_v29, 0.0  ;;  %vm4193_vm4 = vcmp.gt.f32.partialorder %v4192_v39, 0.5  ;;  %vm4195_vm2 = vcmp.gt.f32.partialorder %v4194_v56, 0.5  ;;  %v3908_v26 = vadd.f32 %v3856_v51, %v3516_v57  ;;  %v10932_v51 = vld [vmem:[#allocation128_spill] sm:$0xff] }
 0x26a   :  { %v3998_v19 = vsel %vm3970_vm7, %v3955_v50, 0.0  ;;  %v1040_v47 = vpop.xlane.xlu1 %1039  ;;  %v4917_v29 = vpop.eup %4916  ;;  %v3859_v44 = vmul.f32 0.6931472, %v4915_v2  ;;  %vm8775_vm8 = vcmp.lt.f32.partialorder %v3863_v61, 0.0004427343  ;;  %v3519_v1 = vmax.f32 %v8562_v12, 0.0  ;;  %vm8795_vm11 = vmand %vm4193_vm4, %vm4195_vm2 }
 0x26b   :  { %v3999_v63 = vadd.f32 %v3998_v19, %v3997_v31  ;;  %vm1120_vm0 = vcmp.gt.f32.partialorder %v1040_v47, 0.0  ;;  %v4116_v3 = vsel %vm3970_vm7, %v4442_v20, 0.0  ;;  %v4443_v13 = vsel %vm8708_vm15, 1.0, %v10823_v45 }
 0x26c   :  { %vm8769_vm10 = vmand %vm1092_vm3, %vm1120_vm0  ;;  %vm1093_vm6 = vcmp.gt.f32.partialorder %v959_v27, 0.0  ;;  %v962_v59 = vpop.xlane.xlu0 %961  ;;  %v4115_v57 = vadd.f32 %v4114_v16, %v4113_v41  ;;  %vm8788_vm13 = vcmp.lt.f32.partialorder %v3872_v43, 0.0004427343  ;;  %v3878_v30 = vmul.f32 -0.5, %v8713_v11  ;;  %v10933_v16 = vld [vmem:[#allocation130_spill] sm:$0xff] }
 0x26d   :  { %v3956_v28 = vsel %vm8769_vm10, %v8438_v9, 0.0  ;;  %v3868_v9 = vmul.f32 0.6931472, %v4917_v29  ;;  %v3871_v62 = vmul.f32 %v8663_v24, %v3870_v35  ;;  %v4118_v21 = vsel %vm3970_vm7, %v4443_v13, 0.0 }
 0x26e   :  { %v4000_v53 = vsel %vm3970_vm7, %v3956_v28, 0.0  ;;  %v1043_v60 = vpop.xlane.xlu1 %1042  ;;  %v4117_v46 = vadd.f32 %v4116_v3, %v4115_v57  ;;  %v8805_v33 = vmul.f32 0.041666668, %v3908_v26  ;;  %v3865_v52 = vsel %vm8775_vm8, %v3862_v22, %v3859_v44  ;;  %v10953_v44 = vld [vmem:[#allocation19_spill] sm:$0xff] }
 0x26f   :  { %v4001_v58 = vadd.f32 %v4000_v53, %v3999_v63  ;;  %vm1121_vm15 = vcmp.gt.f32.partialorder %v1043_v60, 0.0  ;;  %v4444_v36 = vsel %vm8732_vm9, 1.0, %v10823_v45  ;;  %vm1094_vm1 = vcmp.gt.f32.partialorder %v962_v59, 0.0 }
 0x270   :  { %vm8801_vm14 = vmand %vm1093_vm6, %vm1121_vm15  ;;  %v965_v61 = vpop.xlane.xlu0 %964  ;;  %v4459_v38 = vsel %vm8795_vm11, 1.0, %v10823_v45  ;;  %v4919_v49 = vpop.eup %4918  ;;  %v3879_v41 = vadd.f32 1.0, %v3878_v30  ;;  %v3881_v22 = vand.u32 2147483647, %v8713_v11  ;;  %vm4209_vm3 = vcmask 1040384   ;;  %v10938_v30 = vld [vmem:[#allocation125_spill] sm:$0xff] }
 0x271   :  { %v3957_v24 = vsel %vm8801_vm14, %v8463_v48, 0.0  ;;  %v3909_v56 = vadd.f32 %v3865_v52, %v3517_v18  ;;  %v3874_v48 = vsel %vm8788_vm13, %v3871_v62, %v3868_v9  ;;  %v4119_v2 = vadd.f32 %v4118_v21, %v4117_v46  ;;  %v10940_v62 = vld [vmem:[#allocation115_spill] sm:$0xff] }
 0x272   :  { %v4002_v31 = vsel %vm3970_vm7, %v3957_v24, 0.0  ;;  %v1046_v39 = vpop.xlane.xlu1 %1045  ;;  %v4120_v50 = vsel %vm3970_vm7, %v4444_v36, 0.0  ;;  %v4228_v43 = vrot.slane %v4459_v38, %v10932_v51  ;;  %v4232_v20 = vrot.slane %v4459_v38, %v10933_v16  ;;  %v10943_v38 = vld [vmem:[#allocation122_spill] sm:$0xff] }
 0x273   :  { %v4003_v15 = vadd.f32 %v4002_v31, %v4001_v58  ;;  %vm1122_vm9 = vcmp.gt.f32.partialorder %v1046_v39, 0.0  ;;  %v4445_v5 = vsel %vm8751_vm5, 1.0, %v10823_v45  ;;  %vm1095_vm4 = vcmp.gt.f32.partialorder %v965_v61, 0.0  ;;  %v10939_v58 = vld [vmem:[#allocation114_spill] sm:$0xff] }
 0x274   :  { %vm8826_vm0 = vmand %vm1094_vm1, %vm1122_vm9  ;;  %v968_v19 = vpop.xlane.xlu0 %967  ;;  %v3877_v47 = vmul.f32 0.6931472, %v4919_v49  ;;  %v3910_v29 = vadd.f32 %v3874_v48, %v3518_v25  ;;  %v3880_v26 = vmul.f32 %v8713_v11, %v3879_v41  ;;  %vm8842_vm2 = vcmp.lt.f32.partialorder %v3881_v22, 0.0004427343  ;;  %v10944_v22 = vld [vmem:[#allocation12_spill] sm:$0xff] }
 0x275   :  { %v3958_v18 = vsel %vm8826_vm0, %v8475_v34, 0.0  ;;  %v4121_v17 = vadd.f32 %v4120_v50, %v4119_v2  ;;  %v8846_v3 = vmul.f32 0.041666668, %v3909_v56  ;;  %v4122_v34 = vsel %vm3970_vm7, %v4445_v5, 0.0  ;;  %v10946_v2 = vld [vmem:[#allocation123_spill] sm:$0xff] }
 0x276   :  { %v4004_v35 = vsel %vm3970_vm7, %v3958_v18, 0.0  ;;  %v1049_v63 = vpop.xlane.xlu1 %1048  ;;  %v4446_v13 = vsel %vm8769_vm10, 1.0, %v10823_v45  ;;  %v4235_v11 = vsel %vm4209_vm3, %v4228_v43, 0.0  ;;  %v4236_v25 = vsel %vm4209_vm3, %v4232_v20, 0.0  ;;  %v10947_v43 = vld [vmem:[#allocation13_spill] sm:$0xff] }
 0x277   :  { %v4005_v14 = vadd.f32 %v4004_v35, %v4003_v15  ;;  %vm1123_vm5 = vcmp.gt.f32.partialorder %v1049_v63, 0.0  ;;  %v4447_v28 = vsel %vm8801_vm14, 1.0, %v10823_v45  ;;  %vm1096_vm6 = vcmp.gt.f32.partialorder %v968_v19, 0.0  ;;  %v10950_v19 = vld [vmem:[#allocation133_spill] sm:$0xff] }
 0x278   :  { %vm8852_vm8 = vmand %vm1095_vm4, %vm1123_vm5  ;;  %v971_v57 = vpop.xlane.xlu0 %970  ;;  %v3883_v42 = vsel %vm8842_vm2, %v3880_v26, %v3877_v47  ;;  %v8867_v32 = vmul.f32 0.041666668, %v3910_v29  ;;  %v2166_v9 = vsub.f32 %v10939_v58, %v10938_v30  ;;  %v2167_v46 = vsub.f32 %v10940_v62, %v7863_v23 }
 0x279   :  { %v3959_v59 = vsel %vm8852_vm8, %v8519_v54, 0.0  ;;  %v4123_v21 = vadd.f32 %v4122_v34, %v4121_v17  ;;  %v4124_v6 = vsel %vm3970_vm7, %v4446_v13, 0.0  ;;  %v4126_v52 = vsel %vm3970_vm7, %v4447_v28, 0.0 }
 0x27a   :  { %v4006_v53 = vsel %vm3970_vm7, %v3959_v59, 0.0  ;;  %v1052_v60 = vpop.xlane.xlu1 %1051  ;;  %v3911_v24 = vadd.f32 %v3883_v42, %v3519_v1  ;;  %v8881_v61 = vadd.f32 %v4236_v25, %v4235_v11  ;;  %v2168_v49 = vsub.f32 %v10943_v38, %v10938_v30  ;;  %v10955_v11 = vld [vmem:[#allocation20_spill] sm:$0xff]  ;;  %v11015_v38 = vld [vmem:[#allocation163_spill] sm:$0xff] }
 0x27b   :  { %v4007_v54 = vadd.f32 %v4006_v53, %v4005_v14  ;;  %vm1124_vm10 = vcmp.gt.f32.partialorder %v1052_v60, 0.0  ;;  %v4448_v31 = vsel %vm8826_vm0, 1.0, %v10823_v45  ;;  %vm1097_vm15 = vcmp.gt.f32.partialorder %v971_v57, 0.0  ;;  %v10957_v53 = vld [vmem:[#allocation26_spill] sm:$0xff] }
 0x27c   :  { %vm8875_vm13 = vmand %vm1096_vm6, %vm1124_vm10  ;;  %v974_v41 = vpop.xlane.xlu0 %973  ;;  %v10945_v15 = vsub.f32 %v10944_v22, %v10938_v30  ;;  %v4125_v1 = vadd.f32 %v4124_v6, %v4123_v21  ;;  %v2169_v50 = vsub.f32 %v10946_v2, %v7863_v23  ;;  %v10948_v27 = vsub.f32 %v10947_v43, %v7863_v23  ;;  %v10964_v22 = vld [vmem:[#allocation36_spill] sm:$0xff] }
 0x27d   :  { %v3960_v39 = vsel %vm8875_vm13, %v8573_v7, 0.0  ;;  %v10949_v7 = vld [vmem:[#allocation132_spill] sm:$0xff]  ;;  %v2171_v47 = vsub.f32 %v10950_v19, %v7863_v23  ;;  %v4128_v63 = vsel %vm3970_vm7, %v4448_v31, 0.0  ;;  %v8909_v26 = vmul.f32 0.041666668, %v3911_v24 }
 0x27e   :  { %v2196_v12 = vmul.f32 1.442695, %v10945_v15  ;;  %v4008_v56 = vsel %vm3970_vm7, %v3960_v39, 0.0  ;;  %v1055_v48 = vpop.xlane.xlu1 %1054  ;;  %v2198_v20 = vmul.f32 1.442695, %v10948_v27  ;;  %v2170_v18 = vsub.f32 %v10949_v7, %v10938_v30  ;;  %v10963_v39 = vld [vmem:[#allocation138_spill] sm:$0xff] }
 0x27f   :  { %v4009_v5 = vadd.f32 %v4008_v56, %v4007_v54  ;;  %vm1125_vm14 = vcmp.gt.f32.partialorder %v1055_v48, 0.0  ;;  %v4127_v35 = vadd.f32 %v4126_v52, %v4125_v1  ;;  %v10954_v17 = vsub.f32 %v10953_v44, %v10938_v30  ;;  %v10959_v54 = vld [vmem:[#allocation27_spill] sm:$0xff]  ;;  %v10968_v44 = vld [vmem:[#allocation42_spill] sm:$0xff] }
 0x280   :  { %vm8905_vm1 = vmand %vm1097_vm15, %vm1125_vm14  ;;  %vm1098_vm9 = vcmp.gt.f32.partialorder %v974_v41, 0.0  ;;  %v977_v13 = vpop.xlane.xlu0 %976  ;;  %4920 = vpow2.f32 %v2196_v12  ;;  %v10956_v25 = vsub.f32 %v10955_v11, %v7863_v23  ;;  %v4449_v59 = vsel %vm8852_vm8, 1.0, %v10823_v45 }
 0x281   :  { %v2200_v14 = vmul.f32 1.442695, %v10954_v17  ;;  %v3961_v34 = vsel %vm8905_vm1, %v8589_v4, 0.0  ;;  %4922 = vpow2.f32 %v2198_v20  ;;  %v10958_v60 = vsub.f32 %v10957_v53, %v10938_v30  ;;  %v10966_v20 = vld [vmem:[#allocation37_spill] sm:$0xff] }
 0x282   :  { %v2202_v28 = vmul.f32 1.442695, %v10956_v25  ;;  %v4010_v57 = vsel %vm3970_vm7, %v3961_v34, 0.0  ;;  %v1058_v42 = vpop.xlane.xlu1 %1057  ;;  %v4450_v4 = vsel %vm8875_vm13, 1.0, %v10823_v45  ;;  %v10960_v52 = vsub.f32 %v10959_v54, %v7863_v23  ;;  %v10973_v25 = vld [vmem:[#allocation43_spill] sm:$0xff] }
 0x283   :  { %v2204_v21 = vmul.f32 1.442695, %v10958_v60  ;;  %v4011_v6 = vadd.f32 %v4010_v57, %v4009_v5  ;;  %vm1126_vm0 = vcmp.gt.f32.partialorder %v1058_v42, 0.0  ;;  %v4129_v10 = vadd.f32 %v4128_v63, %v4127_v35  ;;  %v10975_v60 = vld [vmem:[#allocation50_spill] sm:$0xff] }
 0x284   :  { %v2206_v24 = vmul.f32 1.442695, %v10960_v52  ;;  %vm8933_vm4 = vmand %vm1098_vm9, %vm1126_vm0  ;;  %v2172_v41 = vsub.f32 %v10963_v39, %v10938_v30  ;;  %4924 = vpow2.f32 %v2200_v14  ;;  %v10965_v15 = vsub.f32 %v10964_v22, %v10938_v30  ;;  %v980_v56 = vpop.xlane.xlu0 %979  ;;  %v11019_v39 = vld [vmem:[#allocation181_spill] sm:$0xff] }
 0x285   :  { %v4130_v12 = vsel %vm3970_vm7, %v4449_v59, 0.0  ;;  %v3962_v1 = vsel %vm8933_vm4, %v8678_v8, 0.0  ;;  %vm1099_vm2 = vcmp.gt.f32.partialorder %v977_v13, 0.0  ;;  %4926 = vpow2.f32 %v2202_v28  ;;  %v10972_v13 = vld [vmem:[#allocation139_spill] sm:$0xff] }
 0x286   :  { %v2208_v36 = vmul.f32 1.442695, %v10965_v15  ;;  %v4132_v48 = vsel %vm3970_vm7, %v4450_v4, 0.0  ;;  %v4012_v43 = vsel %vm3970_vm7, %v3962_v1, 0.0  ;;  %v1061_v27 = vpop.xlane.xlu1 %1060  ;;  %4928 = vpow2.f32 %v2204_v21 }
 0x287   :  { %v10967_v5 = vsub.f32 %v10966_v20, %v7863_v23  ;;  %v4013_v63 = vadd.f32 %v4012_v43, %v4011_v6  ;;  %vm1127_vm5 = vcmp.gt.f32.partialorder %v1061_v27, 0.0  ;;  %4930 = vpow2.f32 %v2206_v24  ;;  %v10977_v24 = vld [vmem:[#allocation51_spill] sm:$0xff]  ;;  %v10983_v20 = vld [vmem:[#allocation61_spill] sm:$0xff] }
 0x288   :  { %v10969_v17 = vsub.f32 %v10968_v44, %v10938_v30  ;;  %v4131_v14 = vadd.f32 %v4130_v12, %v4129_v10  ;;  %vm8954_vm8 = vmand %vm1099_vm2, %vm1127_vm5  ;;  %v2173_v11 = vsub.f32 %v10972_v13, %v7863_v23  ;;  %4932 = vpow2.f32 %v2208_v36  ;;  %v983_v53 = vpop.xlane.xlu0 %982 }
 0x289   :  { %v2210_v35 = vmul.f32 1.442695, %v10967_v5  ;;  %v10974_v28 = vsub.f32 %v10973_v25, %v7863_v23  ;;  %v4451_v57 = vsel %vm8905_vm1, 1.0, %v10823_v45  ;;  %v3963_v42 = vsel %vm8954_vm8, %v8718_v37, 0.0  ;;  %v10979_v37 = vld [vmem:[#allocation58_spill] sm:$0xff] }
 0x28a   :  { %v2212_v8 = vmul.f32 1.442695, %v10969_v17  ;;  %vm1100_vm6 = vcmp.gt.f32.partialorder %v980_v56, 0.0  ;;  %v10976_v21 = vsub.f32 %v10975_v60, %v10938_v30  ;;  %v4133_v6 = vadd.f32 %v4132_v48, %v4131_v14  ;;  %v1064_v52 = vpop.xlane.xlu1 %1063  ;;  %v8976_v22 = vpop.eup %4920  ;;  %v10985_v17 = vld [vmem:[#allocation66_spill] sm:$0xff] }
 0x28b   :  { %v2214_v59 = vmul.f32 1.442695, %v10974_v28  ;;  %v4014_v54 = vsel %vm3970_vm7, %v3963_v42, 0.0  ;;  %4934 = vpow2.f32 %v2210_v35  ;;  %v10978_v10 = vsub.f32 %v10977_v24, %v7863_v23  ;;  %v8981_v1 = vpop.eup %4922 }
 0x28c   :  { %v2216_v4 = vmul.f32 1.442695, %v10976_v21  ;;  %v4015_v15 = vadd.f32 %v4014_v54, %v4013_v63  ;;  %vm1128_vm10 = vcmp.gt.f32.partialorder %v1064_v52, 0.0  ;;  %4936 = vpow2.f32 %v2212_v8  ;;  %v986_v44 = vpop.xlane.xlu0 %985  ;;  %v10991_v52 = vld [vmem:[#allocation74_spill] sm:$0xff] }
 0x28d   :  { %v2218_v29 = vmul.f32 1.442695, %v10978_v10  ;;  %v10980_v36 = vsub.f32 %v10979_v37, %v10938_v30  ;;  %v4134_v48 = vsel %vm3970_vm7, %v4451_v57, 0.0  ;;  %v4452_v43 = vsel %vm8933_vm4, 1.0, %v10823_v45  ;;  %vm8988_vm13 = vmand %vm1100_vm6, %vm1128_vm10 }
 0x28e   :  { %4938 = vpow2.f32 %v2214_v59  ;;  %v10984_v5 = vsub.f32 %v10983_v20, %v7863_v23  ;;  %v3964_v63 = vsel %vm8988_vm13, %v8755_v40, 0.0  ;;  %vm1101_vm15 = vcmp.gt.f32.partialorder %v983_v53, 0.0  ;;  %v9001_v8 = vpop.eup %4924  ;;  %v1067_v28 = vpop.xlane.xlu1 %1066  ;;  %v10987_v59 = vld [vmem:[#allocation67_spill] sm:$0xff] }
 0x28f   :  { %v2220_v12 = vmul.f32 1.442695, %v10980_v36  ;;  %4940 = vpow2.f32 %v2216_v4  ;;  %v10986_v31 = vsub.f32 %v10985_v17, %v10938_v30  ;;  %v4453_v14 = vsel %vm8954_vm8, 1.0, %v10823_v45  ;;  %v9010_v42 = vpop.eup %4926 }
 0x290   :  { %v2222_v35 = vmul.f32 1.442695, %v10984_v5  ;;  %v4016_v25 = vsel %vm3970_vm7, %v3964_v63, 0.0  ;;  %4942 = vpow2.f32 %v2218_v29  ;;  %v10988_v40 = vsub.f32 %v10987_v59, %v7863_v23  ;;  %v9013_v4 = vpop.eup %4928  ;;  %v10993_v29 = vld [vmem:[#allocation75_spill] sm:$0xff]  ;;  %v10995_v63 = vld [vmem:[#allocation84_spill] sm:$0xff] }
 0x291   :  { %v2224_v56 = vmul.f32 1.442695, %v10986_v31  ;;  %v4136_v60 = vsel %vm3970_vm7, %v4452_v43, 0.0  ;;  %v4017_v21 = vadd.f32 %v4016_v25, %v4015_v15  ;;  %vm1129_vm14 = vcmp.gt.f32.partialorder %v1067_v28, 0.0  ;;  %v9026_v15 = vpop.eup %4930 }
 0x292   :  { %v2226_v57 = vmul.f32 1.442695, %v10988_v40  ;;  %4944 = vpow2.f32 %v2220_v12  ;;  %v4135_v54 = vadd.f32 %v4134_v48, %v4133_v6  ;;  %vm9016_vm1 = vmand %vm1101_vm15, %vm1129_vm14  ;;  %v10992_v24 = vsub.f32 %v10991_v52, %v10938_v30  ;;  %v989_v48 = vpop.xlane.xlu0 %988  ;;  %v9035_v43 = vpop.eup %4932 }
 0x293   :  { %4946 = vpow2.f32 %v2222_v35  ;;  %v10994_v37 = vsub.f32 %v10993_v29, %v7863_v23  ;;  %v4138_v12 = vsel %vm3970_vm7, %v4453_v14, 0.0  ;;  %v4454_v53 = vsel %vm8988_vm13, 1.0, %v10823_v45  ;;  %v1070_v35 = vpop.xlane.xlu1 %1069 }
 0x294   :  { %v2228_v10 = vmul.f32 1.442695, %v10992_v24  ;;  %v3965_v6 = vsel %vm9016_vm1, %v8805_v33, 0.0  ;;  %vm1102_vm9 = vcmp.gt.f32.partialorder %v986_v44, 0.0  ;;  %v4137_v20 = vadd.f32 %v4136_v60, %v4135_v54 }
 0x295   :  { %v2230_v36 = vmul.f32 1.442695, %v10994_v37  ;;  %v4018_v5 = vsel %vm3970_vm7, %v3965_v6, 0.0  ;;  %4948 = vpow2.f32 %v2224_v56  ;;  %v10996_v17 = vsub.f32 %v10995_v63, %v10938_v30  ;;  %v9044_v33 = vpop.eup %4934  ;;  %v10997_v56 = vld [vmem:[#allocation85_spill] sm:$0xff]  ;;  %v11001_v6 = vld [vmem:[#allocation91_spill] sm:$0xff]  ;;  %v11003_v63 = vld [vmem:[#allocation146_spill] sm:$0xff] }
 0x296   :  { %v4019_v14 = vadd.f32 %v4018_v5, %v4017_v21  ;;  %v4455_v27 = vsel %vm9016_vm1, 1.0, %v10823_v45  ;;  %vm1130_vm0 = vcmp.gt.f32.partialorder %v1070_v35, 0.0  ;;  %4950 = vpow2.f32 %v2226_v57  ;;  %v9051_v60 = vpop.eup %4936  ;;  %v992_v24 = vpop.xlane.xlu0 %991 }
 0x297   :  { %v2232_v31 = vmul.f32 1.442695, %v10996_v17  ;;  %v4139_v25 = vadd.f32 %v4138_v12, %v4137_v20  ;;  %v4140_v28 = vsel %vm3970_vm7, %v4454_v53, 0.0  ;;  %vm1158_vm4 = vmand %vm1102_vm9, %vm1130_vm0  ;;  %4952 = vpow2.f32 %v2228_v10  ;;  %v1073_v52 = vpop.xlane.xlu1 %1072  ;;  %v10999_v10 = vld [vmem:[#allocation90_spill] sm:$0xff] }
 0x298   :  { %v10998_v59 = vsub.f32 %v10997_v56, %v7863_v23  ;;  %v3966_v21 = vsel %vm1158_vm4, %v8846_v3, 0.0  ;;  %v4456_v54 = vsel %vm1158_vm4, 1.0, %v10823_v45  ;;  %vm1103_vm2 = vcmp.gt.f32.partialorder %v989_v48, 0.0  ;;  %v9055_v57 = vpop.eup %4938 }
 0x299   :  { %4954 = vpow2.f32 %v2230_v36  ;;  %v4142_v34 = vsel %vm3970_vm7, %v4455_v27, 0.0  ;;  %v4020_v44 = vsel %vm3970_vm7, %v3966_v21, 0.0  ;;  %v11000_v29 = vsub.f32 %v10999_v10, %v10938_v30  ;;  %v9062_v12 = vpop.eup %4940 }
 0x29a   :  { %v2234_v40 = vmul.f32 1.442695, %v10998_v59  ;;  %4956 = vpow2.f32 %v2232_v31  ;;  %v4141_v3 = vadd.f32 %v4140_v28, %v4139_v25  ;;  %v4021_v53 = vadd.f32 %v4020_v44, %v4019_v14  ;;  %v9067_v5 = vpop.eup %4942  ;;  %v11004_v31 = vld [vmem:[#allocation98_spill] sm:$0xff] }
 0x29b   :  { %v2236_v37 = vmul.f32 1.442695, %v11000_v29  ;;  %vm1131_vm5 = vcmp.gt.f32.partialorder %v1073_v52, 0.0  ;;  %v11002_v36 = vsub.f32 %v11001_v6, %v7863_v23  ;;  %v4144_v35 = vsel %vm3970_vm7, %v4456_v54, 0.0  ;;  %v1076_v44 = vpop.xlane.xlu1 %1075  ;;  %v11010_v6 = vld [vmem:[#allocation147_spill] sm:$0xff] }
 0x29c   :  { %vm1159_vm8 = vmand %vm1103_vm2, %vm1131_vm5  ;;  %v2174_v17 = vsub.f32 %v11003_v63, %v10938_v30  ;;  %4958 = vpow2.f32 %v2234_v40  ;;  %v11005_v27 = vsub.f32 %v11004_v31, %v10938_v30  ;;  %v9076_v14 = vpop.eup %4944  ;;  %v4143_v28 = vadd.f32 %v4142_v34, %v4141_v3  ;;  %v11006_v40 = vld [vmem:[#allocation99_spill] sm:$0xff]  ;;  %v11008_v34 = vld [vmem:[#allocation106_spill] sm:$0xff] }
 0x29d   :  { %v2238_v20 = vmul.f32 1.442695, %v11002_v36  ;;  %v3967_v56 = vsel %vm1159_vm8, %v8867_v32, 0.0  ;;  %v4457_v59 = vsel %vm1159_vm8, 1.0, %v10823_v45  ;;  %vm1104_vm6 = vcmp.gt.f32.partialorder %v992_v24, 0.0  ;;  %v9080_v21 = vpop.eup %4946 }
 0x29e   :  { %v2240_v25 = vmul.f32 1.442695, %v11005_v27  ;;  %v4022_v48 = vsel %vm3970_vm7, %v3967_v56, 0.0  ;;  %v4146_v54 = vsel %vm3970_vm7, %v4457_v59, 0.0  ;;  %4960 = vpow2.f32 %v2236_v37 }
 0x29f   :  { %v11007_v52 = vsub.f32 %v11006_v40, %v7863_v23  ;;  %v4145_v29 = vadd.f32 %v4144_v35, %v4143_v28  ;;  %vm1132_vm10 = vcmp.gt.f32.partialorder %v1076_v44, 0.0  ;;  %4962 = vpow2.f32 %v2238_v20  ;;  %v9090_v24 = vpop.eup %4948 }
 0x2a0   :  { %v11009_v32 = vsub.f32 %v11008_v34, %v10938_v30  ;;  %vm1160_vm13 = vmand %vm1104_vm6, %vm1132_vm10  ;;  %v2175_v36 = vsub.f32 %v11010_v6, %v7863_v23  ;;  %4964 = vpow2.f32 %v2240_v25  ;;  %v11011_v37 = vsub.f32 %v10878_v0, %v7863_v23  ;;  %v9100_v20 = vpop.eup %4950  ;;  %v11016_v6 = vld [vmem:[#allocation170_spill] sm:$0xff] }
 0x2a1   :  { %v2242_v10 = vmul.f32 1.442695, %v11007_v52  ;;  %v2248_v35 = vmul.f32 1.442695, %v2166_v9  ;;  %v4023_v27 = vadd.f32 %v4022_v48, %v4021_v53  ;;  %v4147_v28 = vadd.f32 %v4146_v54, %v4145_v29  ;;  %v9104_v44 = vpop.eup %4952  ;;  %v11012_v48 = vld [vmem:[#allocation154_spill] sm:$0xff]  ;;  %v11013_v52 = vld [vmem:[#allocation157_spill] sm:$0xff] }
 0x2a2   :  { %v2244_v3 = vmul.f32 1.442695, %v11009_v32  ;;  %v2246_v31 = vmul.f32 1.442695, %v11011_v37  ;;  %v3968_v56 = vsel %vm1160_vm13, %v8909_v26, 0.0  ;;  %v4458_v59 = vsel %vm1160_vm13, 1.0, %v10823_v45 }
 0x2a3   :  { %v4024_v25 = vsel %vm3970_vm7, %v3968_v56, 0.0  ;;  %v4148_v40 = vsel %vm3970_vm7, %v4458_v59, 0.0  ;;  %4966 = vpow2.f32 %v2242_v10  ;;  %v2250_v0 = vmul.f32 1.442695, %v2167_v46  ;;  %v9111_v58 = vpop.eup %4954  ;;  %v11014_v46 = vld [vmem:[#allocation162_spill] sm:$0xff]  ;;  %v11021_v56 = vld [vmem:[#allocation188_spill] sm:$0xff] }
 0x2a4   :  { %v4149_v9 = vadd.f32 %v4148_v40, %v4147_v28  ;;  %v4025_v53 = vadd.f32 %v4024_v25, %v4023_v27  ;;  %4968 = vpow2.f32 %v2244_v3  ;;  %v2252_v45 = vmul.f32 1.442695, %v2168_v49  ;;  %v9116_v26 = vpop.eup %4956 }
 0x2a5   :  { %v2176_v54 = vsub.f32 %v11012_v48, %v10938_v30  ;;  %v2177_v10 = vsub.f32 %v11013_v52, %v7863_v23  ;;  %4970 = vpow2.f32 %v2246_v31  ;;  %v2254_v62 = vmul.f32 1.442695, %v2169_v50  ;;  %v11017_v31 = vld [vmem:[#allocation171_spill] sm:$0xff] }
 0x2a6   :  { %4150 = vadd.xlane.f32.xlu1 %v4149_v9  ;;  %4026 = vadd.xlane.f32.xlu0 %v4025_v53  ;;  %v2178_v29 = vsub.f32 %v11014_v46, %v10938_v30  ;;  %v2179_v49 = vsub.f32 %v11015_v38, %v7863_v23  ;;  %4972 = vpow2.f32 %v2248_v35  ;;  %v2256_v34 = vmul.f32 1.442695, %v2170_v18  ;;  %v9132_v32 = vpop.eup %4958  ;;  %v11023_v9 = vld [vmem:[#allocation196_spill] sm:$0xff]  ;;  %v11024_v46 = vld [vmem:[#allocation129_spill] sm:$0xff]  ;;  %v11025_v38 = vld [vmem:[#allocation15_spill] sm:$0xff] }
 0x2a7   :  { %4974 = vpow2.f32 %v2250_v0  ;;  %v2258_v2 = vmul.f32 1.442695, %v2171_v47  ;;  %v2314_v50 = vadd.f32 %v9001_v8, %v8976_v22  ;;  %v2347_v3 = vadd.f32 %v9010_v42, %v8981_v1  ;;  %v11018_v8 = vld [vmem:[#allocation180_spill] sm:$0xff] }
 0x2a8   :  { %v2180_v37 = vsub.f32 %v11016_v6, %v10938_v30  ;;  %v2181_v7 = vsub.f32 %v11017_v31, %v7863_v23  ;;  %4976 = vpow2.f32 %v2252_v45  ;;  %v2260_v18 = vmul.f32 1.442695, %v2172_v41  ;;  %v9148_v35 = vpop.eup %4960 }
 0x2a9   :  { %4978 = vpow2.f32 %v2254_v62  ;;  %v2262_v19 = vmul.f32 1.442695, %v2173_v11  ;;  %v2315_v47 = vadd.f32 %v9013_v4, %v2314_v50  ;;  %v2348_v22 = vadd.f32 %v9026_v15, %v2347_v3  ;;  %v9155_v1 = vpop.eup %4962 }
 0x2aa   :  { %4238 = vadd.xlane.f32.xlu1 %v8881_v61  ;;  %v2182_v42 = vsub.f32 %v11018_v8, %v10938_v30  ;;  %v2183_v41 = vsub.f32 %v11019_v39, %v7863_v23  ;;  %4980 = vpow2.f32 %v2256_v34  ;;  %v2264_v13 = vmul.f32 1.442695, %v2174_v17  ;;  %v9165_v11 = vpop.eup %4964  ;;  %v11020_v61 = vld [vmem:[#allocation187_spill] sm:$0xff] }
 0x2ab   :  { %4982 = vpow2.f32 %v2258_v2  ;;  %v2266_v4 = vmul.f32 1.442695, %v2175_v36  ;;  %v2316_v15 = vadd.f32 %v9035_v43, %v2315_v47  ;;  %v2349_v27 = vadd.f32 %v9044_v33, %v2348_v22  ;;  %v11022_v43 = vld [vmem:[#allocation195_spill] sm:$0xff] }
 0x2ac   :  { %v2184_v28 = vsub.f32 %v11020_v61, %v10938_v30  ;;  %v2185_v59 = vsub.f32 %v11021_v56, %v7863_v23  ;;  %4984 = vpow2.f32 %v2260_v18  ;;  %v2268_v25 = vmul.f32 1.442695, %v2176_v54 }
 0x2ad   :  { %v9173_v40 = vpop.eup %4966  ;;  %4986 = vpow2.f32 %v2262_v19  ;;  %v2270_v63 = vmul.f32 1.442695, %v2177_v10  ;;  %v2317_v17 = vadd.f32 %v9051_v60, %v2316_v15  ;;  %v2350_v36 = vadd.f32 %v9055_v57, %v2349_v27  ;;  %v11029_v15 = vld [vmem:[#allocation25_spill] sm:$0xff] }
 0x2ae   :  { %v9177_v0 = vpop.eup %4968  ;;  %v2186_v33 = vsub.f32 %v11022_v43, %v10938_v30  ;;  %v2187_v53 = vsub.f32 %v11023_v9, %v7863_v23  ;;  %4988 = vpow2.f32 %v2264_v13  ;;  %v2272_v45 = vmul.f32 1.442695, %v2178_v29  ;;  %v11028_v13 = vld [vmem:[#allocation22_spill] sm:$0xff]  ;;  %v11033_v43 = vld [vmem:[#allocation40_spill] sm:$0xff] }
 0x2af   :  { %v9183_v48 = vpop.eup %4970  ;;  %v2190_v54 = vsub.f32 -1e+30, %v10938_v30  ;;  %4990 = vpow2.f32 %v2266_v4  ;;  %v2318_v52 = vadd.f32 %v9062_v12, %v2317_v17  ;;  %v2351_v60 = vadd.f32 %v9067_v5, %v2350_v36  ;;  %v11032_v17 = vld [vmem:[#allocation39_spill] sm:$0xff] }
 0x2b0   :  { %v9188_v57 = vpop.eup %4972  ;;  %v2191_v10 = vsub.f32 -1e+30, %v7863_v23  ;;  %4992 = vpow2.f32 %v2268_v25  ;;  %v2274_v62 = vmul.f32 1.442695, %v2179_v49  ;;  %v3201_v34 = vsub.f32 %v11025_v38, %v11024_v46  ;;  %v11031_v25 = vld [vmem:[#allocation31_spill] sm:$0xff]  ;;  %v11054_v38 = vld [vmem:[#allocation126_spill] sm:$0xff] }
 0x2b1   :  { %v9193_v2 = vpop.eup %4974  ;;  %4994 = vpow2.f32 %v2270_v63  ;;  %v2276_v29 = vmul.f32 1.442695, %v2180_v37  ;;  %v2319_v30 = vadd.f32 %v9076_v14, %v2318_v52  ;;  %v2352_v50 = vadd.f32 %v9080_v21, %v2351_v60  ;;  %v11035_v52 = vld [vmem:[#allocation48_spill] sm:$0xff] }
 0x2b2   :  { %v9197_v12 = vpop.eup %4976  ;;  %4996 = vpow2.f32 %v2272_v45  ;;  %v2278_v5 = vmul.f32 1.442695, %v2181_v7  ;;  %v2280_v3 = vmul.f32 1.442695, %v2182_v42  ;;  %v2282_v6 = vmul.f32 1.442695, %v2183_v41 }
 0x2b3   :  { %v9199_v23 = vpop.eup %4978  ;;  %v2284_v49 = vmul.f32 1.442695, %v2184_v28  ;;  %v2286_v31 = vmul.f32 1.442695, %v2185_v59  ;;  %v2320_v18 = vadd.f32 %v9090_v24, %v2319_v30  ;;  %v2353_v19 = vadd.f32 %v9100_v20, %v2352_v50  ;;  %v11026_v24 = vld [vmem:[#allocation134_spill] sm:$0xff]  ;;  %v11027_v41 = vld [vmem:[#allocation16_spill] sm:$0xff] }
 0x2b4   :  { %v9203_v47 = vpop.eup %4980  ;;  %4998 = vpow2.f32 %v2274_v62  ;;  %v2288_v14 = vmul.f32 1.442695, %v2186_v33  ;;  %v2290_v37 = vmul.f32 1.442695, %v2187_v53  ;;  %v2296_v21 = vmul.f32 1.442695, %v2190_v54 }
 0x2b5   :  { %v9205_v22 = vpop.eup %4982  ;;  %5000 = vpow2.f32 %v2276_v29  ;;  %v2298_v7 = vmul.f32 1.442695, %v2191_v10  ;;  %v2321_v8 = vadd.f32 %v9104_v44, %v2320_v18  ;;  %v2354_v42 = vadd.f32 %v9111_v58, %v2353_v19  ;;  %v11030_v58 = vld [vmem:[#allocation30_spill] sm:$0xff]  ;;  %v11037_v29 = vld [vmem:[#allocation55_spill] sm:$0xff] }
 0x2b6   :  { %v9209_v39 = vpop.eup %4984  ;;  %5002 = vpow2.f32 %v2278_v5  ;;  %v3202_v20 = vsub.f32 %v11027_v41, %v11026_v24  ;;  %v3203_v4 = vsub.f32 %v11028_v13, %v11024_v46  ;;  %v3204_v27 = vsub.f32 %v11029_v15, %v11026_v24  ;;  %v11034_v53 = vld [vmem:[#allocation46_spill] sm:$0xff]  ;;  %v11051_v41 = vld [vmem:[#allocation111_spill] sm:$0xff] }
 0x2b7   :  { %v9217_v61 = vpop.eup %4986  ;;  %5004 = vpow2.f32 %v2280_v3  ;;  %v2322_v28 = vadd.f32 %v9116_v26, %v2321_v8  ;;  %v2355_v44 = vadd.f32 %v9132_v32, %v2354_v42  ;;  %v3205_v56 = vsub.f32 %v11030_v58, %v11024_v46  ;;  %v11036_v10 = vld [vmem:[#allocation54_spill] sm:$0xff]  ;;  %v11041_v8 = vld [vmem:[#allocation71_spill] sm:$0xff] }
 0x2b8   :  { %v9223_v59 = vpop.eup %4988  ;;  %5006 = vpow2.f32 %v2282_v6  ;;  %v3206_v63 = vsub.f32 %v11031_v25, %v11026_v24  ;;  %v11038_v5 = vld [vmem:[#allocation62_spill] sm:$0xff]  ;;  %v11053_v30 = vld [vmem:[#allocation119_spill] sm:$0xff]  ;;  %v3261_v33 = vmul.f32 1.442695, %v3203_v4  ;;  %v11060_v58 = vsub.f32 %v11032_v17, %v11024_v46 }
 0x2b9   :  { %v9231_v9 = vpop.eup %4990  ;;  %5008 = vpow2.f32 %v2284_v49  ;;  %v2323_v26 = vadd.f32 %v9148_v35, %v2322_v28  ;;  %v2356_v32 = vadd.f32 %v9155_v1, %v2355_v44  ;;  %v11039_v49 = vld [vmem:[#allocation63_spill] sm:$0xff]  ;;  %v11040_v18 = vld [vmem:[#allocation70_spill] sm:$0xff]  ;;  %v11061_v25 = vsub.f32 %v11033_v43, %v11026_v24 }
 0x2ba   :  { %v9237_v54 = vpop.eup %4992  ;;  %5010 = vpow2.f32 %v2286_v31  ;;  %v11044_v44 = vld [vmem:[#allocation87_spill] sm:$0xff]  ;;  %v11048_v28 = vld [vmem:[#allocation102_spill] sm:$0xff]  ;;  %v3259_v31 = vmul.f32 1.442695, %v3202_v20  ;;  %v3267_v15 = vmul.f32 1.442695, %v3206_v63  ;;  %v11065_v43 = vsub.f32 %v11035_v52, %v11026_v24 }
 0x2bb   :  { %v9245_v50 = vpop.eup %4994  ;;  %5012 = vpow2.f32 %v2288_v14  ;;  %v2324_v35 = vadd.f32 %v9165_v11, %v2323_v26  ;;  %v2357_v1 = vadd.f32 %v9173_v40, %v2356_v32  ;;  %v11042_v14 = vld [vmem:[#allocation78_spill] sm:$0xff]  ;;  %v11045_v32 = vld [vmem:[#allocation88_spill] sm:$0xff]  ;;  %v11049_v26 = vld [vmem:[#allocation103_spill] sm:$0xff]  ;;  %v3271_v63 = vmul.f32 1.442695, %v11061_v25 }
 0x2bc   :  { %v9251_v6 = vpop.eup %4996  ;;  %5014 = vpow2.f32 %v2290_v37  ;;  %v11043_v37 = vld [vmem:[#allocation79_spill] sm:$0xff]  ;;  %v11050_v42 = vld [vmem:[#allocation110_spill] sm:$0xff]  ;;  %v11069_v52 = vsub.f32 %v11037_v29, %v11026_v24 }
 0x2bd   :  { %5016 = vpow2.f32 %v2296_v21  ;;  %v2325_v11 = vadd.f32 %v9177_v0, %v2324_v35  ;;  %v2358_v40 = vadd.f32 %v9183_v48, %v2357_v1  ;;  %v11046_v35 = vld [vmem:[#allocation94_spill] sm:$0xff]  ;;  %v11056_v45 = vld [vmem:[#allocation135_spill] sm:$0xff] }
 0x2be   :  { %v9263_v13 = vpop.eup %4998  ;;  %5018 = vpow2.f32 %v2298_v7  ;;  %v11047_v7 = vld [vmem:[#allocation96_spill] sm:$0xff]  ;;  %v11052_v3 = vld [vmem:[#allocation118_spill] sm:$0xff]  ;;  %v11063_v20 = vld [vmem:[#allocation151_spill] sm:$0xff] }
 0x2bf   :  { %v9271_v21 = vpop.eup %5000  ;;  %v2326_v0 = vadd.f32 %v9188_v57, %v2325_v11  ;;  %v2359_v48 = vadd.f32 %v9193_v2, %v2358_v40  ;;  %v3257_v57 = vmul.f32 1.442695, %v3201_v34  ;;  %v11057_v34 = vld [vmem:[#allocation136_spill] sm:$0xff]  ;;  %v11058_v1 = vld [vmem:[#allocation142_spill] sm:$0xff] }
 0x2c0   :  { %v5003_v19 = vpop.eup %5002  ;;  %v3233_v4 = vsub.f32 %v11058_v1, %v11024_v46 }
 0x2c1   :  { %v9288_v2 = vpop.eup %5004  ;;  %v2327_v11 = vadd.f32 %v9197_v12, %v2326_v0  ;;  %v2360_v40 = vadd.f32 %v9199_v23, %v2359_v48  ;;  %v11055_v0 = vld [vmem:[#allocation127_spill] sm:$0xff]  ;;  %v3263_v48 = vmul.f32 1.442695, %v3204_v27  ;;  %5020 = vpow2.f32 %v3257_v57  ;;  %v11059_v57 = vld [vmem:[#allocation144_spill] sm:$0xff] }
 0x2c2   :  { %v5007_v62 = vpop.eup %5006  ;;  %5022 = vpow2.f32 %v3259_v31 }
 0x2c3   :  { %v9300_v36 = vpop.eup %5008  ;;  %v2328_v12 = vadd.f32 %v9203_v47, %v2327_v11  ;;  %v2361_v23 = vadd.f32 %v9205_v22, %v2360_v40  ;;  %v3265_v47 = vmul.f32 1.442695, %v3205_v56  ;;  %5024 = vpow2.f32 %v3261_v33  ;;  %v11067_v33 = vld [vmem:[#allocation159_spill] sm:$0xff] }
 0x2c4   :  { %v5011_v60 = vpop.eup %5010  ;;  %v3269_v56 = vmul.f32 1.442695, %v11060_v58  ;;  %5026 = vpow2.f32 %v3263_v48  ;;  %v11064_v58 = vsub.f32 %v11034_v53, %v11024_v46  ;;  %v11068_v53 = vsub.f32 %v11036_v10, %v11024_v46 }
 0x2c5   :  { %v9316_v22 = vpop.eup %5012  ;;  %v2329_v11 = vadd.f32 %v9209_v39, %v2328_v12  ;;  %v2362_v40 = vadd.f32 %v9217_v61, %v2361_v23  ;;  %v11062_v23 = vld [vmem:[#allocation150_spill] sm:$0xff]  ;;  %5028 = vpow2.f32 %v3265_v47  ;;  %v11072_v10 = vsub.f32 %v11038_v5, %v11024_v46 }
 0x2c6   :  { %v5015_v27 = vpop.eup %5014  ;;  %5030 = vpow2.f32 %v3267_v15  ;;  %v3277_v47 = vmul.f32 1.442695, %v11068_v53  ;;  %v3279_v15 = vmul.f32 1.442695, %v11069_v52  ;;  %v11075_v52 = vld [vmem:[#allocation175_spill] sm:$0xff]  ;;  %v11076_v5 = vsub.f32 %v11040_v18, %v11024_v46 }
 0x2c7   :  { %v9330_v39 = vpop.eup %5016  ;;  %v2330_v61 = vadd.f32 %v9223_v59, %v2329_v11  ;;  %v2363_v31 = vadd.f32 %v9231_v9, %v2362_v40  ;;  %v3273_v59 = vmul.f32 1.442695, %v11064_v58  ;;  %v3275_v11 = vmul.f32 1.442695, %v11065_v43  ;;  %v11066_v40 = vld [vmem:[#allocation158_spill] sm:$0xff]  ;;  %v11071_v58 = vld [vmem:[#allocation167_spill] sm:$0xff] }
 0x2c8   :  { %v9337_v12 = vpop.eup %5018  ;;  %v3237_v25 = vsub.f32 %v11066_v40, %v11024_v46  ;;  %5032 = vpow2.f32 %v3269_v56  ;;  %v3281_v56 = vmul.f32 1.442695, %v11072_v10  ;;  %v11079_v43 = vld [vmem:[#allocation184_spill] sm:$0xff]  ;;  %v11080_v18 = vsub.f32 %v11042_v14, %v11024_v46 }
 0x2c9   :  { %v2331_v9 = vadd.f32 %v9237_v54, %v2330_v61  ;;  %v2364_v48 = vadd.f32 %v9245_v50, %v2363_v31  ;;  %5034 = vpow2.f32 %v3271_v63  ;;  %v11070_v61 = vld [vmem:[#allocation166_spill] sm:$0xff]  ;;  %v11084_v14 = vsub.f32 %v11044_v44, %v11024_v46  ;;  %v11087_v44 = vld [vmem:[#allocation131_spill] sm:$0xff]  ;;  %v11088_v31 = vld [vmem:[#allocation137_spill] sm:$0xff] }
 0x2ca   :  { %5036 = vpow2.f32 %v3273_v59  ;;  %v3285_v59 = vmul.f32 1.442695, %v11076_v5  ;;  %v3289_v5 = vmul.f32 1.442695, %v11080_v18 }
 0x2cb   :  { %v2332_v54 = vadd.f32 %v9251_v6, %v2331_v9  ;;  %v2365_v50 = vadd.f32 %v9263_v13, %v2364_v48  ;;  %5038 = vpow2.f32 %v3275_v11  ;;  %v11073_v13 = vsub.f32 %v11039_v49, %v11026_v24  ;;  %v5021_v63 = vpop.eup %5020  ;;  %v11074_v48 = vld [vmem:[#allocation174_spill] sm:$0xff] }
 0x2cc   :  { %5040 = vpow2.f32 %v3277_v47  ;;  %v5023_v10 = vpop.eup %5022  ;;  %v11077_v49 = vsub.f32 %v11041_v8, %v11026_v24  ;;  %v11081_v8 = vsub.f32 %v11043_v37, %v11026_v24  ;;  %v11083_v47 = vld [vmem:[#allocation193_spill] sm:$0xff]  ;;  %v3293_v18 = vmul.f32 1.442695, %v11084_v14 }
 0x2cd   :  { %v2333_v6 = vadd.f32 %v9271_v21, %v2332_v54  ;;  %v2366_v9 = vadd.f32 %v5003_v19, %v2365_v50  ;;  %v3283_v29 = vmul.f32 1.442695, %v11073_v13  ;;  %5042 = vpow2.f32 %v3279_v15  ;;  %v5025_v54 = vpop.eup %5024  ;;  %v11078_v50 = vld [vmem:[#allocation183_spill] sm:$0xff] }
 0x2ce   :  { %v3287_v11 = vmul.f32 1.442695, %v11077_v49  ;;  %5044 = vpow2.f32 %v3281_v56  ;;  %v5027_v53 = vpop.eup %5026  ;;  %v3291_v15 = vmul.f32 1.442695, %v11081_v8  ;;  %v11085_v37 = vsub.f32 %v11045_v32, %v11026_v24 }
 0x2cf   :  { %v2334_v19 = vadd.f32 %v9288_v2, %v2333_v6  ;;  %v2367_v21 = vadd.f32 %v5007_v62, %v2366_v9  ;;  %5046 = vpow2.f32 %v3283_v29  ;;  %v5029_v6 = vpop.eup %5028  ;;  %v11082_v9 = vld [vmem:[#allocation191_spill] sm:$0xff]  ;;  %v3408_v56 = vadd.f32 %v5027_v53, %v5023_v10 }
 0x2d0   :  { %5048 = vpow2.f32 %v3285_v59  ;;  %v5031_v13 = vpop.eup %5030  ;;  %v3295_v29 = vmul.f32 1.442695, %v11085_v37  ;;  %v3375_v59 = vadd.f32 %v5025_v54, %v5021_v63 }
 0x2d1   :  { %v2335_v62 = vadd.f32 %v9300_v36, %v2334_v19  ;;  %v2368_v2 = vadd.f32 %v5011_v60, %v2367_v21  ;;  %5050 = vpow2.f32 %v3287_v11  ;;  %v11086_v21 = vsub.f32 %v11046_v35, %v11024_v46 }
 0x2d2   :  { %v5033_v19 = vpop.eup %5032  ;;  %5052 = vpow2.f32 %v3289_v5  ;;  %v11090_v11 = vsub.f32 %v11048_v28, %v11024_v46  ;;  %v3376_v35 = vadd.f32 %v5029_v6, %v3375_v59 }
 0x2d3   :  { %v2336_v36 = vadd.f32 %v9316_v22, %v2335_v62  ;;  %v2369_v60 = vadd.f32 %v5015_v27, %v2368_v2  ;;  %v3297_v8 = vmul.f32 1.442695, %v11086_v21  ;;  %v5035_v49 = vpop.eup %5034  ;;  %5054 = vpow2.f32 %v3291_v15 }
 0x2d4   :  { %v11089_v22 = vsub.f32 %v11047_v7, %v11026_v24  ;;  %v5037_v32 = vpop.eup %5036  ;;  %5056 = vpow2.f32 %v3293_v18  ;;  %v3301_v5 = vmul.f32 1.442695, %v11090_v11  ;;  %v3409_v62 = vadd.f32 %v5031_v13, %v3408_v56 }
 0x2d5   :  { %v2337_v14 = vadd.f32 %v11087_v44, %v2336_v36  ;;  %v2370_v17 = vadd.f32 %v11088_v31, %v2369_v60  ;;  %v5039_v63 = vpop.eup %5038  ;;  %5058 = vpow2.f32 %v3295_v29  ;;  %v11091_v31 = vsub.f32 %v11049_v26, %v11026_v24 }
 0x2d6   :  { %v3299_v27 = vmul.f32 1.442695, %v11089_v22  ;;  %v5041_v7 = vpop.eup %5040  ;;  %5060 = vpow2.f32 %v3297_v8  ;;  %v11092_v2 = vsub.f32 %v11050_v42, %v11024_v46  ;;  %v3377_v28 = vadd.f32 %v5033_v19, %v3376_v35 }
 0x2d7   :  { %v2338_v53 = vadd.f32 %v9330_v39, %v2337_v14  ;;  %v2371_v10 = vadd.f32 %v9337_v12, %v2370_v17  ;;  %v3303_v54 = vmul.f32 1.442695, %v11091_v31  ;;  %v3410_v18 = vadd.f32 %v5035_v49, %v3409_v62  ;;  %v5043_v6 = vpop.eup %5042 }
 0x2d8   :  { %v3305_v15 = vmul.f32 1.442695, %v11092_v2  ;;  %5062 = vpow2.f32 %v3299_v27  ;;  %v11093_v17 = vsub.f32 %v11051_v41, %v11026_v24  ;;  %v5045_v26 = vpop.eup %5044  ;;  %v11094_v60 = vsub.f32 %v11052_v3, %v11024_v46 }
 0x2d9   :  { %v2339_v13 = vadd.f32 %v9330_v39, %v2338_v53  ;;  %v2372_v56 = vadd.f32 %v9337_v12, %v2371_v10  ;;  %5064 = vpow2.f32 %v3301_v5  ;;  %v3378_v42 = vadd.f32 %v5037_v32, %v3377_v28  ;;  %v5047_v19 = vpop.eup %5046 }
 0x2da   :  { %v3307_v36 = vmul.f32 1.442695, %v11093_v17  ;;  %v3309_v37 = vmul.f32 1.442695, %v11094_v60  ;;  %v3411_v29 = vadd.f32 %v5039_v63, %v3410_v18  ;;  %5066 = vpow2.f32 %v3303_v54  ;;  %v5049_v41 = vpop.eup %5048 }
 0x2db   :  { %v2340_v49 = vadd.f32 %v9330_v39, %v2339_v13  ;;  %v2373_v21 = vadd.f32 %v9337_v12, %v2372_v56  ;;  %v11095_v8 = vsub.f32 %v11053_v30, %v11026_v24  ;;  %5068 = vpow2.f32 %v3305_v15  ;;  %v5051_v27 = vpop.eup %5050 }
 0x2dc   :  { %v11096_v44 = vsub.f32 %v11054_v38, %v11024_v46  ;;  %v3379_v3 = vadd.f32 %v5041_v7, %v3378_v42  ;;  %v3412_v22 = vadd.f32 %v5043_v6, %v3411_v29  ;;  %5070 = vpow2.f32 %v3307_v36  ;;  %v5053_v5 = vpop.eup %5052 }
 0x2dd   :  { %v3311_v59 = vmul.f32 1.442695, %v11095_v8  ;;  %v2341_v32 = vrot.slane %v2340_v49, 4  ;;  %v2374_v11 = vrot.slane %v2373_v21, 4  ;;  %v11097_v39 = vsub.f32 %v11055_v0, %v11026_v24  ;;  %v5055_v38 = vpop.eup %5054 }
 0x2de   :  { %v3313_v14 = vmul.f32 1.442695, %v11096_v44  ;;  %5072 = vpow2.f32 %v3309_v37  ;;  %v11098_v30 = vsub.f32 %v11056_v45, %v11024_v46  ;;  %v3380_v62 = vadd.f32 %v5045_v26, %v3379_v3  ;;  %v5057_v7 = vpop.eup %5056 }
 0x2df   :  { %v3315_v12 = vmul.f32 1.442695, %v11097_v39  ;;  %v3413_v63 = vadd.f32 %v5047_v19, %v3412_v22  ;;  %v2342_v53 = vadd.f32 %v2341_v32, %v2340_v49  ;;  %v2375_v10 = vadd.f32 %v2374_v11, %v2373_v21  ;;  %v5059_v45 = vpop.eup %5058 }
 0x2e0   :  { %v3317_v35 = vmul.f32 1.442695, %v11098_v30  ;;  %5074 = vpow2.f32 %v3311_v59  ;;  %v11099_v31 = vsub.f32 %v11057_v34, %v11026_v24  ;;  %v3321_v0 = vmul.f32 1.442695, %v3233_v4  ;;  %v5061_v56 = vpop.eup %5060 }
 0x2e1   :  { %5076 = vpow2.f32 %v3313_v14  ;;  %v3381_v2 = vadd.f32 %v5049_v41, %v3380_v62  ;;  %v3414_v15 = vadd.f32 %v5051_v27, %v3413_v63  ;;  %v2343_v28 = vrot.slane %v2342_v53, 2  ;;  %v11107_v62 = vld [vmem:[#allocation198_spill] sm:$0xff] }
 0x2e2   :  { %v3319_v54 = vmul.f32 1.442695, %v11099_v31  ;;  %v2376_v18 = vrot.slane %v2375_v10, 2  ;;  %5078 = vpow2.f32 %v3315_v12  ;;  %v11100_v6 = vsub.f32 %v11059_v57, %v11026_v24  ;;  %v5063_v1 = vpop.eup %5062 }
 0x2e3   :  { %5080 = vpow2.f32 %v3317_v35  ;;  %v11101_v34 = vsub.f32 %v11062_v23, %v11024_v46  ;;  %v3382_v36 = vadd.f32 %v5053_v5, %v3381_v2  ;;  %v3415_v26 = vadd.f32 %v5055_v38, %v3414_v15  ;;  %v5065_v29 = vpop.eup %5064  ;;  %v11111_v15 = vld [vmem:[#allocation199_spill] sm:$0xff] }
 0x2e4   :  { %v3323_v13 = vmul.f32 1.442695, %v11100_v6  ;;  %v2344_v4 = vadd.f32 %v2343_v28, %v2342_v53  ;;  %v2377_v60 = vadd.f32 %v2376_v18, %v2375_v10  ;;  %5082 = vpow2.f32 %v3319_v54  ;;  %v5067_v23 = vpop.eup %5066 }
 0x2e5   :  { %v3325_v17 = vmul.f32 1.442695, %v11101_v34  ;;  %v11102_v37 = vsub.f32 %v11063_v20, %v11026_v24  ;;  %5084 = vpow2.f32 %v3321_v0  ;;  %v3329_v57 = vmul.f32 1.442695, %v3237_v25  ;;  %v5069_v44 = vpop.eup %5068  ;;  %v11110_v0 = vld [vmem:[#allocation213_spill] sm:$0xff] }
 0x2e6   :  { %v3383_v19 = vadd.f32 %v5057_v7, %v3382_v36  ;;  %v3416_v49 = vadd.f32 %v5059_v45, %v3415_v26  ;;  %v2345_v21 = vrot.slane %v2344_v4, 1  ;;  %v2378_v8 = vrot.slane %v2377_v60, 1  ;;  %v5071_v40 = vpop.eup %5070 }
 0x2e7   :  { %v3327_v42 = vmul.f32 1.442695, %v11102_v37  ;;  %5086 = vpow2.f32 %v3323_v13  ;;  %v11103_v59 = vsub.f32 %v11067_v33, %v11026_v24  ;;  %v11104_v20 = vsub.f32 %v11070_v61, %v11024_v46 }
 0x2e8   :  { %5088 = vpow2.f32 %v3325_v17  ;;  %v3384_v3 = vadd.f32 %v5061_v56, %v3383_v19  ;;  %v3417_v22 = vadd.f32 %v5063_v1, %v3416_v49  ;;  %v2346_v25 = vadd.f32 %v2345_v21, %v2344_v4  ;;  %v5073_v39 = vpop.eup %5072 }
 0x2e9   :  { %v3331_v41 = vmul.f32 1.442695, %v11103_v59  ;;  %v3333_v14 = vmul.f32 1.442695, %v11104_v20  ;;  %v2379_v27 = vadd.f32 %v2378_v8, %v2377_v60  ;;  %5090 = vpow2.f32 %v3327_v42 }
 0x2ea   :  { %v11105_v32 = vsub.f32 %v11071_v58, %v11026_v24  ;;  %5092 = vpow2.f32 %v3329_v57  ;;  %v11106_v33 = vsub.f32 %v11074_v48, %v11024_v46  ;;  %v3385_v5 = vadd.f32 %v5065_v29, %v3384_v3  ;;  %v5075_v61 = vpop.eup %5074 }
 0x2eb   :  { %v3418_v30 = vadd.f32 %v5067_v23, %v3417_v22  ;;  %v2382_v35 = vcombine.low %v2346_v25, %v2379_v27  ;;  %v3247_v63 = vsub.f32 %v11107_v62, %v11024_v46  ;;  %5094 = vpow2.f32 %v3331_v41  ;;  %v5077_v58 = vpop.eup %5076  ;;  %v11116_v23 = vld [vmem:[#allocation206_spill] sm:$0xff] }
 0x2ec   :  { %v3335_v11 = vmul.f32 1.442695, %v11105_v32  ;;  %v3337_v12 = vmul.f32 1.442695, %v11106_v33  ;;  %v11108_v38 = vsub.f32 %v11075_v52, %v11026_v24  ;;  %5096 = vpow2.f32 %v3333_v14  ;;  %v5079_v7 = vpop.eup %5078 }
 0x2ed   :  { %v11109_v10 = vsub.f32 %v11078_v50, %v11024_v46  ;;  %v3386_v48 = vadd.f32 %v5069_v44, %v3385_v5  ;;  %v3419_v54 = vadd.f32 %v5071_v40, %v3418_v30  ;;  %v2389_v2 = vrot.slane %v2382_v35, %v11110_v0  ;;  %v5081_v18 = vpop.eup %5080  ;;  %v11118_v44 = vld [vmem:[#allocation208_spill] sm:$0xff] }
 0x2ee   :  { %v3339_v53 = vmul.f32 1.442695, %v11108_v38  ;;  %v3248_v45 = vsub.f32 %v11111_v15, %v11026_v24  ;;  %5098 = vpow2.f32 %v3335_v11  ;;  %v11112_v28 = vsub.f32 %v11079_v43, %v11026_v24  ;;  %v5083_v34 = vpop.eup %5082 }
 0x2ef   :  { %v3341_v31 = vmul.f32 1.442695, %v11109_v10  ;;  %5100 = vpow2.f32 %v3337_v12  ;;  %v11113_v6 = vsub.f32 %v11082_v9, %v11024_v46  ;;  %v3387_v13 = vadd.f32 %v5073_v39, %v3386_v48  ;;  %v5085_v43 = vpop.eup %5084  ;;  %v11115_v9 = vld [vmem:[#allocation141_spill] sm:$0xff] }
 0x2f0   :  { %v3343_v52 = vmul.f32 1.442695, %v11112_v28  ;;  %v3420_v56 = vadd.f32 %v5075_v61, %v3419_v54  ;;  %v2396_v17 = vrot.slane %v2389_v2, %v11110_v0  ;;  %v3251_v36 = vsub.f32 -1e+30, %v11024_v46 }
 0x2f1   :  { %v3345_v50 = vmul.f32 1.442695, %v11113_v6  ;;  %5102 = vpow2.f32 %v3339_v53  ;;  %v11114_v26 = vsub.f32 %v11083_v47, %v11026_v24  ;;  %v3349_v4 = vmul.f32 1.442695, %v3247_v63  ;;  %v5087_v42 = vpop.eup %5086 }
 0x2f2   :  { %5104 = vpow2.f32 %v3341_v31  ;;  %v3388_v60 = vadd.f32 %v5077_v58, %v3387_v13  ;;  %v3421_v37 = vadd.f32 %v5079_v7, %v3420_v56  ;;  %v2398_v29 = vadd.f32 %v2396_v17, %v11115_v9  ;;  %v5089_v49 = vpop.eup %5088 }
 0x2f3   :  { %v3347_v1 = vmul.f32 1.442695, %v11114_v26  ;;  %v3252_v57 = vsub.f32 -1e+30, %v11026_v24  ;;  %5106 = vpow2.f32 %v3343_v52  ;;  %v3351_v19 = vmul.f32 1.442695, %v3248_v45  ;;  %v5091_v41 = vpop.eup %5090 }
 0x2f4   :  { %v11117_v21 = vsub.f32 %v11116_v23, %v11024_v46  ;;  %5108 = vpow2.f32 %v3345_v50  ;;  %v3389_v47 = vadd.f32 %v5081_v18, %v3388_v60  ;;  %v3422_v59 = vadd.f32 %v5083_v34, %v3421_v37  ;;  %2399 = vst.msk [vmem:[#allocation2 + $0x2] ss:$8 sm:$0x3] %vm7103_vm12, %v2398_v29  ;;  %v5093_v22 = vpop.eup %5092 }
 0x2f5   :  { %v11119_v20 = vsub.f32 %v11118_v44, %v11026_v24  ;;  %5110 = vpow2.f32 %v3347_v1  ;;  %v3357_v40 = vmul.f32 1.442695, %v3251_v36  ;;  %v5095_v32 = vpop.eup %5094  ;;  %v3359_v46 = vmul.f32 1.442695, %v3252_v57 }
 0x2f6   :  { %v3353_v8 = vmul.f32 1.442695, %v11117_v21  ;;  %5112 = vpow2.f32 %v3349_v4  ;;  %v3390_v25 = vadd.f32 %v5085_v43, %v3389_v47  ;;  %v3423_v27 = vadd.f32 %v5087_v42, %v3422_v59  ;;  %v5097_v11 = vpop.eup %5096  ;;  %v11121_v43 = vld [vmem:[#allocation218_spill] sm:$0xff]  ;;  %v11122_v4 = vld [vmem:[#allocation220_spill] sm:$0xff] }
 0x2f7   :  { %v3355_v14 = vmul.f32 1.442695, %v11119_v20  ;;  %5114 = vpow2.f32 %v3351_v19  ;;  %v11123_v60 = vsub.f32 %v11121_v43, %v11122_v4 }
 0x2f8   :  { %5116 = vpow2.f32 %v3353_v8  ;;  %v3391_v39 = vadd.f32 %v5089_v49, %v3390_v25  ;;  %v3424_v33 = vadd.f32 %v5091_v41, %v3423_v27  ;;  %v5099_v12 = vpop.eup %5098 }
 0x2f9   :  { %5118 = vpow2.f32 %v3355_v14  ;;  %v5101_v24 = vpop.eup %5100  ;;  %v3372_v37 = vmul.f32 1.442695, %v11123_v60 }
 0x2fa   :  { %5120 = vpow2.f32 %v3357_v40  ;;  %v3392_v5 = vadd.f32 %v5093_v22, %v3391_v39  ;;  %v3425_v30 = vadd.f32 %v5095_v32, %v3424_v33  ;;  %v3370_v22 = vld [vmem:[#allocation2 + $0x3] ss:$8 sm:$0x3] }
 0x2fb   :  { %v5103_v61 = vpop.eup %5102  ;;  %5122 = vpow2.f32 %v3359_v46 }
 0x2fc   :  { %v5105_v35 = vpop.eup %5104  ;;  %v3393_v62 = vadd.f32 %v5097_v11, %v3392_v5  ;;  %v3426_v63 = vadd.f32 %v5099_v12, %v3425_v30  ;;  %5124 = vpow2.f32 %v3372_v37  ;;  %v4166_v11 = vld [vmem:[#allocation2 + $0x2] ss:$8 sm:$0x3]  ;;  %v4170_v30 = vld [vmem:[#allocation2 + $0x1] ss:$8 sm:$0x3] }
 0x2fd   :  { %v5107_v38 = vpop.eup %5106  ;;  %5126 = vlog2.f32 %v4166_v11 }
 0x2fe   :  { %v5109_v53 = vpop.eup %5108  ;;  %v3394_v58 = vadd.f32 %v5101_v24, %v3393_v62  ;;  %v3427_v10 = vadd.f32 %v5103_v61, %v3426_v63  ;;  %v4165_v24 = vld [vmem:[#allocation2] ss:$8 sm:$0x3] }
 0x2ff   :  { %v5111_v31 = vpop.eup %5110 }
 0x300   :  { %v5113_v48 = vpop.eup %5112  ;;  %v3395_v54 = vadd.f32 %v5105_v35, %v3394_v58  ;;  %v3428_v7 = vadd.f32 %v5107_v38, %v3427_v10 }
 0x301   :  { %v5115_v2 = vpop.eup %5114 }
 0x302   :  { %v5117_v15 = vpop.eup %5116  ;;  %v3396_v45 = vadd.f32 %v5109_v53, %v3395_v54  ;;  %v3429_v28 = vadd.f32 %v5111_v31, %v3428_v7 }
 0x303   :  { %v5119_v52 = vpop.eup %5118 }
 0x304   :  { %v5121_v18 = vpop.eup %5120  ;;  %v3397_v6 = vadd.f32 %v5113_v48, %v3396_v45  ;;  %v3430_v50 = vadd.f32 %v5115_v2, %v3429_v28 }
 0x305   :  { %v5123_v13 = vpop.eup %5122 }
 0x306   :  { %v3398_v56 = vadd.f32 %v5117_v15, %v3397_v6  ;;  %v3431_v34 = vadd.f32 %v5119_v52, %v3430_v50  ;;  %v5125_v14 = vpop.eup %5124 }
 0x307   :  { %v3374_v25 = vmul.f32 %v5125_v14, %v3370_v22  ;;  %v5127_v33 = vpop.eup %5126 }
 0x308   :  { %v3399_v17 = vadd.f32 %v5121_v18, %v3398_v56  ;;  %v3432_v36 = vadd.f32 %v5123_v13, %v3431_v34  ;;  %v4168_v12 = vmul.f32 0.6931472, %v5127_v33 }
 0x30a   :  { %v3400_v26 = vadd.f32 %v5121_v18, %v3399_v17  ;;  %v3433_v1 = vadd.f32 %v5123_v13, %v3432_v36  ;;  %v4169_v61 = vadd.f32 %v4168_v12, %v4165_v24 }
 0x30c   :  { %v3401_v42 = vadd.f32 %v5121_v18, %v3400_v26  ;;  %v3434_v9 = vadd.f32 %v5123_v13, %v3433_v1 }
 0x30e   :  { %v3402_v29 = vrot.slane %v3401_v42, 4  ;;  %v3435_v57 = vrot.slane %v3434_v9, 4 }
 0x310   :  { %v3403_v19 = vadd.f32 %v3402_v29, %v3401_v42  ;;  %v3436_v49 = vadd.f32 %v3435_v57, %v3434_v9 }
 0x312   :  { %v3404_v23 = vrot.slane %v3403_v19, 2  ;;  %v3437_v21 = vrot.slane %v3436_v49, 2 }
 0x314   :  { %v3405_v8 = vadd.f32 %v3404_v23, %v3403_v19  ;;  %v3438_v47 = vadd.f32 %v3437_v21, %v3436_v49 }
 0x316   :  { %v3406_v59 = vrot.slane %v3405_v8, 1  ;;  %v3439_v41 = vrot.slane %v3438_v47, 1 }
 0x318   :  { %v3407_v44 = vadd.f32 %v3406_v59, %v3405_v8  ;;  %v3440_v20 = vadd.f32 %v3439_v41, %v3438_v47 }
 0x31a   :  { %v3443_v40 = vcombine.low %v3407_v44, %v3440_v20 }
 0x31c   :  { %v3450_v27 = vrot.slane %v3443_v40, %v11110_v0 }
 0x31e   :  { %v3457_v32 = vrot.slane %v3450_v27, %v11110_v0 }
 0x320   :  { %v3459_v46 = vadd.f32 %v3457_v32, %v3374_v25 }
 0x322   :  { %3460 = vst.msk [vmem:[#allocation2 + $0x3] ss:$8 sm:$0x3] %vm7103_vm12, %v3459_v46 }
 0x329   :  { %v4171_v39 = vld [vmem:[#allocation2 + $0x3] ss:$8 sm:$0x3] }
 0x32a   :  { %5128 = vlog2.f32 %v4171_v39 }
 0x333   :  { %v4151_v17 = vpop.xlane.xlu1 %4150  ;;  %v4027_v36 = vpop.xlane.xlu0 %4026 }
 0x334   :  { %v5129_v5 = vpop.eup %5128  ;;  %v4152_v26 = vrot.slane %v4151_v17, 4  ;;  %v4028_v1 = vrot.slane %v4027_v36, 4 }
 0x335   :  { %v4173_v35 = vmul.f32 0.6931472, %v5129_v5 }
 0x336   :  { %v4153_v43 = vadd.f32 %v4152_v26, %v4151_v17  ;;  %v4029_v4 = vadd.f32 %v4028_v1, %v4027_v36 }
 0x337   :  { %v4174_v62 = vadd.f32 %v4173_v35, %v4170_v30  ;;  %v4239_v57 = vpop.xlane.xlu1 %4238 }
 0x338   :  { %v4154_v60 = vrot.slane %v4153_v43, 2  ;;  %v4030_v37 = vrot.slane %v4029_v4, 2  ;;  %v4240_v19 = vrot.slane %v4239_v57, 4 }
 0x339   :  { %v4175_v63 = vadd.f32 %v4174_v62, %v4169_v61 }
 0x33a   :  { %v4031_v55 = vadd.f32 %v4030_v37, %v4029_v4  ;;  %v4155_v42 = vadd.f32 %v4154_v60, %v4153_v43  ;;  %v4241_v49 = vadd.f32 %v4240_v19, %v4239_v57 }
 0x33b   :  { %v4177_v38 = vand.u32 2147483647, %v4175_v63  ;;  %v4176_v2 = vmax.f32 %v4175_v63, 0.0 }
 0x33c   :  { %v4032_v9 = vrot.slane %v4031_v55, 1  ;;  %v4242_v23 = vrot.slane %v4241_v49, 2 }
 0x33d   :  { %v4178_v53 = vsub.f32 0.0, %v4177_v38 }
 0x33e   :  { %v4033_v29 = vadd.f32 %v4032_v9, %v4031_v55  ;;  %v4243_v47 = vadd.f32 %v4242_v23, %v4241_v49 }
 0x33f   :  { %v4179_v0 = vmul.f32 1.442695, %v4178_v53 }
 0x340   :  { %4461 = vpush %v4033_v29  ;;  %v4244_v44 = vrot.slane %v4243_v47, 1 }
 0x341   :  { %5130 = vpow2.f32 %v4179_v0 }
 0x342   :  { %v4245_v22 = vadd.f32 %v4244_v44, %v4243_v47 }
 0x34b   :  { %v5131_v58 = vpop.eup %5130 }
 0x34c   :  { %v4181_v10 = vadd.f32 1.0, %v5131_v58  ;;  %v4184_v3 = vmul.f32 -0.5, %v5131_v58  ;;  %v4187_v48 = vand.u32 2147483647, %v5131_v58 }
 0x34e   :  { %5132 = vlog2.f32 %v4181_v10  ;;  %v4185_v31 = vadd.f32 1.0, %v4184_v3  ;;  %vm4188_vm12 = vcmp.lt.f32.partialorder %v4187_v48, 0.0004427343 }
 0x350   :  { %v4186_v54 = vmul.f32 %v5131_v58, %v4185_v31 }
 0x358   :  { %v5133_v7 = vpop.eup %5132 }
 0x359   :  { %v4183_v15 = vmul.f32 0.6931472, %v5133_v7 }
 0x35b   :  { %v4189_v45 = vsel %vm4188_vm12, %v4186_v54, %v4183_v15 }
 0x35c   :  { %v4190_v28 = vadd.f32 %v4189_v45, %v4176_v2 }
 0x35e   :  { %v4191_v52 = vmul.f32 0.041666668, %v4190_v28 }
 0x360   :  { %v4197_v18 = vsel %vm8795_vm11, %v4191_v52, 0.0 }
 0x361   :  { %v4202_v6 = vrot.slane %v4197_v18, %v10932_v51  ;;  %v4206_v50 = vrot.slane %v4197_v18, %v10933_v16  ;;  %v4156_v51 = vrot.slane %v4155_v42, 1 }
 0x363   :  { %v4210_v13 = vsel %vm4209_vm3, %v4202_v6, 0.0  ;;  %v4211_v56 = vsel %vm4209_vm3, %v4206_v50, 0.0  ;;  %v4157_v16 = vadd.f32 %v4156_v51, %v4155_v42 }
 0x364   :  { %v4212_v34 = vadd.f32 %v4211_v56, %v4210_v13 }
 0x365   :  { %4463 = vpush %v4157_v16 }
 0x366   :  { %4213 = vadd.xlane.f32.xlu0 %v4212_v34 }
 0x371   :  { %s4462_s1 = spop %4461 }
 0x396   :  { %s4464_s13 = spop %4463 }
 0x397   :  { %v4253_v25 = vstv %s4464_s13 }
 0x3f3   :  { %v4214_v21 = vpop.xlane.xlu0 %4213 }
 0x3f4   :  { %v4215_v8 = vrot.slane %v4214_v21, 4 }
 0x3f6   :  { %v4216_v59 = vadd.f32 %v4215_v8, %v4214_v21 }
 0x3f8   :  { %v4217_v41 = vrot.slane %v4216_v59, 2 }
 0x3fa   :  { %v4218_v20 = vadd.f32 %v4217_v41, %v4216_v59 }
 0x3fc   :  { %v4219_v14 = vrot.slane %v4218_v20, 1 }
 0x3fe   :  { %v4220_v40 = vadd.f32 %v4219_v14, %v4218_v20 }
 0x400   :  { %4465 = vpush %v4220_v40 }
 0x401   :  { %4467 = vpush %v4245_v22 }
 0x431   :  { %s4466_s14 = spop %4465 }
 0x432   :  { %s4468_s15 = spop %4467 }
 0x433   :  { %v4247_v27 = vstv %s4468_s15 }
 0x434   :  { %5134 = vrcp.f32 %v4247_v27 }
 0x435   :  { %5136 = vrcp.f32 %v4253_v25 }
 0x43e   :  { %v5135_v32 = vpop.eup %5134 }
 0x43f   :  { %v5137_v46 = vpop.eup %5136  ;;  %4469 = vpush %v5135_v32 }
 0x440   :  { %4471 = vpush %v5137_v46 }
 0x470   :  { %s4470_s16 = spop %4469 }
 0x471   :  { %s4250_s17 = smul.f32 %s4470_s16, %s4466_s14  ;;  %s4472_s18 = spop %4471 }
 0x472   :  { %s4256_s19 = smul.f32 %s4472_s18, %s4462_s1 }
 0x474   :  { %s4257_s20 = sadd.f32 %s4256_s19, %s4250_s17 }
 0x476   :  { %s4258_s21 = smul.f32 0.5, %s4257_s20 }
 0x478   :  { %4260 = sst [smem:[#allocation4]] %s4258_s21 }
 0x479   :  { %5147 = shalt.err (!%p5144_p2)
}
 0x47a   :  { %s5153_s29 = smov [#allocation4]  }
 0x47b   :  { %4268 = dma.smem_to_hbm %s5153_s29, 16, %s9538_s3, [#allocation5]  }
 0x47c   :  { %5148 = dma.done.wait [#allocation5], 16  }
 0x47d   :  { %5149 = vsyncadd [#allocation5], 4294967280 }
 0x47e   :  { %4272 = sfence }
 0x47f   :  { %4273 = vsyncpa [#allocation5], 1 }

</bundles_post_ra>
